<compile_context>
chip_gen: v6e
topology: v6e:2x2x1
jax: 0.10.0
libtpu: 0.0.40
codegen_flags: <defaults>
</compile_context>

<pallas_src>
import jax
import jax.numpy as jnp
from jax.experimental import pallas as pl
from jax.experimental.pallas import tpu as pltpu

BN_EPS = 1e-5
LANE = 128

# Static per-layer conv config (cin/cout known statically so lane padding can be
# sliced off with static indices under jit).
CONV_CFG = [
    dict(cin=1,   cout=64,  kh=5, kw=5, stride=3, pad=0, pool=3),  # Conv2d(1,64,5,stride=3)+MaxPool(3,1)
    dict(cin=64,  cout=128, kh=3, kw=3, stride=1, pad=1, pool=2),  # Conv2d(64,128,3,pad=1)+MaxPool(2,1)
    dict(cin=128, cout=256, kh=3, kw=3, stride=1, pad=1, pool=2),  # Conv2d(128,256,3,pad=1)+MaxPool(2,1)
    dict(cin=256, cout=256, kh=3, kw=3, stride=1, pad=1, pool=2),  # Conv2d(256,256,3,pad=1)+MaxPool(2,1)
    dict(cin=256, cout=512, kh=3, kw=3, stride=1, pad=1, pool=0),  # Conv2d(256,512,3,pad=1)  (fused in tail)
]


# ----------------------------------------------------------------------------
# Pallas kernels
# ----------------------------------------------------------------------------
def _conv_kernel(p_ref, w_ref, b_ref, o_ref):
    # out = relu(patches @ W_bn_folded + bias); bf16 MXU inputs, f32 accumulate,
    # bf16 store (lane-dense N).
    acc = jnp.dot(p_ref[...], w_ref[...], preferred_element_type=jnp.float32)
    o_ref[...] = jnp.maximum(acc + b_ref[...], 0.0).astype(o_ref.dtype)


def conv_matmul(patches, w, b):
    """patches: (n*oh*ow, K) bf16; w: (K, N) bf16 BN-folded; b: (1, N) f32."""
    M, K = patches.shape
    N = w.shape[1]
    return pl.pallas_call(
        _conv_kernel,
        out_shape=jax.ShapeDtypeStruct((M, N), jnp.bfloat16),
        grid=(1,),
        in_specs=[
            pl.BlockSpec((M, K), lambda i: (0, 0)),   # whole batch-folded patch slab
            pl.BlockSpec((K, N), lambda i: (0, 0)),   # BN-folded weights (VMEM resident)
            pl.BlockSpec((1, N), lambda i: (0, 0)),   # folded bias
        ],
        out_specs=pl.BlockSpec((M, N), lambda i: (0, 0)),
        compiler_params=pltpu.CompilerParams(
            dimension_semantics=("arbitrary",),
            # fuse the im2col slices/concat into operand production (no HBM slab)
            allow_input_fusion=[True, False, False],
        ),
    )(patches, w, b)


def _tail_kernel(p5_ref, w5_ref, b5_ref, avg_ref, w1_ref, b1_ref, w2_ref, b2_ref,
                 o_ref):
    # conv5 (+BN+ReLU) + AdaptiveAvgPool2d(1) + Flatten + Linear + BN1d + ReLU
    # + Dropout(eval) + Linear, all in one kernel.
    h5 = jnp.dot(p5_ref[...], w5_ref[...], preferred_element_type=jnp.float32)
    h5 = jnp.maximum(h5 + b5_ref[...], 0.0)                       # (n*hw, 512) f32
    # Adaptive average pool expressed as a tiny (n, n*hw) averaging matmul.
    feat = jnp.dot(avg_ref[...], h5, preferred_element_type=jnp.float32)  # (n, 512)
    h = jnp.dot(feat.astype(jnp.bfloat16), w1_ref[...],
                preferred_element_type=jnp.float32)               # (n, 1024)
    h = jnp.maximum(h + b1_ref[...], 0.0)
    # TODO(synk): Dropout(0.5) is stochastic in train mode; eval-mode identity used here.
    logits = jnp.dot(h.astype(jnp.bfloat16), w2_ref[...],
                     preferred_element_type=jnp.float32) + b2_ref[...]
    o_ref[...] = logits                                            # (n, 128) lane-dense


def classifier_tail(p5, w5, b5, avg, w1, b1, w2, b2):
    """p5: (n*hw, 9*256) bf16 conv5 patches -> (n, 128) padded logits (f32)."""
    n = avg.shape[0]
    N2 = w2.shape[1]
    full = lambda shp: pl.BlockSpec(shp, lambda i: (0,) * len(shp))
    return pl.pallas_call(
        _tail_kernel,
        out_shape=jax.ShapeDtypeStruct((n, N2), jnp.float32),
        grid=(1,),
        in_specs=[full(p5.shape), full(w5.shape), full(b5.shape), full(avg.shape),
                  full(w1.shape), full(b1.shape), full(w2.shape), full(b2.shape)],
        out_specs=pl.BlockSpec((n, N2), lambda i: (0, 0)),
        compiler_params=pltpu.CompilerParams(
            dimension_semantics=("arbitrary",),
            allow_input_fusion=[True] + [False] * 7,
        ),
    )(p5, w5, b5, avg, w1, b1, w2, b2)


# ----------------------------------------------------------------------------
# Plain-JAX glue (fused by XLA): im2col patches and H-only MaxPool
# ----------------------------------------------------------------------------
def im2col(x, kh, kw, stride, pad):
    """NHWC -> batch-folded (n*oh*ow, kh*kw*c) patch matrix (tap order kh,kw,cin)."""
    if pad > 0:
        x = jnp.pad(x, ((0, 0), (pad, pad), (pad, pad), (0, 0)))
    n, h, w, c = x.shape
    oh = (h - kh) // stride + 1
    ow = (w - kw) // stride + 1
    cols = [x[:, i:i + stride * oh:stride, j:j + stride * ow:stride, :]
            for i in range(kh) for j in range(kw)]
    patches = jnp.concatenate(cols, axis=-1)           # (n, oh, ow, kh*kw*c)
    return patches.reshape(n * oh * ow, kh * kw * c), oh, ow


def maxpool_h(x, k):
    """MaxPool2d((k,1),(k,1)) in NHWC, floor mode (drops trailing rows)."""
    n, h, w, c = x.shape
    hp = h // k
    return jnp.max(x[:, :hp * k].reshape(n, hp, k, w, c), axis=2)


# ----------------------------------------------------------------------------
# Parameters: synthetic PyTorch-layout init + one-time BN folding / repacking
# ----------------------------------------------------------------------------
def init_params(key, n_classes=4):
    conv_shapes = [(64, 1, 5, 5), (128, 64, 3, 3), (256, 128, 3, 3),
                   (256, 256, 3, 3), (512, 256, 3, 3)]
    keys = iter(jax.random.split(key, 64))
    nrm = lambda k, shp, s: s * jax.random.normal(k, shp, jnp.float32)
    p = {}
    for idx, shp in enumerate(conv_shapes, start=1):
        cout = shp[0]
        fan_in = shp[1] * shp[2] * shp[3]
        p[f"conv{idx}_w"] = nrm(next(keys), shp, 1.0 / (fan_in ** 0.5))
        p[f"conv{idx}_b"] = nrm(next(keys), (cout,), 0.05)
        p[f"bn{idx}_gamma"] = 1.0 + nrm(next(keys), (cout,), 0.1)
        p[f"bn{idx}_beta"] = nrm(next(keys), (cout,), 0.1)
        p[f"bn{idx}_mean"] = nrm(next(keys), (cout,), 0.1)
        p[f"bn{idx}_var"] = 0.5 + jax.random.uniform(next(keys), (cout,), jnp.float32)
    p["fc1_w"] = nrm(next(keys), (1024, 512), 1.0 / (512 ** 0.5))
    p["fc1_b"] = nrm(next(keys), (1024,), 0.05)
    p["bnf_gamma"] = 1.0 + nrm(next(keys), (1024,), 0.1)
    p["bnf_beta"] = nrm(next(keys), (1024,), 0.1)
    p["bnf_mean"] = nrm(next(keys), (1024,), 0.1)
    p["bnf_var"] = 0.5 + jax.random.uniform(next(keys), (1024,), jnp.float32)
    p["fc2_w"] = nrm(next(keys), (n_classes, 1024), 1.0 / (1024 ** 0.5))
    p["fc2_b"] = nrm(next(keys), (n_classes,), 0.05)
    return p


def prepare_params(p):
    """Fold BN (eval running stats) into weights/bias once; pre-transpose to
    (K, N) bf16 matmul layout; zero-pad narrow output dims to 128 lanes."""
    convs = []
    for idx, cfg in enumerate(CONV_CFG, start=1):
        w = p[f"conv{idx}_w"]                                    # (cout,cin,kh,kw)
        cout = cfg["cout"]
        s = p[f"bn{idx}_gamma"] / jnp.sqrt(p[f"bn{idx}_var"] + BN_EPS)
        bias = (p[f"conv{idx}_b"] - p[f"bn{idx}_mean"]) * s + p[f"bn{idx}_beta"]
        wm = jnp.transpose(w, (2, 3, 1, 0)).reshape(-1, cout) * s[None, :]
        if cout < LANE:                                          # lane-dense store
            wm = jnp.pad(wm, ((0, 0), (0, LANE - cout)))
            bias = jnp.pad(bias, (0, LANE - cout))
        convs.append(dict(w=wm.astype(jnp.bfloat16),
                          b=bias.reshape(1, -1).astype(jnp.float32)))
    s1 = p["bnf_gamma"] / jnp.sqrt(p["bnf_var"] + BN_EPS)
    b1 = (p["fc1_b"] - p["bnf_mean"]) * s1 + p["bnf_beta"]
    w2 = p["fc2_w"].T                                            # (1024, ncls)
    b2 = p["fc2_b"]
    ncls = w2.shape[1]
    if ncls < LANE:                                              # lane-dense logits
        w2 = jnp.pad(w2, ((0, 0), (0, LANE - ncls)))
        b2 = jnp.pad(b2, (0, LANE - ncls))
    return dict(
        convs=convs,
        w1=(p["fc1_w"].T * s1[None, :]).astype(jnp.bfloat16),    # (512, 1024)
        b1=b1.reshape(1, -1).astype(jnp.float32),
        w2=w2.astype(jnp.bfloat16),                              # (1024, 128)
        b2=b2.reshape(1, -1).astype(jnp.float32),
    )


# ----------------------------------------------------------------------------
# Forward pass (matches ToneCNN.forward, eval mode)
# ----------------------------------------------------------------------------
def tone_cnn_forward(x_nchw, prep, n_classes=4):
    x = jnp.transpose(x_nchw, (0, 2, 3, 1)).astype(jnp.bfloat16)  # NCHW -> NHWC bf16
    n = x.shape[0]

    # conv1..conv4: each is one single-block Pallas matmul kernel (batch in M).
    for cfg, lyr in zip(CONV_CFG[:4], prep["convs"][:4]):
        patches, oh, ow = im2col(x, cfg["kh"], cfg["kw"], cfg["stride"], cfg["pad"])
        out = conv_matmul(patches, lyr["w"], lyr["b"])            # (n*oh*ow, N) bf16
        x = out.reshape(n, oh, ow, out.shape[-1])[..., :cfg["cout"]]
        if cfg["pool"] > 1:
            x = maxpool_h(x, cfg["pool"])

    # conv5 + adaptive avg pool + classifier fused into one tail kernel.
    cfg5 = CONV_CFG[4]
    patches5, oh, ow = im2col(x, cfg5["kh"], cfg5["kw"], cfg5["stride"], cfg5["pad"])
    hw = oh * ow
    avg = jnp.repeat(jnp.eye(n, dtype=jnp.float32), hw, axis=1) / float(hw)  # (n, n*hw)
    logits = classifier_tail(patches5, prep["convs"][4]["w"], prep["convs"][4]["b"],
                             avg, prep["w1"], prep["b1"], prep["w2"], prep["b2"])
    return logits[:, :n_classes]


# ----------------------------------------------------------------------------
# Pure-JAX f32 reference (un-folded BN) for a numerical sanity check
# ----------------------------------------------------------------------------
def reference_forward(x_nchw, p, n_classes=4):
    hi = jax.lax.Precision.HIGHEST
    x = jnp.transpose(x_nchw, (0, 2, 3, 1)).astype(jnp.float32)
    n = x.shape[0]
    for idx, cfg in enumerate(CONV_CFG, start=1):
        patches, oh, ow = im2col(x, cfg["kh"], cfg["kw"], cfg["stride"], cfg["pad"])
        w = p[f"conv{idx}_w"]
        wm = jnp.transpose(w, (2, 3, 1, 0)).reshape(-1, w.shape[0])
        y = jnp.dot(patches, wm, precision=hi) + p[f"conv{idx}_b"]
        y = ((y - p[f"bn{idx}_mean"]) / jnp.sqrt(p[f"bn{idx}_var"] + BN_EPS)
             * p[f"bn{idx}_gamma"] + p[f"bn{idx}_beta"])
        y = jnp.maximum(y, 0.0)
        x = y.reshape(n, oh, ow, -1)
        if cfg["pool"] > 1:
            x = maxpool_h(x, cfg["pool"])
    feat = jnp.mean(x, axis=(1, 2))                               # (n, 512)
    h = jnp.dot(feat, p["fc1_w"].T, precision=hi) + p["fc1_b"]
    h = ((h - p["bnf_mean"]) / jnp.sqrt(p["bnf_var"] + BN_EPS)
         * p["bnf_gamma"] + p["bnf_beta"])
    h = jnp.maximum(h, 0.0)
    return jnp.dot(h, p["fc2_w"].T, precision=hi) + p["fc2_b"]


if __name__ == "__main__":
    key = jax.random.PRNGKey(0)
    pkey, xkey = jax.random.split(key)
    params = init_params(pkey, n_classes=4)
    prep = prepare_params(params)                 # one-time BN fold / repack / pad

    # NCHW input, 1 channel, tall spectrogram-like shape so all H-pools survive.
    x = jax.random.normal(xkey, (2, 1, 128, 32), jnp.float32)

    fwd = jax.jit(tone_cnn_forward)
    logits = fwd(x, prep)
    jax.block_until_ready(logits)

    assert logits.shape == (2, 4), logits.shape
    assert bool(jnp.all(jnp.isfinite(logits)))

    # bf16 MXU inputs => expect ~1e-2-level relative error versus f32 reference.
    ref = jax.jit(reference_forward)(x, params)
    jax.block_until_ready(ref)
    scale = max(1.0, float(jnp.max(jnp.abs(ref))))
    err = float(jnp.max(jnp.abs(ref - logits)))
    assert err <= 0.1 * scale, (err, scale)

    print("KERNEL_OK")
</pallas_src>

<mosaic_0001>
module attributes {stable_mosaic.version = 11 : i64} {
  func.func @_conv_kernel(%arg0: i32, %arg1: memref<840x25xbf16, #tpu.memory_space<vmem>>, %arg2: memref<25x128xbf16, #tpu.memory_space<vmem>>, %arg3: memref<1x128xf32, #tpu.memory_space<vmem>>, %arg4: memref<840x128xbf16, #tpu.memory_space<vmem>>) attributes {dimension_semantics = [#tpu.dimension_semantics<arbitrary>], iteration_bounds = array<i64: 1>, scalar_prefetch = 0 : i64, scratch_operands = 0 : i64, tpu.core_type = #tpu.core_type<tc>, window_params = [{pipeline_mode = #tpu.pipeline_mode<synchronous>, transform_indices = @transform_0, window_bounds = array<i64: 840, 25>}, {pipeline_mode = #tpu.pipeline_mode<synchronous>, transform_indices = @transform_1, window_bounds = array<i64: 25, 128>}, {pipeline_mode = #tpu.pipeline_mode<synchronous>, transform_indices = @transform_2, window_bounds = array<i64: 1, 128>}, {pipeline_mode = #tpu.pipeline_mode<synchronous>, transform_indices = @transform_3, window_bounds = array<i64: 840, 128>}]} {
    %c0 = arith.constant 0 : index
    %c0_0 = arith.constant 0 : index
    %0 = vector.load %arg1[%c0, %c0_0] : memref<840x25xbf16, #tpu.memory_space<vmem>>, vector<840x25xbf16>
    %c0_1 = arith.constant 0 : index
    %c0_2 = arith.constant 0 : index
    %1 = vector.load %arg2[%c0_1, %c0_2] : memref<25x128xbf16, #tpu.memory_space<vmem>>, vector<25x128xbf16>
    %cst = arith.constant dense<0.000000e+00> : vector<840x128xf32>
    %2 = tpu.matmul %0, %1, %cst {dimension_numbers = #tpu.dot_dimension_numbers<[1], [0], [0], [1], [0, 0, 1, 1], [], []>} : vector<840x25xbf16>, vector<25x128xbf16>, vector<840x128xf32> -> vector<840x128xf32>
    %c0_3 = arith.constant 0 : index
    %c0_4 = arith.constant 0 : index
    %3 = vector.load %arg3[%c0_3, %c0_4] : memref<1x128xf32, #tpu.memory_space<vmem>>, vector<1x128xf32>
    %4 = vector.broadcast %3 : vector<1x128xf32> to vector<840x128xf32>
    %5 = arith.addf %2, %4 : vector<840x128xf32>
    %cst_5 = arith.constant 0.000000e+00 : f32
    %6 = vector.broadcast %cst_5 : f32 to vector<840x128xf32>
    %7 = arith.maximumf %5, %6 : vector<840x128xf32>
    %8 = arith.truncf %7 : vector<840x128xf32> to vector<840x128xbf16>
    %c0_6 = arith.constant 0 : index
    %c0_7 = arith.constant 0 : index
    %9 = vector.load %arg4[%c0_6, %c0_7] : memref<840x128xbf16, #tpu.memory_space<vmem>>, vector<840x128xbf16>
    tpu.vector_store %arg4[%c0_6, %c0_7], %8 {strides = array<i32>} : memref<840x128xbf16, #tpu.memory_space<vmem>>, vector<840x128xbf16>,
    return
  }
  func.func @transform_0(%arg0: i32) -> (i32, i32) {
    %c0_i32 = arith.constant 0 : i32
    %c0_i32_0 = arith.constant 0 : i32
    %c0_i32_1 = arith.constant 0 : i32
    return %c0_i32, %c0_i32_0 : i32, i32
  }
  func.func @transform_1(%arg0: i32) -> (i32, i32) {
    %c0_i32 = arith.constant 0 : i32
    %c0_i32_0 = arith.constant 0 : i32
    %c0_i32_1 = arith.constant 0 : i32
    return %c0_i32, %c0_i32_0 : i32, i32
  }
  func.func @transform_2(%arg0: i32) -> (i32, i32) {
    %c0_i32 = arith.constant 0 : i32
    %c0_i32_0 = arith.constant 0 : i32
    %c0_i32_1 = arith.constant 0 : i32
    return %c0_i32, %c0_i32_0 : i32, i32
  }
  func.func @transform_3(%arg0: i32) -> (i32, i32) {
    %c0_i32 = arith.constant 0 : i32
    %c0_i32_0 = arith.constant 0 : i32
    %c0_i32_1 = arith.constant 0 : i32
    return %c0_i32, %c0_i32_0 : i32, i32
  }
}

module attributes {stable_mosaic.version = 11 : i64} {
  func.func @_conv_kernel(%arg0: i32, %arg1: memref<280x576xbf16, #tpu.memory_space<vmem>>, %arg2: memref<576x128xbf16, #tpu.memory_space<vmem>>, %arg3: memref<1x128xf32, #tpu.memory_space<vmem>>, %arg4: memref<280x128xbf16, #tpu.memory_space<vmem>>) attributes {dimension_semantics = [#tpu.dimension_semantics<arbitrary>], iteration_bounds = array<i64: 1>, scalar_prefetch = 0 : i64, scratch_operands = 0 : i64, tpu.core_type = #tpu.core_type<tc>, window_params = [{pipeline_mode = #tpu.pipeline_mode<synchronous>, transform_indices = @transform_0, window_bounds = array<i64: 280, 576>}, {pipeline_mode = #tpu.pipeline_mode<synchronous>, transform_indices = @transform_1, window_bounds = array<i64: 576, 128>}, {pipeline_mode = #tpu.pipeline_mode<synchronous>, transform_indices = @transform_2, window_bounds = array<i64: 1, 128>}, {pipeline_mode = #tpu.pipeline_mode<synchronous>, transform_indices = @transform_3, window_bounds = array<i64: 280, 128>}]} {
    %c0 = arith.constant 0 : index
    %c0_0 = arith.constant 0 : index
    %0 = vector.load %arg1[%c0, %c0_0] : memref<280x576xbf16, #tpu.memory_space<vmem>>, vector<280x576xbf16>
    %c0_1 = arith.constant 0 : index
    %c0_2 = arith.constant 0 : index
    %1 = vector.load %arg2[%c0_1, %c0_2] : memref<576x128xbf16, #tpu.memory_space<vmem>>, vector<576x128xbf16>
    %cst = arith.constant dense<0.000000e+00> : vector<280x128xf32>
    %2 = tpu.matmul %0, %1, %cst {dimension_numbers = #tpu.dot_dimension_numbers<[1], [0], [0], [1], [0, 0, 1, 1], [], []>} : vector<280x576xbf16>, vector<576x128xbf16>, vector<280x128xf32> -> vector<280x128xf32>
    %c0_3 = arith.constant 0 : index
    %c0_4 = arith.constant 0 : index
    %3 = vector.load %arg3[%c0_3, %c0_4] : memref<1x128xf32, #tpu.memory_space<vmem>>, vector<1x128xf32>
    %4 = vector.broadcast %3 : vector<1x128xf32> to vector<280x128xf32>
    %5 = arith.addf %2, %4 : vector<280x128xf32>
    %cst_5 = arith.constant 0.000000e+00 : f32
    %6 = vector.broadcast %cst_5 : f32 to vector<280x128xf32>
    %7 = arith.maximumf %5, %6 : vector<280x128xf32>
    %8 = arith.truncf %7 : vector<280x128xf32> to vector<280x128xbf16>
    %c0_6 = arith.constant 0 : index
    %c0_7 = arith.constant 0 : index
    %9 = vector.load %arg4[%c0_6, %c0_7] : memref<280x128xbf16, #tpu.memory_space<vmem>>, vector<280x128xbf16>
    tpu.vector_store %arg4[%c0_6, %c0_7], %8 {strides = array<i32>} : memref<280x128xbf16, #tpu.memory_space<vmem>>, vector<280x128xbf16>,
    return
  }
  func.func @transform_0(%arg0: i32) -> (i32, i32) {
    %c0_i32 = arith.constant 0 : i32
    %c0_i32_0 = arith.constant 0 : i32
    %c0_i32_1 = arith.constant 0 : i32
    return %c0_i32, %c0_i32_0 : i32, i32
  }
  func.func @transform_1(%arg0: i32) -> (i32, i32) {
    %c0_i32 = arith.constant 0 : i32
    %c0_i32_0 = arith.constant 0 : i32
    %c0_i32_1 = arith.constant 0 : i32
    return %c0_i32, %c0_i32_0 : i32, i32
  }
  func.func @transform_2(%arg0: i32) -> (i32, i32) {
    %c0_i32 = arith.constant 0 : i32
    %c0_i32_0 = arith.constant 0 : i32
    %c0_i32_1 = arith.constant 0 : i32
    return %c0_i32, %c0_i32_0 : i32, i32
  }
  func.func @transform_3(%arg0: i32) -> (i32, i32) {
    %c0_i32 = arith.constant 0 : i32
    %c0_i32_0 = arith.constant 0 : i32
    %c0_i32_1 = arith.constant 0 : i32
    return %c0_i32, %c0_i32_0 : i32, i32
  }
}

module attributes {stable_mosaic.version = 11 : i64} {
  func.func @_conv_kernel(%arg0: i32, %arg1: memref<140x1152xbf16, #tpu.memory_space<vmem>>, %arg2: memref<1152x256xbf16, #tpu.memory_space<vmem>>, %arg3: memref<1x256xf32, #tpu.memory_space<vmem>>, %arg4: memref<140x256xbf16, #tpu.memory_space<vmem>>) attributes {dimension_semantics = [#tpu.dimension_semantics<arbitrary>], iteration_bounds = array<i64: 1>, scalar_prefetch = 0 : i64, scratch_operands = 0 : i64, tpu.core_type = #tpu.core_type<tc>, window_params = [{pipeline_mode = #tpu.pipeline_mode<synchronous>, transform_indices = @transform_0, window_bounds = array<i64: 140, 1152>}, {pipeline_mode = #tpu.pipeline_mode<synchronous>, transform_indices = @transform_1, window_bounds = array<i64: 1152, 256>}, {pipeline_mode = #tpu.pipeline_mode<synchronous>, transform_indices = @transform_2, window_bounds = array<i64: 1, 256>}, {pipeline_mode = #tpu.pipeline_mode<synchronous>, transform_indices = @transform_3, window_bounds = array<i64: 140, 256>}]} {
    %c0 = arith.constant 0 : index
    %c0_0 = arith.constant 0 : index
    %0 = vector.load %arg1[%c0, %c0_0] : memref<140x1152xbf16, #tpu.memory_space<vmem>>, vector<140x1152xbf16>
    %c0_1 = arith.constant 0 : index
    %c0_2 = arith.constant 0 : index
    %1 = vector.load %arg2[%c0_1, %c0_2] : memref<1152x256xbf16, #tpu.memory_space<vmem>>, vector<1152x256xbf16>
    %cst = arith.constant dense<0.000000e+00> : vector<140x256xf32>
    %2 = tpu.matmul %0, %1, %cst {dimension_numbers = #tpu.dot_dimension_numbers<[1], [0], [0], [1], [0, 0, 1, 1], [], []>} : vector<140x1152xbf16>, vector<1152x256xbf16>, vector<140x256xf32> -> vector<140x256xf32>
    %c0_3 = arith.constant 0 : index
    %c0_4 = arith.constant 0 : index
    %3 = vector.load %arg3[%c0_3, %c0_4] : memref<1x256xf32, #tpu.memory_space<vmem>>, vector<1x256xf32>
    %4 = vector.broadcast %3 : vector<1x256xf32> to vector<140x256xf32>
    %5 = arith.addf %2, %4 : vector<140x256xf32>
    %cst_5 = arith.constant 0.000000e+00 : f32
    %6 = vector.broadcast %cst_5 : f32 to vector<140x256xf32>
    %7 = arith.maximumf %5, %6 : vector<140x256xf32>
    %8 = arith.truncf %7 : vector<140x256xf32> to vector<140x256xbf16>
    %c0_6 = arith.constant 0 : index
    %c0_7 = arith.constant 0 : index
    %9 = vector.load %arg4[%c0_6, %c0_7] : memref<140x256xbf16, #tpu.memory_space<vmem>>, vector<140x256xbf16>
    tpu.vector_store %arg4[%c0_6, %c0_7], %8 {strides = array<i32>} : memref<140x256xbf16, #tpu.memory_space<vmem>>, vector<140x256xbf16>,
    return
  }
  func.func @transform_0(%arg0: i32) -> (i32, i32) {
    %c0_i32 = arith.constant 0 : i32
    %c0_i32_0 = arith.constant 0 : i32
    %c0_i32_1 = arith.constant 0 : i32
    return %c0_i32, %c0_i32_0 : i32, i32
  }
  func.func @transform_1(%arg0: i32) -> (i32, i32) {
    %c0_i32 = arith.constant 0 : i32
    %c0_i32_0 = arith.constant 0 : i32
    %c0_i32_1 = arith.constant 0 : i32
    return %c0_i32, %c0_i32_0 : i32, i32
  }
  func.func @transform_2(%arg0: i32) -> (i32, i32) {
    %c0_i32 = arith.constant 0 : i32
    %c0_i32_0 = arith.constant 0 : i32
    %c0_i32_1 = arith.constant 0 : i32
    return %c0_i32, %c0_i32_0 : i32, i32
  }
  func.func @transform_3(%arg0: i32) -> (i32, i32) {
    %c0_i32 = arith.constant 0 : i32
    %c0_i32_0 = arith.constant 0 : i32
    %c0_i32_1 = arith.constant 0 : i32
    return %c0_i32, %c0_i32_0 : i32, i32
  }
}

module attributes {stable_mosaic.version = 11 : i64} {
  func.func @_conv_kernel(%arg0: i32, %arg1: memref<60x2304xbf16, #tpu.memory_space<vmem>>, %arg2: memref<2304x256xbf16, #tpu.memory_space<vmem>>, %arg3: memref<1x256xf32, #tpu.memory_space<vmem>>, %arg4: memref<60x256xbf16, #tpu.memory_space<vmem>>) attributes {dimension_semantics = [#tpu.dimension_semantics<arbitrary>], iteration_bounds = array<i64: 1>, scalar_prefetch = 0 : i64, scratch_operands = 0 : i64, tpu.core_type = #tpu.core_type<tc>, window_params = [{pipeline_mode = #tpu.pipeline_mode<synchronous>, transform_indices = @transform_0, window_bounds = array<i64: 60, 2304>}, {pipeline_mode = #tpu.pipeline_mode<synchronous>, transform_indices = @transform_1, window_bounds = array<i64: 2304, 256>}, {pipeline_mode = #tpu.pipeline_mode<synchronous>, transform_indices = @transform_2, window_bounds = array<i64: 1, 256>}, {pipeline_mode = #tpu.pipeline_mode<synchronous>, transform_indices = @transform_3, window_bounds = array<i64: 60, 256>}]} {
    %c0 = arith.constant 0 : index
    %c0_0 = arith.constant 0 : index
    %0 = vector.load %arg1[%c0, %c0_0] : memref<60x2304xbf16, #tpu.memory_space<vmem>>, vector<60x2304xbf16>
    %c0_1 = arith.constant 0 : index
    %c0_2 = arith.constant 0 : index
    %1 = vector.load %arg2[%c0_1, %c0_2] : memref<2304x256xbf16, #tpu.memory_space<vmem>>, vector<2304x256xbf16>
    %cst = arith.constant dense<0.000000e+00> : vector<60x256xf32>
    %2 = tpu.matmul %0, %1, %cst {dimension_numbers = #tpu.dot_dimension_numbers<[1], [0], [0], [1], [0, 0, 1, 1], [], []>} : vector<60x2304xbf16>, vector<2304x256xbf16>, vector<60x256xf32> -> vector<60x256xf32>
    %c0_3 = arith.constant 0 : index
    %c0_4 = arith.constant 0 : index
    %3 = vector.load %arg3[%c0_3, %c0_4] : memref<1x256xf32, #tpu.memory_space<vmem>>, vector<1x256xf32>
    %4 = vector.broadcast %3 : vector<1x256xf32> to vector<60x256xf32>
    %5 = arith.addf %2, %4 : vector<60x256xf32>
    %cst_5 = arith.constant 0.000000e+00 : f32
    %6 = vector.broadcast %cst_5 : f32 to vector<60x256xf32>
    %7 = arith.maximumf %5, %6 : vector<60x256xf32>
    %8 = arith.truncf %7 : vector<60x256xf32> to vector<60x256xbf16>
    %c0_6 = arith.constant 0 : index
    %c0_7 = arith.constant 0 : index
    %9 = vector.load %arg4[%c0_6, %c0_7] : memref<60x256xbf16, #tpu.memory_space<vmem>>, vector<60x256xbf16>
    tpu.vector_store %arg4[%c0_6, %c0_7], %8 {strides = array<i32>} : memref<60x256xbf16, #tpu.memory_space<vmem>>, vector<60x256xbf16>,
    return
  }
  func.func @transform_0(%arg0: i32) -> (i32, i32) {
    %c0_i32 = arith.constant 0 : i32
    %c0_i32_0 = arith.constant 0 : i32
    %c0_i32_1 = arith.constant 0 : i32
    return %c0_i32, %c0_i32_0 : i32, i32
  }
  func.func @transform_1(%arg0: i32) -> (i32, i32) {
    %c0_i32 = arith.constant 0 : i32
    %c0_i32_0 = arith.constant 0 : i32
    %c0_i32_1 = arith.constant 0 : i32
    return %c0_i32, %c0_i32_0 : i32, i32
  }
  func.func @transform_2(%arg0: i32) -> (i32, i32) {
    %c0_i32 = arith.constant 0 : i32
    %c0_i32_0 = arith.constant 0 : i32
    %c0_i32_1 = arith.constant 0 : i32
    return %c0_i32, %c0_i32_0 : i32, i32
  }
  func.func @transform_3(%arg0: i32) -> (i32, i32) {
    %c0_i32 = arith.constant 0 : i32
    %c0_i32_0 = arith.constant 0 : i32
    %c0_i32_1 = arith.constant 0 : i32
    return %c0_i32, %c0_i32_0 : i32, i32
  }
}

module attributes {stable_mosaic.version = 11 : i64} {
  func.func @_tail_kernel(%arg0: i32, %arg1: memref<20x2304xbf16, #tpu.memory_space<vmem>>, %arg2: memref<2304x512xbf16, #tpu.memory_space<vmem>>, %arg3: memref<1x512xf32, #tpu.memory_space<vmem>>, %arg4: memref<2x20xf32, #tpu.memory_space<vmem>>, %arg5: memref<512x1024xbf16, #tpu.memory_space<vmem>>, %arg6: memref<1x1024xf32, #tpu.memory_space<vmem>>, %arg7: memref<1024x128xbf16, #tpu.memory_space<vmem>>, %arg8: memref<1x128xf32, #tpu.memory_space<vmem>>, %arg9: memref<2x128xf32, #tpu.memory_space<vmem>>) attributes {dimension_semantics = [#tpu.dimension_semantics<arbitrary>], iteration_bounds = array<i64: 1>, scalar_prefetch = 0 : i64, scratch_operands = 0 : i64, tpu.core_type = #tpu.core_type<tc>, window_params = [{pipeline_mode = #tpu.pipeline_mode<synchronous>, transform_indices = @transform_0, window_bounds = array<i64: 20, 2304>}, {pipeline_mode = #tpu.pipeline_mode<synchronous>, transform_indices = @transform_1, window_bounds = array<i64: 2304, 512>}, {pipeline_mode = #tpu.pipeline_mode<synchronous>, transform_indices = @transform_2, window_bounds = array<i64: 1, 512>}, {pipeline_mode = #tpu.pipeline_mode<synchronous>, transform_indices = @transform_3, window_bounds = array<i64: 2, 20>}, {pipeline_mode = #tpu.pipeline_mode<synchronous>, transform_indices = @transform_4, window_bounds = array<i64: 512, 1024>}, {pipeline_mode = #tpu.pipeline_mode<synchronous>, transform_indices = @transform_5, window_bounds = array<i64: 1, 1024>}, {pipeline_mode = #tpu.pipeline_mode<synchronous>, transform_indices = @transform_6, window_bounds = array<i64: 1024, 128>}, {pipeline_mode = #tpu.pipeline_mode<synchronous>, transform_indices = @transform_7, window_bounds = array<i64: 1, 128>}, {pipeline_mode = #tpu.pipeline_mode<synchronous>, transform_indices = @transform_8, window_bounds = array<i64: 2, 128>}]} {
    %c0 = arith.constant 0 : index
    %c0_0 = arith.constant 0 : index
    %0 = vector.load %arg1[%c0, %c0_0] : memref<20x2304xbf16, #tpu.memory_space<vmem>>, vector<20x2304xbf16>
    %c0_1 = arith.constant 0 : index
    %c0_2 = arith.constant 0 : index
    %1 = vector.load %arg2[%c0_1, %c0_2] : memref<2304x512xbf16, #tpu.memory_space<vmem>>, vector<2304x512xbf16>
    %cst = arith.constant dense<0.000000e+00> : vector<20x512xf32>
    %2 = tpu.matmul %0, %1, %cst {dimension_numbers = #tpu.dot_dimension_numbers<[1], [0], [0], [1], [0, 0, 1, 1], [], []>} : vector<20x2304xbf16>, vector<2304x512xbf16>, vector<20x512xf32> -> vector<20x512xf32>
    %c0_3 = arith.constant 0 : index
    %c0_4 = arith.constant 0 : index
    %3 = vector.load %arg3[%c0_3, %c0_4] : memref<1x512xf32, #tpu.memory_space<vmem>>, vector<1x512xf32>
    %4 = vector.broadcast %3 : vector<1x512xf32> to vector<20x512xf32>
    %5 = arith.addf %2, %4 : vector<20x512xf32>
    %cst_5 = arith.constant 0.000000e+00 : f32
    %6 = vector.broadcast %cst_5 : f32 to vector<20x512xf32>
    %7 = arith.maximumf %5, %6 : vector<20x512xf32>
    %c0_6 = arith.constant 0 : index
    %c0_7 = arith.constant 0 : index
    %8 = vector.load %arg4[%c0_6, %c0_7] : memref<2x20xf32, #tpu.memory_space<vmem>>, vector<2x20xf32>
    %cst_8 = arith.constant dense<0.000000e+00> : vector<2x512xf32>
    %9 = tpu.matmul %8, %7, %cst_8 {dimension_numbers = #tpu.dot_dimension_numbers<[1], [0], [0], [1], [0, 0, 1, 1], [], []>} : vector<2x20xf32>, vector<20x512xf32>, vector<2x512xf32> -> vector<2x512xf32>
    %10 = arith.truncf %9 : vector<2x512xf32> to vector<2x512xbf16>
    %c0_9 = arith.constant 0 : index
    %c0_10 = arith.constant 0 : index
    %11 = vector.load %arg5[%c0_9, %c0_10] : memref<512x1024xbf16, #tpu.memory_space<vmem>>, vector<512x1024xbf16>
    %cst_11 = arith.constant dense<0.000000e+00> : vector<2x1024xf32>
    %12 = tpu.matmul %10, %11, %cst_11 {dimension_numbers = #tpu.dot_dimension_numbers<[1], [0], [0], [1], [0, 0, 1, 1], [], []>} : vector<2x512xbf16>, vector<512x1024xbf16>, vector<2x1024xf32> -> vector<2x1024xf32>
    %c0_12 = arith.constant 0 : index
    %c0_13 = arith.constant 0 : index
    %13 = vector.load %arg6[%c0_12, %c0_13] : memref<1x1024xf32, #tpu.memory_space<vmem>>, vector<1x1024xf32>
    %14 = vector.broadcast %13 : vector<1x1024xf32> to vector<2x1024xf32>
    %15 = arith.addf %12, %14 : vector<2x1024xf32>
    %cst_14 = arith.constant 0.000000e+00 : f32
    %16 = vector.broadcast %cst_14 : f32 to vector<2x1024xf32>
    %17 = arith.maximumf %15, %16 : vector<2x1024xf32>
    %18 = arith.truncf %17 : vector<2x1024xf32> to vector<2x1024xbf16>
    %c0_15 = arith.constant 0 : index
    %c0_16 = arith.constant 0 : index
    %19 = vector.load %arg7[%c0_15, %c0_16] : memref<1024x128xbf16, #tpu.memory_space<vmem>>, vector<1024x128xbf16>
    %cst_17 = arith.constant dense<0.000000e+00> : vector<2x128xf32>
    %20 = tpu.matmul %18, %19, %cst_17 {dimension_numbers = #tpu.dot_dimension_numbers<[1], [0], [0], [1], [0, 0, 1, 1], [], []>} : vector<2x1024xbf16>, vector<1024x128xbf16>, vector<2x128xf32> -> vector<2x128xf32>
    %c0_18 = arith.constant 0 : index
    %c0_19 = arith.constant 0 : index
    %21 = vector.load %arg8[%c0_18, %c0_19] : memref<1x128xf32, #tpu.memory_space<vmem>>, vector<1x128xf32>
    %22 = vector.broadcast %21 : vector<1x128xf32> to vector<2x128xf32>
    %23 = arith.addf %20, %22 : vector<2x128xf32>
    %c0_20 = arith.constant 0 : index
    %c0_21 = arith.constant 0 : index
    %24 = vector.load %arg9[%c0_20, %c0_21] : memref<2x128xf32, #tpu.memory_space<vmem>>, vector<2x128xf32>
    tpu.vector_store %arg9[%c0_20, %c0_21], %23 {strides = array<i32>} : memref<2x128xf32, #tpu.memory_space<vmem>>, vector<2x128xf32>,
    return
  }
  func.func @transform_0(%arg0: i32) -> (i32, i32) {
    %c0_i32 = arith.constant 0 : i32
    %c0_i32_0 = arith.constant 0 : i32
    %c0_i32_1 = arith.constant 0 : i32
    return %c0_i32, %c0_i32_0 : i32, i32
  }
  func.func @transform_1(%arg0: i32) -> (i32, i32) {
    %c0_i32 = arith.constant 0 : i32
    %c0_i32_0 = arith.constant 0 : i32
    %c0_i32_1 = arith.constant 0 : i32
    return %c0_i32, %c0_i32_0 : i32, i32
  }
  func.func @transform_2(%arg0: i32) -> (i32, i32) {
    %c0_i32 = arith.constant 0 : i32
    %c0_i32_0 = arith.constant 0 : i32
    %c0_i32_1 = arith.constant 0 : i32
    return %c0_i32, %c0_i32_0 : i32, i32
  }
  func.func @transform_3(%arg0: i32) -> (i32, i32) {
    %c0_i32 = arith.constant 0 : i32
    %c0_i32_0 = arith.constant 0 : i32
    %c0_i32_1 = arith.constant 0 : i32
    return %c0_i32, %c0_i32_0 : i32, i32
  }
  func.func @transform_4(%arg0: i32) -> (i32, i32) {
    %c0_i32 = arith.constant 0 : i32
    %c0_i32_0 = arith.constant 0 : i32
    %c0_i32_1 = arith.constant 0 : i32
    return %c0_i32, %c0_i32_0 : i32, i32
  }
  func.func @transform_5(%arg0: i32) -> (i32, i32) {
    %c0_i32 = arith.constant 0 : i32
    %c0_i32_0 = arith.constant 0 : i32
    %c0_i32_1 = arith.constant 0 : i32
    return %c0_i32, %c0_i32_0 : i32, i32
  }
  func.func @transform_6(%arg0: i32) -> (i32, i32) {
    %c0_i32 = arith.constant 0 : i32
    %c0_i32_0 = arith.constant 0 : i32
    %c0_i32_1 = arith.constant 0 : i32
    return %c0_i32, %c0_i32_0 : i32, i32
  }
  func.func @transform_7(%arg0: i32) -> (i32, i32) {
    %c0_i32 = arith.constant 0 : i32
    %c0_i32_0 = arith.constant 0 : i32
    %c0_i32_1 = arith.constant 0 : i32
    return %c0_i32, %c0_i32_0 : i32, i32
  }
  func.func @transform_8(%arg0: i32) -> (i32, i32) {
    %c0_i32 = arith.constant 0 : i32
    %c0_i32_0 = arith.constant 0 : i32
    %c0_i32_1 = arith.constant 0 : i32
    return %c0_i32, %c0_i32_0 : i32, i32
  }
}

</mosaic_0001>

<bundles_post_ra>
// kernel: tone_cnn_forward.5
= control target key start
LH: loop header
LB: loop body
LE: loop exit
PB: predicated region body
PF: predicated region fallthrough
CT: control target
= control target key end

     0   :  { %8 = vsyncpa [#allocation3], 0  ;;  %s3319_s0 = inlined_call_operand.vmem [shape: bf16[840,25], index: 0, kind: input, shape index: {}]   ;;  %s3320_s1 = inlined_call_operand.hbm [shape: bf16[25,128], index: 1, kind: input, shape index: {}]   ;;  %s3321_s2 = inlined_call_operand.hbm [shape: f32[1,128], index: 2, kind: input, shape index: {}]   ;;  %s3322_s3 = inlined_call_operand.vmem [shape: bf16[840,128], index: 3, kind: output, shape index: {}]  }
   0x1   :  { %9 = vsyncpa [#allocation5], 0  ;;  %s2703_s12 = smov [#allocation2]  }
   0x2   :  { %s17_s13 = sshll.u32 %s2703_s12, 4  ;;  %s18_s13 = int_to_ptr.vmem [resolvable:$true] %s17_s13 }
   0x3   :  { %s2667_s14 = scalar_lea.vmem %s18_s13, 256  ;;  %p2672_p1 = scmp.lt.s32.totalorder %s18_s13, %s18_s13 }
   0x4   :  { %p2668_p0 = scmp.ne.s32.totalorder %s18_s13, %s2667_s14  ;;  %p2673_p2 = scmp.lt.s32.totalorder %s2667_s14, %s2667_s14 }
   0x6   :  { %p2674_p3 = por %p2673_p2, %p2672_p1 }
   0x8   :  { %p2675_p4 = pnand %p2674_p3, %p2668_p0 }
   0xa   :  { %2678 = shalt.err (!%p2675_p4)
}
   0xb   :  { %s2704_s15 = smov 64   ;;  %s2705_s16 = smov 4  }
   0xc   :  { %23 = dma.hbm_to_vmem [thread:$0]  %s3320_s1, 256, %s18_s13, [#allocation3], %s2704_s15, %s2704_s15, %s2705_s16  }
   0xd   :  { %s2706_s19 = smov [#allocation4]  }
   0xe   :  { %s30_s20 = sshll.u32 %s2706_s19, 4  ;;  %s31_s20 = int_to_ptr.vmem [resolvable:$true] %s30_s20 }
   0xf   :  { %s2687_s21 = scalar_lea.vmem %s31_s20, 16  ;;  %s2691_s22 = scalar_lea.vmem %s31_s20, 32 }
  0x10   :  { %p2688_p5 = scmp.ne.s32.totalorder %s31_s20, %s2687_s21  ;;  %p2692_p6 = scmp.lt.s32.totalorder %s31_s20, %s31_s20 }
  0x11   :  { %p2693_p7 = scmp.lt.s32.totalorder %s2691_s22, %s2687_s21 }
  0x13   :  { %p2694_p8 = por %p2693_p7, %p2692_p6 }
  0x15   :  { %p2695_p9 = pnand %p2694_p8, %p2688_p5 }
  0x17   :  { %2698 = shalt.err (!%p2695_p9)
}
  0x18   :  { %33 = dma.hbm_to_vmem [thread:$0]  %s3321_s2, 16, %s31_s20, [#allocation5]  }
  0x19   :  { %2699 = dma.done.wait [#allocation3], 256  }
  0x1a   :  { %2700 = vsyncadd [#allocation3], 4294967040 }
  0x1b   :  { %2701 = dma.done.wait [#allocation5], 16  }
  0x1c   :  { %2702 = vsyncadd [#allocation5], 4294967280  ;;  %vm591_vm0 = vcmask 1043456   ;;  %v2707_v0 = vmov 0.0   ;;  %vm2708_vm1 = vmmov 0   ;;  %vm592_vm2 = vcmask 1044480  }
  0x1d   :  { %2376 = vmatprep.subr.bf16.mxu0 %v2707_v0  ;;  %2592 = vmatprep.subr.bf16.mxu1 %v2707_v0  ;;  %v2709_v1 = vmov 65535   ;;  %v2603_v4 = vld [vmem:[#allocation2 + $0x8] sm:$0x1f]   ;;  %v2604_v6 = vld [vmem:[#allocation2] sm:$0xff]   ;;  %v2606_v8 = vld [vmem:[%s3319_s0 + $0xd8] sm:$0xff]   ;;  %vm431_vm3 = vcmask 203776  }
  0x1e   :  { %2380 = vmatprep.mubr.msk.bf16.mxu0 %vm2708_vm1, %v2707_v0  ;;  %2488 = vmatprep.mubr.msk.bf16.mxu1 %vm2708_vm1, %v2707_v0  ;;  %v593_v2 = vsel %vm591_vm0, 4294967295, %v2709_v1  ;;  %v2605_v7 = vld [vmem:[%s3319_s0] sm:$0xff]   ;;  %v2607_v9 = vld [vmem:[%s3319_s0 + $0x8] sm:$0xff]   ;;  %v2609_v11 = vld [vmem:[%s3319_s0 + $0x10] sm:$0xff]  }
  0x1f   :  { %v594_v3 = vsel %vm592_vm2, %v593_v2, 0  ;;  %v2608_v10 = vld [vmem:[%s3319_s0 + $0xe0] sm:$0xff]   ;;  %v2610_v12 = vld [vmem:[%s3319_s0 + $0xe8] sm:$0xff]   ;;  %v2611_v13 = vld [vmem:[%s3319_s0 + $0x18] sm:$0xff]  }
  0x20   :  { %v596_v5 = vand.u32 %v2603_v4, %v594_v3  ;;  %v2612_v14 = vld [vmem:[%s3319_s0 + $0xf0] sm:$0xff]   ;;  %v2613_v15 = vld [vmem:[%s3319_s0 + $0x20] sm:$0xff]   ;;  %v2614_v16 = vld [vmem:[%s3319_s0 + $0xf8] sm:$0xff]  }
  0x21   :  { %v2615_v17 = vld [vmem:[%s3319_s0 + $0x28] sm:$0xff]   ;;  %v2616_v18 = vld [vmem:[%s3319_s0 + $0x100] sm:$0xff]   ;;  %v2617_v19 = vld [vmem:[%s3319_s0 + $0x30] sm:$0xff]  }
  0x22   :  { %2377 = vmatpush3.bf16.msra.mxu0 %v596_v5  ;;  %2594 = vmatpush3.bf16.msra.mxu1 %v596_v5  ;;  %v2618_v20 = vld [vmem:[%s3319_s0 + $0x108] sm:$0xff]   ;;  %v2619_v21 = vld [vmem:[%s3319_s0 + $0x38] sm:$0xff]   ;;  %v2620_v22 = vld [vmem:[%s3319_s0 + $0x110] sm:$0xff]  }
  0x23   :  { %2378 = vmatprep.subr.bf16.mxu0 %v2707_v0  ;;  %2593 = vmatprep.subr.bf16.mxu1 %v2707_v0  ;;  %v2621_v23 = vld [vmem:[%s3319_s0 + $0x40] sm:$0xff]   ;;  %v2622_v24 = vld [vmem:[%s3319_s0 + $0x118] sm:$0xff]   ;;  %v2623_v25 = vld [vmem:[%s3319_s0 + $0x48] sm:$0xff]  }
  0x24   :  { %v2624_v26 = vld [vmem:[%s3319_s0 + $0x120] sm:$0xff]   ;;  %v2625_v27 = vld [vmem:[%s3319_s0 + $0x50] sm:$0xff]   ;;  %v2626_v28 = vld [vmem:[%s3319_s0 + $0x128] sm:$0xff]  }
  0x25   :  { %v2627_v29 = vld [vmem:[%s3319_s0 + $0x58] sm:$0xff]   ;;  %v2628_v30 = vld [vmem:[%s3319_s0 + $0x130] sm:$0xff]   ;;  %v2629_v31 = vld [vmem:[%s3319_s0 + $0x60] sm:$0xff]  }
  0x26   :  { %2379 = vmatpush3.bf16.msra.mxu0 %v2604_v6  ;;  %2595 = vmatpush3.bf16.msra.mxu1 %v2604_v6  ;;  %v2630_v32 = vld [vmem:[%s3319_s0 + $0x138] sm:$0xff]   ;;  %v2631_v33 = vld [vmem:[%s3319_s0 + $0x68] sm:$0xff]   ;;  %v2632_v34 = vld [vmem:[%s3319_s0 + $0x140] sm:$0xff]  }
  0x27   :  { %v2633_v35 = vld [vmem:[%s3319_s0 + $0x70] sm:$0xff]   ;;  %v2634_v36 = vld [vmem:[%s3319_s0 + $0x148] sm:$0xff]   ;;  %v2635_v37 = vld [vmem:[%s3319_s0 + $0x78] sm:$0xff]  }
  0x28   :  { %v2636_v38 = vld [vmem:[%s3319_s0 + $0x150] sm:$0xff]   ;;  %v2637_v39 = vld [vmem:[%s3319_s0 + $0x80] sm:$0xff]   ;;  %v2638_v40 = vld [vmem:[%s3319_s0 + $0x158] sm:$0xff]  }
  0x29   :  { %2381 = vmatmul.mubr.msk.bf16.vlgmr.msra.gmra.mxu0 %vm431_vm3, %v2605_v7  ;;  %2489 = vmatmul.mubr.msk.bf16.vlgmr.msra.gmra.mxu1 %vm431_vm3, %v2606_v8  ;;  %v2639_v41 = vld [vmem:[%s3319_s0 + $0x88] sm:$0xff]   ;;  %v2640_v42 = vld [vmem:[%s3319_s0 + $0x160] sm:$0xff]   ;;  %v2641_v43 = vld [vmem:[%s3319_s0 + $0x90] sm:$0xff]  }
  0x2a   :  { %2384 = vmatprep.mubr.msk.bf16.mxu0 %vm2708_vm1, %v2707_v0  ;;  %2492 = vmatprep.mubr.msk.bf16.mxu1 %vm2708_vm1, %v2707_v0  ;;  %v2642_v44 = vld [vmem:[%s3319_s0 + $0x168] sm:$0xff]   ;;  %v2643_v45 = vld [vmem:[%s3319_s0 + $0x98] sm:$0xff]   ;;  %v2644_v46 = vld [vmem:[%s3319_s0 + $0x170] sm:$0xff]  }
  0x2b   :  { %v2645_v47 = vld [vmem:[%s3319_s0 + $0xa0] sm:$0xff]   ;;  %v2646_v48 = vld [vmem:[%s3319_s0 + $0x178] sm:$0xff]   ;;  %v2647_v49 = vld [vmem:[%s3319_s0 + $0xa8] sm:$0xff]  }
  0x2c   :  { %v2648_v50 = vld [vmem:[%s3319_s0 + $0x180] sm:$0xff]   ;;  %v2649_v51 = vld [vmem:[%s3319_s0 + $0xb0] sm:$0xff]   ;;  %v2650_v52 = vld [vmem:[%s3319_s0 + $0x188] sm:$0xff]  }
  0x2d   :  { %v2651_v53 = vld [vmem:[%s3319_s0 + $0xb8] sm:$0xff]   ;;  %v2652_v54 = vld [vmem:[%s3319_s0 + $0x190] sm:$0xff]   ;;  %v2653_v55 = vld [vmem:[%s3319_s0 + $0xc0] sm:$0xff]  }
  0x2e   :  { %v2654_v56 = vld [vmem:[%s3319_s0 + $0x198] sm:$0xff]   ;;  %v3038_v57 = vld [vmem:[#allocation4] ss:$0 sm:$0xff]  ;;  %v2655_v2 = vld [vmem:[%s3319_s0 + $0xc8] sm:$0xff]  }
  0x2f   :  { %v2656_v4 = vld [vmem:[%s3319_s0 + $0x1a0] ss:$0 sps:$4 sm:$0xff]  }
  0x31   :  { %2385 = vmatmul.mubr.msk.bf16.gmra.mxu0 %vm431_vm3, %v2607_v9  ;;  %2493 = vmatmul.mubr.msk.bf16.gmra.mxu1 %vm431_vm3, %v2608_v10 }
  0x32   :  { %2388 = vmatprep.mubr.msk.bf16.mxu0 %vm2708_vm1, %v2707_v0  ;;  %2496 = vmatprep.mubr.msk.bf16.mxu1 %vm2708_vm1, %v2707_v0 }
  0x39   :  { %2389 = vmatmul.mubr.msk.bf16.gmra.mxu0 %vm431_vm3, %v2609_v11  ;;  %2497 = vmatmul.mubr.msk.bf16.gmra.mxu1 %vm431_vm3, %v2610_v12 }
  0x3a   :  { %2392 = vmatprep.mubr.msk.bf16.mxu0 %vm2708_vm1, %v2707_v0  ;;  %2500 = vmatprep.mubr.msk.bf16.mxu1 %vm2708_vm1, %v2707_v0 }
  0x41   :  { %2393 = vmatmul.mubr.msk.bf16.gmra.mxu0 %vm431_vm3, %v2611_v13  ;;  %2501 = vmatmul.mubr.msk.bf16.gmra.mxu1 %vm431_vm3, %v2612_v14 }
  0x42   :  { %2396 = vmatprep.mubr.msk.bf16.mxu0 %vm2708_vm1, %v2707_v0  ;;  %2504 = vmatprep.mubr.msk.bf16.mxu1 %vm2708_vm1, %v2707_v0 }
  0x49   :  { %2397 = vmatmul.mubr.msk.bf16.gmra.mxu0 %vm431_vm3, %v2613_v15  ;;  %2505 = vmatmul.mubr.msk.bf16.gmra.mxu1 %vm431_vm3, %v2614_v16 }
  0x4a   :  { %2400 = vmatprep.mubr.msk.bf16.mxu0 %vm2708_vm1, %v2707_v0  ;;  %2508 = vmatprep.mubr.msk.bf16.mxu1 %vm2708_vm1, %v2707_v0 }
  0x51   :  { %2401 = vmatmul.mubr.msk.bf16.gmra.mxu0 %vm431_vm3, %v2615_v17  ;;  %2509 = vmatmul.mubr.msk.bf16.gmra.mxu1 %vm431_vm3, %v2616_v18 }
  0x52   :  { %2404 = vmatprep.mubr.msk.bf16.mxu0 %vm2708_vm1, %v2707_v0  ;;  %2512 = vmatprep.mubr.msk.bf16.mxu1 %vm2708_vm1, %v2707_v0 }
  0x59   :  { %2405 = vmatmul.mubr.msk.bf16.gmra.mxu0 %vm431_vm3, %v2617_v19  ;;  %2513 = vmatmul.mubr.msk.bf16.gmra.mxu1 %vm431_vm3, %v2618_v20 }
  0x5a   :  { %2408 = vmatprep.mubr.msk.bf16.mxu0 %vm2708_vm1, %v2707_v0  ;;  %2516 = vmatprep.mubr.msk.bf16.mxu1 %vm2708_vm1, %v2707_v0 }
  0x61   :  { %2409 = vmatmul.mubr.msk.bf16.gmra.mxu0 %vm431_vm3, %v2619_v21  ;;  %2517 = vmatmul.mubr.msk.bf16.gmra.mxu1 %vm431_vm3, %v2620_v22  ;;  %v2657_v22 = vld [vmem:[%s3319_s0 + $0xd0] sm:$0xff]  }
  0x62   :  { %2412 = vmatprep.mubr.msk.bf16.mxu0 %vm2708_vm1, %v2707_v0  ;;  %2520 = vmatprep.mubr.msk.bf16.mxu1 %vm2708_vm1, %v2707_v0 }
  0x69   :  { %2413 = vmatmul.mubr.msk.bf16.gmra.mxu0 %vm431_vm3, %v2621_v23  ;;  %2521 = vmatmul.mubr.msk.bf16.gmra.mxu1 %vm431_vm3, %v2622_v24 }
  0x6a   :  { %2416 = vmatprep.mubr.msk.bf16.mxu0 %vm2708_vm1, %v2707_v0  ;;  %2524 = vmatprep.mubr.msk.bf16.mxu1 %vm2708_vm1, %v2707_v0 }
  0x71   :  { %2417 = vmatmul.mubr.msk.bf16.gmra.mxu0 %vm431_vm3, %v2623_v25  ;;  %2525 = vmatmul.mubr.msk.bf16.gmra.mxu1 %vm431_vm3, %v2624_v26 }
  0x72   :  { %2420 = vmatprep.mubr.msk.bf16.mxu0 %vm2708_vm1, %v2707_v0  ;;  %2528 = vmatprep.mubr.msk.bf16.mxu1 %vm2708_vm1, %v2707_v0 }
  0x79   :  { %2421 = vmatmul.mubr.msk.bf16.gmra.mxu0 %vm431_vm3, %v2625_v27  ;;  %2529 = vmatmul.mubr.msk.bf16.gmra.mxu1 %vm431_vm3, %v2626_v28 }
  0x7a   :  { %2424 = vmatprep.mubr.msk.bf16.mxu0 %vm2708_vm1, %v2707_v0  ;;  %2532 = vmatprep.mubr.msk.bf16.mxu1 %vm2708_vm1, %v2707_v0 }
  0x81   :  { %2425 = vmatmul.mubr.msk.bf16.gmra.mxu0 %vm431_vm3, %v2627_v29  ;;  %2533 = vmatmul.mubr.msk.bf16.gmra.mxu1 %vm431_vm3, %v2628_v30 }
  0x82   :  { %2428 = vmatprep.mubr.msk.bf16.mxu0 %vm2708_vm1, %v2707_v0  ;;  %2536 = vmatprep.mubr.msk.bf16.mxu1 %vm2708_vm1, %v2707_v0 }
  0x89   :  { %2429 = vmatmul.mubr.msk.bf16.gmra.mxu0 %vm431_vm3, %v2629_v31  ;;  %2537 = vmatmul.mubr.msk.bf16.gmra.mxu1 %vm431_vm3, %v2630_v32 }
  0x8a   :  { %2432 = vmatprep.mubr.msk.bf16.mxu0 %vm2708_vm1, %v2707_v0  ;;  %2540 = vmatprep.mubr.msk.bf16.mxu1 %vm2708_vm1, %v2707_v0 }
  0x91   :  { %2433 = vmatmul.mubr.msk.bf16.gmra.mxu0 %vm431_vm3, %v2631_v33  ;;  %2541 = vmatmul.mubr.msk.bf16.gmra.mxu1 %vm431_vm3, %v2632_v34 }
  0x92   :  { %2436 = vmatprep.mubr.msk.bf16.mxu0 %vm2708_vm1, %v2707_v0  ;;  %2544 = vmatprep.mubr.msk.bf16.mxu1 %vm2708_vm1, %v2707_v0 }
  0x99   :  { %2437 = vmatmul.mubr.msk.bf16.gmra.mxu0 %vm431_vm3, %v2633_v35  ;;  %2545 = vmatmul.mubr.msk.bf16.gmra.mxu1 %vm431_vm3, %v2634_v36 }
  0x9a   :  { %2440 = vmatprep.mubr.msk.bf16.mxu0 %vm2708_vm1, %v2707_v0  ;;  %2548 = vmatprep.mubr.msk.bf16.mxu1 %vm2708_vm1, %v2707_v0 }
  0xa1   :  { %2441 = vmatmul.mubr.msk.bf16.gmra.mxu0 %vm431_vm3, %v2635_v37  ;;  %2549 = vmatmul.mubr.msk.bf16.gmra.mxu1 %vm431_vm3, %v2636_v38 }
  0xa2   :  { %2444 = vmatprep.mubr.msk.bf16.mxu0 %vm2708_vm1, %v2707_v0  ;;  %2552 = vmatprep.mubr.msk.bf16.mxu1 %vm2708_vm1, %v2707_v0 }
  0xa9   :  { %2445 = vmatmul.mubr.msk.bf16.gmra.mxu0 %vm431_vm3, %v2637_v39  ;;  %2553 = vmatmul.mubr.msk.bf16.gmra.mxu1 %vm431_vm3, %v2638_v40 }
  0xaa   :  { %2448 = vmatprep.mubr.msk.bf16.mxu0 %vm2708_vm1, %v2707_v0  ;;  %2556 = vmatprep.mubr.msk.bf16.mxu1 %vm2708_vm1, %v2707_v0 }
  0xb1   :  { %2449 = vmatmul.mubr.msk.bf16.gmra.mxu0 %vm431_vm3, %v2639_v41  ;;  %2557 = vmatmul.mubr.msk.bf16.gmra.mxu1 %vm431_vm3, %v2640_v42 }
  0xb2   :  { %2452 = vmatprep.mubr.msk.bf16.mxu0 %vm2708_vm1, %v2707_v0  ;;  %2560 = vmatprep.mubr.msk.bf16.mxu1 %vm2708_vm1, %v2707_v0 }
  0xb9   :  { %2453 = vmatmul.mubr.msk.bf16.gmra.mxu0 %vm431_vm3, %v2641_v43  ;;  %2561 = vmatmul.mubr.msk.bf16.gmra.mxu1 %vm431_vm3, %v2642_v44 }
  0xba   :  { %2456 = vmatprep.mubr.msk.bf16.mxu0 %vm2708_vm1, %v2707_v0  ;;  %2564 = vmatprep.mubr.msk.bf16.mxu1 %vm2708_vm1, %v2707_v0 }
  0xc1   :  { %2457 = vmatmul.mubr.msk.bf16.gmra.mxu0 %vm431_vm3, %v2643_v45  ;;  %2565 = vmatmul.mubr.msk.bf16.gmra.mxu1 %vm431_vm3, %v2644_v46 }
  0xc2   :  { %2460 = vmatprep.mubr.msk.bf16.mxu0 %vm2708_vm1, %v2707_v0  ;;  %2568 = vmatprep.mubr.msk.bf16.mxu1 %vm2708_vm1, %v2707_v0 }
  0xc9   :  { %2461 = vmatmul.mubr.msk.bf16.gmra.mxu0 %vm431_vm3, %v2645_v47  ;;  %2569 = vmatmul.mubr.msk.bf16.gmra.mxu1 %vm431_vm3, %v2646_v48 }
  0xca   :  { %2464 = vmatprep.mubr.msk.bf16.mxu0 %vm2708_vm1, %v2707_v0  ;;  %2572 = vmatprep.mubr.msk.bf16.mxu1 %vm2708_vm1, %v2707_v0 }
  0xd1   :  { %2465 = vmatmul.mubr.msk.bf16.gmra.mxu0 %vm431_vm3, %v2647_v49  ;;  %2573 = vmatmul.mubr.msk.bf16.gmra.mxu1 %vm431_vm3, %v2648_v50 }
  0xd2   :  { %2468 = vmatprep.mubr.msk.bf16.mxu0 %vm2708_vm1, %v2707_v0  ;;  %2576 = vmatprep.mubr.msk.bf16.mxu1 %vm2708_vm1, %v2707_v0 }
  0xd9   :  { %2469 = vmatmul.mubr.msk.bf16.gmra.mxu0 %vm431_vm3, %v2649_v51  ;;  %2577 = vmatmul.mubr.msk.bf16.gmra.mxu1 %vm431_vm3, %v2650_v52 }
  0xda   :  { %2472 = vmatprep.mubr.msk.bf16.mxu0 %vm2708_vm1, %v2707_v0  ;;  %2580 = vmatprep.mubr.msk.bf16.mxu1 %vm2708_vm1, %v2707_v0 }
  0xe1   :  { %2473 = vmatmul.mubr.msk.bf16.gmra.mxu0 %vm431_vm3, %v2651_v53  ;;  %2581 = vmatmul.mubr.msk.bf16.gmra.mxu1 %vm431_vm3, %v2652_v54 }
  0xe2   :  { %2476 = vmatprep.mubr.msk.bf16.mxu0 %vm2708_vm1, %v2707_v0  ;;  %2584 = vmatprep.mubr.msk.bf16.mxu1 %vm2708_vm1, %v2707_v0 }
  0xe9   :  { %v632_v58 = vpop.f32.mrf.mxu0  ;;  %2477 = vmatmul.mubr.msk.bf16.gmra.mxu0 %vm431_vm3, %v2653_v55  ;;  %v848_v59 = vpop.f32.mrf.mxu1  ;;  %2585 = vmatmul.mubr.msk.bf16.gmra.mxu1 %vm431_vm3, %v2654_v56 }
  0xea   :  { %v849_v60 = vadd.f32 %v3038_v57, %v848_v59  ;;  %2480 = vmatprep.mubr.msk.bf16.mxu0 %vm2708_vm1, %v2707_v0  ;;  %2588 = vmatprep.mubr.msk.bf16.mxu1 %vm2708_vm1, %v2707_v0  ;;  %v633_v63 = vadd.f32 %v3038_v57, %v632_v58 }
  0xeb   :  { %v2382_v61 = vpop.f32.mrf.mxu0  ;;  %v2490_v62 = vpop.f32.mrf.mxu1 }
  0xec   :  { %v1108_v6 = vmax.f32 %v849_v60, 0.0  ;;  %v1054_v10 = vmax.f32 %v633_v63, 0.0 }
  0xed   :  { %v635_v1 = vpop.f32.mrf.mxu0  ;;  %v851_v3 = vpop.f32.mrf.mxu1 }
  0xee   :  { %v636_v5 = vadd.f32 %v3038_v57, %v635_v1  ;;  %v852_v7 = vadd.f32 %v3038_v57, %v851_v3 }
  0xef   :  { %v2383_v8 = vpop.f32.mrf.mxu0  ;;  %v2491_v9 = vpop.f32.mrf.mxu1 }
  0xf0   :  { %v1055_v11 = vmax.f32 %v636_v5, 0.0  ;;  %v1109_v12 = vmax.f32 %v852_v7, 0.0 }
  0xf1   :  { %v640_v13 = vpop.f32.mrf.mxu0  ;;  %2481 = vmatmul.mubr.msk.bf16.gmra.mxu0 %vm431_vm3, %v2655_v2  ;;  %v856_v14 = vpop.f32.mrf.mxu1  ;;  %2589 = vmatmul.mubr.msk.bf16.gmra.mxu1 %vm431_vm3, %v2656_v4 }
  0xf2   :  { %v2013_v15 = vpack.c.bf16 %v1055_v11, %v1054_v10  ;;  %v2148_v16 = vpack.c.bf16 %v1109_v12, %v1108_v6  ;;  %v857_v17 = vadd.f32 %v3038_v57, %v856_v14  ;;  %2484 = vmatprep.mubr.msk.bf16.mxu0 %vm2708_vm1, %v2707_v0  ;;  %v641_v20 = vadd.f32 %v3038_v57, %v640_v13 }
  0xf3   :  { %v2386_v18 = vpop.f32.mrf.mxu0  ;;  %v2494_v19 = vpop.f32.mrf.mxu1 }
  0xf4   :  { %2014 = vst [vmem:[%s3322_s3] sm:$0xff] %v2013_v15   ;;  %2296 = vst [vmem:[%s3322_s3 + $0xd8] sm:$0xff] %v2148_v16   ;;  %v1110_v24 = vmax.f32 %v857_v17, 0.0  ;;  %v1056_v28 = vmax.f32 %v641_v20, 0.0 }
  0xf5   :  { %v643_v21 = vpop.f32.mrf.mxu0  ;;  %v859_v23 = vpop.f32.mrf.mxu1 }
  0xf6   :  { %v644_v0 = vadd.f32 %v3038_v57, %v643_v21  ;;  %v860_v25 = vadd.f32 %v3038_v57, %v859_v23 }
  0xf7   :  { %v2387_v26 = vpop.f32.mrf.mxu0  ;;  %v2495_v27 = vpop.f32.mrf.mxu1 }
  0xf8   :  { %v1057_v29 = vmax.f32 %v644_v0, 0.0  ;;  %v1111_v30 = vmax.f32 %v860_v25, 0.0 }
  0xf9   :  { %v648_v31 = vpop.f32.mrf.mxu0  ;;  %2485 = vmatmul.mubr.msk.bf16.gmra.mxu0 %vm431_vm3, %v2657_v22  ;;  %v864_v32 = vpop.f32.mrf.mxu1 }
  0xfa   :  { %v2018_v33 = vpack.c.bf16 %v1057_v29, %v1056_v28  ;;  %v2153_v34 = vpack.c.bf16 %v1111_v30, %v1110_v24  ;;  %v865_v35 = vadd.f32 %v3038_v57, %v864_v32  ;;  %v649_v38 = vadd.f32 %v3038_v57, %v648_v31 }
  0xfb   :  { %v2390_v36 = vpop.f32.mrf.mxu0  ;;  %v2498_v37 = vpop.f32.mrf.mxu1 }
  0xfc   :  { %2270 = vst [vmem:[%s3322_s3 + $0x8] sm:$0xff] %v2018_v33   ;;  %2297 = vst [vmem:[%s3322_s3 + $0xe0] sm:$0xff] %v2153_v34   ;;  %v1112_v42 = vmax.f32 %v865_v35, 0.0  ;;  %v1058_v46 = vmax.f32 %v649_v38, 0.0 }
  0xfd   :  { %v651_v39 = vpop.f32.mrf.mxu0  ;;  %v867_v40 = vpop.f32.mrf.mxu1 }
  0xfe   :  { %v652_v41 = vadd.f32 %v3038_v57, %v651_v39  ;;  %v868_v43 = vadd.f32 %v3038_v57, %v867_v40 }
  0xff   :  { %v2391_v44 = vpop.f32.mrf.mxu0  ;;  %v2499_v45 = vpop.f32.mrf.mxu1 }
 0x100   :  { %v1059_v47 = vmax.f32 %v652_v41, 0.0  ;;  %v1113_v48 = vmax.f32 %v868_v43, 0.0 }
 0x101   :  { %v656_v49 = vpop.f32.mrf.mxu0  ;;  %v872_v50 = vpop.f32.mrf.mxu1 }
 0x102   :  { %v2023_v51 = vpack.c.bf16 %v1059_v47, %v1058_v46  ;;  %v2158_v52 = vpack.c.bf16 %v1113_v48, %v1112_v42  ;;  %v873_v53 = vadd.f32 %v3038_v57, %v872_v50  ;;  %v657_v56 = vadd.f32 %v3038_v57, %v656_v49 }
 0x103   :  { %v2394_v54 = vpop.f32.mrf.mxu0  ;;  %v2502_v55 = vpop.f32.mrf.mxu1 }
 0x104   :  { %2271 = vst [vmem:[%s3322_s3 + $0x10] sm:$0xff] %v2023_v51   ;;  %2298 = vst [vmem:[%s3322_s3 + $0xe8] sm:$0xff] %v2158_v52   ;;  %v1114_v61 = vmax.f32 %v873_v53, 0.0  ;;  %v1060_v2 = vmax.f32 %v657_v56, 0.0 }
 0x105   :  { %v659_v58 = vpop.f32.mrf.mxu0  ;;  %v875_v59 = vpop.f32.mrf.mxu1 }
 0x106   :  { %v660_v60 = vadd.f32 %v3038_v57, %v659_v58  ;;  %v876_v62 = vadd.f32 %v3038_v57, %v875_v59 }
 0x107   :  { %v2395_v63 = vpop.f32.mrf.mxu0  ;;  %v2503_v1 = vpop.f32.mrf.mxu1 }
 0x108   :  { %v1061_v3 = vmax.f32 %v660_v60, 0.0  ;;  %v1115_v4 = vmax.f32 %v876_v62, 0.0 }
 0x109   :  { %v664_v5 = vpop.f32.mrf.mxu0  ;;  %v880_v6 = vpop.f32.mrf.mxu1 }
 0x10a   :  { %v2028_v7 = vpack.c.bf16 %v1061_v3, %v1060_v2  ;;  %v2163_v8 = vpack.c.bf16 %v1115_v4, %v1114_v61  ;;  %v881_v9 = vadd.f32 %v3038_v57, %v880_v6  ;;  %v665_v12 = vadd.f32 %v3038_v57, %v664_v5 }
 0x10b   :  { %v2398_v10 = vpop.f32.mrf.mxu0  ;;  %v2506_v11 = vpop.f32.mrf.mxu1 }
 0x10c   :  { %2272 = vst [vmem:[%s3322_s3 + $0x18] sm:$0xff] %v2028_v7   ;;  %2299 = vst [vmem:[%s3322_s3 + $0xf0] sm:$0xff] %v2163_v8   ;;  %v1116_v16 = vmax.f32 %v881_v9, 0.0  ;;  %v1062_v20 = vmax.f32 %v665_v12, 0.0 }
 0x10d   :  { %v667_v13 = vpop.f32.mrf.mxu0  ;;  %v883_v14 = vpop.f32.mrf.mxu1 }
 0x10e   :  { %v668_v15 = vadd.f32 %v3038_v57, %v667_v13  ;;  %v884_v17 = vadd.f32 %v3038_v57, %v883_v14 }
 0x10f   :  { %v2399_v18 = vpop.f32.mrf.mxu0  ;;  %v2507_v19 = vpop.f32.mrf.mxu1 }
 0x110   :  { %v1063_v21 = vmax.f32 %v668_v15, 0.0  ;;  %v1117_v22 = vmax.f32 %v884_v17, 0.0 }
 0x111   :  { %v672_v23 = vpop.f32.mrf.mxu0  ;;  %v888_v0 = vpop.f32.mrf.mxu1 }
 0x112   :  { %v2033_v24 = vpack.c.bf16 %v1063_v21, %v1062_v20  ;;  %v2168_v25 = vpack.c.bf16 %v1117_v22, %v1116_v16  ;;  %v889_v26 = vadd.f32 %v3038_v57, %v888_v0  ;;  %v673_v29 = vadd.f32 %v3038_v57, %v672_v23 }
 0x113   :  { %v2402_v27 = vpop.f32.mrf.mxu0  ;;  %v2510_v28 = vpop.f32.mrf.mxu1 }
 0x114   :  { %2273 = vst [vmem:[%s3322_s3 + $0x20] sm:$0xff] %v2033_v24   ;;  %2300 = vst [vmem:[%s3322_s3 + $0xf8] sm:$0xff] %v2168_v25   ;;  %v1118_v33 = vmax.f32 %v889_v26, 0.0  ;;  %v1064_v37 = vmax.f32 %v673_v29, 0.0 }
 0x115   :  { %v675_v30 = vpop.f32.mrf.mxu0  ;;  %v891_v31 = vpop.f32.mrf.mxu1 }
 0x116   :  { %v676_v32 = vadd.f32 %v3038_v57, %v675_v30  ;;  %v892_v34 = vadd.f32 %v3038_v57, %v891_v31 }
 0x117   :  { %v2403_v35 = vpop.f32.mrf.mxu0  ;;  %v2511_v36 = vpop.f32.mrf.mxu1 }
 0x118   :  { %v1065_v38 = vmax.f32 %v676_v32, 0.0  ;;  %v1119_v39 = vmax.f32 %v892_v34, 0.0 }
 0x119   :  { %v680_v40 = vpop.f32.mrf.mxu0  ;;  %v896_v41 = vpop.f32.mrf.mxu1 }
 0x11a   :  { %v2038_v42 = vpack.c.bf16 %v1065_v38, %v1064_v37  ;;  %v2173_v43 = vpack.c.bf16 %v1119_v39, %v1118_v33  ;;  %v897_v44 = vadd.f32 %v3038_v57, %v896_v41  ;;  %v681_v47 = vadd.f32 %v3038_v57, %v680_v40 }
 0x11b   :  { %v2406_v45 = vpop.f32.mrf.mxu0  ;;  %v2514_v46 = vpop.f32.mrf.mxu1 }
 0x11c   :  { %2274 = vst [vmem:[%s3322_s3 + $0x28] sm:$0xff] %v2038_v42   ;;  %2301 = vst [vmem:[%s3322_s3 + $0x100] sm:$0xff] %v2173_v43   ;;  %v1120_v51 = vmax.f32 %v897_v44, 0.0  ;;  %v1066_v55 = vmax.f32 %v681_v47, 0.0 }
 0x11d   :  { %v683_v48 = vpop.f32.mrf.mxu0  ;;  %v899_v49 = vpop.f32.mrf.mxu1 }
 0x11e   :  { %v684_v50 = vadd.f32 %v3038_v57, %v683_v48  ;;  %v900_v52 = vadd.f32 %v3038_v57, %v899_v49 }
 0x11f   :  { %v2407_v53 = vpop.f32.mrf.mxu0  ;;  %v2515_v54 = vpop.f32.mrf.mxu1 }
 0x120   :  { %v1067_v56 = vmax.f32 %v684_v50, 0.0  ;;  %v1121_v58 = vmax.f32 %v900_v52, 0.0 }
 0x121   :  { %v688_v59 = vpop.f32.mrf.mxu0  ;;  %v904_v60 = vpop.f32.mrf.mxu1 }
 0x122   :  { %v2043_v61 = vpack.c.bf16 %v1067_v56, %v1066_v55  ;;  %v2178_v62 = vpack.c.bf16 %v1121_v58, %v1120_v51  ;;  %v905_v63 = vadd.f32 %v3038_v57, %v904_v60  ;;  %v689_v3 = vadd.f32 %v3038_v57, %v688_v59 }
 0x123   :  { %v2410_v1 = vpop.f32.mrf.mxu0  ;;  %v2518_v2 = vpop.f32.mrf.mxu1 }
 0x124   :  { %2275 = vst [vmem:[%s3322_s3 + $0x30] sm:$0xff] %v2043_v61   ;;  %2302 = vst [vmem:[%s3322_s3 + $0x108] sm:$0xff] %v2178_v62   ;;  %v1122_v7 = vmax.f32 %v905_v63, 0.0  ;;  %v1068_v11 = vmax.f32 %v689_v3, 0.0 }
 0x125   :  { %v691_v4 = vpop.f32.mrf.mxu0  ;;  %v907_v5 = vpop.f32.mrf.mxu1 }
 0x126   :  { %v692_v6 = vadd.f32 %v3038_v57, %v691_v4  ;;  %v908_v8 = vadd.f32 %v3038_v57, %v907_v5 }
 0x127   :  { %v2411_v9 = vpop.f32.mrf.mxu0  ;;  %v2519_v10 = vpop.f32.mrf.mxu1 }
 0x128   :  { %v1069_v12 = vmax.f32 %v692_v6, 0.0  ;;  %v1123_v13 = vmax.f32 %v908_v8, 0.0 }
 0x129   :  { %v696_v14 = vpop.f32.mrf.mxu0  ;;  %v912_v15 = vpop.f32.mrf.mxu1 }
 0x12a   :  { %v2048_v16 = vpack.c.bf16 %v1069_v12, %v1068_v11  ;;  %v2183_v17 = vpack.c.bf16 %v1123_v13, %v1122_v7  ;;  %v913_v18 = vadd.f32 %v3038_v57, %v912_v15  ;;  %v697_v21 = vadd.f32 %v3038_v57, %v696_v14 }
 0x12b   :  { %v2414_v19 = vpop.f32.mrf.mxu0  ;;  %v2522_v20 = vpop.f32.mrf.mxu1 }
 0x12c   :  { %2276 = vst [vmem:[%s3322_s3 + $0x38] sm:$0xff] %v2048_v16   ;;  %2303 = vst [vmem:[%s3322_s3 + $0x110] sm:$0xff] %v2183_v17   ;;  %v1124_v24 = vmax.f32 %v913_v18, 0.0  ;;  %v1070_v28 = vmax.f32 %v697_v21, 0.0 }
 0x12d   :  { %v699_v22 = vpop.f32.mrf.mxu0  ;;  %v915_v23 = vpop.f32.mrf.mxu1 }
 0x12e   :  { %v700_v0 = vadd.f32 %v3038_v57, %v699_v22  ;;  %v916_v25 = vadd.f32 %v3038_v57, %v915_v23 }
 0x12f   :  { %v2415_v26 = vpop.f32.mrf.mxu0  ;;  %v2523_v27 = vpop.f32.mrf.mxu1 }
 0x130   :  { %v1071_v29 = vmax.f32 %v700_v0, 0.0  ;;  %v1125_v30 = vmax.f32 %v916_v25, 0.0 }
 0x131   :  { %v704_v31 = vpop.f32.mrf.mxu0  ;;  %v920_v32 = vpop.f32.mrf.mxu1 }
 0x132   :  { %v2053_v33 = vpack.c.bf16 %v1071_v29, %v1070_v28  ;;  %v2188_v34 = vpack.c.bf16 %v1125_v30, %v1124_v24  ;;  %v921_v35 = vadd.f32 %v3038_v57, %v920_v32  ;;  %v705_v38 = vadd.f32 %v3038_v57, %v704_v31 }
 0x133   :  { %v2418_v36 = vpop.f32.mrf.mxu0  ;;  %v2526_v37 = vpop.f32.mrf.mxu1 }
 0x134   :  { %2277 = vst [vmem:[%s3322_s3 + $0x40] sm:$0xff] %v2053_v33   ;;  %2304 = vst [vmem:[%s3322_s3 + $0x118] sm:$0xff] %v2188_v34   ;;  %v1126_v42 = vmax.f32 %v921_v35, 0.0  ;;  %v1072_v46 = vmax.f32 %v705_v38, 0.0 }
 0x135   :  { %v707_v39 = vpop.f32.mrf.mxu0  ;;  %v923_v40 = vpop.f32.mrf.mxu1 }
 0x136   :  { %v708_v41 = vadd.f32 %v3038_v57, %v707_v39  ;;  %v924_v43 = vadd.f32 %v3038_v57, %v923_v40 }
 0x137   :  { %v2419_v44 = vpop.f32.mrf.mxu0  ;;  %v2527_v45 = vpop.f32.mrf.mxu1 }
 0x138   :  { %v1073_v47 = vmax.f32 %v708_v41, 0.0  ;;  %v1127_v48 = vmax.f32 %v924_v43, 0.0 }
 0x139   :  { %v712_v49 = vpop.f32.mrf.mxu0  ;;  %v928_v50 = vpop.f32.mrf.mxu1 }
 0x13a   :  { %v2058_v51 = vpack.c.bf16 %v1073_v47, %v1072_v46  ;;  %v2193_v52 = vpack.c.bf16 %v1127_v48, %v1126_v42  ;;  %v929_v53 = vadd.f32 %v3038_v57, %v928_v50  ;;  %v713_v56 = vadd.f32 %v3038_v57, %v712_v49 }
 0x13b   :  { %v2422_v54 = vpop.f32.mrf.mxu0  ;;  %v2530_v55 = vpop.f32.mrf.mxu1 }
 0x13c   :  { %2278 = vst [vmem:[%s3322_s3 + $0x48] sm:$0xff] %v2058_v51   ;;  %2305 = vst [vmem:[%s3322_s3 + $0x120] sm:$0xff] %v2193_v52   ;;  %v1128_v61 = vmax.f32 %v929_v53, 0.0  ;;  %v1074_v2 = vmax.f32 %v713_v56, 0.0 }
 0x13d   :  { %v715_v58 = vpop.f32.mrf.mxu0  ;;  %v931_v59 = vpop.f32.mrf.mxu1 }
 0x13e   :  { %v716_v60 = vadd.f32 %v3038_v57, %v715_v58  ;;  %v932_v62 = vadd.f32 %v3038_v57, %v931_v59 }
 0x13f   :  { %v2423_v63 = vpop.f32.mrf.mxu0  ;;  %v2531_v1 = vpop.f32.mrf.mxu1 }
 0x140   :  { %v1075_v3 = vmax.f32 %v716_v60, 0.0  ;;  %v1129_v4 = vmax.f32 %v932_v62, 0.0 }
 0x141   :  { %v720_v5 = vpop.f32.mrf.mxu0  ;;  %v936_v6 = vpop.f32.mrf.mxu1 }
 0x142   :  { %v2063_v7 = vpack.c.bf16 %v1075_v3, %v1074_v2  ;;  %v2198_v8 = vpack.c.bf16 %v1129_v4, %v1128_v61  ;;  %v937_v9 = vadd.f32 %v3038_v57, %v936_v6  ;;  %v721_v12 = vadd.f32 %v3038_v57, %v720_v5 }
 0x143   :  { %v2426_v10 = vpop.f32.mrf.mxu0  ;;  %v2534_v11 = vpop.f32.mrf.mxu1 }
 0x144   :  { %2279 = vst [vmem:[%s3322_s3 + $0x50] sm:$0xff] %v2063_v7   ;;  %2306 = vst [vmem:[%s3322_s3 + $0x128] sm:$0xff] %v2198_v8   ;;  %v1130_v16 = vmax.f32 %v937_v9, 0.0  ;;  %v1076_v20 = vmax.f32 %v721_v12, 0.0 }
 0x145   :  { %v723_v13 = vpop.f32.mrf.mxu0  ;;  %v939_v14 = vpop.f32.mrf.mxu1 }
 0x146   :  { %v724_v15 = vadd.f32 %v3038_v57, %v723_v13  ;;  %v940_v17 = vadd.f32 %v3038_v57, %v939_v14 }
 0x147   :  { %v2427_v18 = vpop.f32.mrf.mxu0  ;;  %v2535_v19 = vpop.f32.mrf.mxu1 }
 0x148   :  { %v1077_v21 = vmax.f32 %v724_v15, 0.0  ;;  %v1131_v22 = vmax.f32 %v940_v17, 0.0 }
 0x149   :  { %v728_v23 = vpop.f32.mrf.mxu0  ;;  %v944_v0 = vpop.f32.mrf.mxu1 }
 0x14a   :  { %v2068_v24 = vpack.c.bf16 %v1077_v21, %v1076_v20  ;;  %v2203_v25 = vpack.c.bf16 %v1131_v22, %v1130_v16  ;;  %v945_v26 = vadd.f32 %v3038_v57, %v944_v0  ;;  %v729_v29 = vadd.f32 %v3038_v57, %v728_v23 }
 0x14b   :  { %v2430_v27 = vpop.f32.mrf.mxu0  ;;  %v2538_v28 = vpop.f32.mrf.mxu1 }
 0x14c   :  { %2280 = vst [vmem:[%s3322_s3 + $0x58] sm:$0xff] %v2068_v24   ;;  %2307 = vst [vmem:[%s3322_s3 + $0x130] sm:$0xff] %v2203_v25   ;;  %v1132_v33 = vmax.f32 %v945_v26, 0.0  ;;  %v1078_v37 = vmax.f32 %v729_v29, 0.0 }
 0x14d   :  { %v731_v30 = vpop.f32.mrf.mxu0  ;;  %v947_v31 = vpop.f32.mrf.mxu1 }
 0x14e   :  { %v732_v32 = vadd.f32 %v3038_v57, %v731_v30  ;;  %v948_v34 = vadd.f32 %v3038_v57, %v947_v31 }
 0x14f   :  { %v2431_v35 = vpop.f32.mrf.mxu0  ;;  %v2539_v36 = vpop.f32.mrf.mxu1 }
 0x150   :  { %v1079_v38 = vmax.f32 %v732_v32, 0.0  ;;  %v1133_v39 = vmax.f32 %v948_v34, 0.0 }
 0x151   :  { %v736_v40 = vpop.f32.mrf.mxu0  ;;  %v952_v41 = vpop.f32.mrf.mxu1 }
 0x152   :  { %v2073_v42 = vpack.c.bf16 %v1079_v38, %v1078_v37  ;;  %v2208_v43 = vpack.c.bf16 %v1133_v39, %v1132_v33  ;;  %v953_v44 = vadd.f32 %v3038_v57, %v952_v41  ;;  %v737_v47 = vadd.f32 %v3038_v57, %v736_v40 }
 0x153   :  { %v2434_v45 = vpop.f32.mrf.mxu0  ;;  %v2542_v46 = vpop.f32.mrf.mxu1 }
 0x154   :  { %2281 = vst [vmem:[%s3322_s3 + $0x60] sm:$0xff] %v2073_v42   ;;  %2308 = vst [vmem:[%s3322_s3 + $0x138] sm:$0xff] %v2208_v43   ;;  %v1134_v51 = vmax.f32 %v953_v44, 0.0  ;;  %v1080_v55 = vmax.f32 %v737_v47, 0.0 }
 0x155   :  { %v739_v48 = vpop.f32.mrf.mxu0  ;;  %v955_v49 = vpop.f32.mrf.mxu1 }
 0x156   :  { %v740_v50 = vadd.f32 %v3038_v57, %v739_v48  ;;  %v956_v52 = vadd.f32 %v3038_v57, %v955_v49 }
 0x157   :  { %v2435_v53 = vpop.f32.mrf.mxu0  ;;  %v2543_v54 = vpop.f32.mrf.mxu1 }
 0x158   :  { %v1081_v56 = vmax.f32 %v740_v50, 0.0  ;;  %v1135_v58 = vmax.f32 %v956_v52, 0.0 }
 0x159   :  { %v744_v59 = vpop.f32.mrf.mxu0  ;;  %v960_v60 = vpop.f32.mrf.mxu1 }
 0x15a   :  { %v2078_v61 = vpack.c.bf16 %v1081_v56, %v1080_v55  ;;  %v2213_v62 = vpack.c.bf16 %v1135_v58, %v1134_v51  ;;  %v961_v63 = vadd.f32 %v3038_v57, %v960_v60  ;;  %v745_v3 = vadd.f32 %v3038_v57, %v744_v59 }
 0x15b   :  { %v2438_v1 = vpop.f32.mrf.mxu0  ;;  %v2546_v2 = vpop.f32.mrf.mxu1 }
 0x15c   :  { %2282 = vst [vmem:[%s3322_s3 + $0x68] sm:$0xff] %v2078_v61   ;;  %2309 = vst [vmem:[%s3322_s3 + $0x140] sm:$0xff] %v2213_v62   ;;  %v1136_v7 = vmax.f32 %v961_v63, 0.0  ;;  %v1082_v11 = vmax.f32 %v745_v3, 0.0 }
 0x15d   :  { %v747_v4 = vpop.f32.mrf.mxu0  ;;  %v963_v5 = vpop.f32.mrf.mxu1 }
 0x15e   :  { %v748_v6 = vadd.f32 %v3038_v57, %v747_v4  ;;  %v964_v8 = vadd.f32 %v3038_v57, %v963_v5 }
 0x15f   :  { %v2439_v9 = vpop.f32.mrf.mxu0  ;;  %v2547_v10 = vpop.f32.mrf.mxu1 }
 0x160   :  { %v1083_v12 = vmax.f32 %v748_v6, 0.0  ;;  %v1137_v13 = vmax.f32 %v964_v8, 0.0 }
 0x161   :  { %v752_v14 = vpop.f32.mrf.mxu0  ;;  %v968_v15 = vpop.f32.mrf.mxu1 }
 0x162   :  { %v2083_v16 = vpack.c.bf16 %v1083_v12, %v1082_v11  ;;  %v2218_v17 = vpack.c.bf16 %v1137_v13, %v1136_v7  ;;  %v969_v18 = vadd.f32 %v3038_v57, %v968_v15  ;;  %v753_v21 = vadd.f32 %v3038_v57, %v752_v14 }
 0x163   :  { %v2442_v19 = vpop.f32.mrf.mxu0  ;;  %v2550_v20 = vpop.f32.mrf.mxu1 }
 0x164   :  { %2283 = vst [vmem:[%s3322_s3 + $0x70] sm:$0xff] %v2083_v16   ;;  %2310 = vst [vmem:[%s3322_s3 + $0x148] sm:$0xff] %v2218_v17   ;;  %v1138_v24 = vmax.f32 %v969_v18, 0.0  ;;  %v1084_v28 = vmax.f32 %v753_v21, 0.0 }
 0x165   :  { %v755_v22 = vpop.f32.mrf.mxu0  ;;  %v971_v23 = vpop.f32.mrf.mxu1 }
 0x166   :  { %v756_v0 = vadd.f32 %v3038_v57, %v755_v22  ;;  %v972_v25 = vadd.f32 %v3038_v57, %v971_v23 }
 0x167   :  { %v2443_v26 = vpop.f32.mrf.mxu0  ;;  %v2551_v27 = vpop.f32.mrf.mxu1 }
 0x168   :  { %v1085_v29 = vmax.f32 %v756_v0, 0.0  ;;  %v1139_v30 = vmax.f32 %v972_v25, 0.0 }
 0x169   :  { %v760_v31 = vpop.f32.mrf.mxu0  ;;  %v976_v32 = vpop.f32.mrf.mxu1 }
 0x16a   :  { %v2088_v33 = vpack.c.bf16 %v1085_v29, %v1084_v28  ;;  %v2223_v34 = vpack.c.bf16 %v1139_v30, %v1138_v24  ;;  %v977_v35 = vadd.f32 %v3038_v57, %v976_v32  ;;  %v761_v38 = vadd.f32 %v3038_v57, %v760_v31 }
 0x16b   :  { %v2446_v36 = vpop.f32.mrf.mxu0  ;;  %v2554_v37 = vpop.f32.mrf.mxu1 }
 0x16c   :  { %2284 = vst [vmem:[%s3322_s3 + $0x78] sm:$0xff] %v2088_v33   ;;  %2311 = vst [vmem:[%s3322_s3 + $0x150] sm:$0xff] %v2223_v34   ;;  %v1140_v42 = vmax.f32 %v977_v35, 0.0  ;;  %v1086_v46 = vmax.f32 %v761_v38, 0.0 }
 0x16d   :  { %v763_v39 = vpop.f32.mrf.mxu0  ;;  %v979_v40 = vpop.f32.mrf.mxu1 }
 0x16e   :  { %v764_v41 = vadd.f32 %v3038_v57, %v763_v39  ;;  %v980_v43 = vadd.f32 %v3038_v57, %v979_v40 }
 0x16f   :  { %v2447_v44 = vpop.f32.mrf.mxu0  ;;  %v2555_v45 = vpop.f32.mrf.mxu1 }
 0x170   :  { %v1087_v47 = vmax.f32 %v764_v41, 0.0  ;;  %v1141_v48 = vmax.f32 %v980_v43, 0.0 }
 0x171   :  { %v768_v49 = vpop.f32.mrf.mxu0  ;;  %v984_v50 = vpop.f32.mrf.mxu1 }
 0x172   :  { %v2093_v51 = vpack.c.bf16 %v1087_v47, %v1086_v46  ;;  %v2228_v52 = vpack.c.bf16 %v1141_v48, %v1140_v42  ;;  %v985_v53 = vadd.f32 %v3038_v57, %v984_v50  ;;  %v769_v56 = vadd.f32 %v3038_v57, %v768_v49 }
 0x173   :  { %v2450_v54 = vpop.f32.mrf.mxu0  ;;  %v2558_v55 = vpop.f32.mrf.mxu1 }
 0x174   :  { %2285 = vst [vmem:[%s3322_s3 + $0x80] sm:$0xff] %v2093_v51   ;;  %2312 = vst [vmem:[%s3322_s3 + $0x158] sm:$0xff] %v2228_v52   ;;  %v1142_v61 = vmax.f32 %v985_v53, 0.0  ;;  %v1088_v2 = vmax.f32 %v769_v56, 0.0 }
 0x175   :  { %v771_v58 = vpop.f32.mrf.mxu0  ;;  %v987_v59 = vpop.f32.mrf.mxu1 }
 0x176   :  { %v772_v60 = vadd.f32 %v3038_v57, %v771_v58  ;;  %v988_v62 = vadd.f32 %v3038_v57, %v987_v59 }
 0x177   :  { %v2451_v63 = vpop.f32.mrf.mxu0  ;;  %v2559_v1 = vpop.f32.mrf.mxu1 }
 0x178   :  { %v1089_v3 = vmax.f32 %v772_v60, 0.0  ;;  %v1143_v4 = vmax.f32 %v988_v62, 0.0 }
 0x179   :  { %v776_v5 = vpop.f32.mrf.mxu0  ;;  %v992_v6 = vpop.f32.mrf.mxu1 }
 0x17a   :  { %v2098_v7 = vpack.c.bf16 %v1089_v3, %v1088_v2  ;;  %v2233_v8 = vpack.c.bf16 %v1143_v4, %v1142_v61  ;;  %v993_v9 = vadd.f32 %v3038_v57, %v992_v6  ;;  %v777_v12 = vadd.f32 %v3038_v57, %v776_v5 }
 0x17b   :  { %v2454_v10 = vpop.f32.mrf.mxu0  ;;  %v2562_v11 = vpop.f32.mrf.mxu1 }
 0x17c   :  { %2286 = vst [vmem:[%s3322_s3 + $0x88] sm:$0xff] %v2098_v7   ;;  %2313 = vst [vmem:[%s3322_s3 + $0x160] sm:$0xff] %v2233_v8   ;;  %v1144_v16 = vmax.f32 %v993_v9, 0.0  ;;  %v1090_v20 = vmax.f32 %v777_v12, 0.0 }
 0x17d   :  { %v779_v13 = vpop.f32.mrf.mxu0  ;;  %v995_v14 = vpop.f32.mrf.mxu1 }
 0x17e   :  { %v780_v15 = vadd.f32 %v3038_v57, %v779_v13  ;;  %v996_v17 = vadd.f32 %v3038_v57, %v995_v14 }
 0x17f   :  { %v2455_v18 = vpop.f32.mrf.mxu0  ;;  %v2563_v19 = vpop.f32.mrf.mxu1 }
 0x180   :  { %v1091_v21 = vmax.f32 %v780_v15, 0.0  ;;  %v1145_v22 = vmax.f32 %v996_v17, 0.0 }
 0x181   :  { %v784_v23 = vpop.f32.mrf.mxu0  ;;  %v1000_v0 = vpop.f32.mrf.mxu1 }
 0x182   :  { %v2103_v24 = vpack.c.bf16 %v1091_v21, %v1090_v20  ;;  %v2238_v25 = vpack.c.bf16 %v1145_v22, %v1144_v16  ;;  %v1001_v26 = vadd.f32 %v3038_v57, %v1000_v0  ;;  %v785_v29 = vadd.f32 %v3038_v57, %v784_v23 }
 0x183   :  { %v2458_v27 = vpop.f32.mrf.mxu0  ;;  %v2566_v28 = vpop.f32.mrf.mxu1 }
 0x184   :  { %2287 = vst [vmem:[%s3322_s3 + $0x90] sm:$0xff] %v2103_v24   ;;  %2314 = vst [vmem:[%s3322_s3 + $0x168] sm:$0xff] %v2238_v25   ;;  %v1146_v33 = vmax.f32 %v1001_v26, 0.0  ;;  %v1092_v37 = vmax.f32 %v785_v29, 0.0 }
 0x185   :  { %v787_v30 = vpop.f32.mrf.mxu0  ;;  %v1003_v31 = vpop.f32.mrf.mxu1 }
 0x186   :  { %v788_v32 = vadd.f32 %v3038_v57, %v787_v30  ;;  %v1004_v34 = vadd.f32 %v3038_v57, %v1003_v31 }
 0x187   :  { %v2459_v35 = vpop.f32.mrf.mxu0  ;;  %v2567_v36 = vpop.f32.mrf.mxu1 }
 0x188   :  { %v1093_v38 = vmax.f32 %v788_v32, 0.0  ;;  %v1147_v39 = vmax.f32 %v1004_v34, 0.0 }
 0x189   :  { %v792_v40 = vpop.f32.mrf.mxu0  ;;  %v1008_v41 = vpop.f32.mrf.mxu1 }
 0x18a   :  { %v2108_v42 = vpack.c.bf16 %v1093_v38, %v1092_v37  ;;  %v2243_v43 = vpack.c.bf16 %v1147_v39, %v1146_v33  ;;  %v1009_v44 = vadd.f32 %v3038_v57, %v1008_v41  ;;  %v793_v47 = vadd.f32 %v3038_v57, %v792_v40 }
 0x18b   :  { %v2462_v45 = vpop.f32.mrf.mxu0  ;;  %v2570_v46 = vpop.f32.mrf.mxu1 }
 0x18c   :  { %2288 = vst [vmem:[%s3322_s3 + $0x98] sm:$0xff] %v2108_v42   ;;  %2315 = vst [vmem:[%s3322_s3 + $0x170] sm:$0xff] %v2243_v43   ;;  %v1148_v51 = vmax.f32 %v1009_v44, 0.0  ;;  %v1094_v55 = vmax.f32 %v793_v47, 0.0 }
 0x18d   :  { %v795_v48 = vpop.f32.mrf.mxu0  ;;  %v1011_v49 = vpop.f32.mrf.mxu1 }
 0x18e   :  { %v796_v50 = vadd.f32 %v3038_v57, %v795_v48  ;;  %v1012_v52 = vadd.f32 %v3038_v57, %v1011_v49 }
 0x18f   :  { %v2463_v53 = vpop.f32.mrf.mxu0  ;;  %v2571_v54 = vpop.f32.mrf.mxu1 }
 0x190   :  { %v1095_v56 = vmax.f32 %v796_v50, 0.0  ;;  %v1149_v58 = vmax.f32 %v1012_v52, 0.0 }
 0x191   :  { %v800_v59 = vpop.f32.mrf.mxu0  ;;  %v1016_v60 = vpop.f32.mrf.mxu1 }
 0x192   :  { %v2113_v61 = vpack.c.bf16 %v1095_v56, %v1094_v55  ;;  %v2248_v62 = vpack.c.bf16 %v1149_v58, %v1148_v51  ;;  %v1017_v63 = vadd.f32 %v3038_v57, %v1016_v60  ;;  %v801_v3 = vadd.f32 %v3038_v57, %v800_v59 }
 0x193   :  { %v2466_v1 = vpop.f32.mrf.mxu0  ;;  %v2574_v2 = vpop.f32.mrf.mxu1 }
 0x194   :  { %2289 = vst [vmem:[%s3322_s3 + $0xa0] sm:$0xff] %v2113_v61   ;;  %2316 = vst [vmem:[%s3322_s3 + $0x178] sm:$0xff] %v2248_v62   ;;  %v1150_v7 = vmax.f32 %v1017_v63, 0.0  ;;  %v1096_v11 = vmax.f32 %v801_v3, 0.0 }
 0x195   :  { %v803_v4 = vpop.f32.mrf.mxu0  ;;  %v1019_v5 = vpop.f32.mrf.mxu1 }
 0x196   :  { %v804_v6 = vadd.f32 %v3038_v57, %v803_v4  ;;  %v1020_v8 = vadd.f32 %v3038_v57, %v1019_v5 }
 0x197   :  { %v2467_v9 = vpop.f32.mrf.mxu0  ;;  %v2575_v10 = vpop.f32.mrf.mxu1 }
 0x198   :  { %v1097_v12 = vmax.f32 %v804_v6, 0.0  ;;  %v1151_v13 = vmax.f32 %v1020_v8, 0.0  ;;  %v2658_v9 = vld [vmem:[#allocation4] ss:$0 sm:$0xff] }
 0x199   :  { %v808_v14 = vpop.f32.mrf.mxu0  ;;  %v1024_v15 = vpop.f32.mrf.mxu1 }
 0x19a   :  { %v2118_v16 = vpack.c.bf16 %v1097_v12, %v1096_v11  ;;  %v2253_v17 = vpack.c.bf16 %v1151_v13, %v1150_v7  ;;  %v1025_v18 = vadd.f32 %v3038_v57, %v1024_v15  ;;  %v809_v21 = vadd.f32 %v3038_v57, %v808_v14 }
 0x19b   :  { %v2470_v19 = vpop.f32.mrf.mxu0  ;;  %v2578_v20 = vpop.f32.mrf.mxu1 }
 0x19c   :  { %2290 = vst [vmem:[%s3322_s3 + $0xa8] sm:$0xff] %v2118_v16   ;;  %2317 = vst [vmem:[%s3322_s3 + $0x180] sm:$0xff] %v2253_v17   ;;  %v1152_v24 = vmax.f32 %v1025_v18, 0.0  ;;  %v1098_v28 = vmax.f32 %v809_v21, 0.0 }
 0x19d   :  { %v811_v22 = vpop.f32.mrf.mxu0  ;;  %v1027_v23 = vpop.f32.mrf.mxu1 }
 0x19e   :  { %v812_v0 = vadd.f32 %v3038_v57, %v811_v22  ;;  %v1028_v25 = vadd.f32 %v3038_v57, %v1027_v23 }
 0x19f   :  { %v2471_v26 = vpop.f32.mrf.mxu0  ;;  %v2579_v27 = vpop.f32.mrf.mxu1 }
 0x1a0   :  { %v1099_v29 = vmax.f32 %v812_v0, 0.0  ;;  %v1153_v30 = vmax.f32 %v1028_v25, 0.0 }
 0x1a1   :  { %v816_v31 = vpop.f32.mrf.mxu0  ;;  %v1032_v32 = vpop.f32.mrf.mxu1 }
 0x1a2   :  { %v2123_v33 = vpack.c.bf16 %v1099_v29, %v1098_v28  ;;  %v2258_v34 = vpack.c.bf16 %v1153_v30, %v1152_v24  ;;  %v1033_v35 = vadd.f32 %v3038_v57, %v1032_v32  ;;  %v817_v38 = vadd.f32 %v3038_v57, %v816_v31 }
 0x1a3   :  { %v2474_v36 = vpop.f32.mrf.mxu0  ;;  %v2582_v37 = vpop.f32.mrf.mxu1 }
 0x1a4   :  { %2291 = vst [vmem:[%s3322_s3 + $0xb0] sm:$0xff] %v2123_v33   ;;  %2318 = vst [vmem:[%s3322_s3 + $0x188] sm:$0xff] %v2258_v34   ;;  %v1154_v42 = vmax.f32 %v1033_v35, 0.0  ;;  %v1100_v46 = vmax.f32 %v817_v38, 0.0 }
 0x1a5   :  { %v819_v39 = vpop.f32.mrf.mxu0  ;;  %v1035_v40 = vpop.f32.mrf.mxu1 }
 0x1a6   :  { %v820_v41 = vadd.f32 %v3038_v57, %v819_v39  ;;  %v1036_v43 = vadd.f32 %v3038_v57, %v1035_v40 }
 0x1a7   :  { %v2475_v44 = vpop.f32.mrf.mxu0  ;;  %v2583_v45 = vpop.f32.mrf.mxu1 }
 0x1a8   :  { %v1101_v47 = vmax.f32 %v820_v41, 0.0  ;;  %v1155_v48 = vmax.f32 %v1036_v43, 0.0 }
 0x1a9   :  { %v824_v49 = vpop.f32.mrf.mxu0  ;;  %v1040_v50 = vpop.f32.mrf.mxu1 }
 0x1aa   :  { %v2128_v51 = vpack.c.bf16 %v1101_v47, %v1100_v46  ;;  %v2263_v52 = vpack.c.bf16 %v1155_v48, %v1154_v42  ;;  %v1041_v53 = vadd.f32 %v3038_v57, %v1040_v50  ;;  %v825_v56 = vadd.f32 %v3038_v57, %v824_v49 }
 0x1ab   :  { %v2478_v54 = vpop.f32.mrf.mxu0  ;;  %v2586_v55 = vpop.f32.mrf.mxu1 }
 0x1ac   :  { %2292 = vst [vmem:[%s3322_s3 + $0xb8] sm:$0xff] %v2128_v51   ;;  %2319 = vst [vmem:[%s3322_s3 + $0x190] sm:$0xff] %v2263_v52   ;;  %v1156_v61 = vmax.f32 %v1041_v53, 0.0  ;;  %v1102_v2 = vmax.f32 %v825_v56, 0.0 }
 0x1ad   :  { %v827_v58 = vpop.f32.mrf.mxu0  ;;  %v1043_v59 = vpop.f32.mrf.mxu1 }
 0x1ae   :  { %v828_v60 = vadd.f32 %v3038_v57, %v827_v58  ;;  %v1044_v62 = vadd.f32 %v3038_v57, %v1043_v59 }
 0x1af   :  { %v2479_v63 = vpop.f32.mrf.mxu0  ;;  %v2587_v1 = vpop.f32.mrf.mxu1 }
 0x1b0   :  { %v1103_v3 = vmax.f32 %v828_v60, 0.0  ;;  %v1157_v4 = vmax.f32 %v1044_v62, 0.0 }
 0x1b1   :  { %v832_v5 = vpop.f32.mrf.mxu0  ;;  %v1048_v6 = vpop.f32.mrf.mxu1 }
 0x1b2   :  { %v2133_v7 = vpack.c.bf16 %v1103_v3, %v1102_v2  ;;  %v2268_v8 = vpack.c.bf16 %v1157_v4, %v1156_v61  ;;  %v1049_v10 = vadd.f32 %v2658_v9, %v1048_v6  ;;  %v833_v13 = vadd.f32 %v2658_v9, %v832_v5 }
 0x1b3   :  { %v2482_v11 = vpop.f32.mrf.mxu0  ;;  %v2590_v12 = vpop.f32.mrf.mxu1 }
 0x1b4   :  { %2293 = vst [vmem:[%s3322_s3 + $0xc0] sm:$0xff] %v2133_v7   ;;  %2320 = vst [vmem:[%s3322_s3 + $0x198] sm:$0xff] %v2268_v8   ;;  %v1158_v57 = vmax.f32 %v1049_v10, 0.0  ;;  %v1104_v20 = vmax.f32 %v833_v13, 0.0 }
 0x1b5   :  { %v835_v14 = vpop.f32.mrf.mxu0  ;;  %v1051_v15 = vpop.f32.mrf.mxu1 }
 0x1b6   :  { %v836_v16 = vadd.f32 %v2658_v9, %v835_v14  ;;  %v2009_v17 = vpack.c.bf16 %v1158_v57, %v1158_v57 }
 0x1b7   :  { %v2483_v18 = vpop.f32.mrf.mxu0  ;;  %v2591_v19 = vpop.f32.mrf.mxu1 }
 0x1b8   :  { %v1105_v21 = vmax.f32 %v836_v16, 0.0  ;;  %1684 = vst [vmem:[%s3322_s3 + $0x1a0] sm:$0xf] %v2009_v17 }
 0x1b9   :  { %v840_v22 = vpop.f32.mrf.mxu0 }
 0x1ba   :  { %v2138_v23 = vpack.c.bf16 %v1105_v21, %v1104_v20  ;;  %v841_v24 = vadd.f32 %v2658_v9, %v840_v22 }
 0x1bb   :  { %v2486_v0 = vpop.f32.mrf.mxu0 }
 0x1bc   :  { %2294 = vst [vmem:[%s3322_s3 + $0xc8] sm:$0xff] %v2138_v23   ;;  %v1106_v28 = vmax.f32 %v841_v24, 0.0 }
 0x1bd   :  { %v843_v25 = vpop.f32.mrf.mxu0 }
 0x1be   :  { %v844_v26 = vadd.f32 %v2658_v9, %v843_v25 }
 0x1bf   :  { %v2487_v27 = vpop.f32.mrf.mxu0 }
 0x1c0   :  { %v1107_v29 = vmax.f32 %v844_v26, 0.0 }
 0x1c2   :  { %v2143_v30 = vpack.c.bf16 %v1107_v29, %v1106_v28 }
 0x1c4   :  { %2295 = vst [vmem:[%s3322_s3 + $0xd0] sm:$0xff] %v2143_v30  }
 0x1c5   :  { %1689 = vsyncpa [#allocation3], 1 }
 0x1c6   :  { %1690 = vsyncpa [#allocation5], 1 }

// kernel: tone_cnn_forward.6
= control target key start
LH: loop header
LB: loop body
LE: loop exit
PB: predicated region body
PF: predicated region fallthrough
CT: control target
= control target key end

     0   :  { %v2206_v0 = vmov 0   ;;  %vm857_vm0 = vcmask 523264   ;;  %s2872_s1 = inlined_call_operand.vmem [shape: bf16[576,128], index: 1, kind: input, shape index: {}]   ;;  %s2873_s0 = inlined_call_operand.vmem [shape: bf16[280,576], index: 0, kind: input, shape index: {}]   ;;  %s2874_s2 = inlined_call_operand.vmem [shape: f32[1,128], index: 2, kind: input, shape index: {}]   ;;  %s2875_s3 = inlined_call_operand.vmem [shape: bf16[280,128], index: 3, kind: output, shape index: {}]  }
   0x1   :  { %912 = vmatprep.subr.bf16.mxu0 %v2206_v0  ;;  %1088 = vmatprep.subr.bf16.mxu1 %v2206_v0  ;;  %v2046_v1 = vld [vmem:[%s2872_s1 + $0x38] sm:$0xff]   ;;  %v2048_v3 = vld [vmem:[%s2872_s1 + $0x30] sm:$0xff]   ;;  %v2050_v5 = vld [vmem:[%s2872_s1 + $0x28] sm:$0xff]  }
   0x2   :  { %v2047_v2 = vld [vmem:[%s2872_s1 + $0xb8] sm:$0xff]   ;;  %913 = vmatpush1.bf16.msra.mxu0 %v2046_v1  ;;  %v2049_v4 = vld [vmem:[%s2872_s1 + $0xb0] sm:$0xff]   ;;  %v2051_v6 = vld [vmem:[%s2872_s1 + $0xa8] sm:$0xff]  }
   0x3   :  { %1089 = vmatpush1.bf16.msra.mxu1 %v2047_v2  ;;  %914 = vmatprep.subr.bf16.mxu0 %v2206_v0  ;;  %v2052_v7 = vld [vmem:[%s2872_s1 + $0x20] sm:$0xff]   ;;  %v2054_v9 = vld [vmem:[%s2872_s1 + $0x18] sm:$0xff]   ;;  %v2056_v11 = vld [vmem:[%s2872_s1 + $0x10] sm:$0xff]  }
   0x4   :  { %1090 = vmatprep.subr.bf16.mxu1 %v2206_v0  ;;  %v2053_v8 = vld [vmem:[%s2872_s1 + $0xa0] sm:$0xff]   ;;  %v2055_v10 = vld [vmem:[%s2872_s1 + $0x98] sm:$0xff]   ;;  %v2057_v12 = vld [vmem:[%s2872_s1 + $0x90] sm:$0xff]  }
   0x5   :  { %v2058_v13 = vld [vmem:[%s2872_s1 + $0x8] sm:$0xff]   ;;  %v2060_v15 = vld [vmem:[%s2872_s1] sm:$0xff]   ;;  %v2062_v17 = vld [vmem:[%s2872_s1 + $0x78] sm:$0xff]  }
   0x6   :  { %915 = vmatpush1.bf16.msra.mxu0 %v2048_v3  ;;  %v2059_v14 = vld [vmem:[%s2872_s1 + $0x88] sm:$0xff]   ;;  %v2061_v16 = vld [vmem:[%s2872_s1 + $0x80] sm:$0xff]   ;;  %v2063_v18 = vld [vmem:[%s2872_s1 + $0xf8] sm:$0xff]  }
   0x7   :  { %1091 = vmatpush1.bf16.msra.mxu1 %v2049_v4  ;;  %916 = vmatprep.subr.bf16.mxu0 %v2206_v0  ;;  %v2080_v19 = vld [vmem:[%s2873_s0 + $0x4] ss:$20 sps:$4 sm:$0xff]   ;;  %v2064_v20 = vld [vmem:[%s2872_s1 + $0x70] sm:$0xff]   ;;  %v2083_v21 = vld [vmem:[%s2873_s0 + $0xc] ss:$20 sps:$4 sm:$0xff]  }
   0x8   :  { %1092 = vmatprep.subr.bf16.mxu1 %v2206_v0  ;;  %v2065_v22 = vld [vmem:[%s2872_s1 + $0xf0] sm:$0xff]   ;;  %944 = vmatprep.mubr.bf16.mxu0 %v2080_v19  ;;  %v2066_v23 = vld [vmem:[%s2872_s1 + $0x68] sm:$0xff]   ;;  %v2068_v25 = vld [vmem:[%s2872_s1 + $0x60] sm:$0xff]  }
   0x9   :  { %1120 = vmatprep.mubr.bf16.mxu1 %v2083_v21  ;;  %v2067_v24 = vld [vmem:[%s2872_s1 + $0xe8] sm:$0xff]   ;;  %v2069_v26 = vld [vmem:[%s2872_s1 + $0xe0] sm:$0xff]   ;;  %v2070_v27 = vld [vmem:[%s2872_s1 + $0x58] sm:$0xff]  }
   0xa   :  { %917 = vmatpush1.bf16.msra.mxu0 %v2050_v5  ;;  %v2071_v28 = vld [vmem:[%s2872_s1 + $0xd8] sm:$0xff]   ;;  %v2072_v29 = vld [vmem:[%s2872_s1 + $0x50] sm:$0xff]   ;;  %v2074_v31 = vld [vmem:[%s2872_s1 + $0x48] sm:$0xff]  }
   0xb   :  { %1093 = vmatpush1.bf16.msra.mxu1 %v2051_v6  ;;  %918 = vmatprep.subr.bf16.mxu0 %v2206_v0  ;;  %v2073_v30 = vld [vmem:[%s2872_s1 + $0xd0] sm:$0xff]   ;;  %v2075_v32 = vld [vmem:[%s2872_s1 + $0xc8] sm:$0xff]   ;;  %v2076_v33 = vld [vmem:[%s2872_s1 + $0x40] sm:$0xff]  }
   0xc   :  { %1094 = vmatprep.subr.bf16.mxu1 %v2206_v0  ;;  %v2077_v34 = vld [vmem:[%s2872_s1 + $0xc0] sm:$0xff]   ;;  %v2084_v35 = vld [vmem:[%s2872_s1 + $0x118] sm:$0xff]   ;;  %v2087_v39 = vld [vmem:[%s2873_s0 + $0x34] ss:$20 sps:$4 sm:$0xff]  }
   0xd   :  { %v2078_v36 = vld [vmem:[%s2873_s0] ss:$20 sps:$4 sm:$0xff]   ;;  %v2081_v37 = vld [vmem:[%s2873_s0 + $0x8] ss:$20 sps:$4 sm:$0xff]   ;;  %v2090_v43 = vld [vmem:[%s2873_s0 + $0x30] ss:$20 sps:$4 sm:$0xff]  }
   0xe   :  { %919 = vmatpush1.bf16.msra.mxu0 %v2052_v7  ;;  %v2085_v38 = vld [vmem:[%s2873_s0 + $0x2c] ss:$20 sps:$4 sm:$0xff]   ;;  %v2109_v40 = vld [vmem:[%s2872_s1 + $0x110] sm:$0xff]   ;;  %v2089_v42 = vld [vmem:[%s2873_s0 + $0x28] ss:$20 sps:$4 sm:$0xff]  }
   0xf   :  { %1095 = vmatpush1.bf16.msra.mxu1 %v2053_v8  ;;  %920 = vmatprep.subr.bf16.mxu0 %v2206_v0  ;;  %v2140_v41 = vld [vmem:[%s2872_s1 + $0x108] sm:$0xff]   ;;  %v2093_v45 = vld [vmem:[%s2873_s0 + $0x5c] ss:$20 sps:$4 sm:$0xff]   ;;  %v2165_v46 = vld [vmem:[%s2872_s1 + $0x100] sm:$0xff]  }
  0x10   :  { %1096 = vmatprep.subr.bf16.mxu1 %v2206_v0  ;;  %v2091_v44 = vld [vmem:[%s2873_s0 + $0x54] ss:$20 sps:$4 sm:$0xff]   ;;  %v2095_v47 = vld [vmem:[%s2873_s0 + $0x50] ss:$20 sps:$4 sm:$0xff]   ;;  %v2096_v48 = vld [vmem:[%s2873_s0 + $0x58] ss:$20 sps:$4 sm:$0xff]  }
  0x11   :  { %v2097_v49 = vld [vmem:[%s2873_s0 + $0x7c] ss:$20 sps:$4 sm:$0xff]   ;;  %v2099_v50 = vld [vmem:[%s2873_s0 + $0x84] ss:$20 sps:$4 sm:$0xff]   ;;  %v2102_v52 = vld [vmem:[%s2873_s0 + $0x80] ss:$20 sps:$4 sm:$0xff]  }
  0x12   :  { %921 = vmatpush1.bf16.msra.mxu0 %v2054_v9  ;;  %v2101_v51 = vld [vmem:[%s2873_s0 + $0x78] ss:$20 sps:$4 sm:$0xff]   ;;  %v2107_v55 = vld [vmem:[%s2873_s0 + $0xa0] ss:$20 sps:$4 sm:$0xff]   ;;  %v2108_v56 = vld [vmem:[%s2873_s0 + $0xa8] ss:$20 sps:$4 sm:$0xff]  }
  0x13   :  { %1097 = vmatpush1.bf16.msra.mxu1 %v2055_v10  ;;  %922 = vmatprep.subr.bf16.mxu0 %v2206_v0  ;;  %v2103_v53 = vld [vmem:[%s2873_s0 + $0xa4] ss:$20 sps:$4 sm:$0xff]   ;;  %v2105_v54 = vld [vmem:[%s2873_s0 + $0xac] ss:$20 sps:$4 sm:$0xff]   ;;  %v2112_v58 = vld [vmem:[%s2873_s0 + $0xd4] ss:$20 sps:$4 sm:$0xff]  }
  0x14   :  { %1098 = vmatprep.subr.bf16.mxu1 %v2206_v0  ;;  %v2110_v57 = vld [vmem:[%s2873_s0 + $0xcc] ss:$20 sps:$4 sm:$0xff]   ;;  %v2114_v59 = vld [vmem:[%s2873_s0 + $0xc8] ss:$20 sps:$4 sm:$0xff]   ;;  %v2115_v60 = vld [vmem:[%s2873_s0 + $0xd0] ss:$20 sps:$4 sm:$0xff]  }
  0x15   :  { %v2116_v61 = vld [vmem:[%s2873_s0 + $0xf4] ss:$20 sps:$4 sm:$0xff]   ;;  %v2118_v62 = vld [vmem:[%s2873_s0 + $0xfc] ss:$20 sps:$4 sm:$0xff]   ;;  %v2124_v2 = vld [vmem:[%s2873_s0 + $0x124] ss:$20 sps:$4 sm:$0xff]  }
  0x16   :  { %923 = vmatpush1.bf16.msra.mxu0 %v2056_v11  ;;  %v2120_v63 = vld [vmem:[%s2873_s0 + $0xf0] ss:$20 sps:$4 sm:$0xff]   ;;  %v2126_v3 = vld [vmem:[%s2873_s0 + $0x118] ss:$20 sps:$4 sm:$0xff]   ;;  %v2127_v4 = vld [vmem:[%s2873_s0 + $0x120] ss:$20 sps:$4 sm:$0xff]  }
  0x17   :  { %1099 = vmatpush1.bf16.msra.mxu1 %v2057_v12  ;;  %924 = vmatprep.subr.bf16.mxu0 %v2206_v0  ;;  %v2122_v1 = vld [vmem:[%s2873_s0 + $0x11c] ss:$20 sps:$4 sm:$0xff]   ;;  %v2128_v5 = vld [vmem:[%s2873_s0 + $0x144] ss:$20 sps:$4 sm:$0xff]   ;;  %v2130_v6 = vld [vmem:[%s2873_s0 + $0x14c] ss:$20 sps:$4 sm:$0xff]  }
  0x18   :  { %1100 = vmatprep.subr.bf16.mxu1 %v2206_v0  ;;  %v2132_v7 = vld [vmem:[%s2873_s0 + $0x140] ss:$20 sps:$4 sm:$0xff]   ;;  %v2133_v8 = vld [vmem:[%s2873_s0 + $0x148] ss:$20 sps:$4 sm:$0xff]   ;;  %v2139_v12 = vld [vmem:[%s2873_s0 + $0x170] ss:$20 sps:$4 sm:$0xff]  }
  0x19   :  { %v2134_v9 = vld [vmem:[%s2873_s0 + $0x16c] ss:$20 sps:$4 sm:$0xff]   ;;  %v2136_v10 = vld [vmem:[%s2873_s0 + $0x174] ss:$20 sps:$4 sm:$0xff]   ;;  %v2153_v21 = vld [vmem:[%s2873_s0 + $0x1e4] ss:$20 sps:$4 sm:$0xff]  }
  0x1a   :  { %925 = vmatpush1.bf16.msra.mxu0 %v2058_v13  ;;  %v2138_v11 = vld [vmem:[%s2873_s0 + $0x168] ss:$20 sps:$4 sm:$0xff]   ;;  %v2151_v19 = vld [vmem:[%s2873_s0 + $0x1b8] ss:$20 sps:$4 sm:$0xff]  }
  0x1b   :  { %1101 = vmatpush1.bf16.msra.mxu1 %v2059_v14  ;;  %926 = vmatprep.subr.bf16.mxu0 %v2206_v0  ;;  %v2141_v13 = vld [vmem:[%s2873_s0 + $0x194] ss:$20 sps:$4 sm:$0xff]   ;;  %v2143_v14 = vld [vmem:[%s2873_s0 + $0x19c] ss:$20 sps:$4 sm:$0xff]  }
  0x1c   :  { %1102 = vmatprep.subr.bf16.mxu1 %v2206_v0 }
  0x1e   :  { %927 = vmatpush1.bf16.msra.mxu0 %v2060_v15  ;;  %v2145_v15 = vld [vmem:[%s2873_s0 + $0x190] ss:$20 sps:$4 sm:$0xff]  }
  0x1f   :  { %1103 = vmatpush1.bf16.msra.mxu1 %v2061_v16  ;;  %928 = vmatprep.subr.bf16.mxu0 %v2206_v0  ;;  %v2146_v16 = vld [vmem:[%s2873_s0 + $0x198] ss:$20 sps:$4 sm:$0xff]  }
  0x20   :  { %1104 = vmatprep.subr.bf16.mxu1 %v2206_v0 }
  0x22   :  { %929 = vmatpush2.bf16.msra.mxu0 %v2062_v17  ;;  %v2147_v17 = vld [vmem:[%s2873_s0 + $0x1bc] ss:$20 sps:$4 sm:$0xff]  }
  0x23   :  { %1105 = vmatpush2.bf16.msra.mxu1 %v2063_v18  ;;  %930 = vmatprep.subr.bf16.mxu0 %v2206_v0  ;;  %v2149_v18 = vld [vmem:[%s2873_s0 + $0x1c4] ss:$20 sps:$4 sm:$0xff]  }
  0x24   :  { %1106 = vmatprep.subr.bf16.mxu1 %v2206_v0 }
  0x26   :  { %931 = vmatpush2.bf16.msra.mxu0 %v2064_v20  ;;  %v2152_v20 = vld [vmem:[%s2873_s0 + $0x1c0] ss:$20 sps:$4 sm:$0xff]  }
  0x27   :  { %1107 = vmatpush2.bf16.msra.mxu1 %v2065_v22  ;;  %932 = vmatprep.subr.bf16.mxu0 %v2206_v0  ;;  %v2155_v22 = vld [vmem:[%s2873_s0 + $0x1ec] ss:$20 sps:$4 sm:$0xff]  }
  0x28   :  { %1108 = vmatprep.subr.bf16.mxu1 %v2206_v0 }
  0x2a   :  { %933 = vmatpush2.bf16.msra.mxu0 %v2066_v23  ;;  %v2157_v23 = vld [vmem:[%s2873_s0 + $0x1e0] ss:$20 sps:$4 sm:$0xff]  }
  0x2b   :  { %1109 = vmatpush2.bf16.msra.mxu1 %v2067_v24  ;;  %934 = vmatprep.subr.bf16.mxu0 %v2206_v0  ;;  %v2158_v24 = vld [vmem:[%s2873_s0 + $0x1e8] ss:$20 sps:$4 sm:$0xff]  }
  0x2c   :  { %1110 = vmatprep.subr.bf16.mxu1 %v2206_v0 }
  0x2e   :  { %935 = vmatpush2.bf16.msra.mxu0 %v2068_v25  ;;  %v2159_v25 = vld [vmem:[%s2873_s0 + $0x20c] ss:$20 sps:$4 sm:$0xff]  }
  0x2f   :  { %1111 = vmatpush2.bf16.msra.mxu1 %v2069_v26  ;;  %936 = vmatprep.subr.bf16.mxu0 %v2206_v0  ;;  %v2161_v26 = vld [vmem:[%s2873_s0 + $0x214] ss:$20 sps:$4 sm:$0xff]  }
  0x30   :  { %1112 = vmatprep.subr.bf16.mxu1 %v2206_v0 }
  0x32   :  { %937 = vmatpush2.bf16.msra.mxu0 %v2070_v27  ;;  %v2163_v27 = vld [vmem:[%s2873_s0 + $0x208] ss:$20 sps:$4 sm:$0xff]  }
  0x33   :  { %1113 = vmatpush2.bf16.msra.mxu1 %v2071_v28  ;;  %938 = vmatprep.subr.bf16.mxu0 %v2206_v0  ;;  %v2164_v28 = vld [vmem:[%s2873_s0 + $0x210] ss:$20 sps:$4 sm:$0xff]  }
  0x34   :  { %1114 = vmatprep.subr.bf16.mxu1 %v2206_v0 }
  0x36   :  { %939 = vmatpush2.bf16.msra.mxu0 %v2072_v29  ;;  %v2166_v29 = vld [vmem:[%s2873_s0 + $0x234] ss:$20 sps:$4 sm:$0xff]  }
  0x37   :  { %1115 = vmatpush2.bf16.msra.mxu1 %v2073_v30  ;;  %940 = vmatprep.subr.bf16.mxu0 %v2206_v0  ;;  %v2168_v30 = vld [vmem:[%s2873_s0 + $0x23c] ss:$20 sps:$4 sm:$0xff]  }
  0x38   :  { %1116 = vmatprep.subr.bf16.mxu1 %v2206_v0 }
  0x3a   :  { %941 = vmatpush2.bf16.msra.mxu0 %v2074_v31  ;;  %v2170_v31 = vld [vmem:[%s2873_s0 + $0x230] ss:$20 sps:$4 sm:$0xff]  }
  0x3b   :  { %1117 = vmatpush2.bf16.msra.mxu1 %v2075_v32  ;;  %942 = vmatprep.subr.bf16.mxu0 %v2206_v0  ;;  %v2171_v32 = vld [vmem:[%s2873_s0 + $0x238] ss:$20 sps:$4 sm:$0xff]  }
  0x3c   :  { %1118 = vmatprep.subr.bf16.mxu1 %v2206_v0  ;;  %v2121_v0 = vld [vmem:[%s2873_s0 + $0xf8] ss:$20 sps:$4 sm:$0xff]  }
  0x3e   :  { %943 = vmatpush2.bf16.msra.mxu0 %v2076_v33  ;;  %v2172_v33 = vld [vmem:[%s2873_s0 + $0x25c] ss:$20 sps:$4 sm:$0xff]  }
  0x3f   :  { %1119 = vmatpush2.bf16.msra.mxu1 %v2077_v34  ;;  %1993 = vmatprep.subr.bf16.mxu0 %v2084_v35  ;;  %v2174_v34 = vld [vmem:[%s2873_s0 + $0x264] ss:$20 sps:$4 sm:$0xff]  }
  0x40   :  { %2037 = vmatprep.subr.bf16.mxu1 %v2084_v35 }
  0x41   :  { %945 = vmatmul.mubr.bf16.vlgmr.msra.gmra.mxu0 %v2078_v36  ;;  %v2177_v36 = vld [vmem:[%s2873_s0 + $0x260] ss:$20 sps:$4 sm:$0xff]  }
  0x42   :  { %1121 = vmatmul.mubr.bf16.vlgmr.msra.gmra.mxu1 %v2081_v37  ;;  %1994 = vmatpush3.bf16.msra.mxu0 %v2084_v35  ;;  %v2178_v37 = vld [vmem:[%s2873_s0 + $0x284] ss:$20 sps:$4 sm:$0xff]  }
  0x43   :  { %952 = vmatprep.mubr.bf16.mxu0 %v2085_v38  ;;  %1128 = vmatprep.mubr.bf16.mxu1 %v2087_v39  ;;  %v2180_v38 = vld [vmem:[%s2873_s0 + $0x28c] ss:$20 sps:$4 sm:$0xff]  }
  0x44   :  { %2041 = vmatpush3.bf16.msra.mxu1 %v2084_v35  ;;  %1995 = vmatprep.subr.bf16.mxu0 %v2109_v40  ;;  %v2176_v35 = vld [vmem:[%s2873_s0 + $0x258] ss:$20 sps:$4 sm:$0xff]  }
  0x45   :  { %2038 = vmatprep.subr.bf16.mxu1 %v2109_v40  ;;  %v117_v39 = vld [vmem:[%s2873_s0 + $0x2a8] sm:$0xff] }
  0x46   :  { %1996 = vmatpush3.bf16.msra.mxu0 %v2109_v40 }
  0x47   :  { %1997 = vmatprep.subr.bf16.mxu0 %v2140_v41 }
  0x48   :  { %2042 = vmatpush3.bf16.msra.mxu1 %v2109_v40  ;;  %v118_v40 = vld [vmem:[%s2873_s0 + $0x2b0] sm:$0xff] }
  0x49   :  { %953 = vmatmul.mubr.bf16.gmra.mxu0 %v2089_v42  ;;  %2039 = vmatprep.subr.bf16.mxu1 %v2140_v41  ;;  %v2183_v42 = vld [vmem:[%s2873_s0 + $0x288] ss:$20 sps:$4 sm:$0xff]  }
  0x4a   :  { %1129 = vmatmul.mubr.bf16.gmra.mxu1 %v2090_v43  ;;  %960 = vmatprep.mubr.bf16.mxu0 %v2091_v44  ;;  %v1742_v43 = vcombine.high %v117_v39, %v117_v39  ;;  %v1744_v44 = vcombine.high %v118_v40, %v118_v40 }
  0x4b   :  { %1136 = vmatprep.mubr.bf16.mxu1 %v2093_v45  ;;  %1998 = vmatpush3.bf16.msra.mxu0 %v2140_v41  ;;  %v1741_v45 = vcombine.low %v117_v39, %v117_v39 }
  0x4c   :  { %2043 = vmatpush3.bf16.msra.mxu1 %v2140_v41  ;;  %1999 = vmatprep.subr.bf16.mxu0 %v2165_v46  ;;  %v2182_v41 = vld [vmem:[%s2873_s0 + $0x280] ss:$20 sps:$4 sm:$0xff]  }
  0x4d   :  { %2040 = vmatprep.subr.bf16.mxu1 %v2165_v46 }
  0x4f   :  { %2000 = vmatpush3.bf16.msra.mxu0 %v2165_v46 }
  0x50   :  { %2044 = vmatpush3.bf16.msra.mxu1 %v2165_v46  ;;  %v1743_v46 = vcombine.low %v118_v40, %v118_v40 }
  0x51   :  { %961 = vmatmul.mubr.bf16.gmra.mxu0 %v2095_v47  ;;  %v2188_v47 = vld [vmem:[%s2873_s0 + $0x10] ss:$20 sps:$4 sm:$0xff]  }
  0x52   :  { %1137 = vmatmul.mubr.bf16.gmra.mxu1 %v2096_v48  ;;  %968 = vmatprep.mubr.bf16.mxu0 %v2097_v49  ;;  %v2189_v48 = vld [vmem:[%s2873_s0 + $0x1a0] ss:$20 sps:$4 sm:$0xff]   ;;  %v2190_v49 = vld [vmem:[%s2873_s0 + $0x38] ss:$20 sps:$4 sm:$0xff]  }
  0x53   :  { %1144 = vmatprep.mubr.bf16.mxu1 %v2099_v50  ;;  %v2191_v50 = vld [vmem:[%s2873_s0 + $0x1c8] ss:$20 sps:$4 sm:$0xff]  }
  0x59   :  { %969 = vmatmul.mubr.bf16.gmra.mxu0 %v2101_v51  ;;  %v2192_v51 = vld [vmem:[%s2873_s0 + $0x60] ss:$20 sps:$4 sm:$0xff]  }
  0x5a   :  { %1145 = vmatmul.mubr.bf16.gmra.mxu1 %v2102_v52  ;;  %976 = vmatprep.mubr.bf16.mxu0 %v2103_v53  ;;  %v2193_v52 = vld [vmem:[%s2873_s0 + $0x1f0] ss:$20 sps:$4 sm:$0xff]   ;;  %v2194_v53 = vld [vmem:[%s2873_s0 + $0x88] ss:$20 sps:$4 sm:$0xff]  }
  0x5b   :  { %1152 = vmatprep.mubr.bf16.mxu1 %v2105_v54  ;;  %v2195_v54 = vld [vmem:[%s2873_s0 + $0x218] ss:$20 sps:$4 sm:$0xff]  }
  0x61   :  { %977 = vmatmul.mubr.bf16.gmra.mxu0 %v2107_v55  ;;  %v2196_v55 = vld [vmem:[%s2873_s0 + $0xb0] ss:$20 sps:$4 sm:$0xff]  }
  0x62   :  { %1153 = vmatmul.mubr.bf16.gmra.mxu1 %v2108_v56  ;;  %984 = vmatprep.mubr.bf16.mxu0 %v2110_v57  ;;  %v2197_v56 = vld [vmem:[%s2873_s0 + $0x240] ss:$20 sps:$4 sm:$0xff]   ;;  %v2198_v57 = vld [vmem:[%s2873_s0 + $0xd8] ss:$20 sps:$4 sm:$0xff]  }
  0x63   :  { %1160 = vmatprep.mubr.bf16.mxu1 %v2112_v58  ;;  %v2199_v58 = vld [vmem:[%s2873_s0 + $0x268] ss:$20 sps:$4 sm:$0xff]  }
  0x69   :  { %985 = vmatmul.mubr.bf16.gmra.mxu0 %v2114_v59  ;;  %v2200_v59 = vld [vmem:[%s2873_s0 + $0x100] ss:$20 sps:$4 sm:$0xff]  }
  0x6a   :  { %1161 = vmatmul.mubr.bf16.gmra.mxu1 %v2115_v60  ;;  %992 = vmatprep.mubr.bf16.mxu0 %v2116_v61  ;;  %v2201_v60 = vld [vmem:[%s2873_s0 + $0x290] ss:$20 sps:$4 sm:$0xff]   ;;  %v2202_v61 = vld [vmem:[%s2873_s0 + $0x128] ss:$20 sps:$4 sm:$0xff]  }
  0x6b   :  { %1168 = vmatprep.mubr.bf16.mxu1 %v2118_v62  ;;  %v2203_v62 = vld [vmem:[%s2873_s0 + $0x2b8] ss:$0 sps:$4 sm:$0xff]  }
  0x71   :  { %993 = vmatmul.mubr.bf16.gmra.mxu0 %v2120_v63  ;;  %v2204_v63 = vld [vmem:[%s2873_s0 + $0x150] ss:$20 sps:$4 sm:$0xff]  }
  0x72   :  { %1169 = vmatmul.mubr.bf16.gmra.mxu1 %v2121_v0  ;;  %1000 = vmatprep.mubr.bf16.mxu0 %v2122_v1  ;;  %v2205_v0 = vld [vmem:[%s2873_s0 + $0x178] ss:$20 sps:$4 sm:$0xff]   ;;  %v2652_v1 = vld [vmem:[%s2874_s2] ss:$0 sm:$0xff] }
  0x73   :  { %1176 = vmatprep.mubr.bf16.mxu1 %v2124_v2 }
  0x79   :  { %1001 = vmatmul.mubr.bf16.gmra.mxu0 %v2126_v3 }
  0x7a   :  { %1177 = vmatmul.mubr.bf16.gmra.mxu1 %v2127_v4  ;;  %1008 = vmatprep.mubr.bf16.mxu0 %v2128_v5 }
  0x7b   :  { %1184 = vmatprep.mubr.bf16.mxu1 %v2130_v6 }
  0x81   :  { %1009 = vmatmul.mubr.bf16.gmra.mxu0 %v2132_v7 }
  0x82   :  { %1185 = vmatmul.mubr.bf16.gmra.mxu1 %v2133_v8  ;;  %1016 = vmatprep.mubr.bf16.mxu0 %v2134_v9 }
  0x83   :  { %1192 = vmatprep.mubr.bf16.mxu1 %v2136_v10 }
  0x89   :  { %1017 = vmatmul.mubr.bf16.gmra.mxu0 %v2138_v11 }
  0x8a   :  { %1193 = vmatmul.mubr.bf16.gmra.mxu1 %v2139_v12  ;;  %1024 = vmatprep.mubr.bf16.mxu0 %v2141_v13 }
  0x8b   :  { %1200 = vmatprep.mubr.bf16.mxu1 %v2143_v14 }
  0x91   :  { %1025 = vmatmul.mubr.bf16.gmra.mxu0 %v2145_v15 }
  0x92   :  { %1201 = vmatmul.mubr.bf16.gmra.mxu1 %v2146_v16  ;;  %1032 = vmatprep.mubr.bf16.mxu0 %v2147_v17 }
  0x93   :  { %1208 = vmatprep.mubr.bf16.mxu1 %v2149_v18 }
  0x99   :  { %1033 = vmatmul.mubr.bf16.gmra.mxu0 %v2151_v19 }
  0x9a   :  { %1209 = vmatmul.mubr.bf16.gmra.mxu1 %v2152_v20  ;;  %1040 = vmatprep.mubr.bf16.mxu0 %v2153_v21 }
  0x9b   :  { %1216 = vmatprep.mubr.bf16.mxu1 %v2155_v22 }
  0xa1   :  { %1041 = vmatmul.mubr.bf16.gmra.mxu0 %v2157_v23 }
  0xa2   :  { %1217 = vmatmul.mubr.bf16.gmra.mxu1 %v2158_v24  ;;  %1048 = vmatprep.mubr.bf16.mxu0 %v2159_v25 }
  0xa3   :  { %1224 = vmatprep.mubr.bf16.mxu1 %v2161_v26 }
  0xa9   :  { %1049 = vmatmul.mubr.bf16.gmra.mxu0 %v2163_v27 }
  0xaa   :  { %1225 = vmatmul.mubr.bf16.gmra.mxu1 %v2164_v28  ;;  %1056 = vmatprep.mubr.bf16.mxu0 %v2166_v29 }
  0xab   :  { %1232 = vmatprep.mubr.bf16.mxu1 %v2168_v30 }
  0xb1   :  { %1057 = vmatmul.mubr.bf16.gmra.mxu0 %v2170_v31 }
  0xb2   :  { %1233 = vmatmul.mubr.bf16.gmra.mxu1 %v2171_v32  ;;  %1064 = vmatprep.mubr.bf16.mxu0 %v2172_v33 }
  0xb3   :  { %1240 = vmatprep.mubr.bf16.mxu1 %v2174_v34 }
  0xb9   :  { %1065 = vmatmul.mubr.bf16.gmra.mxu0 %v2176_v35 }
  0xba   :  { %1241 = vmatmul.mubr.bf16.gmra.mxu1 %v2177_v36  ;;  %1072 = vmatprep.mubr.bf16.mxu0 %v2178_v37 }
  0xbb   :  { %1248 = vmatprep.mubr.bf16.mxu1 %v2180_v38 }
  0xc1   :  { %1073 = vmatmul.mubr.bf16.gmra.mxu0 %v2182_v41 }
  0xc2   :  { %1249 = vmatmul.mubr.bf16.gmra.mxu1 %v2183_v42  ;;  %1080 = vmatprep.mubr.bf16.mxu0 %v1742_v43 }
  0xc3   :  { %1256 = vmatprep.mubr.bf16.mxu1 %v1744_v44 }
  0xc9   :  { %1081 = vmatmul.mubr.bf16.gmra.mxu0 %v1741_v45 }
  0xca   :  { %1257 = vmatmul.mubr.bf16.gmra.mxu1 %v1743_v46  ;;  %2001 = vmatprep.mubr.msk.bf16.mxu0 %vm857_vm0, %v2188_v47 }
  0xcb   :  { %2021 = vmatprep.mubr.msk.bf16.mxu1 %vm857_vm0, %v2189_v48 }
  0xd1   :  { %2002 = vmatmul.mubr.msk.bf16.vlgmr.msra.gmra.mxu0 %vm857_vm0, %v2190_v49 }
  0xd2   :  { %2022 = vmatmul.mubr.msk.bf16.vlgmr.msra.gmra.mxu1 %vm857_vm0, %v2191_v50  ;;  %2005 = vmatprep.mubr.msk.bf16.mxu0 %vm857_vm0, %v2192_v51 }
  0xd3   :  { %2025 = vmatprep.mubr.msk.bf16.mxu1 %vm857_vm0, %v2193_v52 }
  0xd9   :  { %2006 = vmatmul.mubr.msk.bf16.gmra.mxu0 %vm857_vm0, %v2194_v53 }
  0xda   :  { %2026 = vmatmul.mubr.msk.bf16.gmra.mxu1 %vm857_vm0, %v2195_v54  ;;  %2009 = vmatprep.mubr.msk.bf16.mxu0 %vm857_vm0, %v2196_v55 }
  0xdb   :  { %2029 = vmatprep.mubr.msk.bf16.mxu1 %vm857_vm0, %v2197_v56 }
  0xe1   :  { %2010 = vmatmul.mubr.msk.bf16.gmra.mxu0 %vm857_vm0, %v2198_v57 }
  0xe2   :  { %2030 = vmatmul.mubr.msk.bf16.gmra.mxu1 %vm857_vm0, %v2199_v58  ;;  %2013 = vmatprep.mubr.msk.bf16.mxu0 %vm857_vm0, %v2200_v59 }
  0xe3   :  { %2033 = vmatprep.mubr.msk.bf16.mxu1 %vm857_vm0, %v2201_v60 }
  0xe9   :  { %2014 = vmatmul.mubr.msk.bf16.gmra.mxu0 %vm857_vm0, %v2202_v61 }
  0xea   :  { %2034 = vmatmul.mubr.msk.bf16.gmra.mxu1 %vm857_vm0, %v2203_v62  ;;  %2017 = vmatprep.mubr.msk.bf16.mxu0 %vm857_vm0, %v2204_v63 }
  0xf1   :  { %2018 = vmatmul.mubr.msk.bf16.gmra.mxu0 %vm857_vm0, %v2205_v0 }
 0x101   :  { %v946_v2 = vpop.f32.mrf.mxu0 }
 0x102   :  { %v947_v3 = vadd.f32 %v2652_v1, %v946_v2  ;;  %v1122_v4 = vpop.f32.mrf.mxu1 }
 0x103   :  { %v948_v5 = vpop.f32.mrf.mxu0 }
 0x104   :  { %v2655_v6 = vadd.f32 %v1122_v4, %v947_v3  ;;  %v1124_v7 = vpop.f32.mrf.mxu1 }
 0x105   :  { %v949_v8 = vpop.f32.mrf.mxu0 }
 0x106   :  { %v950_v9 = vadd.f32 %v2652_v1, %v949_v8  ;;  %v1125_v10 = vpop.f32.mrf.mxu1 }
 0x107   :  { %v951_v11 = vpop.f32.mrf.mxu0 }
 0x108   :  { %v2658_v12 = vadd.f32 %v1125_v10, %v950_v9  ;;  %v1127_v13 = vpop.f32.mrf.mxu1 }
 0x109   :  { %v954_v14 = vpop.f32.mrf.mxu0 }
 0x10a   :  { %v955_v15 = vadd.f32 %v2652_v1, %v954_v14  ;;  %v1130_v16 = vpop.f32.mrf.mxu1 }
 0x10b   :  { %v956_v17 = vpop.f32.mrf.mxu0 }
 0x10c   :  { %v2661_v18 = vadd.f32 %v1130_v16, %v955_v15  ;;  %v1132_v19 = vpop.f32.mrf.mxu1 }
 0x10d   :  { %v957_v20 = vpop.f32.mrf.mxu0 }
 0x10e   :  { %v958_v21 = vadd.f32 %v2652_v1, %v957_v20  ;;  %v1133_v22 = vpop.f32.mrf.mxu1 }
 0x10f   :  { %v959_v23 = vpop.f32.mrf.mxu0 }
 0x110   :  { %v2664_v24 = vadd.f32 %v1133_v22, %v958_v21  ;;  %v1135_v25 = vpop.f32.mrf.mxu1 }
 0x111   :  { %v962_v26 = vpop.f32.mrf.mxu0 }
 0x112   :  { %v963_v27 = vadd.f32 %v2652_v1, %v962_v26  ;;  %v1138_v28 = vpop.f32.mrf.mxu1 }
 0x113   :  { %v964_v29 = vpop.f32.mrf.mxu0 }
 0x114   :  { %v2667_v30 = vadd.f32 %v1138_v28, %v963_v27  ;;  %v1140_v31 = vpop.f32.mrf.mxu1 }
 0x115   :  { %v965_v32 = vpop.f32.mrf.mxu0 }
 0x116   :  { %v966_v33 = vadd.f32 %v2652_v1, %v965_v32  ;;  %v1141_v34 = vpop.f32.mrf.mxu1 }
 0x117   :  { %v967_v35 = vpop.f32.mrf.mxu0 }
 0x118   :  { %v2670_v36 = vadd.f32 %v1141_v34, %v966_v33  ;;  %v1143_v37 = vpop.f32.mrf.mxu1 }
 0x119   :  { %v970_v38 = vpop.f32.mrf.mxu0 }
 0x11a   :  { %v971_v39 = vadd.f32 %v2652_v1, %v970_v38  ;;  %v1146_v40 = vpop.f32.mrf.mxu1 }
 0x11b   :  { %v972_v41 = vpop.f32.mrf.mxu0 }
 0x11c   :  { %v2673_v42 = vadd.f32 %v1146_v40, %v971_v39  ;;  %v1148_v43 = vpop.f32.mrf.mxu1 }
 0x11d   :  { %v973_v44 = vpop.f32.mrf.mxu0 }
 0x11e   :  { %v974_v45 = vadd.f32 %v2652_v1, %v973_v44  ;;  %v1149_v46 = vpop.f32.mrf.mxu1 }
 0x11f   :  { %v975_v47 = vpop.f32.mrf.mxu0 }
 0x120   :  { %v2676_v48 = vadd.f32 %v1149_v46, %v974_v45  ;;  %v1151_v49 = vpop.f32.mrf.mxu1 }
 0x121   :  { %v978_v50 = vpop.f32.mrf.mxu0 }
 0x122   :  { %v979_v51 = vadd.f32 %v2652_v1, %v978_v50  ;;  %v1154_v52 = vpop.f32.mrf.mxu1 }
 0x123   :  { %v980_v53 = vpop.f32.mrf.mxu0 }
 0x124   :  { %v2679_v54 = vadd.f32 %v1154_v52, %v979_v51  ;;  %v1156_v55 = vpop.f32.mrf.mxu1 }
 0x125   :  { %v981_v56 = vpop.f32.mrf.mxu0 }
 0x126   :  { %v982_v57 = vadd.f32 %v2652_v1, %v981_v56  ;;  %v1157_v58 = vpop.f32.mrf.mxu1 }
 0x127   :  { %v983_v59 = vpop.f32.mrf.mxu0 }
 0x128   :  { %v2682_v60 = vadd.f32 %v1157_v58, %v982_v57  ;;  %v1159_v61 = vpop.f32.mrf.mxu1 }
 0x129   :  { %v986_v62 = vpop.f32.mrf.mxu0 }
 0x12a   :  { %v987_v63 = vadd.f32 %v2652_v1, %v986_v62  ;;  %v1162_v0 = vpop.f32.mrf.mxu1 }
 0x12b   :  { %v988_v2 = vpop.f32.mrf.mxu0 }
 0x12c   :  { %v2685_v3 = vadd.f32 %v1162_v0, %v987_v63  ;;  %v1164_v4 = vpop.f32.mrf.mxu1 }
 0x12d   :  { %v989_v5 = vpop.f32.mrf.mxu0 }
 0x12e   :  { %v990_v7 = vadd.f32 %v2652_v1, %v989_v5  ;;  %v1165_v8 = vpop.f32.mrf.mxu1 }
 0x12f   :  { %v991_v9 = vpop.f32.mrf.mxu0 }
 0x130   :  { %v2688_v10 = vadd.f32 %v1165_v8, %v990_v7  ;;  %v1167_v11 = vpop.f32.mrf.mxu1 }
 0x131   :  { %v994_v13 = vpop.f32.mrf.mxu0 }
 0x132   :  { %v995_v14 = vadd.f32 %v2652_v1, %v994_v13  ;;  %v1170_v15 = vpop.f32.mrf.mxu1 }
 0x133   :  { %v996_v16 = vpop.f32.mrf.mxu0 }
 0x134   :  { %v2691_v17 = vadd.f32 %v1170_v15, %v995_v14  ;;  %v1172_v19 = vpop.f32.mrf.mxu1 }
 0x135   :  { %v997_v20 = vpop.f32.mrf.mxu0 }
 0x136   :  { %v998_v21 = vadd.f32 %v2652_v1, %v997_v20  ;;  %v1173_v22 = vpop.f32.mrf.mxu1 }
 0x137   :  { %v999_v23 = vpop.f32.mrf.mxu0 }
 0x138   :  { %v2694_v25 = vadd.f32 %v1173_v22, %v998_v21  ;;  %v1175_v26 = vpop.f32.mrf.mxu1 }
 0x139   :  { %v1002_v27 = vpop.f32.mrf.mxu0 }
 0x13a   :  { %v1003_v28 = vadd.f32 %v2652_v1, %v1002_v27  ;;  %v1178_v29 = vpop.f32.mrf.mxu1 }
 0x13b   :  { %v1004_v31 = vpop.f32.mrf.mxu0 }
 0x13c   :  { %v2697_v32 = vadd.f32 %v1178_v29, %v1003_v28  ;;  %v1180_v33 = vpop.f32.mrf.mxu1 }
 0x13d   :  { %v1005_v34 = vpop.f32.mrf.mxu0 }
 0x13e   :  { %v1006_v35 = vadd.f32 %v2652_v1, %v1005_v34  ;;  %v1181_v37 = vpop.f32.mrf.mxu1 }
 0x13f   :  { %v1007_v38 = vpop.f32.mrf.mxu0 }
 0x140   :  { %v2700_v39 = vadd.f32 %v1181_v37, %v1006_v35  ;;  %v1183_v40 = vpop.f32.mrf.mxu1 }
 0x141   :  { %v1010_v41 = vpop.f32.mrf.mxu0 }
 0x142   :  { %v1011_v43 = vadd.f32 %v2652_v1, %v1010_v41  ;;  %v1186_v44 = vpop.f32.mrf.mxu1 }
 0x143   :  { %v1012_v45 = vpop.f32.mrf.mxu0 }
 0x144   :  { %v2703_v46 = vadd.f32 %v1186_v44, %v1011_v43  ;;  %v1188_v47 = vpop.f32.mrf.mxu1 }
 0x145   :  { %v1013_v49 = vpop.f32.mrf.mxu0 }
 0x146   :  { %v1014_v50 = vadd.f32 %v2652_v1, %v1013_v49  ;;  %v1189_v51 = vpop.f32.mrf.mxu1 }
 0x147   :  { %v1015_v52 = vpop.f32.mrf.mxu0 }
 0x148   :  { %v2706_v53 = vadd.f32 %v1189_v51, %v1014_v50  ;;  %v1191_v55 = vpop.f32.mrf.mxu1 }
 0x149   :  { %v1018_v56 = vpop.f32.mrf.mxu0 }
 0x14a   :  { %2876 = vst [vmem:[#allocation2_spill] sm:$0xff] %v2706_v53  ;;  %v1019_v57 = vadd.f32 %v2652_v1, %v1018_v56  ;;  %v1194_v58 = vpop.f32.mrf.mxu1 }
 0x14b   :  { %v1020_v59 = vpop.f32.mrf.mxu0 }
 0x14c   :  { %v2709_v61 = vadd.f32 %v1194_v58, %v1019_v57  ;;  %v1196_v62 = vpop.f32.mrf.mxu1 }
 0x14d   :  { %v1021_v63 = vpop.f32.mrf.mxu0 }
 0x14e   :  { %v1022_v0 = vadd.f32 %v2652_v1, %v1021_v63  ;;  %v1197_v2 = vpop.f32.mrf.mxu1 }
 0x14f   :  { %v1023_v4 = vpop.f32.mrf.mxu0 }
 0x150   :  { %v2712_v5 = vadd.f32 %v1197_v2, %v1022_v0  ;;  %v1199_v7 = vpop.f32.mrf.mxu1 }
 0x151   :  { %v1026_v8 = vpop.f32.mrf.mxu0 }
 0x152   :  { %2877 = vst [vmem:[#allocation3_spill] sm:$0xff] %v2712_v5  ;;  %v1027_v9 = vadd.f32 %v2652_v1, %v1026_v8  ;;  %v1202_v11 = vpop.f32.mrf.mxu1 }
 0x153   :  { %v1028_v13 = vpop.f32.mrf.mxu0 }
 0x154   :  { %v2715_v14 = vadd.f32 %v1202_v11, %v1027_v9  ;;  %v1204_v15 = vpop.f32.mrf.mxu1 }
 0x155   :  { %v2717_v16 = vpop.f32.mrf.mxu0 }
 0x156   :  { %v2719_v19 = vpop.f32.mrf.mxu1 }
 0x157   :  { %v1031_v20 = vpop.f32.mrf.mxu0 }
 0x158   :  { %v1207_v21 = vpop.f32.mrf.mxu1 }
 0x159   :  { %v1034_v22 = vpop.f32.mrf.mxu0 }
 0x15a   :  { %v1210_v23 = vpop.f32.mrf.mxu1 }
 0x15b   :  { %v1036_v26 = vpop.f32.mrf.mxu0 }
 0x15c   :  { %v1212_v27 = vpop.f32.mrf.mxu1 }
 0x15d   :  { %v1037_v28 = vpop.f32.mrf.mxu0 }
 0x15e   :  { %v1213_v29 = vpop.f32.mrf.mxu1 }
 0x15f   :  { %v1039_v31 = vpop.f32.mrf.mxu0 }
 0x160   :  { %v1215_v33 = vpop.f32.mrf.mxu1 }
 0x161   :  { %v2721_v34 = vpop.f32.mrf.mxu0 }
 0x162   :  { %v2723_v35 = vpop.f32.mrf.mxu1 }
 0x163   :  { %v1044_v37 = vpop.f32.mrf.mxu0 }
 0x164   :  { %v1220_v38 = vpop.f32.mrf.mxu1 }
 0x165   :  { %v2725_v40 = vpop.f32.mrf.mxu0 }
 0x166   :  { %v2727_v41 = vpop.f32.mrf.mxu1 }
 0x167   :  { %v1047_v43 = vpop.f32.mrf.mxu0 }
 0x168   :  { %v1223_v44 = vpop.f32.mrf.mxu1 }
 0x169   :  { %v1050_v45 = vpop.f32.mrf.mxu0 }
 0x16a   :  { %v2729_v47 = vpop.f32.mrf.mxu1 }
 0x16b   :  { %v1052_v49 = vpop.f32.mrf.mxu0 }
 0x16c   :  { %v1228_v50 = vpop.f32.mrf.mxu1 }
 0x16d   :  { %v1053_v51 = vpop.f32.mrf.mxu0 }
 0x16e   :  { %v2731_v52 = vpop.f32.mrf.mxu1 }
 0x16f   :  { %v1055_v55 = vpop.f32.mrf.mxu0 }
 0x170   :  { %v1231_v56 = vpop.f32.mrf.mxu1 }
 0x171   :  { %v2733_v57 = vpop.f32.mrf.mxu0 }
 0x172   :  { %v2735_v58 = vpop.f32.mrf.mxu1 }
 0x173   :  { %v1060_v59 = vpop.f32.mrf.mxu0 }
 0x174   :  { %v1236_v62 = vpop.f32.mrf.mxu1 }
 0x175   :  { %v2737_v63 = vpop.f32.mrf.mxu0 }
 0x176   :  { %v2739_v0 = vpop.f32.mrf.mxu1 }
 0x177   :  { %v1063_v2 = vpop.f32.mrf.mxu0 }
 0x178   :  { %v1239_v4 = vpop.f32.mrf.mxu1  ;;  %v1035_v2 = vadd.f32 %v2652_v1, %v1034_v22 }
 0x179   :  { %v2741_v7 = vpop.f32.mrf.mxu0 }
 0x17a   :  { %v2743_v8 = vpop.f32.mrf.mxu1 }
 0x17b   :  { %v1068_v9 = vpop.f32.mrf.mxu0 }
 0x17c   :  { %v1244_v11 = vpop.f32.mrf.mxu1 }
 0x17d   :  { %v2745_v13 = vpop.f32.mrf.mxu0  ;;  %v1038_v11 = vadd.f32 %v2652_v1, %v1037_v28 }
 0x17e   :  { %v2747_v15 = vpop.f32.mrf.mxu1 }
 0x17f   :  { %v1071_v20 = vpop.f32.mrf.mxu0 }
 0x180   :  { %v1247_v21 = vpop.f32.mrf.mxu1 }
 0x181   :  { %v2749_v26 = vpop.f32.mrf.mxu0 }
 0x182   :  { %v2751_v27 = vpop.f32.mrf.mxu1 }
 0x183   :  { %v1076_v31 = vpop.f32.mrf.mxu0 }
 0x184   :  { %v1252_v33 = vpop.f32.mrf.mxu1  ;;  %v1030_v31 = vadd.f32 %v2652_v1, %v2717_v16 }
 0x185   :  { %v2753_v37 = vpop.f32.mrf.mxu0  ;;  %v1211_v33 = vadd.f32 %v1210_v23, %v1035_v2 }
 0x186   :  { %v2755_v38 = vpop.f32.mrf.mxu1  ;;  %v1206_v28 = vadd.f32 %v2719_v19, %v1030_v31 }
 0x187   :  { %v1079_v43 = vpop.f32.mrf.mxu0 }
 0x188   :  { %v1255_v44 = vpop.f32.mrf.mxu1 }
 0x189   :  { %v2757_v49 = vpop.f32.mrf.mxu0 }
 0x18a   :  { %v2759_v50 = vpop.f32.mrf.mxu1 }
 0x18b   :  { %v1084_v55 = vpop.f32.mrf.mxu0 }
 0x18c   :  { %v1260_v56 = vpop.f32.mrf.mxu1  ;;  %v1214_v55 = vadd.f32 %v1213_v29, %v1038_v11 }
 0x18d   :  { %v1085_v59 = vpop.f32.mrf.mxu0 }
 0x18e   :  { %v1261_v62 = vpop.f32.mrf.mxu1 }
 0x18f   :  { %v1086_v4 = vpop.f32.mrf.mxu0 }
 0x190   :  { %v1262_v9 = vpop.f32.mrf.mxu1 }
 0x191   :  { %v2003_v20 = vpop.f32.mrf.mxu0  ;;  %v1051_v9 = vadd.f32 %v2652_v1, %v1050_v45  ;;  %v1046_v45 = vadd.f32 %v2652_v1, %v2725_v40 }
 0x192   :  { %v2023_v21 = vpop.f32.mrf.mxu1  ;;  %v1307_v44 = vadd.f32 %v2003_v20, %v2661_v18  ;;  %v1043_v18 = vadd.f32 %v2652_v1, %v2721_v34 }
 0x193   :  { %v1298_v43 = vpop.f32.mrf.mxu0  ;;  %v1387_v56 = vadd.f32 %v2023_v21, %v1211_v33  ;;  %v1227_v34 = vadd.f32 %v2729_v47, %v1051_v9 }
 0x194   :  { %v1378_v53 = vpop.f32.mrf.mxu1  ;;  %v1299_v62 = vadd.f32 %v1298_v43, %v2655_v6  ;;  %v1442_v2 = vmax.f32 %v1307_v44, 0.0  ;;  %v1054_v6 = vadd.f32 %v2652_v1, %v1053_v51  ;;  %v1219_v40 = vadd.f32 %v2723_v35, %v1043_v18 }
 0x195   :  { %v2004_v59 = vpop.f32.mrf.mxu0  ;;  %v1379_v5 = vadd.f32 %v1378_v53, %v2715_v14  ;;  %v1222_v35 = vadd.f32 %v2727_v41, %v1046_v45  ;;  %v1070_v41 = vadd.f32 %v2652_v1, %v2745_v13 }
 0x196   :  { %v1310_v22 = vadd.f32 %v2004_v59, %v2664_v24  ;;  %v2024_v4 = vpop.f32.mrf.mxu1  ;;  %v1462_v24 = vmax.f32 %v1387_v56, 0.0  ;;  %v1440_v53 = vmax.f32 %v1299_v62, 0.0  ;;  %v1230_v62 = vadd.f32 %v2731_v52, %v1054_v6 }
 0x197   :  { %v1390_v16 = vadd.f32 %v2024_v4, %v1214_v55  ;;  %v1301_v23 = vpop.f32.mrf.mxu0  ;;  %v1460_v44 = vmax.f32 %v1379_v5, 0.0  ;;  %v1067_v52 = vadd.f32 %v2652_v1, %v2741_v7 }
 0x198   :  { %v1443_v29 = vmax.f32 %v1310_v22, 0.0  ;;  %v1302_v11 = vadd.f32 %v1301_v23, %v2658_v12  ;;  %v1381_v20 = vpop.f32.mrf.mxu1 }
 0x199   :  { %v1463_v21 = vmax.f32 %v1390_v16, 0.0  ;;  %v1382_v33 = vadd.f32 %v1381_v20, %v1206_v28  ;;  %v2007_v19 = vpop.f32.mrf.mxu0 }
 0x19a   :  { %v1878_v14 = vpack.c.bf16 %v1443_v29, %v1442_v2  ;;  %v1441_v31 = vmax.f32 %v1302_v11, 0.0  ;;  %v2027_v43 = vpop.f32.mrf.mxu1  ;;  %v1323_v56 = vadd.f32 %v2007_v19, %v2673_v42  ;;  %v1059_v2 = vadd.f32 %v2652_v1, %v2733_v57 }
 0x19b   :  { %v1928_v55 = vpack.c.bf16 %v1463_v21, %v1462_v24  ;;  %v1461_v59 = vmax.f32 %v1382_v33, 0.0  ;;  %v1314_v12 = vpop.f32.mrf.mxu0  ;;  %v1403_v47 = vadd.f32 %v2027_v43, %v1227_v34  ;;  %v1062_v21 = vadd.f32 %v2652_v1, %v2737_v63 }
 0x19c   :  { %1955 = vst [vmem:[%s2875_s3 + $0x8] sm:$0xff] %v1878_v14   ;;  %v1873_v51 = vpack.c.bf16 %v1441_v31, %v1440_v53  ;;  %v1394_v22 = vpop.f32.mrf.mxu1  ;;  %v1315_v28 = vadd.f32 %v1314_v12, %v2667_v30  ;;  %v1446_v29 = vmax.f32 %v1323_v56, 0.0  ;;  %v1243_v57 = vadd.f32 %v2743_v8, %v1067_v52 }
 0x19d   :  { %1965 = vst [vmem:[%s2875_s3 + $0x58] sm:$0xff] %v1928_v55   ;;  %v1923_v5 = vpack.c.bf16 %v1461_v59, %v1460_v44  ;;  %v2008_v4 = vpop.f32.mrf.mxu0  ;;  %v1395_v16 = vadd.f32 %v1394_v22, %v1219_v40  ;;  %v1466_v20 = vmax.f32 %v1403_v47, 0.0  ;;  %v1235_v34 = vadd.f32 %v2735_v58, %v1059_v2 }
 0x19e   :  { %1874 = vst [vmem:[%s2875_s3] sm:$0xff] %v1873_v51   ;;  %v1326_v42 = vadd.f32 %v2008_v4, %v2676_v48  ;;  %v2028_v9 = vpop.f32.mrf.mxu1  ;;  %v1444_v33 = vmax.f32 %v1315_v28, 0.0  ;;  %v1246_v55 = vadd.f32 %v2747_v15, %v1070_v41  ;;  %v1083_v59 = vadd.f32 %v2652_v1, %v2757_v49 }
 0x19f   :  { %1964 = vst [vmem:[%s2875_s3 + $0x50] sm:$0xff] %v1923_v5   ;;  %v1406_v23 = vadd.f32 %v2028_v9, %v1230_v62  ;;  %v1317_v18 = vpop.f32.mrf.mxu0  ;;  %v1464_v14 = vmax.f32 %v1395_v16, 0.0  ;;  %v1238_v15 = vadd.f32 %v2739_v0, %v1062_v21  ;;  %v1075_v62 = vadd.f32 %v2652_v1, %v2749_v26 }
 0x1a0   :  { %v1447_v30 = vmax.f32 %v1326_v42, 0.0  ;;  %v1318_v48 = vadd.f32 %v1317_v18, %v2670_v36  ;;  %v1397_v11 = vpop.f32.mrf.mxu1 }
 0x1a1   :  { %v1467_v7 = vmax.f32 %v1406_v23, 0.0  ;;  %v1398_v6 = vadd.f32 %v1397_v11, %v1222_v35  ;;  %v2011_v24 = vpop.f32.mrf.mxu0  ;;  %v1078_v35 = vadd.f32 %v2652_v1, %v2753_v37  ;;  %v1251_v41 = vadd.f32 %v2751_v27, %v1075_v62 }
 0x1a2   :  { %v1888_v19 = vpack.c.bf16 %v1447_v30, %v1446_v29  ;;  %v1445_v45 = vmax.f32 %v1318_v48, 0.0  ;;  %v2031_v53 = vpop.f32.mrf.mxu1  ;;  %v1339_v44 = vadd.f32 %v2011_v24, %v2685_v3 }
 0x1a3   :  { %v1938_v31 = vpack.c.bf16 %v1467_v7, %v1466_v20  ;;  %v1465_v36 = vmax.f32 %v1398_v6, 0.0  ;;  %v1330_v43 = vpop.f32.mrf.mxu0  ;;  %v1419_v12 = vadd.f32 %v2031_v53, %v1243_v57 }
 0x1a4   :  { %1957 = vst [vmem:[%s2875_s3 + $0x18] sm:$0xff] %v1888_v19   ;;  %v1883_v13 = vpack.c.bf16 %v1445_v45, %v1444_v33  ;;  %v1410_v63 = vpop.f32.mrf.mxu1  ;;  %v1331_v51 = vadd.f32 %v1330_v43, %v2679_v54  ;;  %v1450_v5 = vmax.f32 %v1339_v44, 0.0 }
 0x1a5   :  { %1967 = vst [vmem:[%s2875_s3 + $0x68] sm:$0xff] %v1938_v31   ;;  %v1933_v8 = vpack.c.bf16 %v1465_v36, %v1464_v14  ;;  %v2012_v58 = vpop.f32.mrf.mxu0  ;;  %v1411_v49 = vadd.f32 %v1410_v63, %v1235_v34  ;;  %v1470_v28 = vmax.f32 %v1419_v12, 0.0 }
 0x1a6   :  { %1956 = vst [vmem:[%s2875_s3 + $0x10] sm:$0xff] %v1883_v13   ;;  %v1342_v3 = vadd.f32 %v2012_v58, %v2688_v10  ;;  %v2032_v56 = vpop.f32.mrf.mxu1  ;;  %v1259_v10 = vadd.f32 %v2759_v50, %v1083_v59  ;;  %v1448_v52 = vmax.f32 %v1331_v51, 0.0  ;;  %v2878_v59 = vld [vmem:[#allocation3_spill] sm:$0xff] }
 0x1a7   :  { %1966 = vst [vmem:[%s2875_s3 + $0x60] sm:$0xff] %v1933_v8   ;;  %v1422_v22 = vadd.f32 %v2032_v56, %v1246_v55  ;;  %v1333_v40 = vpop.f32.mrf.mxu0  ;;  %v1468_v2 = vmax.f32 %v1411_v49, 0.0 }
 0x1a8   :  { %v1451_v47 = vmax.f32 %v1342_v3, 0.0  ;;  %v1334_v4 = vadd.f32 %v1333_v40, %v2682_v60  ;;  %v1413_v54 = vpop.f32.mrf.mxu1  ;;  %v2879_v3 = vld [vmem:[#allocation2_spill] sm:$0xff] }
 0x1a9   :  { %v1471_v42 = vmax.f32 %v1422_v22, 0.0  ;;  %v1414_v0 = vadd.f32 %v1413_v54, %v1238_v15  ;;  %v2015_v9 = vpop.f32.mrf.mxu0 }
 0x1aa   :  { %v1898_v16 = vpack.c.bf16 %v1451_v47, %v1450_v5  ;;  %v1449_v23 = vmax.f32 %v1334_v4, 0.0  ;;  %v2035_v18 = vpop.f32.mrf.mxu1  ;;  %v1355_v50 = vadd.f32 %v2015_v9, %v2697_v32  ;;  %v1254_v32 = vadd.f32 %v2755_v38, %v1078_v35 }
 0x1ab   :  { %v1948_v26 = vpack.c.bf16 %v1471_v42, %v1470_v28  ;;  %v1469_v29 = vmax.f32 %v1414_v0, 0.0  ;;  %v1435_v30 = vadd.f32 %v2035_v18, %v1259_v10  ;;  %v1346_v48 = vpop.f32.mrf.mxu0 }
 0x1ac   :  { %1959 = vst [vmem:[%s2875_s3 + $0x28] sm:$0xff] %v1898_v16   ;;  %v1893_v60 = vpack.c.bf16 %v1449_v23, %v1448_v52  ;;  %v1426_v11 = vpop.f32.mrf.mxu1  ;;  %v1347_v7 = vadd.f32 %v1346_v48, %v2691_v17  ;;  %v1454_v19 = vmax.f32 %v1355_v50, 0.0 }
 0x1ad   :  { %1969 = vst [vmem:[%s2875_s3 + $0x78] sm:$0xff] %v1948_v26   ;;  %v1943_v1 = vpack.c.bf16 %v1469_v29, %v1468_v2  ;;  %v1474_v37 = vmax.f32 %v1435_v30, 0.0  ;;  %v2016_v20 = vpop.f32.mrf.mxu0  ;;  %v1427_v21 = vadd.f32 %v1426_v11, %v1251_v41 }
 0x1ae   :  { %1958 = vst [vmem:[%s2875_s3 + $0x20] sm:$0xff] %v1893_v60   ;;  %v1358_v6 = vadd.f32 %v2016_v20, %v2700_v39  ;;  %v2036_v24 = vpop.f32.mrf.mxu1  ;;  %v1452_v14 = vmax.f32 %v1347_v7, 0.0 }
 0x1af   :  { %1968 = vst [vmem:[%s2875_s3 + $0x70] sm:$0xff] %v1943_v1   ;;  %v1869_v27 = vpack.c.bf16 %v1474_v37, %v1474_v37  ;;  %v1349_v33 = vpop.f32.mrf.mxu0  ;;  %v1472_v36 = vmax.f32 %v1427_v21, 0.0 }
 0x1b0   :  { %v1455_v45 = vmax.f32 %v1358_v6, 0.0  ;;  %v1350_v53 = vadd.f32 %v1349_v33, %v2694_v25  ;;  %v1429_v57 = vpop.f32.mrf.mxu1 }
 0x1b1   :  { %1650 = vst [vmem:[%s2875_s3 + $0x88] sm:$0xf] %v1869_v27  ;;  %v1430_v17 = vadd.f32 %v1429_v57, %v1254_v32  ;;  %v2019_v39 = vpop.f32.mrf.mxu0 }
 0x1b2   :  { %v1908_v38 = vpack.c.bf16 %v1455_v45, %v1454_v19  ;;  %v1453_v31 = vmax.f32 %v1350_v53, 0.0  ;;  %v1371_v25 = vadd.f32 %v2019_v39, %v2709_v61 }
 0x1b3   :  { %v1473_v43 = vmax.f32 %v1430_v17, 0.0  ;;  %v1362_v34 = vpop.f32.mrf.mxu0 }
 0x1b4   :  { %1961 = vst [vmem:[%s2875_s3 + $0x38] sm:$0xff] %v1908_v38   ;;  %v1903_v13 = vpack.c.bf16 %v1453_v31, %v1452_v14  ;;  %v1363_v55 = vadd.f32 %v1362_v34, %v2703_v46  ;;  %v1458_v58 = vmax.f32 %v1371_v25, 0.0 }
 0x1b5   :  { %v1953_v44 = vpack.c.bf16 %v1473_v43, %v1472_v36  ;;  %v2020_v63 = vpop.f32.mrf.mxu0 }
 0x1b6   :  { %1960 = vst [vmem:[%s2875_s3 + $0x30] sm:$0xff] %v1903_v13   ;;  %v1374_v8 = vadd.f32 %v2020_v63, %v2878_v59  ;;  %v1456_v61 = vmax.f32 %v1363_v55, 0.0 }
 0x1b7   :  { %1970 = vst [vmem:[%s2875_s3 + $0x80] sm:$0xff] %v1953_v44   ;;  %v1365_v12 = vpop.f32.mrf.mxu0 }
 0x1b8   :  { %v1459_v51 = vmax.f32 %v1374_v8, 0.0  ;;  %v1366_v56 = vadd.f32 %v1365_v12, %v2879_v3 }
 0x1ba   :  { %v1918_v15 = vpack.c.bf16 %v1459_v51, %v1458_v58  ;;  %v1457_v49 = vmax.f32 %v1366_v56, 0.0 }
 0x1bc   :  { %1963 = vst [vmem:[%s2875_s3 + $0x48] sm:$0xff] %v1918_v15   ;;  %v1913_v22 = vpack.c.bf16 %v1457_v49, %v1456_v61 }
 0x1be   :  { %1962 = vst [vmem:[%s2875_s3 + $0x40] sm:$0xff] %v1913_v22  }

// kernel: tone_cnn_forward.7
= control target key start
LH: loop header
LB: loop body
LE: loop exit
PB: predicated region body
PF: predicated region fallthrough
CT: control target
= control target key end

     0   :  { %s3802_s1 = inlined_call_operand.vmem [shape: bf16[1152,256], index: 1, kind: input, shape index: {}]   ;;  %s3803_s0 = inlined_call_operand.vmem [shape: bf16[140,1152], index: 0, kind: input, shape index: {}]   ;;  %s3804_s2 = inlined_call_operand.vmem [shape: f32[1,256], index: 2, kind: input, shape index: {}]   ;;  %s3805_s3 = inlined_call_operand.vmem [shape: bf16[140,256], index: 3, kind: output, shape index: {}]  }
   0x1   :  { %v2454_v0 = vld [vmem:[%s3802_s1 + $0x74] ss:$8 sps:$4 sm:$0xff]   ;;  %v2458_v2 = vld [vmem:[%s3802_s1 + $0x70] ss:$8 sps:$4 sm:$0xff]   ;;  %v2460_v4 = vld [vmem:[%s3802_s1 + $0x64] ss:$8 sps:$4 sm:$0xff]  }
   0x2   :  { %v2456_v1 = vld [vmem:[%s3802_s1 + $0x174] ss:$8 sps:$4 sm:$0xff]   ;;  %1395 = vmatprep.subr.bf16.mxu0 %v2454_v0  ;;  %v2459_v3 = vld [vmem:[%s3802_s1 + $0x170] ss:$8 sps:$4 sm:$0xff]   ;;  %v2462_v5 = vld [vmem:[%s3802_s1 + $0x164] ss:$8 sps:$4 sm:$0xff]  }
   0x3   :  { %1518 = vmatprep.subr.bf16.mxu1 %v2456_v1  ;;  %1396 = vmatpush1.bf16.msra.mxu0 %v2458_v2  ;;  %v2464_v6 = vld [vmem:[%s3802_s1 + $0x60] ss:$8 sps:$4 sm:$0xff]   ;;  %v2466_v8 = vld [vmem:[%s3802_s1 + $0x54] ss:$8 sps:$4 sm:$0xff]   ;;  %v2470_v10 = vld [vmem:[%s3802_s1 + $0x50] ss:$8 sps:$4 sm:$0xff]  }
   0x4   :  { %1519 = vmatpush1.bf16.msra.mxu1 %v2459_v3  ;;  %1397 = vmatprep.subr.bf16.mxu0 %v2460_v4  ;;  %v2465_v7 = vld [vmem:[%s3802_s1 + $0x160] ss:$8 sps:$4 sm:$0xff]   ;;  %v2468_v9 = vld [vmem:[%s3802_s1 + $0x154] ss:$8 sps:$4 sm:$0xff]   ;;  %v2471_v11 = vld [vmem:[%s3802_s1 + $0x150] ss:$8 sps:$4 sm:$0xff]  }
   0x5   :  { %1520 = vmatprep.subr.bf16.mxu1 %v2462_v5  ;;  %v2472_v12 = vld [vmem:[%s3802_s1 + $0x44] ss:$8 sps:$4 sm:$0xff]   ;;  %v2476_v14 = vld [vmem:[%s3802_s1 + $0x40] ss:$8 sps:$4 sm:$0xff]   ;;  %v2478_v16 = vld [vmem:[%s3802_s1 + $0x34] ss:$8 sps:$4 sm:$0xff]  }
   0x6   :  { %v2474_v13 = vld [vmem:[%s3802_s1 + $0x144] ss:$8 sps:$4 sm:$0xff]   ;;  %v2477_v15 = vld [vmem:[%s3802_s1 + $0x140] ss:$8 sps:$4 sm:$0xff]   ;;  %v2480_v17 = vld [vmem:[%s3802_s1 + $0x134] ss:$8 sps:$4 sm:$0xff]  }
   0x7   :  { %1398 = vmatpush1.bf16.msra.mxu0 %v2464_v6  ;;  %v2482_v18 = vld [vmem:[%s3802_s1 + $0x30] ss:$8 sps:$4 sm:$0xff]   ;;  %v2484_v20 = vld [vmem:[%s3802_s1 + $0x24] ss:$8 sps:$4 sm:$0xff]   ;;  %v2488_v22 = vld [vmem:[%s3802_s1 + $0x20] ss:$8 sps:$4 sm:$0xff]  }
   0x8   :  { %1521 = vmatpush1.bf16.msra.mxu1 %v2465_v7  ;;  %1399 = vmatprep.subr.bf16.mxu0 %v2466_v8  ;;  %v2483_v19 = vld [vmem:[%s3802_s1 + $0x130] ss:$8 sps:$4 sm:$0xff]   ;;  %v2486_v21 = vld [vmem:[%s3802_s1 + $0x124] ss:$8 sps:$4 sm:$0xff]   ;;  %v2489_v23 = vld [vmem:[%s3802_s1 + $0x120] ss:$8 sps:$4 sm:$0xff]  }
   0x9   :  { %1522 = vmatprep.subr.bf16.mxu1 %v2468_v9  ;;  %v2490_v24 = vld [vmem:[%s3802_s1 + $0x14] ss:$8 sps:$4 sm:$0xff]   ;;  %v2494_v26 = vld [vmem:[%s3802_s1 + $0x10] ss:$8 sps:$4 sm:$0xff]   ;;  %v2496_v28 = vld [vmem:[%s3802_s1 + $0x4] ss:$8 sps:$4 sm:$0xff]  }
   0xa   :  { %v2492_v25 = vld [vmem:[%s3802_s1 + $0x114] ss:$8 sps:$4 sm:$0xff]   ;;  %v2495_v27 = vld [vmem:[%s3802_s1 + $0x110] ss:$8 sps:$4 sm:$0xff]   ;;  %v2498_v29 = vld [vmem:[%s3802_s1 + $0x104] ss:$8 sps:$4 sm:$0xff]  }
   0xb   :  { %1400 = vmatpush1.bf16.msra.mxu0 %v2470_v10  ;;  %v2500_v30 = vld [vmem:[%s3802_s1] ss:$8 sps:$4 sm:$0xff]   ;;  %v2502_v32 = vld [vmem:[%s3802_s1 + $0xf4] ss:$8 sps:$4 sm:$0xff]   ;;  %v2506_v34 = vld [vmem:[%s3802_s1 + $0xf0] ss:$8 sps:$4 sm:$0xff]  }
   0xc   :  { %1523 = vmatpush1.bf16.msra.mxu1 %v2471_v11  ;;  %1401 = vmatprep.subr.bf16.mxu0 %v2472_v12  ;;  %v2501_v31 = vld [vmem:[%s3802_s1 + $0x100] ss:$8 sps:$4 sm:$0xff]   ;;  %v2504_v33 = vld [vmem:[%s3802_s1 + $0x1f4] ss:$8 sps:$4 sm:$0xff]   ;;  %v2507_v35 = vld [vmem:[%s3802_s1 + $0x1f0] ss:$8 sps:$4 sm:$0xff]  }
   0xd   :  { %1524 = vmatprep.subr.bf16.mxu1 %v2474_v13  ;;  %v2508_v36 = vld [vmem:[%s3802_s1 + $0xe4] ss:$8 sps:$4 sm:$0xff]   ;;  %v2512_v38 = vld [vmem:[%s3802_s1 + $0xe0] ss:$8 sps:$4 sm:$0xff]   ;;  %v2514_v40 = vld [vmem:[%s3802_s1 + $0xd4] ss:$8 sps:$4 sm:$0xff]  }
   0xe   :  { %v2510_v37 = vld [vmem:[%s3802_s1 + $0x1e4] ss:$8 sps:$4 sm:$0xff]   ;;  %v2513_v39 = vld [vmem:[%s3802_s1 + $0x1e0] ss:$8 sps:$4 sm:$0xff]   ;;  %v2516_v41 = vld [vmem:[%s3802_s1 + $0x1d4] ss:$8 sps:$4 sm:$0xff]  }
   0xf   :  { %1402 = vmatpush1.bf16.msra.mxu0 %v2476_v14  ;;  %v2518_v42 = vld [vmem:[%s3802_s1 + $0xd0] ss:$8 sps:$4 sm:$0xff]   ;;  %v2520_v44 = vld [vmem:[%s3802_s1 + $0xc4] ss:$8 sps:$4 sm:$0xff]   ;;  %v2524_v46 = vld [vmem:[%s3802_s1 + $0xc0] ss:$8 sps:$4 sm:$0xff]  }
  0x10   :  { %1525 = vmatpush1.bf16.msra.mxu1 %v2477_v15  ;;  %1403 = vmatprep.subr.bf16.mxu0 %v2478_v16  ;;  %v2519_v43 = vld [vmem:[%s3802_s1 + $0x1d0] ss:$8 sps:$4 sm:$0xff]   ;;  %v2522_v45 = vld [vmem:[%s3802_s1 + $0x1c4] ss:$8 sps:$4 sm:$0xff]   ;;  %v2525_v47 = vld [vmem:[%s3802_s1 + $0x1c0] ss:$8 sps:$4 sm:$0xff]  }
  0x11   :  { %1526 = vmatprep.subr.bf16.mxu1 %v2480_v17  ;;  %v2526_v48 = vld [vmem:[%s3802_s1 + $0xb4] ss:$8 sps:$4 sm:$0xff]   ;;  %v2552_v49 = vld [vmem:[%s3803_s0 + $0x4] ss:$36 sps:$4 sm:$0xff]   ;;  %v2555_v51 = vld [vmem:[%s3803_s0 + $0xc] ss:$36 sps:$4 sm:$0xff]  }
  0x12   :  { %v2528_v50 = vld [vmem:[%s3802_s1 + $0x1b4] ss:$8 sps:$4 sm:$0xff]   ;;  %1427 = vmatprep.mubr.bf16.mxu0 %v2552_v49  ;;  %v2530_v52 = vld [vmem:[%s3802_s1 + $0xb0] ss:$8 sps:$4 sm:$0xff]   ;;  %1550 = vmatprep.mubr.bf16.mxu1 %v2555_v51  ;;  %v2532_v54 = vld [vmem:[%s3802_s1 + $0xa4] ss:$8 sps:$4 sm:$0xff]  }
  0x13   :  { %1404 = vmatpush1.bf16.msra.mxu0 %v2482_v18  ;;  %v2531_v53 = vld [vmem:[%s3802_s1 + $0x1b0] ss:$8 sps:$4 sm:$0xff]   ;;  %v2534_v55 = vld [vmem:[%s3802_s1 + $0x1a4] ss:$8 sps:$4 sm:$0xff]   ;;  %v2536_v56 = vld [vmem:[%s3802_s1 + $0xa0] ss:$8 sps:$4 sm:$0xff]  }
  0x14   :  { %1527 = vmatpush1.bf16.msra.mxu1 %v2483_v19  ;;  %1405 = vmatprep.subr.bf16.mxu0 %v2484_v20  ;;  %v2537_v57 = vld [vmem:[%s3802_s1 + $0x1a0] ss:$8 sps:$4 sm:$0xff]   ;;  %v2538_v58 = vld [vmem:[%s3802_s1 + $0x94] ss:$8 sps:$4 sm:$0xff]   ;;  %v2542_v60 = vld [vmem:[%s3802_s1 + $0x90] ss:$8 sps:$4 sm:$0xff]  }
  0x15   :  { %1528 = vmatprep.subr.bf16.mxu1 %v2486_v21  ;;  %v2540_v59 = vld [vmem:[%s3802_s1 + $0x194] ss:$8 sps:$4 sm:$0xff]   ;;  %v2543_v61 = vld [vmem:[%s3802_s1 + $0x190] ss:$8 sps:$4 sm:$0xff]   ;;  %v2544_v62 = vld [vmem:[%s3802_s1 + $0x84] ss:$8 sps:$4 sm:$0xff]  }
  0x16   :  { %v2546_v63 = vld [vmem:[%s3802_s1 + $0x184] ss:$8 sps:$4 sm:$0xff]   ;;  %v2548_v0 = vld [vmem:[%s3802_s1 + $0x80] ss:$8 sps:$4 sm:$0xff]   ;;  %v2558_v2 = vld [vmem:[%s3802_s1 + $0x274] ss:$8 sps:$4 sm:$0xff]  }
  0x17   :  { %1406 = vmatpush1.bf16.msra.mxu0 %v2488_v22  ;;  %v2549_v1 = vld [vmem:[%s3802_s1 + $0x180] ss:$8 sps:$4 sm:$0xff]   ;;  %v2570_v3 = vld [vmem:[%s3802_s1 + $0x374] ss:$8 sps:$4 sm:$0xff]   ;;  %v2556_v6 = vld [vmem:[%s3802_s1 + $0x270] ss:$8 sps:$4 sm:$0xff]  }
  0x18   :  { %1529 = vmatpush1.bf16.msra.mxu1 %v2489_v23  ;;  %1407 = vmatprep.subr.bf16.mxu0 %v2490_v24  ;;  %v2550_v4 = vld [vmem:[%s3803_s0] ss:$36 sps:$4 sm:$0xff]   ;;  %v2553_v5 = vld [vmem:[%s3803_s0 + $0x8] ss:$36 sps:$4 sm:$0xff]   ;;  %v2564_v9 = vld [vmem:[%s3803_s0 + $0x54] ss:$36 sps:$4 sm:$0xff]  }
  0x19   :  { %1530 = vmatprep.subr.bf16.mxu1 %v2492_v25  ;;  %v2562_v7 = vld [vmem:[%s3803_s0 + $0x4c] ss:$36 sps:$4 sm:$0xff]   ;;  %v2559_v12 = vld [vmem:[%s3802_s1 + $0x260] ss:$8 sps:$4 sm:$0xff]   ;;  %v2573_v14 = vld [vmem:[%s3802_s1 + $0x254] ss:$8 sps:$4 sm:$0xff]  }
  0x1a   :  { %v2561_v8 = vld [vmem:[%s3802_s1 + $0x264] ss:$8 sps:$4 sm:$0xff]   ;;  %v2568_v10 = vld [vmem:[%s3802_s1 + $0x370] ss:$8 sps:$4 sm:$0xff]   ;;  %v2574_v16 = vld [vmem:[%s3802_s1 + $0x360] ss:$8 sps:$4 sm:$0xff]  }
  0x1b   :  { %1408 = vmatpush1.bf16.msra.mxu0 %v2494_v26  ;;  %v2576_v11 = vld [vmem:[%s3802_s1 + $0x364] ss:$8 sps:$4 sm:$0xff]   ;;  %v2567_v15 = vld [vmem:[%s3803_s0 + $0x50] ss:$36 sps:$4 sm:$0xff]   ;;  %v2582_v20 = vld [vmem:[%s3803_s0 + $0x9c] ss:$36 sps:$4 sm:$0xff]  }
  0x1c   :  { %1531 = vmatpush1.bf16.msra.mxu1 %v2495_v27  ;;  %1409 = vmatprep.subr.bf16.mxu0 %v2496_v28  ;;  %v2566_v13 = vld [vmem:[%s3803_s0 + $0x48] ss:$36 sps:$4 sm:$0xff]   ;;  %v2571_v17 = vld [vmem:[%s3802_s1 + $0x250] ss:$8 sps:$4 sm:$0xff]   ;;  %v2588_v21 = vld [vmem:[%s3802_s1 + $0x354] ss:$8 sps:$4 sm:$0xff]  }
  0x1d   :  { %1532 = vmatprep.subr.bf16.mxu1 %v2498_v29  ;;  %v2579_v18 = vld [vmem:[%s3802_s1 + $0x244] ss:$8 sps:$4 sm:$0xff]   ;;  %v2580_v19 = vld [vmem:[%s3803_s0 + $0x94] ss:$36 sps:$4 sm:$0xff]   ;;  %v2577_v22 = vld [vmem:[%s3802_s1 + $0x240] ss:$8 sps:$4 sm:$0xff]  }
  0x1e   :  { %v2586_v23 = vld [vmem:[%s3802_s1 + $0x350] ss:$8 sps:$4 sm:$0xff]   ;;  %v2594_v24 = vld [vmem:[%s3802_s1 + $0x344] ss:$8 sps:$4 sm:$0xff]   ;;  %v2591_v25 = vld [vmem:[%s3802_s1 + $0x234] ss:$8 sps:$4 sm:$0xff]  }
  0x1f   :  { %1410 = vmatpush1.bf16.msra.mxu0 %v2500_v30  ;;  %v2584_v26 = vld [vmem:[%s3803_s0 + $0x90] ss:$36 sps:$4 sm:$0xff]   ;;  %v2585_v27 = vld [vmem:[%s3803_s0 + $0x98] ss:$36 sps:$4 sm:$0xff]   ;;  %v2592_v29 = vld [vmem:[%s3802_s1 + $0x340] ss:$8 sps:$4 sm:$0xff]  }
  0x20   :  { %1533 = vmatpush1.bf16.msra.mxu1 %v2501_v31  ;;  %1411 = vmatprep.subr.bf16.mxu0 %v2502_v32  ;;  %v2589_v28 = vld [vmem:[%s3802_s1 + $0x230] ss:$8 sps:$4 sm:$0xff]   ;;  %v2595_v30 = vld [vmem:[%s3803_s0 + $0xdc] ss:$36 sps:$4 sm:$0xff]   ;;  %v2597_v31 = vld [vmem:[%s3803_s0 + $0xe4] ss:$36 sps:$4 sm:$0xff]  }
  0x21   :  { %1534 = vmatprep.subr.bf16.mxu1 %v2504_v33  ;;  %v2601_v32 = vld [vmem:[%s3802_s1 + $0x224] ss:$8 sps:$4 sm:$0xff]   ;;  %v2606_v33 = vld [vmem:[%s3802_s1 + $0x334] ss:$8 sps:$4 sm:$0xff]  }
  0x22   :  { %v2630_v49 = vld [vmem:[%s3802_s1 + $0x304] ss:$8 sps:$4 sm:$0xff]  }
  0x23   :  { %1412 = vmatpush2.bf16.msra.mxu0 %v2506_v34  ;;  %v2599_v34 = vld [vmem:[%s3802_s1 + $0x220] ss:$8 sps:$4 sm:$0xff]  }
  0x24   :  { %1535 = vmatpush2.bf16.msra.mxu1 %v2507_v35  ;;  %1413 = vmatprep.subr.bf16.mxu0 %v2508_v36  ;;  %v2604_v35 = vld [vmem:[%s3802_s1 + $0x330] ss:$8 sps:$4 sm:$0xff]   ;;  %v2609_v36 = vld [vmem:[%s3802_s1 + $0x214] ss:$8 sps:$4 sm:$0xff]   ;;  %v2618_v51 = vld [vmem:[%s3803_s0 + $0x128] ss:$36 sps:$4 sm:$0xff]  }
  0x25   :  { %1536 = vmatprep.subr.bf16.mxu1 %v2510_v37  ;;  %v2612_v37 = vld [vmem:[%s3802_s1 + $0x324] ss:$8 sps:$4 sm:$0xff]  }
  0x27   :  { %1414 = vmatpush2.bf16.msra.mxu0 %v2512_v38  ;;  %v2602_v38 = vld [vmem:[%s3803_s0 + $0xd8] ss:$36 sps:$4 sm:$0xff]  }
  0x28   :  { %1537 = vmatpush2.bf16.msra.mxu1 %v2513_v39  ;;  %1415 = vmatprep.subr.bf16.mxu0 %v2514_v40  ;;  %v2603_v39 = vld [vmem:[%s3803_s0 + $0xe0] ss:$36 sps:$4 sm:$0xff]   ;;  %v2607_v40 = vld [vmem:[%s3802_s1 + $0x210] ss:$8 sps:$4 sm:$0xff]  }
  0x29   :  { %1538 = vmatprep.subr.bf16.mxu1 %v2516_v41  ;;  %v2610_v41 = vld [vmem:[%s3802_s1 + $0x320] ss:$8 sps:$4 sm:$0xff]  }
  0x2b   :  { %1416 = vmatpush2.bf16.msra.mxu0 %v2518_v42  ;;  %v2613_v42 = vld [vmem:[%s3803_s0 + $0x124] ss:$36 sps:$4 sm:$0xff]  }
  0x2c   :  { %1539 = vmatpush2.bf16.msra.mxu1 %v2519_v43  ;;  %1417 = vmatprep.subr.bf16.mxu0 %v2520_v44  ;;  %v2615_v43 = vld [vmem:[%s3803_s0 + $0x12c] ss:$36 sps:$4 sm:$0xff]  }
  0x2d   :  { %1540 = vmatprep.subr.bf16.mxu1 %v2522_v45  ;;  %v2621_v44 = vld [vmem:[%s3802_s1 + $0x204] ss:$8 sps:$4 sm:$0xff]   ;;  %v2624_v45 = vld [vmem:[%s3802_s1 + $0x314] ss:$8 sps:$4 sm:$0xff]  }
  0x2f   :  { %1418 = vmatpush2.bf16.msra.mxu0 %v2524_v46  ;;  %v2619_v46 = vld [vmem:[%s3802_s1 + $0x200] ss:$8 sps:$4 sm:$0xff]  }
  0x30   :  { %1541 = vmatpush2.bf16.msra.mxu1 %v2525_v47  ;;  %1419 = vmatprep.subr.bf16.mxu0 %v2526_v48  ;;  %v2622_v47 = vld [vmem:[%s3802_s1 + $0x310] ss:$8 sps:$4 sm:$0xff]   ;;  %v2627_v48 = vld [vmem:[%s3802_s1 + $0x2f4] ss:$8 sps:$4 sm:$0xff]  }
  0x31   :  { %1542 = vmatprep.subr.bf16.mxu1 %v2528_v50  ;;  %v2617_v50 = vld [vmem:[%s3803_s0 + $0x120] ss:$36 sps:$4 sm:$0xff]  }
  0x33   :  { %1420 = vmatpush2.bf16.msra.mxu0 %v2530_v52  ;;  %v2625_v52 = vld [vmem:[%s3802_s1 + $0x2f0] ss:$8 sps:$4 sm:$0xff]  }
  0x34   :  { %1543 = vmatpush2.bf16.msra.mxu1 %v2531_v53  ;;  %1421 = vmatprep.subr.bf16.mxu0 %v2532_v54  ;;  %v2628_v53 = vld [vmem:[%s3802_s1 + $0x300] ss:$8 sps:$4 sm:$0xff]   ;;  %v2631_v54 = vld [vmem:[%s3803_s0 + $0x16c] ss:$36 sps:$4 sm:$0xff]  }
  0x35   :  { %1544 = vmatprep.subr.bf16.mxu1 %v2534_v55  ;;  %v2633_v55 = vld [vmem:[%s3803_s0 + $0x174] ss:$36 sps:$4 sm:$0xff]  }
  0x37   :  { %1422 = vmatpush2.bf16.msra.mxu0 %v2536_v56  ;;  %v2639_v56 = vld [vmem:[%s3802_s1 + $0x3f4] ss:$8 sps:$4 sm:$0xff]  }
  0x38   :  { %1545 = vmatpush2.bf16.msra.mxu1 %v2537_v57  ;;  %1423 = vmatprep.subr.bf16.mxu0 %v2538_v58  ;;  %v2642_v57 = vld [vmem:[%s3802_s1 + $0x2e4] ss:$8 sps:$4 sm:$0xff]   ;;  %v2637_v58 = vld [vmem:[%s3802_s1 + $0x3f0] ss:$8 sps:$4 sm:$0xff]  }
  0x39   :  { %1546 = vmatprep.subr.bf16.mxu1 %v2540_v59  ;;  %v2640_v59 = vld [vmem:[%s3802_s1 + $0x2e0] ss:$8 sps:$4 sm:$0xff]  }
  0x3b   :  { %1424 = vmatpush2.bf16.msra.mxu0 %v2542_v60  ;;  %v2645_v60 = vld [vmem:[%s3802_s1 + $0x3e4] ss:$8 sps:$4 sm:$0xff]  }
  0x3c   :  { %1547 = vmatpush2.bf16.msra.mxu1 %v2543_v61  ;;  %1425 = vmatprep.subr.bf16.mxu0 %v2544_v62  ;;  %v2648_v61 = vld [vmem:[%s3802_s1 + $0x2d4] ss:$8 sps:$4 sm:$0xff]   ;;  %v2635_v62 = vld [vmem:[%s3803_s0 + $0x168] ss:$36 sps:$4 sm:$0xff]  }
  0x3d   :  { %1548 = vmatprep.subr.bf16.mxu1 %v2546_v63  ;;  %v2636_v63 = vld [vmem:[%s3803_s0 + $0x170] ss:$36 sps:$4 sm:$0xff]  }
  0x3f   :  { %1426 = vmatpush2.bf16.msra.mxu0 %v2548_v0  ;;  %v2643_v0 = vld [vmem:[%s3802_s1 + $0x3e0] ss:$8 sps:$4 sm:$0xff]  }
  0x40   :  { %1549 = vmatpush2.bf16.msra.mxu1 %v2549_v1  ;;  %1641 = vmatprep.subr.bf16.mxu0 %v2558_v2  ;;  %v2646_v1 = vld [vmem:[%s3802_s1 + $0x2d0] ss:$8 sps:$4 sm:$0xff]  }
  0x41   :  { %1764 = vmatprep.subr.bf16.mxu1 %v2570_v3  ;;  %v2649_v2 = vld [vmem:[%s3803_s0 + $0x1b4] ss:$36 sps:$4 sm:$0xff]   ;;  %v2651_v3 = vld [vmem:[%s3803_s0 + $0x1bc] ss:$36 sps:$4 sm:$0xff]  }
  0x42   :  { %1428 = vmatmul.mubr.bf16.vlgmr.msra.gmra.mxu0 %v2550_v4  ;;  %v2657_v4 = vld [vmem:[%s3802_s1 + $0x3d4] ss:$8 sps:$4 sm:$0xff]  }
  0x43   :  { %1551 = vmatmul.mubr.bf16.vlgmr.msra.gmra.mxu1 %v2553_v5  ;;  %1642 = vmatpush1.bf16.msra.mxu0 %v2556_v6  ;;  %v2660_v5 = vld [vmem:[%s3802_s1 + $0x2c4] ss:$8 sps:$4 sm:$0xff]   ;;  %v2655_v6 = vld [vmem:[%s3802_s1 + $0x3d0] ss:$8 sps:$4 sm:$0xff]  }
  0x44   :  { %1437 = vmatprep.mubr.bf16.mxu0 %v2562_v7  ;;  %1643 = vmatprep.subr.bf16.mxu0 %v2561_v8  ;;  %v2658_v7 = vld [vmem:[%s3802_s1 + $0x2c0] ss:$8 sps:$4 sm:$0xff]   ;;  %v2653_v8 = vld [vmem:[%s3803_s0 + $0x1b0] ss:$36 sps:$4 sm:$0xff]  }
  0x45   :  { %1560 = vmatprep.mubr.bf16.mxu1 %v2564_v9  ;;  %1765 = vmatpush1.bf16.msra.mxu1 %v2568_v10  ;;  %v2663_v9 = vld [vmem:[%s3802_s1 + $0x3c4] ss:$8 sps:$4 sm:$0xff]   ;;  %v2666_v10 = vld [vmem:[%s3802_s1 + $0x2b4] ss:$8 sps:$4 sm:$0xff]  }
  0x46   :  { %1766 = vmatprep.subr.bf16.mxu1 %v2576_v11  ;;  %v2654_v11 = vld [vmem:[%s3803_s0 + $0x1b8] ss:$36 sps:$4 sm:$0xff]  }
  0x47   :  { %1644 = vmatpush1.bf16.msra.mxu0 %v2559_v12  ;;  %v2661_v12 = vld [vmem:[%s3802_s1 + $0x3c0] ss:$8 sps:$4 sm:$0xff]  }
  0x48   :  { %1645 = vmatprep.subr.bf16.mxu0 %v2573_v14  ;;  %v2667_v14 = vld [vmem:[%s3803_s0 + $0x1fc] ss:$36 sps:$4 sm:$0xff]  }
  0x49   :  { %1767 = vmatpush1.bf16.msra.mxu1 %v2574_v16  ;;  %v2675_v16 = vld [vmem:[%s3802_s1 + $0x3b4] ss:$8 sps:$4 sm:$0xff]  }
  0x4a   :  { %1438 = vmatmul.mubr.bf16.gmra.mxu0 %v2566_v13  ;;  %1768 = vmatprep.subr.bf16.mxu1 %v2588_v21  ;;  %v2664_v13 = vld [vmem:[%s3802_s1 + $0x2b0] ss:$8 sps:$4 sm:$0xff]   ;;  %v2676_v21 = vld [vmem:[%s3802_s1 + $0x2a0] ss:$8 sps:$4 sm:$0xff]  }
  0x4b   :  { %1561 = vmatmul.mubr.bf16.gmra.mxu1 %v2567_v15  ;;  %1646 = vmatpush1.bf16.msra.mxu0 %v2571_v17  ;;  %v2669_v15 = vld [vmem:[%s3803_s0 + $0x204] ss:$36 sps:$4 sm:$0xff]  }
  0x4c   :  { %1447 = vmatprep.mubr.bf16.mxu0 %v2580_v19  ;;  %1647 = vmatprep.subr.bf16.mxu0 %v2579_v18  ;;  %v2678_v17 = vld [vmem:[%s3802_s1 + $0x2a4] ss:$8 sps:$4 sm:$0xff]   ;;  %v2673_v18 = vld [vmem:[%s3802_s1 + $0x3b0] ss:$8 sps:$4 sm:$0xff]  }
  0x4d   :  { %1570 = vmatprep.mubr.bf16.mxu1 %v2582_v20  ;;  %1769 = vmatpush1.bf16.msra.mxu1 %v2586_v23  ;;  %v2671_v19 = vld [vmem:[%s3803_s0 + $0x1f8] ss:$36 sps:$4 sm:$0xff]   ;;  %v2672_v20 = vld [vmem:[%s3803_s0 + $0x200] ss:$36 sps:$4 sm:$0xff]  }
  0x4e   :  { %1770 = vmatprep.subr.bf16.mxu1 %v2594_v24  ;;  %v2688_v23 = vld [vmem:[%s3802_s1 + $0x294] ss:$8 sps:$4 sm:$0xff]   ;;  %v2679_v24 = vld [vmem:[%s3802_s1 + $0x3a0] ss:$8 sps:$4 sm:$0xff]  }
  0x4f   :  { %1648 = vmatpush1.bf16.msra.mxu0 %v2577_v22  ;;  %v2681_v22 = vld [vmem:[%s3802_s1 + $0x3a4] ss:$8 sps:$4 sm:$0xff]  }
  0x50   :  { %1649 = vmatprep.subr.bf16.mxu0 %v2591_v25  ;;  %v2682_v25 = vld [vmem:[%s3803_s0 + $0x244] ss:$36 sps:$4 sm:$0x3f]  }
  0x51   :  { %1771 = vmatpush1.bf16.msra.mxu1 %v2592_v29  ;;  %v2696_v29 = vld [vmem:[%s3802_s1 + $0x284] ss:$8 sps:$4 sm:$0xff]  }
  0x52   :  { %1448 = vmatmul.mubr.bf16.gmra.mxu0 %v2584_v26  ;;  %1772 = vmatprep.subr.bf16.mxu1 %v2606_v33  ;;  %v2684_v26 = vld [vmem:[%s3803_s0 + $0x24c] ss:$36 sps:$4 sm:$0x3f]  }
  0x53   :  { %1571 = vmatmul.mubr.bf16.gmra.mxu1 %v2585_v27  ;;  %1650 = vmatpush1.bf16.msra.mxu0 %v2589_v28  ;;  %v2686_v27 = vld [vmem:[%s3802_s1 + $0x290] ss:$8 sps:$4 sm:$0xff]   ;;  %v2693_v28 = vld [vmem:[%s3802_s1 + $0x394] ss:$8 sps:$4 sm:$0xff]   ;;  %v2699_v33 = vld [vmem:[%s3802_s1 + $0x384] ss:$8 sps:$4 sm:$0xff]  }
  0x54   :  { %1457 = vmatprep.mubr.bf16.mxu0 %v2595_v30  ;;  %1580 = vmatprep.mubr.bf16.mxu1 %v2597_v31  ;;  %v2691_v30 = vld [vmem:[%s3802_s1 + $0x390] ss:$8 sps:$4 sm:$0xff]   ;;  %v2689_v31 = vld [vmem:[%s3803_s0 + $0x240] ss:$36 sps:$4 sm:$0x3f]  }
  0x55   :  { %1651 = vmatprep.subr.bf16.mxu0 %v2601_v32  ;;  %1773 = vmatpush1.bf16.msra.mxu1 %v2604_v35  ;;  %v2694_v32 = vld [vmem:[%s3802_s1 + $0x280] ss:$8 sps:$4 sm:$0xff]  }
  0x56   :  { %1774 = vmatprep.subr.bf16.mxu1 %v2612_v37  ;;  %v2690_v35 = vld [vmem:[%s3803_s0 + $0x248] ss:$36 sps:$4 sm:$0x3f]   ;;  %v2702_v37 = vld [vmem:[%s3803_s0 + $0x14] ss:$36 sps:$4 sm:$0xff]  }
  0x57   :  { %1652 = vmatpush1.bf16.msra.mxu0 %v2599_v34  ;;  %v2708_v34 = vld [vmem:[%s3802_s1 + $0x474] ss:$8 sps:$4 sm:$0xff]  }
  0x58   :  { %1653 = vmatprep.subr.bf16.mxu0 %v2609_v36  ;;  %v2697_v36 = vld [vmem:[%s3802_s1 + $0x380] ss:$8 sps:$4 sm:$0xff]  }
  0x59   :  { %1775 = vmatpush1.bf16.msra.mxu1 %v2610_v41  ;;  %v2706_v41 = vld [vmem:[%s3802_s1 + $0x470] ss:$8 sps:$4 sm:$0xff]  }
  0x5a   :  { %1458 = vmatmul.mubr.bf16.gmra.mxu0 %v2602_v38  ;;  %1776 = vmatprep.subr.bf16.mxu1 %v2624_v45  ;;  %v2705_v38 = vld [vmem:[%s3803_s0 + $0x1c] ss:$36 sps:$4 sm:$0xff]  }
  0x5b   :  { %1581 = vmatmul.mubr.bf16.gmra.mxu1 %v2603_v39  ;;  %1654 = vmatpush1.bf16.msra.mxu0 %v2607_v40  ;;  %v2700_v39 = vld [vmem:[%s3803_s0 + $0x10] ss:$36 sps:$4 sm:$0xff]   ;;  %v2703_v40 = vld [vmem:[%s3803_s0 + $0x18] ss:$36 sps:$4 sm:$0xff]   ;;  %v2715_v45 = vld [vmem:[%s3802_s1 + $0x460] ss:$8 sps:$4 sm:$0xff]  }
  0x5c   :  { %1467 = vmatprep.mubr.bf16.mxu0 %v2613_v42  ;;  %1590 = vmatprep.mubr.bf16.mxu1 %v2615_v43  ;;  %v2709_v42 = vld [vmem:[%s3803_s0 + $0x5c] ss:$36 sps:$4 sm:$0xff]   ;;  %v2711_v43 = vld [vmem:[%s3803_s0 + $0x64] ss:$36 sps:$4 sm:$0xff]  }
  0x5d   :  { %1655 = vmatprep.subr.bf16.mxu0 %v2621_v44  ;;  %1777 = vmatpush1.bf16.msra.mxu1 %v2622_v47  ;;  %v2717_v44 = vld [vmem:[%s3802_s1 + $0x464] ss:$8 sps:$4 sm:$0xff]   ;;  %v2713_v47 = vld [vmem:[%s3803_s0 + $0x58] ss:$36 sps:$4 sm:$0xff]  }
  0x5e   :  { %1778 = vmatprep.subr.bf16.mxu1 %v2630_v49  ;;  %v2718_v49 = vld [vmem:[%s3803_s0 + $0xa4] ss:$36 sps:$4 sm:$0xff]  }
  0x5f   :  { %1656 = vmatpush1.bf16.msra.mxu0 %v2619_v46  ;;  %v2726_v46 = vld [vmem:[%s3802_s1 + $0x454] ss:$8 sps:$4 sm:$0xff]  }
  0x60   :  { %1657 = vmatprep.subr.bf16.mxu0 %v2627_v48  ;;  %v2714_v48 = vld [vmem:[%s3803_s0 + $0x60] ss:$36 sps:$4 sm:$0xff]  }
  0x61   :  { %1779 = vmatpush1.bf16.msra.mxu1 %v2628_v53  ;;  %v2722_v53 = vld [vmem:[%s3803_s0 + $0xa0] ss:$36 sps:$4 sm:$0xff]  }
  0x62   :  { %1468 = vmatmul.mubr.bf16.gmra.mxu0 %v2617_v50  ;;  %1780 = vmatprep.subr.bf16.mxu1 %v2639_v56  ;;  %v2720_v50 = vld [vmem:[%s3803_s0 + $0xac] ss:$36 sps:$4 sm:$0xff]  }
  0x63   :  { %1591 = vmatmul.mubr.bf16.gmra.mxu1 %v2618_v51  ;;  %1658 = vmatpush2.bf16.msra.mxu0 %v2625_v52  ;;  %v2724_v51 = vld [vmem:[%s3802_s1 + $0x450] ss:$8 sps:$4 sm:$0xff]   ;;  %v2735_v52 = vld [vmem:[%s3802_s1 + $0x444] ss:$8 sps:$4 sm:$0xff]  }
  0x64   :  { %1477 = vmatprep.mubr.bf16.mxu0 %v2631_v54  ;;  %1600 = vmatprep.mubr.bf16.mxu1 %v2633_v55  ;;  %v2733_v54 = vld [vmem:[%s3802_s1 + $0x440] ss:$8 sps:$4 sm:$0xff]   ;;  %v2744_v55 = vld [vmem:[%s3802_s1 + $0x434] ss:$8 sps:$4 sm:$0xff]  }
  0x65   :  { %1659 = vmatprep.subr.bf16.mxu0 %v2642_v57  ;;  %1781 = vmatpush2.bf16.msra.mxu1 %v2637_v58  ;;  %v2723_v56 = vld [vmem:[%s3803_s0 + $0xa8] ss:$36 sps:$4 sm:$0xff]   ;;  %v2729_v58 = vld [vmem:[%s3803_s0 + $0xf4] ss:$36 sps:$4 sm:$0xff]  }
  0x66   :  { %1782 = vmatprep.subr.bf16.mxu1 %v2645_v60  ;;  %v2727_v57 = vld [vmem:[%s3803_s0 + $0xec] ss:$36 sps:$4 sm:$0xff]  }
  0x67   :  { %1660 = vmatpush2.bf16.msra.mxu0 %v2640_v59  ;;  %v2742_v59 = vld [vmem:[%s3802_s1 + $0x430] ss:$8 sps:$4 sm:$0xff]   ;;  %v2753_v60 = vld [vmem:[%s3802_s1 + $0x424] ss:$8 sps:$4 sm:$0xff]  }
  0x68   :  { %1661 = vmatprep.subr.bf16.mxu0 %v2648_v61  ;;  %v2751_v61 = vld [vmem:[%s3802_s1 + $0x420] ss:$8 sps:$4 sm:$0xff]  }
  0x69   :  { %1783 = vmatpush2.bf16.msra.mxu1 %v2643_v0  ;;  %v2732_v0 = vld [vmem:[%s3803_s0 + $0xf0] ss:$36 sps:$4 sm:$0xff]  }
  0x6a   :  { %1478 = vmatmul.mubr.bf16.gmra.mxu0 %v2635_v62  ;;  %1784 = vmatprep.subr.bf16.mxu1 %v2657_v4  ;;  %v2762_v62 = vld [vmem:[%s3802_s1 + $0x414] ss:$8 sps:$4 sm:$0xff]   ;;  %v2775_v4 = vld [vmem:[%s3802_s1 + $0x404] ss:$8 sps:$4 sm:$0xff]  }
  0x6b   :  { %1601 = vmatmul.mubr.bf16.gmra.mxu1 %v2636_v63  ;;  %1662 = vmatpush2.bf16.msra.mxu0 %v2646_v1  ;;  %v2731_v63 = vld [vmem:[%s3803_s0 + $0xe8] ss:$36 sps:$4 sm:$0xff]   ;;  %v2736_v1 = vld [vmem:[%s3803_s0 + $0x134] ss:$36 sps:$4 sm:$0xff]  }
  0x6c   :  { %1487 = vmatprep.mubr.bf16.mxu0 %v2649_v2  ;;  %1610 = vmatprep.mubr.bf16.mxu1 %v2651_v3  ;;  %v2738_v2 = vld [vmem:[%s3803_s0 + $0x13c] ss:$36 sps:$4 sm:$0xff]   ;;  %v2760_v3 = vld [vmem:[%s3802_s1 + $0x410] ss:$8 sps:$4 sm:$0xff]  }
  0x6d   :  { %1663 = vmatprep.subr.bf16.mxu0 %v2660_v5  ;;  %1785 = vmatpush2.bf16.msra.mxu1 %v2655_v6  ;;  %v2773_v5 = vld [vmem:[%s3802_s1 + $0x400] ss:$8 sps:$4 sm:$0xff]   ;;  %v2740_v6 = vld [vmem:[%s3803_s0 + $0x130] ss:$36 sps:$4 sm:$0xff]  }
  0x6e   :  { %1786 = vmatprep.subr.bf16.mxu1 %v2663_v9  ;;  %v2747_v9 = vld [vmem:[%s3803_s0 + $0x184] ss:$36 sps:$4 sm:$0xff]  }
  0x6f   :  { %1664 = vmatpush2.bf16.msra.mxu0 %v2658_v7  ;;  %v2741_v7 = vld [vmem:[%s3803_s0 + $0x138] ss:$36 sps:$4 sm:$0xff]  }
  0x70   :  { %1665 = vmatprep.subr.bf16.mxu0 %v2666_v10  ;;  %v2749_v10 = vld [vmem:[%s3803_s0 + $0x178] ss:$36 sps:$4 sm:$0xff]  }
  0x71   :  { %1787 = vmatpush2.bf16.msra.mxu1 %v2661_v12  ;;  %v2754_v12 = vld [vmem:[%s3803_s0 + $0x1c4] ss:$36 sps:$4 sm:$0xff]  }
  0x72   :  { %1488 = vmatmul.mubr.bf16.gmra.mxu0 %v2653_v8  ;;  %1788 = vmatprep.subr.bf16.mxu1 %v2675_v16  ;;  %v2745_v8 = vld [vmem:[%s3803_s0 + $0x17c] ss:$36 sps:$4 sm:$0xff]   ;;  %v2763_v16 = vld [vmem:[%s3803_s0 + $0x20c] ss:$36 sps:$4 sm:$0xff]  }
  0x73   :  { %1611 = vmatmul.mubr.bf16.gmra.mxu1 %v2654_v11  ;;  %1497 = vmatprep.mubr.bf16.mxu0 %v2667_v14  ;;  %v2750_v11 = vld [vmem:[%s3803_s0 + $0x180] ss:$36 sps:$4 sm:$0xff]  }
  0x74   :  { %1620 = vmatprep.mubr.bf16.mxu1 %v2669_v15  ;;  %1666 = vmatpush2.bf16.msra.mxu0 %v2664_v13  ;;  %v2756_v13 = vld [vmem:[%s3803_s0 + $0x1cc] ss:$36 sps:$4 sm:$0xff]   ;;  %v2758_v14 = vld [vmem:[%s3803_s0 + $0x1c0] ss:$36 sps:$4 sm:$0xff]  }
  0x75   :  { %1667 = vmatprep.subr.bf16.mxu0 %v2678_v17  ;;  %1789 = vmatpush2.bf16.msra.mxu1 %v2673_v18  ;;  %v2759_v15 = vld [vmem:[%s3803_s0 + $0x1c8] ss:$36 sps:$4 sm:$0xff]   ;;  %v2765_v17 = vld [vmem:[%s3803_s0 + $0x214] ss:$36 sps:$4 sm:$0xff]  }
  0x76   :  { %1790 = vmatprep.subr.bf16.mxu1 %v2681_v22  ;;  %v2767_v18 = vld [vmem:[%s3803_s0 + $0x208] ss:$36 sps:$4 sm:$0xff]   ;;  %v2776_v22 = vld [vmem:[%s3803_s0 + $0x250] ss:$36 sps:$4 sm:$0x3f]  }
  0x78   :  { %1668 = vmatpush2.bf16.msra.mxu0 %v2676_v21  ;;  %v2771_v21 = vld [vmem:[%s3803_s0 + $0x25c] ss:$36 sps:$4 sm:$0x3f]  }
  0x79   :  { %1669 = vmatprep.subr.bf16.mxu0 %v2688_v23  ;;  %1791 = vmatpush2.bf16.msra.mxu1 %v2679_v24  ;;  %v2777_v23 = vld [vmem:[%s3803_s0 + $0x258] ss:$36 sps:$4 sm:$0x3f]   ;;  %v2787_v24 = vmov 0  }
  0x7a   :  { %1498 = vmatmul.mubr.bf16.gmra.mxu0 %v2671_v19  ;;  %1792 = vmatprep.subr.bf16.mxu1 %v2693_v28  ;;  %v2768_v19 = vld [vmem:[%s3803_s0 + $0x210] ss:$36 sps:$4 sm:$0xff]  }
  0x7b   :  { %1621 = vmatmul.mubr.bf16.gmra.mxu1 %v2672_v20  ;;  %1507 = vmatprep.mubr.bf16.mxu0 %v2682_v25  ;;  %v2769_v20 = vld [vmem:[%s3803_s0 + $0x254] ss:$36 sps:$4 sm:$0x3f]   ;;  %v2778_v25 = vld [vmem:[%s3803_s0 + $0x20] ss:$36 sps:$4 sm:$0xff]  }
  0x7c   :  { %1630 = vmatprep.mubr.bf16.mxu1 %v2684_v26  ;;  %1670 = vmatpush2.bf16.msra.mxu0 %v2686_v27  ;;  %v2779_v26 = vld [vmem:[%s3803_s0 + $0x188] ss:$36 sps:$4 sm:$0xff]   ;;  %v2781_v28 = vld [vmem:[%s3803_s0 + $0x1d0] ss:$36 sps:$4 sm:$0xff]  }
  0x7d   :  { %1671 = vmatprep.subr.bf16.mxu0 %v2696_v29  ;;  %1793 = vmatpush2.bf16.msra.mxu1 %v2691_v30  ;;  %v2780_v27 = vld [vmem:[%s3803_s0 + $0x68] ss:$36 sps:$4 sm:$0xff]   ;;  %v2782_v29 = vld [vmem:[%s3803_s0 + $0xb0] ss:$36 sps:$4 sm:$0xff]   ;;  %v2783_v30 = vld [vmem:[%s3803_s0 + $0x218] ss:$36 sps:$4 sm:$0xff]  }
  0x7e   :  { %1794 = vmatprep.subr.bf16.mxu1 %v2699_v33  ;;  %v2786_v33 = vld [vmem:[%s3803_s0 + $0x140] ss:$36 sps:$4 sm:$0xff]  }
  0x80   :  { %1672 = vmatpush2.bf16.msra.mxu0 %v2694_v32  ;;  %v2785_v32 = vld [vmem:[%s3803_s0 + $0x260] ss:$36 sps:$4 sm:$0x3f]  }
  0x81   :  { %1887 = vmatprep.subr.bf16.mxu0 %v2708_v34  ;;  %1795 = vmatpush2.bf16.msra.mxu1 %v2697_v36 }
  0x82   :  { %1508 = vmatmul.mubr.bf16.gmra.mxu0 %v2689_v31  ;;  %2437 = vmatprep.subr.bf16.mxu1 %v2708_v34  ;;  %v2784_v31 = vld [vmem:[%s3803_s0 + $0xf8] ss:$36 sps:$4 sm:$0xff]   ;;  %v251_v34 = vlaneseq }
  0x83   :  { %1631 = vmatmul.mubr.bf16.gmra.mxu1 %v2690_v35  ;;  %1673 = vmatprep.mubr.bf16.mxu0 %v2702_v37  ;;  %v249_v37 = vld [vmem:[%s3804_s2] sm:$0x3] }
  0x84   :  { %1796 = vmatprep.mubr.bf16.mxu1 %v2705_v38  ;;  %v252_v35 = vshrl.u32 %v251_v34, 7 }
  0x86   :  { %v253_v36 = vsub.s32 0, %v252_v35  ;;  %v257_v38 = vsub.s32 1, %v252_v35 }
  0x8a   :  { %1674 = vmatmul.mubr.bf16.vlgmr.msra.gmra.mxu0 %v2700_v39  ;;  %v3486_v39 = vrot.slane %v249_v37, %v253_v36 }
  0x8b   :  { %1797 = vmatmul.mubr.bf16.vlgmr.msra.gmra.mxu1 %v2703_v40  ;;  %1888 = vmatpush1.bf16.msra.mxu0 %v2706_v41  ;;  %v3488_v40 = vrot.slane %v249_v37, %v257_v38 }
  0x8c   :  { %1683 = vmatprep.mubr.bf16.mxu0 %v2709_v42  ;;  %1806 = vmatprep.mubr.bf16.mxu1 %v2711_v43 }
  0x8d   :  { %2445 = vmatpush1.bf16.msra.mxu1 %v2706_v41  ;;  %1889 = vmatprep.subr.bf16.mxu0 %v2717_v44 }
  0x8e   :  { %2438 = vmatprep.subr.bf16.mxu1 %v2717_v44 }
  0x8f   :  { %1890 = vmatpush1.bf16.msra.mxu0 %v2715_v45 }
  0x90   :  { %1891 = vmatprep.subr.bf16.mxu0 %v2726_v46 }
  0x91   :  { %2446 = vmatpush1.bf16.msra.mxu1 %v2715_v45 }
  0x92   :  { %2439 = vmatprep.subr.bf16.mxu1 %v2726_v46  ;;  %1684 = vmatmul.mubr.bf16.gmra.mxu0 %v2713_v47 }
  0x93   :  { %1807 = vmatmul.mubr.bf16.gmra.mxu1 %v2714_v48  ;;  %1693 = vmatprep.mubr.bf16.mxu0 %v2718_v49 }
  0x94   :  { %1816 = vmatprep.mubr.bf16.mxu1 %v2720_v50  ;;  %1892 = vmatpush1.bf16.msra.mxu0 %v2724_v51 }
  0x95   :  { %2447 = vmatpush1.bf16.msra.mxu1 %v2724_v51  ;;  %1893 = vmatprep.subr.bf16.mxu0 %v2735_v52 }
  0x96   :  { %2440 = vmatprep.subr.bf16.mxu1 %v2735_v52 }
  0x98   :  { %1894 = vmatpush1.bf16.msra.mxu0 %v2733_v54 }
  0x99   :  { %2448 = vmatpush1.bf16.msra.mxu1 %v2733_v54  ;;  %1895 = vmatprep.subr.bf16.mxu0 %v2744_v55 }
  0x9a   :  { %2441 = vmatprep.subr.bf16.mxu1 %v2744_v55  ;;  %1694 = vmatmul.mubr.bf16.gmra.mxu0 %v2722_v53 }
  0x9b   :  { %1817 = vmatmul.mubr.bf16.gmra.mxu1 %v2723_v56  ;;  %1703 = vmatprep.mubr.bf16.mxu0 %v2727_v57 }
  0x9c   :  { %1826 = vmatprep.mubr.bf16.mxu1 %v2729_v58  ;;  %1896 = vmatpush1.bf16.msra.mxu0 %v2742_v59 }
  0x9d   :  { %2449 = vmatpush1.bf16.msra.mxu1 %v2742_v59  ;;  %1897 = vmatprep.subr.bf16.mxu0 %v2753_v60 }
  0x9e   :  { %2442 = vmatprep.subr.bf16.mxu1 %v2753_v60 }
  0xa0   :  { %1898 = vmatpush1.bf16.msra.mxu0 %v2751_v61 }
  0xa1   :  { %2450 = vmatpush1.bf16.msra.mxu1 %v2751_v61  ;;  %1899 = vmatprep.subr.bf16.mxu0 %v2762_v62 }
  0xa2   :  { %2443 = vmatprep.subr.bf16.mxu1 %v2762_v62  ;;  %1704 = vmatmul.mubr.bf16.gmra.mxu0 %v2731_v63 }
  0xa3   :  { %1827 = vmatmul.mubr.bf16.gmra.mxu1 %v2732_v0  ;;  %1713 = vmatprep.mubr.bf16.mxu0 %v2736_v1 }
  0xa4   :  { %1836 = vmatprep.mubr.bf16.mxu1 %v2738_v2  ;;  %1900 = vmatpush1.bf16.msra.mxu0 %v2760_v3 }
  0xa5   :  { %2451 = vmatpush1.bf16.msra.mxu1 %v2760_v3  ;;  %1901 = vmatprep.subr.bf16.mxu0 %v2775_v4 }
  0xa6   :  { %2444 = vmatprep.subr.bf16.mxu1 %v2775_v4 }
  0xa8   :  { %1902 = vmatpush1.bf16.msra.mxu0 %v2773_v5 }
  0xa9   :  { %2452 = vmatpush1.bf16.msra.mxu1 %v2773_v5 }
  0xaa   :  { %1714 = vmatmul.mubr.bf16.gmra.mxu0 %v2740_v6 }
  0xab   :  { %1837 = vmatmul.mubr.bf16.gmra.mxu1 %v2741_v7  ;;  %1723 = vmatprep.mubr.bf16.mxu0 %v2745_v8 }
  0xac   :  { %1846 = vmatprep.mubr.bf16.mxu1 %v2747_v9 }
  0xb2   :  { %1724 = vmatmul.mubr.bf16.gmra.mxu0 %v2749_v10 }
  0xb3   :  { %1847 = vmatmul.mubr.bf16.gmra.mxu1 %v2750_v11  ;;  %1733 = vmatprep.mubr.bf16.mxu0 %v2754_v12 }
  0xb4   :  { %1856 = vmatprep.mubr.bf16.mxu1 %v2756_v13 }
  0xba   :  { %1734 = vmatmul.mubr.bf16.gmra.mxu0 %v2758_v14 }
  0xbb   :  { %1857 = vmatmul.mubr.bf16.gmra.mxu1 %v2759_v15  ;;  %1743 = vmatprep.mubr.bf16.mxu0 %v2763_v16 }
  0xbc   :  { %1866 = vmatprep.mubr.bf16.mxu1 %v2765_v17 }
  0xc2   :  { %1744 = vmatmul.mubr.bf16.gmra.mxu0 %v2767_v18 }
  0xc3   :  { %1867 = vmatmul.mubr.bf16.gmra.mxu1 %v2768_v19  ;;  %1753 = vmatprep.mubr.bf16.mxu0 %v2769_v20 }
  0xc4   :  { %1876 = vmatprep.mubr.bf16.mxu1 %v2771_v21 }
  0xca   :  { %1754 = vmatmul.mubr.bf16.gmra.mxu0 %v2776_v22 }
  0xcb   :  { %1877 = vmatmul.mubr.bf16.gmra.mxu1 %v2777_v23  ;;  %1919 = vmatprep.mubr.bf16.mxu0 %v2787_v24 }
  0xcc   :  { %1969 = vmatprep.mubr.bf16.mxu1 %v2787_v24 }
  0xd2   :  { %1920 = vmatmul.mubr.bf16.vlgmr.msra.gmra.mxu0 %v2778_v25 }
  0xd3   :  { %1970 = vmatmul.mubr.bf16.vlgmr.msra.gmra.mxu1 %v2779_v26  ;;  %1929 = vmatprep.mubr.bf16.mxu0 %v2787_v24 }
  0xd4   :  { %1979 = vmatprep.mubr.bf16.mxu1 %v2787_v24 }
  0xda   :  { %1930 = vmatmul.mubr.bf16.gmra.mxu0 %v2780_v27 }
  0xdb   :  { %1980 = vmatmul.mubr.bf16.gmra.mxu1 %v2781_v28  ;;  %1939 = vmatprep.mubr.bf16.mxu0 %v2787_v24 }
  0xdc   :  { %1989 = vmatprep.mubr.bf16.mxu1 %v2787_v24 }
  0xe2   :  { %1940 = vmatmul.mubr.bf16.gmra.mxu0 %v2782_v29 }
  0xe3   :  { %1990 = vmatmul.mubr.bf16.gmra.mxu1 %v2783_v30  ;;  %1949 = vmatprep.mubr.bf16.mxu0 %v2787_v24 }
  0xe4   :  { %1999 = vmatprep.mubr.bf16.mxu1 %v2787_v24 }
  0xea   :  { %1950 = vmatmul.mubr.bf16.gmra.mxu0 %v2784_v31 }
  0xeb   :  { %2000 = vmatmul.mubr.bf16.gmra.mxu1 %v2785_v32  ;;  %1959 = vmatprep.mubr.bf16.mxu0 %v2787_v24 }
  0xf2   :  { %1960 = vmatmul.mubr.bf16.gmra.mxu0 %v2786_v33 }
 0x102   :  { %v1429_v41 = vpop.f32.mrf.mxu0 }
 0x103   :  { %v1552_v42 = vpop.f32.mrf.mxu1  ;;  %v1430_v43 = vadd.f32 %v1429_v41, %v3486_v39 }
 0x104   :  { %v1431_v44 = vpop.f32.mrf.mxu0 }
 0x105   :  { %v1554_v45 = vpop.f32.mrf.mxu1  ;;  %v3491_v46 = vadd.f32 %v1552_v42, %v1430_v43  ;;  %v1432_v47 = vadd.f32 %v1431_v44, %v3488_v40 }
 0x106   :  { %v1433_v48 = vpop.f32.mrf.mxu0 }
 0x107   :  { %v1556_v49 = vpop.f32.mrf.mxu1  ;;  %v3494_v50 = vadd.f32 %v1554_v45, %v1432_v47  ;;  %v1434_v51 = vadd.f32 %v1433_v48, %v3486_v39 }
 0x108   :  { %v1435_v52 = vpop.f32.mrf.mxu0 }
 0x109   :  { %v1558_v53 = vpop.f32.mrf.mxu1  ;;  %v3497_v54 = vadd.f32 %v1556_v49, %v1434_v51  ;;  %v1436_v55 = vadd.f32 %v1435_v52, %v3488_v40 }
 0x10a   :  { %v1439_v56 = vpop.f32.mrf.mxu0 }
 0x10b   :  { %v1562_v57 = vpop.f32.mrf.mxu1  ;;  %v3500_v58 = vadd.f32 %v1558_v53, %v1436_v55  ;;  %v1440_v59 = vadd.f32 %v1439_v56, %v3486_v39 }
 0x10c   :  { %v1441_v60 = vpop.f32.mrf.mxu0 }
 0x10d   :  { %v1564_v61 = vpop.f32.mrf.mxu1  ;;  %v3503_v62 = vadd.f32 %v1562_v57, %v1440_v59  ;;  %v1442_v63 = vadd.f32 %v1441_v60, %v3488_v40 }
 0x10e   :  { %v1443_v0 = vpop.f32.mrf.mxu0 }
 0x10f   :  { %v1566_v1 = vpop.f32.mrf.mxu1  ;;  %v3506_v2 = vadd.f32 %v1564_v61, %v1442_v63  ;;  %v1444_v3 = vadd.f32 %v1443_v0, %v3486_v39 }
 0x110   :  { %v1445_v4 = vpop.f32.mrf.mxu0 }
 0x111   :  { %v1568_v5 = vpop.f32.mrf.mxu1  ;;  %v3509_v6 = vadd.f32 %v1566_v1, %v1444_v3  ;;  %v1446_v7 = vadd.f32 %v1445_v4, %v3488_v40 }
 0x112   :  { %v1449_v8 = vpop.f32.mrf.mxu0 }
 0x113   :  { %v1572_v9 = vpop.f32.mrf.mxu1  ;;  %v3512_v10 = vadd.f32 %v1568_v5, %v1446_v7  ;;  %v1450_v11 = vadd.f32 %v1449_v8, %v3486_v39 }
 0x114   :  { %v1451_v12 = vpop.f32.mrf.mxu0 }
 0x115   :  { %v1574_v13 = vpop.f32.mrf.mxu1  ;;  %v3515_v14 = vadd.f32 %v1572_v9, %v1450_v11  ;;  %v1452_v15 = vadd.f32 %v1451_v12, %v3488_v40 }
 0x116   :  { %v1453_v16 = vpop.f32.mrf.mxu0 }
 0x117   :  { %v1576_v17 = vpop.f32.mrf.mxu1  ;;  %v3518_v18 = vadd.f32 %v1574_v13, %v1452_v15  ;;  %v1454_v19 = vadd.f32 %v1453_v16, %v3486_v39 }
 0x118   :  { %v1455_v20 = vpop.f32.mrf.mxu0 }
 0x119   :  { %v1578_v21 = vpop.f32.mrf.mxu1  ;;  %v3521_v22 = vadd.f32 %v1576_v17, %v1454_v19  ;;  %v1456_v23 = vadd.f32 %v1455_v20, %v3488_v40 }
 0x11a   :  { %v1459_v24 = vpop.f32.mrf.mxu0 }
 0x11b   :  { %v1582_v25 = vpop.f32.mrf.mxu1  ;;  %v3524_v26 = vadd.f32 %v1578_v21, %v1456_v23  ;;  %v1460_v27 = vadd.f32 %v1459_v24, %v3486_v39 }
 0x11c   :  { %v1461_v28 = vpop.f32.mrf.mxu0 }
 0x11d   :  { %v1584_v29 = vpop.f32.mrf.mxu1  ;;  %v3527_v30 = vadd.f32 %v1582_v25, %v1460_v27  ;;  %v1462_v31 = vadd.f32 %v1461_v28, %v3488_v40 }
 0x11e   :  { %v1463_v32 = vpop.f32.mrf.mxu0 }
 0x11f   :  { %v1586_v33 = vpop.f32.mrf.mxu1  ;;  %v3530_v34 = vadd.f32 %v1584_v29, %v1462_v31  ;;  %v1464_v35 = vadd.f32 %v1463_v32, %v3486_v39 }
 0x120   :  { %v1465_v36 = vpop.f32.mrf.mxu0 }
 0x121   :  { %v1588_v37 = vpop.f32.mrf.mxu1  ;;  %v3533_v38 = vadd.f32 %v1586_v33, %v1464_v35  ;;  %v1466_v41 = vadd.f32 %v1465_v36, %v3488_v40 }
 0x122   :  { %v1469_v42 = vpop.f32.mrf.mxu0 }
 0x123   :  { %v1592_v43 = vpop.f32.mrf.mxu1  ;;  %v3536_v44 = vadd.f32 %v1588_v37, %v1466_v41  ;;  %v1470_v45 = vadd.f32 %v1469_v42, %v3486_v39 }
 0x124   :  { %v1471_v47 = vpop.f32.mrf.mxu0 }
 0x125   :  { %v1594_v48 = vpop.f32.mrf.mxu1  ;;  %v3539_v49 = vadd.f32 %v1592_v43, %v1470_v45  ;;  %v1472_v51 = vadd.f32 %v1471_v47, %v3488_v40 }
 0x126   :  { %v1473_v52 = vpop.f32.mrf.mxu0 }
 0x127   :  { %v1596_v53 = vpop.f32.mrf.mxu1  ;;  %v3542_v55 = vadd.f32 %v1594_v48, %v1472_v51  ;;  %v1474_v56 = vadd.f32 %v1473_v52, %v3486_v39 }
 0x128   :  { %v1475_v57 = vpop.f32.mrf.mxu0 }
 0x129   :  { %v1598_v59 = vpop.f32.mrf.mxu1  ;;  %v3545_v60 = vadd.f32 %v1596_v53, %v1474_v56  ;;  %v1476_v61 = vadd.f32 %v1475_v57, %v3488_v40 }
 0x12a   :  { %v1479_v63 = vpop.f32.mrf.mxu0 }
 0x12b   :  { %v1602_v0 = vpop.f32.mrf.mxu1  ;;  %v3548_v1 = vadd.f32 %v1598_v59, %v1476_v61  ;;  %v1480_v3 = vadd.f32 %v1479_v63, %v3486_v39 }
 0x12c   :  { %v1481_v4 = vpop.f32.mrf.mxu0 }
 0x12d   :  { %v1604_v5 = vpop.f32.mrf.mxu1  ;;  %v3551_v7 = vadd.f32 %v1602_v0, %v1480_v3  ;;  %v1482_v8 = vadd.f32 %v1481_v4, %v3488_v40 }
 0x12e   :  { %v1483_v9 = vpop.f32.mrf.mxu0 }
 0x12f   :  { %v1606_v11 = vpop.f32.mrf.mxu1  ;;  %v3554_v12 = vadd.f32 %v1604_v5, %v1482_v8  ;;  %v1484_v13 = vadd.f32 %v1483_v9, %v3486_v39 }
 0x130   :  { %v1485_v15 = vpop.f32.mrf.mxu0 }
 0x131   :  { %v1608_v16 = vpop.f32.mrf.mxu1  ;;  %v3557_v17 = vadd.f32 %v1606_v11, %v1484_v13  ;;  %v1486_v19 = vadd.f32 %v1485_v15, %v3488_v40 }
 0x132   :  { %v1489_v20 = vpop.f32.mrf.mxu0 }
 0x133   :  { %v1612_v21 = vpop.f32.mrf.mxu1  ;;  %v3560_v23 = vadd.f32 %v1608_v16, %v1486_v19  ;;  %v1490_v24 = vadd.f32 %v1489_v20, %v3486_v39 }
 0x134   :  { %v1491_v25 = vpop.f32.mrf.mxu0 }
 0x135   :  { %v1614_v27 = vpop.f32.mrf.mxu1  ;;  %v3563_v28 = vadd.f32 %v1612_v21, %v1490_v24  ;;  %v1492_v29 = vadd.f32 %v1491_v25, %v3488_v40 }
 0x136   :  { %v1493_v31 = vpop.f32.mrf.mxu0 }
 0x137   :  { %v1616_v32 = vpop.f32.mrf.mxu1  ;;  %v3566_v33 = vadd.f32 %v1614_v27, %v1492_v29  ;;  %v1494_v35 = vadd.f32 %v1493_v31, %v3486_v39 }
 0x138   :  { %v1495_v36 = vpop.f32.mrf.mxu0 }
 0x139   :  { %v1618_v37 = vpop.f32.mrf.mxu1  ;;  %v3569_v41 = vadd.f32 %v1616_v32, %v1494_v35  ;;  %v1496_v42 = vadd.f32 %v1495_v36, %v3488_v40 }
 0x13a   :  { %v1499_v43 = vpop.f32.mrf.mxu0 }
 0x13b   :  { %v1622_v45 = vpop.f32.mrf.mxu1  ;;  %v3572_v47 = vadd.f32 %v1618_v37, %v1496_v42  ;;  %v1500_v48 = vadd.f32 %v1499_v43, %v3486_v39 }
 0x13c   :  { %v1501_v51 = vpop.f32.mrf.mxu0 }
 0x13d   :  { %v1624_v52 = vpop.f32.mrf.mxu1  ;;  %v3575_v53 = vadd.f32 %v1622_v45, %v1500_v48  ;;  %v1502_v56 = vadd.f32 %v1501_v51, %v3488_v40 }
 0x13e   :  { %v1503_v57 = vpop.f32.mrf.mxu0 }
 0x13f   :  { %v1626_v59 = vpop.f32.mrf.mxu1  ;;  %v3578_v61 = vadd.f32 %v1624_v52, %v1502_v56  ;;  %v1504_v63 = vadd.f32 %v1503_v57, %v3486_v39 }
 0x140   :  { %v1505_v0 = vpop.f32.mrf.mxu0 }
 0x141   :  { %v1628_v3 = vpop.f32.mrf.mxu1  ;;  %v3581_v4 = vadd.f32 %v1626_v59, %v1504_v63  ;;  %v1506_v5 = vadd.f32 %v1505_v0, %v3488_v40 }
 0x142   :  { %v1509_v8 = vpop.f32.mrf.mxu0 }
 0x143   :  { %v1632_v9 = vpop.f32.mrf.mxu1  ;;  %v3584_v11 = vadd.f32 %v1628_v3, %v1506_v5  ;;  %v1510_v13 = vadd.f32 %v1509_v8, %v3486_v39 }
 0x144   :  { %v1511_v15 = vpop.f32.mrf.mxu0 }
 0x145   :  { %v1634_v16 = vpop.f32.mrf.mxu1  ;;  %v3587_v19 = vadd.f32 %v1632_v9, %v1510_v13  ;;  %v1512_v20 = vadd.f32 %v1511_v15, %v3488_v40 }
 0x146   :  { %v1513_v21 = vpop.f32.mrf.mxu0 }
 0x147   :  { %v1636_v24 = vpop.f32.mrf.mxu1  ;;  %v3590_v25 = vadd.f32 %v1634_v16, %v1512_v20  ;;  %v1514_v27 = vadd.f32 %v1513_v21, %v3486_v39 }
 0x148   :  { %v1515_v29 = vpop.f32.mrf.mxu0 }
 0x149   :  { %v1638_v31 = vpop.f32.mrf.mxu1  ;;  %v3593_v32 = vadd.f32 %v1636_v24, %v1514_v27  ;;  %v1516_v35 = vadd.f32 %v1515_v29, %v3488_v40 }
 0x14a   :  { %v1675_v36 = vpop.f32.mrf.mxu0 }
 0x14b   :  { %3806 = vst [vmem:[#allocation2_spill] sm:$0xff] %v3593_v32  ;;  %v1798_v37 = vpop.f32.mrf.mxu1  ;;  %v3596_v42 = vadd.f32 %v1638_v31, %v1516_v35  ;;  %v1676_v43 = vadd.f32 %v1675_v36, %v3491_v46 }
 0x14c   :  { %v1677_v45 = vpop.f32.mrf.mxu0 }
 0x14d   :  { %3807 = vst [vmem:[#allocation3_spill] sm:$0xff] %v3596_v42  ;;  %v1800_v48 = vpop.f32.mrf.mxu1  ;;  %v3599_v51 = vadd.f32 %v1798_v37, %v1676_v43  ;;  %v1678_v52 = vadd.f32 %v1677_v45, %v3494_v50 }
 0x14e   :  { %v1679_v56 = vpop.f32.mrf.mxu0 }
 0x14f   :  { %v1802_v39 = vpop.f32.mrf.mxu1  ;;  %v3602_v57 = vadd.f32 %v1800_v48, %v1678_v52  ;;  %v1680_v59 = vadd.f32 %v1679_v56, %v3497_v54 }
 0x150   :  { %v1681_v63 = vpop.f32.mrf.mxu0 }
 0x151   :  { %v1804_v40 = vpop.f32.mrf.mxu1  ;;  %v3605_v0 = vadd.f32 %v1802_v39, %v1680_v59  ;;  %v1682_v3 = vadd.f32 %v1681_v63, %v3500_v58 }
 0x152   :  { %v1685_v5 = vpop.f32.mrf.mxu0 }
 0x153   :  { %v1808_v46 = vpop.f32.mrf.mxu1  ;;  %v3608_v8 = vadd.f32 %v1804_v40, %v1682_v3  ;;  %v1686_v9 = vadd.f32 %v1685_v5, %v3503_v62 }
 0x154   :  { %v1687_v13 = vpop.f32.mrf.mxu0 }
 0x155   :  { %v1810_v50 = vpop.f32.mrf.mxu1  ;;  %v3611_v15 = vadd.f32 %v1808_v46, %v1686_v9  ;;  %v1688_v16 = vadd.f32 %v1687_v13, %v3506_v2 }
 0x156   :  { %v1689_v20 = vpop.f32.mrf.mxu0 }
 0x157   :  { %v1812_v54 = vpop.f32.mrf.mxu1  ;;  %v3614_v21 = vadd.f32 %v1810_v50, %v1688_v16  ;;  %v1690_v24 = vadd.f32 %v1689_v20, %v3509_v6 }
 0x158   :  { %v1691_v27 = vpop.f32.mrf.mxu0 }
 0x159   :  { %v1814_v58 = vpop.f32.mrf.mxu1  ;;  %v3617_v29 = vadd.f32 %v1812_v54, %v1690_v24  ;;  %v1692_v31 = vadd.f32 %v1691_v27, %v3512_v10 }
 0x15a   :  { %v1695_v35 = vpop.f32.mrf.mxu0 }
 0x15b   :  { %v1818_v62 = vpop.f32.mrf.mxu1  ;;  %v3620_v36 = vadd.f32 %v1814_v58, %v1692_v31  ;;  %v1696_v37 = vadd.f32 %v1695_v35, %v3515_v14 }
 0x15c   :  { %v1697_v43 = vpop.f32.mrf.mxu0 }
 0x15d   :  { %v1820_v2 = vpop.f32.mrf.mxu1  ;;  %v3623_v45 = vadd.f32 %v1818_v62, %v1696_v37  ;;  %v1698_v48 = vadd.f32 %v1697_v43, %v3518_v18 }
 0x15e   :  { %v1699_v52 = vpop.f32.mrf.mxu0 }
 0x15f   :  { %v1822_v6 = vpop.f32.mrf.mxu1  ;;  %v3626_v56 = vadd.f32 %v1820_v2, %v1698_v48  ;;  %v1700_v39 = vadd.f32 %v1699_v52, %v3521_v22 }
 0x160   :  { %v1701_v59 = vpop.f32.mrf.mxu0 }
 0x161   :  { %v1824_v10 = vpop.f32.mrf.mxu1  ;;  %v3629_v63 = vadd.f32 %v1822_v6, %v1700_v39  ;;  %v1702_v40 = vadd.f32 %v1701_v59, %v3524_v26 }
 0x162   :  { %v1705_v3 = vpop.f32.mrf.mxu0 }
 0x163   :  { %v1828_v14 = vpop.f32.mrf.mxu1  ;;  %v3632_v5 = vadd.f32 %v1824_v10, %v1702_v40  ;;  %v1706_v46 = vadd.f32 %v1705_v3, %v3527_v30 }
 0x164   :  { %v1707_v9 = vpop.f32.mrf.mxu0 }
 0x165   :  { %3808 = vst [vmem:[#allocation4_spill] sm:$0xff] %v3632_v5  ;;  %v1830_v18 = vpop.f32.mrf.mxu1  ;;  %v3635_v13 = vadd.f32 %v1828_v14, %v1706_v46  ;;  %v1708_v50 = vadd.f32 %v1707_v9, %v3530_v34 }
 0x166   :  { %v1709_v16 = vpop.f32.mrf.mxu0 }
 0x167   :  { %3809 = vst [vmem:[#allocation5_spill] sm:$0xff] %v3635_v13  ;;  %v1832_v22 = vpop.f32.mrf.mxu1  ;;  %v3638_v20 = vadd.f32 %v1830_v18, %v1708_v50  ;;  %v1710_v54 = vadd.f32 %v1709_v16, %v3533_v38 }
 0x168   :  { %v1711_v24 = vpop.f32.mrf.mxu0 }
 0x169   :  { %3810 = vst [vmem:[#allocation6_spill] sm:$0xff] %v3638_v20  ;;  %v1834_v26 = vpop.f32.mrf.mxu1  ;;  %v3641_v27 = vadd.f32 %v1832_v22, %v1710_v54  ;;  %v1712_v58 = vadd.f32 %v1711_v24, %v3536_v44 }
 0x16a   :  { %v1715_v31 = vpop.f32.mrf.mxu0 }
 0x16b   :  { %3811 = vst [vmem:[#allocation7_spill] sm:$0xff] %v3641_v27  ;;  %v1838_v30 = vpop.f32.mrf.mxu1  ;;  %v3644_v35 = vadd.f32 %v1834_v26, %v1712_v58  ;;  %v1716_v62 = vadd.f32 %v1715_v31, %v3539_v49 }
 0x16c   :  { %v1717_v37 = vpop.f32.mrf.mxu0 }
 0x16d   :  { %3812 = vst [vmem:[#allocation8_spill] sm:$0xff] %v3644_v35  ;;  %v1840_v34 = vpop.f32.mrf.mxu1  ;;  %v3647_v43 = vadd.f32 %v1838_v30, %v1716_v62  ;;  %v1718_v2 = vadd.f32 %v1717_v37, %v3542_v55 }
 0x16e   :  { %v1719_v48 = vpop.f32.mrf.mxu0 }
 0x16f   :  { %3813 = vst [vmem:[#allocation9_spill] sm:$0xff] %v3647_v43  ;;  %v1842_v38 = vpop.f32.mrf.mxu1  ;;  %v3650_v52 = vadd.f32 %v1840_v34, %v1718_v2  ;;  %v1720_v6 = vadd.f32 %v1719_v48, %v3545_v60 }
 0x170   :  { %v1721_v39 = vpop.f32.mrf.mxu0 }
 0x171   :  { %3814 = vst [vmem:[#allocation10_spill] sm:$0xff] %v3650_v52  ;;  %v1844_v44 = vpop.f32.mrf.mxu1  ;;  %v3653_v59 = vadd.f32 %v1842_v38, %v1720_v6  ;;  %v1722_v10 = vadd.f32 %v1721_v39, %v3548_v1 }
 0x172   :  { %v1725_v40 = vpop.f32.mrf.mxu0 }
 0x173   :  { %3815 = vst [vmem:[#allocation11_spill] sm:$0xff] %v3653_v59  ;;  %v1848_v49 = vpop.f32.mrf.mxu1  ;;  %v3656_v3 = vadd.f32 %v1844_v44, %v1722_v10 }
 0x174   :  { %v1727_v14 = vpop.f32.mrf.mxu0 }
 0x175   :  { %3816 = vst [vmem:[#allocation12_spill] sm:$0xff] %v3656_v3  ;;  %v1850_v46 = vpop.f32.mrf.mxu1  ;;  %v1726_v3 = vadd.f32 %v1725_v40, %v3551_v7  ;;  %v1728_v43 = vadd.f32 %v1727_v14, %v3554_v12 }
 0x176   :  { %v1729_v9 = vpop.f32.mrf.mxu0 }
 0x177   :  { %v1852_v55 = vpop.f32.mrf.mxu1  ;;  %v1849_v20 = vadd.f32 %v1848_v49, %v1726_v3  ;;  %v1730_v13 = vadd.f32 %v1729_v9, %v3557_v17  ;;  %v1851_v32 = vadd.f32 %v1850_v46, %v1728_v43 }
 0x178   :  { %v1731_v18 = vpop.f32.mrf.mxu0 }
 0x179   :  { %v1854_v50 = vpop.f32.mrf.mxu1  ;;  %v1732_v7 = vadd.f32 %v1731_v18, %v3560_v23 }
 0x17a   :  { %v1735_v16 = vpop.f32.mrf.mxu0 }
 0x17b   :  { %v1858_v22 = vpop.f32.mrf.mxu1 }
 0x17c   :  { %v1737_v54 = vpop.f32.mrf.mxu0 }
 0x17d   :  { %v1860_v60 = vpop.f32.mrf.mxu1  ;;  %v1738_v49 = vadd.f32 %v1737_v54, %v3566_v33 }
 0x17e   :  { %v1739_v24 = vpop.f32.mrf.mxu0 }
 0x17f   :  { %v3658_v26 = vpop.f32.mrf.mxu1 }
 0x180   :  { %v1741_v58 = vpop.f32.mrf.mxu0 }
 0x181   :  { %v3660_v31 = vpop.f32.mrf.mxu1  ;;  %v1742_v54 = vadd.f32 %v1741_v58, %v3572_v47 }
 0x182   :  { %v3662_v1 = vpop.f32.mrf.mxu0 }
 0x183   :  { %v3664_v30 = vpop.f32.mrf.mxu1  ;;  %v1746_v47 = vadd.f32 %v3662_v1, %v3575_v53 }
 0x184   :  { %v3666_v62 = vpop.f32.mrf.mxu0 }
 0x185   :  { %v3668_v37 = vpop.f32.mrf.mxu1  ;;  %v1869_v1 = vadd.f32 %v3664_v30, %v1746_v47 }
 0x186   :  { %v3670_v34 = vpop.f32.mrf.mxu0 }
 0x187   :  { %v3672_v2 = vpop.f32.mrf.mxu1 }
 0x188   :  { %v3674_v48 = vpop.f32.mrf.mxu0 }
 0x189   :  { %v3676_v38 = vpop.f32.mrf.mxu1 }
 0x18a   :  { %v3678_v6 = vpop.f32.mrf.mxu0 }
 0x18b   :  { %v3680_v39 = vpop.f32.mrf.mxu1 }
 0x18c   :  { %3817 = vst [vmem:[#allocation13_spill] sm:$0xff] %v3680_v39  ;;  %v3682_v44 = vpop.f32.mrf.mxu0 }
 0x18d   :  { %v3684_v10 = vpop.f32.mrf.mxu1 }
 0x18e   :  { %3818 = vst [vmem:[#allocation14_spill] sm:$0xff] %v3684_v10  ;;  %v3687_v59 = vpop.f32.mrf.mxu0 }
 0x18f   :  { %3819 = vst [vmem:[#allocation15_spill] sm:$0xff] %v3687_v59  ;;  %v3689_v52 = vpop.f32.mrf.mxu1 }
 0x190   :  { %3820 = vst [vmem:[#allocation16_spill] sm:$0xff] %v3689_v52  ;;  %v3692_v35 = vpop.f32.mrf.mxu0  ;;  %v1736_v52 = vadd.f32 %v1735_v16, %v3563_v28 }
 0x191   :  { %3821 = vst [vmem:[#allocation17_spill] sm:$0xff] %v3692_v35  ;;  %v3694_v27 = vpop.f32.mrf.mxu1  ;;  %v1853_v35 = vadd.f32 %v1852_v55, %v1730_v13  ;;  %v1861_v55 = vadd.f32 %v1860_v60, %v1738_v49 }
 0x192   :  { %3822 = vst [vmem:[#allocation18_spill] sm:$0xff] %v3694_v27  ;;  %v1921_v42 = vpop.f32.mrf.mxu0  ;;  %v1859_v18 = vadd.f32 %v1858_v22, %v1736_v52 }
 0x193   :  { %v1971_v5 = vpop.f32.mrf.mxu1  ;;  %v1922_v10 = vadd.f32 %v1921_v42, %v3599_v51  ;;  %v1855_v42 = vadd.f32 %v1854_v50, %v1732_v7 }
 0x194   :  { %v1972_v39 = vadd.f32 %v1971_v5, %v1849_v20  ;;  %v1923_v40 = vpop.f32.mrf.mxu0 }
 0x195   :  { %v1973_v59 = vpop.f32.mrf.mxu1  ;;  %v1924_v12 = vadd.f32 %v1923_v40, %v3602_v57  ;;  %v2010_v9 = vmax.f32 %v1922_v10, 0.0 }
 0x196   :  { %v1974_v14 = vadd.f32 %v1973_v59, %v1851_v32  ;;  %v1925_v3 = vpop.f32.mrf.mxu0  ;;  %v2030_v27 = vmax.f32 %v1972_v39, 0.0  ;;  %v1740_v32 = vadd.f32 %v1739_v24, %v3569_v41  ;;  %v1748_v39 = vadd.f32 %v3666_v62, %v3578_v61 }
 0x197   :  { %v1975_v17 = vpop.f32.mrf.mxu1  ;;  %v2011_v43 = vmax.f32 %v1924_v12, 0.0  ;;  %v1926_v51 = vadd.f32 %v1925_v3, %v3605_v0 }
 0x198   :  { %v2031_v46 = vmax.f32 %v1974_v14, 0.0  ;;  %v1976_v23 = vadd.f32 %v1975_v17, %v1853_v35  ;;  %v1927_v5 = vpop.f32.mrf.mxu0  ;;  %v1863_v58 = vadd.f32 %v3658_v26, %v1740_v32  ;;  %v1865_v17 = vadd.f32 %v3660_v31, %v1742_v54 }
 0x199   :  { %v1977_v20 = vpop.f32.mrf.mxu1  ;;  %v2419_v28 = vpack.c.bf16 %v2011_v43, %v2010_v9  ;;  %v1928_v57 = vadd.f32 %v1927_v5, %v3608_v8  ;;  %v2012_v41 = vmax.f32 %v1926_v51, 0.0  ;;  %v1750_v31 = vadd.f32 %v3670_v34, %v3581_v4 }
 0x19a   :  { %v2429_v16 = vpack.c.bf16 %v2031_v46, %v2030_v27  ;;  %v1978_v33 = vadd.f32 %v1977_v20, %v1855_v42  ;;  %v1931_v13 = vpop.f32.mrf.mxu0  ;;  %v2032_v35 = vmax.f32 %v1976_v23, 0.0  ;;  %v1871_v23 = vadd.f32 %v3668_v37, %v1748_v39 }
 0x19b   :  { %v1981_v59 = vpop.f32.mrf.mxu1  ;;  %2154 = vst [vmem:[%s3805_s3] sm:$0xff] %v2419_v28  ;;  %v1932_v0 = vadd.f32 %v1931_v13, %v3611_v15  ;;  %v2013_v8 = vmax.f32 %v1928_v57, 0.0  ;;  %v1758_v32 = vadd.f32 %v3682_v44, %v3590_v25 }
 0x19c   :  { %2164 = vst [vmem:[%s3805_s3 + $0x50] sm:$0xff] %v2429_v16  ;;  %v1982_v27 = vadd.f32 %v1981_v59, %v1859_v18  ;;  %v2033_v52 = vmax.f32 %v1978_v33, 0.0  ;;  %v1933_v50 = vpop.f32.mrf.mxu0  ;;  %v1873_v16 = vadd.f32 %v3672_v2, %v1750_v31 }
 0x19d   :  { %v1983_v22 = vpop.f32.mrf.mxu1  ;;  %v1934_v60 = vadd.f32 %v1933_v50, %v3614_v21  ;;  %v2420_v10 = vpack.c.bf16 %v2013_v8, %v2012_v41  ;;  %v2014_v12 = vmax.f32 %v1932_v0, 0.0  ;;  %v3824_v8 = vld [vmem:[#allocation2_spill] sm:$0xff]  ;;  %v3826_v50 = vld [vmem:[#allocation4_spill] sm:$0xff] }
 0x19e   :  { %v1984_v24 = vadd.f32 %v1983_v22, %v1861_v55  ;;  %v2430_v15 = vpack.c.bf16 %v2033_v52, %v2032_v35  ;;  %v1935_v7 = vpop.f32.mrf.mxu0  ;;  %v2034_v14 = vmax.f32 %v1982_v27, 0.0  ;;  %v3825_v52 = vld [vmem:[#allocation15_spill] sm:$0xff] }
 0x19f   :  { %v1985_v40 = vpop.f32.mrf.mxu1  ;;  %v2015_v49 = vmax.f32 %v1934_v60, 0.0  ;;  %2155 = vst [vmem:[%s3805_s3 + $0x8] sm:$0xff] %v2420_v10  ;;  %v1936_v53 = vadd.f32 %v1935_v7, %v3617_v29  ;;  %v1752_v29 = vadd.f32 %v3674_v48, %v3584_v11  ;;  %v1756_v11 = vadd.f32 %v3678_v6, %v3587_v19  ;;  %v3823_v6 = vld [vmem:[#allocation13_spill] sm:$0xff]  ;;  %v3828_v10 = vld [vmem:[#allocation3_spill] sm:$0xff] }
 0x1a0   :  { %v2035_v3 = vmax.f32 %v1984_v24, 0.0  ;;  %2165 = vst [vmem:[%s3805_s3 + $0x58] sm:$0xff] %v2430_v15  ;;  %v1986_v61 = vadd.f32 %v1985_v40, %v1863_v58  ;;  %v1937_v21 = vpop.f32.mrf.mxu0  ;;  %v3827_v58 = vld [vmem:[#allocation14_spill] sm:$0xff]  ;;  %v3829_v15 = vld [vmem:[#allocation17_spill] sm:$0xff] }
 0x1a1   :  { %v1987_v26 = vpop.f32.mrf.mxu1  ;;  %v2421_v62 = vpack.c.bf16 %v2015_v49, %v2014_v12  ;;  %v1938_v43 = vadd.f32 %v1937_v21, %v3620_v36  ;;  %v2016_v36 = vmax.f32 %v1936_v53, 0.0  ;;  %v1875_v27 = vadd.f32 %v3676_v38, %v1752_v29  ;;  %v3830_v7 = vld [vmem:[#allocation5_spill] sm:$0xff]  ;;  %v3831_v21 = vld [vmem:[#allocation6_spill] sm:$0xff] }
 0x1a2   :  { %v2431_v9 = vpack.c.bf16 %v2035_v3, %v2034_v14  ;;  %v1988_v46 = vadd.f32 %v1987_v26, %v1865_v17  ;;  %v1941_v42 = vpop.f32.mrf.mxu0  ;;  %v2036_v34 = vmax.f32 %v1986_v61, 0.0  ;;  %v1879_v44 = vadd.f32 %v3823_v6, %v1756_v11 }
 0x1a3   :  { %v1991_v51 = vpop.f32.mrf.mxu1  ;;  %2156 = vst [vmem:[%s3805_s3 + $0x10] sm:$0xff] %v2421_v62  ;;  %v1942_v4 = vadd.f32 %v1941_v42, %v3623_v45  ;;  %v2017_v5 = vmax.f32 %v1938_v43, 0.0  ;;  %v1760_v38 = vadd.f32 %v3825_v52, %v3824_v8  ;;  %v1881_v39 = vadd.f32 %v3827_v58, %v1758_v32  ;;  %v3832_v62 = vld [vmem:[#allocation16_spill] sm:$0xff] }
 0x1a4   :  { %2166 = vst [vmem:[%s3805_s3 + $0x60] sm:$0xff] %v2431_v9  ;;  %v1992_v30 = vadd.f32 %v1991_v51, %v1869_v1  ;;  %v2037_v20 = vmax.f32 %v1988_v46, 0.0  ;;  %v1943_v18 = vpop.f32.mrf.mxu0 }
 0x1a5   :  { %v1993_v37 = vpop.f32.mrf.mxu1  ;;  %v1944_v48 = vadd.f32 %v1943_v18, %v3626_v56  ;;  %v2422_v57 = vpack.c.bf16 %v2017_v5, %v2016_v36  ;;  %v2018_v59 = vmax.f32 %v1942_v4, 0.0  ;;  %v1883_v9 = vadd.f32 %v3832_v62, %v1760_v38  ;;  %v3839_v38 = vld [vmem:[#allocation12_spill] sm:$0xff] }
 0x1a6   :  { %v1994_v28 = vadd.f32 %v1993_v37, %v1871_v23  ;;  %v2432_v45 = vpack.c.bf16 %v2037_v20, %v2036_v34  ;;  %v1945_v33 = vpop.f32.mrf.mxu0  ;;  %v2038_v55 = vmax.f32 %v1992_v30, 0.0  ;;  %v3833_v30 = vld [vmem:[#allocation18_spill] sm:$0xff]  ;;  %v3834_v34 = vld [vmem:[#allocation7_spill] sm:$0xff] }
 0x1a7   :  { %v1995_v13 = vpop.f32.mrf.mxu1  ;;  %v2019_v54 = vmax.f32 %v1944_v48, 0.0  ;;  %2157 = vst [vmem:[%s3805_s3 + $0x18] sm:$0xff] %v2422_v57  ;;  %v1946_v19 = vadd.f32 %v1945_v33, %v3629_v63  ;;  %v1762_v63 = vadd.f32 %v3829_v15, %v3828_v10 }
 0x1a8   :  { %v2039_v0 = vmax.f32 %v1994_v28, 0.0  ;;  %2167 = vst [vmem:[%s3805_s3 + $0x68] sm:$0xff] %v2432_v45  ;;  %v1996_v25 = vadd.f32 %v1995_v13, %v1873_v16  ;;  %v1947_v56 = vpop.f32.mrf.mxu0  ;;  %v3835_v28 = vld [vmem:[#allocation8_spill] sm:$0xff]  ;;  %v3836_v45 = vld [vmem:[#allocation9_spill] sm:$0xff] }
 0x1a9   :  { %v1997_v2 = vpop.f32.mrf.mxu1  ;;  %v2423_v41 = vpack.c.bf16 %v2019_v54, %v2018_v59  ;;  %v1948_v22 = vadd.f32 %v1947_v56, %v3826_v50  ;;  %v2020_v14 = vmax.f32 %v1946_v19, 0.0  ;;  %v1885_v36 = vadd.f32 %v3833_v30, %v1762_v63 }
 0x1aa   :  { %v2433_v35 = vpack.c.bf16 %v2039_v0, %v2038_v55  ;;  %v1998_v47 = vadd.f32 %v1997_v2, %v1875_v27  ;;  %v1951_v60 = vpop.f32.mrf.mxu0  ;;  %v2040_v49 = vmax.f32 %v1996_v25, 0.0  ;;  %v3837_v27 = vld [vmem:[#allocation10_spill] sm:$0xff] }
 0x1ab   :  { %v2001_v24 = vpop.f32.mrf.mxu1  ;;  %2158 = vst [vmem:[%s3805_s3 + $0x20] sm:$0xff] %v2423_v41  ;;  %v1952_v40 = vadd.f32 %v1951_v60, %v3830_v7  ;;  %v2021_v3 = vmax.f32 %v1948_v22, 0.0  ;;  %v3838_v41 = vld [vmem:[#allocation11_spill] sm:$0xff] }
 0x1ac   :  { %2168 = vst [vmem:[%s3805_s3 + $0x70] sm:$0xff] %v2433_v35  ;;  %v2002_v12 = vadd.f32 %v2001_v24, %v1879_v44  ;;  %v2041_v17 = vmax.f32 %v1998_v47, 0.0  ;;  %v1953_v53 = vpop.f32.mrf.mxu0 }
 0x1ad   :  { %v2003_v61 = vpop.f32.mrf.mxu1  ;;  %v1954_v26 = vadd.f32 %v1953_v53, %v3831_v21  ;;  %v2424_v31 = vpack.c.bf16 %v2021_v3, %v2020_v14  ;;  %v2022_v51 = vmax.f32 %v1952_v40, 0.0 }
 0x1ae   :  { %v2004_v1 = vadd.f32 %v2003_v61, %v1881_v39  ;;  %v2434_v43 = vpack.c.bf16 %v2041_v17, %v2040_v49  ;;  %v1955_v46 = vpop.f32.mrf.mxu0  ;;  %v2042_v23 = vmax.f32 %v2002_v12, 0.0 }
 0x1af   :  { %v2005_v42 = vpop.f32.mrf.mxu1  ;;  %v2023_v29 = vmax.f32 %v1954_v26, 0.0  ;;  %2159 = vst [vmem:[%s3805_s3 + $0x28] sm:$0xff] %v2424_v31  ;;  %v1956_v5 = vadd.f32 %v1955_v46, %v3834_v34 }
 0x1b0   :  { %v2043_v4 = vmax.f32 %v2004_v1, 0.0  ;;  %2169 = vst [vmem:[%s3805_s3 + $0x78] sm:$0xff] %v2434_v43  ;;  %v2006_v20 = vadd.f32 %v2005_v42, %v1883_v9  ;;  %v1957_v18 = vpop.f32.mrf.mxu0 }
 0x1b1   :  { %v2007_v37 = vpop.f32.mrf.mxu1  ;;  %v2425_v11 = vpack.c.bf16 %v2023_v29, %v2022_v51  ;;  %v1958_v16 = vadd.f32 %v1957_v18, %v3835_v28  ;;  %v2024_v13 = vmax.f32 %v1956_v5, 0.0 }
 0x1b2   :  { %v2435_v48 = vpack.c.bf16 %v2043_v4, %v2042_v23  ;;  %v2008_v32 = vadd.f32 %v2007_v37, %v1885_v36  ;;  %v1961_v57 = vpop.f32.mrf.mxu0  ;;  %v2044_v59 = vmax.f32 %v2006_v20, 0.0 }
 0x1b3   :  { %2160 = vst [vmem:[%s3805_s3 + $0x30] sm:$0xff] %v2425_v11  ;;  %v1962_v33 = vadd.f32 %v1961_v57, %v3836_v45  ;;  %v2025_v55 = vmax.f32 %v1958_v16, 0.0 }
 0x1b4   :  { %2170 = vst [vmem:[%s3805_s3 + $0x80] sm:$0xff] %v2435_v48  ;;  %v2045_v54 = vmax.f32 %v2008_v32, 0.0  ;;  %v1963_v0 = vpop.f32.mrf.mxu0 }
 0x1b5   :  { %v1964_v19 = vadd.f32 %v1963_v0, %v3837_v27  ;;  %v2426_v25 = vpack.c.bf16 %v2025_v55, %v2024_v13  ;;  %v2026_v6 = vmax.f32 %v1962_v33, 0.0 }
 0x1b6   :  { %v2436_v56 = vpack.c.bf16 %v2045_v54, %v2044_v59  ;;  %v1965_v2 = vpop.f32.mrf.mxu0 }
 0x1b7   :  { %v2027_v44 = vmax.f32 %v1964_v19, 0.0  ;;  %v1966_v35 = vadd.f32 %v1965_v2, %v3838_v41  ;;  %2161 = vst [vmem:[%s3805_s3 + $0x38] sm:$0xff] %v2426_v25 }
 0x1b8   :  { %2171 = vst [vmem:[%s3805_s3 + $0x88] sm:$0x33] %v2436_v56  ;;  %v1967_v8 = vpop.f32.mrf.mxu0 }
 0x1b9   :  { %v2427_v52 = vpack.c.bf16 %v2027_v44, %v2026_v6  ;;  %v1968_v50 = vadd.f32 %v1967_v8, %v3839_v38  ;;  %v2028_v22 = vmax.f32 %v1966_v35, 0.0 }
 0x1bb   :  { %2162 = vst [vmem:[%s3805_s3 + $0x40] sm:$0xff] %v2427_v52  ;;  %v2029_v47 = vmax.f32 %v1968_v50, 0.0 }
 0x1bd   :  { %v2428_v60 = vpack.c.bf16 %v2029_v47, %v2028_v22 }
 0x1bf   :  { %2163 = vst [vmem:[%s3805_s3 + $0x48] sm:$0xff] %v2428_v60 }

// kernel: tone_cnn_forward.8
= control target key start
LH: loop header
LB: loop body
LE: loop exit
PB: predicated region body
PF: predicated region fallthrough
CT: control target
= control target key end

     0   :  { %s5212_s1 = inlined_call_operand.vmem [shape: bf16[2304,256], index: 1, kind: input, shape index: {}]   ;;  %s5213_s0 = inlined_call_operand.vmem [shape: bf16[60,2304], index: 0, kind: input, shape index: {}]   ;;  %s5214_s2 = inlined_call_operand.vmem [shape: f32[1,256], index: 2, kind: input, shape index: {}]   ;;  %s5215_s3 = inlined_call_operand.vmem [shape: bf16[60,256], index: 3, kind: output, shape index: {}]  }
   0x1   :  { %v3327_v0 = vld [vmem:[%s5212_s1 + $0x74] ss:$8 sps:$4 sm:$0xff]   ;;  %v3331_v2 = vld [vmem:[%s5212_s1 + $0x70] ss:$8 sps:$4 sm:$0xff]   ;;  %v3333_v4 = vld [vmem:[%s5212_s1 + $0x64] ss:$8 sps:$4 sm:$0xff]  }
   0x2   :  { %v3329_v1 = vld [vmem:[%s5212_s1 + $0x174] ss:$8 sps:$4 sm:$0xff]   ;;  %2186 = vmatprep.subr.bf16.mxu0 %v3327_v0  ;;  %v3332_v3 = vld [vmem:[%s5212_s1 + $0x170] ss:$8 sps:$4 sm:$0xff]   ;;  %v3335_v5 = vld [vmem:[%s5212_s1 + $0x164] ss:$8 sps:$4 sm:$0xff]  }
   0x3   :  { %2259 = vmatprep.subr.bf16.mxu1 %v3329_v1  ;;  %2187 = vmatpush1.bf16.msra.mxu0 %v3331_v2  ;;  %v3337_v6 = vld [vmem:[%s5212_s1 + $0x60] ss:$8 sps:$4 sm:$0xff]   ;;  %v3339_v8 = vld [vmem:[%s5212_s1 + $0x54] ss:$8 sps:$4 sm:$0xff]   ;;  %v3343_v10 = vld [vmem:[%s5212_s1 + $0x50] ss:$8 sps:$4 sm:$0xff]  }
   0x4   :  { %2260 = vmatpush1.bf16.msra.mxu1 %v3332_v3  ;;  %2188 = vmatprep.subr.bf16.mxu0 %v3333_v4  ;;  %v3338_v7 = vld [vmem:[%s5212_s1 + $0x160] ss:$8 sps:$4 sm:$0xff]   ;;  %v3341_v9 = vld [vmem:[%s5212_s1 + $0x154] ss:$8 sps:$4 sm:$0xff]   ;;  %v3344_v11 = vld [vmem:[%s5212_s1 + $0x150] ss:$8 sps:$4 sm:$0xff]  }
   0x5   :  { %2261 = vmatprep.subr.bf16.mxu1 %v3335_v5  ;;  %v3345_v12 = vld [vmem:[%s5212_s1 + $0x44] ss:$8 sps:$4 sm:$0xff]   ;;  %v3349_v14 = vld [vmem:[%s5212_s1 + $0x40] ss:$8 sps:$4 sm:$0xff]   ;;  %v3351_v16 = vld [vmem:[%s5212_s1 + $0x34] ss:$8 sps:$4 sm:$0xff]  }
   0x6   :  { %v3347_v13 = vld [vmem:[%s5212_s1 + $0x144] ss:$8 sps:$4 sm:$0xff]   ;;  %v3350_v15 = vld [vmem:[%s5212_s1 + $0x140] ss:$8 sps:$4 sm:$0xff]   ;;  %v3353_v17 = vld [vmem:[%s5212_s1 + $0x134] ss:$8 sps:$4 sm:$0xff]  }
   0x7   :  { %2189 = vmatpush1.bf16.msra.mxu0 %v3337_v6  ;;  %v3355_v18 = vld [vmem:[%s5212_s1 + $0x30] ss:$8 sps:$4 sm:$0xff]   ;;  %v3357_v20 = vld [vmem:[%s5212_s1 + $0x24] ss:$8 sps:$4 sm:$0xff]   ;;  %v3361_v22 = vld [vmem:[%s5212_s1 + $0x20] ss:$8 sps:$4 sm:$0xff]  }
   0x8   :  { %2262 = vmatpush1.bf16.msra.mxu1 %v3338_v7  ;;  %2190 = vmatprep.subr.bf16.mxu0 %v3339_v8  ;;  %v3356_v19 = vld [vmem:[%s5212_s1 + $0x130] ss:$8 sps:$4 sm:$0xff]   ;;  %v3359_v21 = vld [vmem:[%s5212_s1 + $0x124] ss:$8 sps:$4 sm:$0xff]   ;;  %v3362_v23 = vld [vmem:[%s5212_s1 + $0x120] ss:$8 sps:$4 sm:$0xff]  }
   0x9   :  { %2263 = vmatprep.subr.bf16.mxu1 %v3341_v9  ;;  %v3363_v24 = vld [vmem:[%s5212_s1 + $0x14] ss:$8 sps:$4 sm:$0xff]   ;;  %v3367_v26 = vld [vmem:[%s5212_s1 + $0x10] ss:$8 sps:$4 sm:$0xff]   ;;  %v3369_v28 = vld [vmem:[%s5212_s1 + $0x4] ss:$8 sps:$4 sm:$0xff]  }
   0xa   :  { %v3365_v25 = vld [vmem:[%s5212_s1 + $0x114] ss:$8 sps:$4 sm:$0xff]   ;;  %v3368_v27 = vld [vmem:[%s5212_s1 + $0x110] ss:$8 sps:$4 sm:$0xff]   ;;  %v3371_v29 = vld [vmem:[%s5212_s1 + $0x104] ss:$8 sps:$4 sm:$0xff]  }
   0xb   :  { %2191 = vmatpush1.bf16.msra.mxu0 %v3343_v10  ;;  %v3373_v30 = vld [vmem:[%s5212_s1] ss:$8 sps:$4 sm:$0xff]   ;;  %v3375_v32 = vld [vmem:[%s5212_s1 + $0xf4] ss:$8 sps:$4 sm:$0xff]   ;;  %v3379_v34 = vld [vmem:[%s5212_s1 + $0xf0] ss:$8 sps:$4 sm:$0xff]  }
   0xc   :  { %2264 = vmatpush1.bf16.msra.mxu1 %v3344_v11  ;;  %2192 = vmatprep.subr.bf16.mxu0 %v3345_v12  ;;  %v3374_v31 = vld [vmem:[%s5212_s1 + $0x100] ss:$8 sps:$4 sm:$0xff]   ;;  %v3377_v33 = vld [vmem:[%s5212_s1 + $0x1f4] ss:$8 sps:$4 sm:$0xff]   ;;  %v3380_v35 = vld [vmem:[%s5212_s1 + $0x1f0] ss:$8 sps:$4 sm:$0xff]  }
   0xd   :  { %2265 = vmatprep.subr.bf16.mxu1 %v3347_v13  ;;  %v3381_v36 = vld [vmem:[%s5212_s1 + $0xe4] ss:$8 sps:$4 sm:$0xff]   ;;  %v3385_v38 = vld [vmem:[%s5212_s1 + $0xe0] ss:$8 sps:$4 sm:$0xff]   ;;  %v3387_v40 = vld [vmem:[%s5212_s1 + $0xd4] ss:$8 sps:$4 sm:$0xff]  }
   0xe   :  { %v3383_v37 = vld [vmem:[%s5212_s1 + $0x1e4] ss:$8 sps:$4 sm:$0xff]   ;;  %v3386_v39 = vld [vmem:[%s5212_s1 + $0x1e0] ss:$8 sps:$4 sm:$0xff]   ;;  %v3389_v41 = vld [vmem:[%s5212_s1 + $0x1d4] ss:$8 sps:$4 sm:$0xff]  }
   0xf   :  { %2193 = vmatpush1.bf16.msra.mxu0 %v3349_v14  ;;  %v3391_v42 = vld [vmem:[%s5212_s1 + $0xd0] ss:$8 sps:$4 sm:$0xff]   ;;  %v3393_v44 = vld [vmem:[%s5212_s1 + $0xc4] ss:$8 sps:$4 sm:$0xff]   ;;  %v3397_v46 = vld [vmem:[%s5212_s1 + $0xc0] ss:$8 sps:$4 sm:$0xff]  }
  0x10   :  { %2266 = vmatpush1.bf16.msra.mxu1 %v3350_v15  ;;  %2194 = vmatprep.subr.bf16.mxu0 %v3351_v16  ;;  %v3392_v43 = vld [vmem:[%s5212_s1 + $0x1d0] ss:$8 sps:$4 sm:$0xff]   ;;  %v3395_v45 = vld [vmem:[%s5212_s1 + $0x1c4] ss:$8 sps:$4 sm:$0xff]   ;;  %v3398_v47 = vld [vmem:[%s5212_s1 + $0x1c0] ss:$8 sps:$4 sm:$0xff]  }
  0x11   :  { %2267 = vmatprep.subr.bf16.mxu1 %v3353_v17  ;;  %v3399_v48 = vld [vmem:[%s5212_s1 + $0xb4] ss:$8 sps:$4 sm:$0xff]   ;;  %v3425_v49 = vld [vmem:[%s5213_s0 + $0x4] ss:$72 sps:$4 sm:$0xff]   ;;  %v3403_v52 = vld [vmem:[%s5212_s1 + $0xb0] ss:$8 sps:$4 sm:$0xff]  }
  0x12   :  { %v3401_v50 = vld [vmem:[%s5212_s1 + $0x1b4] ss:$8 sps:$4 sm:$0xff]   ;;  %2218 = vmatprep.mubr.bf16.mxu0 %v3425_v49  ;;  %v3404_v53 = vld [vmem:[%s5212_s1 + $0x1b0] ss:$8 sps:$4 sm:$0xff]   ;;  %v3405_v54 = vld [vmem:[%s5212_s1 + $0xa4] ss:$8 sps:$4 sm:$0xff]  }
  0x13   :  { %2195 = vmatpush1.bf16.msra.mxu0 %v3355_v18  ;;  %v3428_v51 = vld [vmem:[%s5213_s0 + $0xc] ss:$72 sps:$4 sm:$0xff]   ;;  %v3409_v56 = vld [vmem:[%s5212_s1 + $0xa0] ss:$8 sps:$4 sm:$0xff]   ;;  %v3415_v60 = vld [vmem:[%s5212_s1 + $0x90] ss:$8 sps:$4 sm:$0xff]  }
  0x14   :  { %2268 = vmatpush1.bf16.msra.mxu1 %v3356_v19  ;;  %2196 = vmatprep.subr.bf16.mxu0 %v3357_v20  ;;  %v3407_v55 = vld [vmem:[%s5212_s1 + $0x1a4] ss:$8 sps:$4 sm:$0xff]   ;;  %v3410_v57 = vld [vmem:[%s5212_s1 + $0x1a0] ss:$8 sps:$4 sm:$0xff]   ;;  %v3411_v58 = vld [vmem:[%s5212_s1 + $0x94] ss:$8 sps:$4 sm:$0xff]  }
  0x15   :  { %2269 = vmatprep.subr.bf16.mxu1 %v3359_v21  ;;  %2291 = vmatprep.mubr.bf16.mxu1 %v3428_v51  ;;  %v3413_v59 = vld [vmem:[%s5212_s1 + $0x194] ss:$8 sps:$4 sm:$0xff]   ;;  %v3416_v61 = vld [vmem:[%s5212_s1 + $0x190] ss:$8 sps:$4 sm:$0xff]   ;;  %v3417_v62 = vld [vmem:[%s5212_s1 + $0x84] ss:$8 sps:$4 sm:$0xff]  }
  0x16   :  { %v3419_v63 = vld [vmem:[%s5212_s1 + $0x184] ss:$8 sps:$4 sm:$0xff]   ;;  %v3421_v0 = vld [vmem:[%s5212_s1 + $0x80] ss:$8 sps:$4 sm:$0xff]   ;;  %v3431_v2 = vld [vmem:[%s5212_s1 + $0x274] ss:$8 sps:$4 sm:$0xff]  }
  0x17   :  { %2197 = vmatpush1.bf16.msra.mxu0 %v3361_v22  ;;  %v3422_v1 = vld [vmem:[%s5212_s1 + $0x180] ss:$8 sps:$4 sm:$0xff]   ;;  %v3434_v3 = vld [vmem:[%s5212_s1 + $0x374] ss:$8 sps:$4 sm:$0xff]   ;;  %v3429_v6 = vld [vmem:[%s5212_s1 + $0x270] ss:$8 sps:$4 sm:$0xff]  }
  0x18   :  { %2270 = vmatpush1.bf16.msra.mxu1 %v3362_v23  ;;  %2198 = vmatprep.subr.bf16.mxu0 %v3363_v24  ;;  %v3423_v4 = vld [vmem:[%s5213_s0] ss:$72 sps:$4 sm:$0xff]   ;;  %v3432_v7 = vld [vmem:[%s5212_s1 + $0x370] ss:$8 sps:$4 sm:$0xff]   ;;  %v3437_v8 = vld [vmem:[%s5212_s1 + $0x264] ss:$8 sps:$4 sm:$0xff]  }
  0x19   :  { %2271 = vmatprep.subr.bf16.mxu1 %v3365_v25  ;;  %v3426_v5 = vld [vmem:[%s5213_s0 + $0x8] ss:$72 sps:$4 sm:$0xff]   ;;  %v3440_v9 = vld [vmem:[%s5212_s1 + $0x364] ss:$8 sps:$4 sm:$0xff]   ;;  %v3477_v11 = vld [vmem:[%s5213_s0 + $0x94] ss:$72 sps:$4 sm:$0xff]  }
  0x1a   :  { %v3435_v10 = vld [vmem:[%s5212_s1 + $0x260] ss:$8 sps:$4 sm:$0xff]   ;;  %v3443_v13 = vld [vmem:[%s5212_s1 + $0x254] ss:$8 sps:$4 sm:$0xff]   ;;  %v3441_v15 = vld [vmem:[%s5212_s1 + $0x250] ss:$8 sps:$4 sm:$0xff]  }
  0x1b   :  { %2199 = vmatpush1.bf16.msra.mxu0 %v3367_v26  ;;  %v3438_v12 = vld [vmem:[%s5212_s1 + $0x360] ss:$8 sps:$4 sm:$0xff]   ;;  %v3446_v14 = vld [vmem:[%s5212_s1 + $0x354] ss:$8 sps:$4 sm:$0xff]   ;;  %v3444_v16 = vld [vmem:[%s5212_s1 + $0x350] ss:$8 sps:$4 sm:$0xff]  }
  0x1c   :  { %2272 = vmatpush1.bf16.msra.mxu1 %v3368_v27  ;;  %2200 = vmatprep.subr.bf16.mxu0 %v3369_v28  ;;  %v3485_v17 = vld [vmem:[%s5213_s0 + $0x90] ss:$72 sps:$4 sm:$0xff]   ;;  %v3486_v18 = vld [vmem:[%s5213_s0 + $0x9c] ss:$72 sps:$4 sm:$0xff]   ;;  %v3447_v22 = vld [vmem:[%s5212_s1 + $0x240] ss:$8 sps:$4 sm:$0xff]  }
  0x1d   :  { %2273 = vmatprep.subr.bf16.mxu1 %v3371_v29  ;;  %v3488_v19 = vld [vmem:[%s5213_s0 + $0x98] ss:$72 sps:$4 sm:$0xff]   ;;  %v3449_v20 = vld [vmem:[%s5212_s1 + $0x244] ss:$8 sps:$4 sm:$0xff]   ;;  %v3455_v25 = vld [vmem:[%s5212_s1 + $0x234] ss:$8 sps:$4 sm:$0xff]  }
  0x1e   :  { %v3452_v21 = vld [vmem:[%s5212_s1 + $0x344] ss:$8 sps:$4 sm:$0xff]   ;;  %v3450_v24 = vld [vmem:[%s5212_s1 + $0x340] ss:$8 sps:$4 sm:$0xff]   ;;  %v3458_v26 = vld [vmem:[%s5212_s1 + $0x334] ss:$8 sps:$4 sm:$0xff]  }
  0x1f   :  { %2201 = vmatpush1.bf16.msra.mxu0 %v3373_v30  ;;  %v3495_v23 = vld [vmem:[%s5213_s0 + $0x124] ss:$72 sps:$4 sm:$0xff]   ;;  %v3453_v27 = vld [vmem:[%s5212_s1 + $0x230] ss:$8 sps:$4 sm:$0xff]   ;;  %v3503_v29 = vld [vmem:[%s5213_s0 + $0x120] ss:$72 sps:$4 sm:$0xff]  }
  0x20   :  { %2274 = vmatpush1.bf16.msra.mxu1 %v3374_v31  ;;  %2202 = vmatprep.subr.bf16.mxu0 %v3375_v32  ;;  %v3456_v28 = vld [vmem:[%s5212_s1 + $0x330] ss:$8 sps:$4 sm:$0xff]   ;;  %v3504_v30 = vld [vmem:[%s5213_s0 + $0x12c] ss:$72 sps:$4 sm:$0xff]  }
  0x21   :  { %2275 = vmatprep.subr.bf16.mxu1 %v3377_v33  ;;  %v3506_v31 = vld [vmem:[%s5213_s0 + $0x128] ss:$72 sps:$4 sm:$0xff]   ;;  %v3461_v32 = vld [vmem:[%s5212_s1 + $0x224] ss:$8 sps:$4 sm:$0xff]   ;;  %v3484_v49 = vld [vmem:[%s5212_s1 + $0x3f4] ss:$8 sps:$4 sm:$0xff]  }
  0x22   :  { %v3464_v33 = vld [vmem:[%s5212_s1 + $0x324] ss:$8 sps:$4 sm:$0xff]   ;;  %v3482_v51 = vld [vmem:[%s5212_s1 + $0x3f0] ss:$8 sps:$4 sm:$0xff]  }
  0x23   :  { %2203 = vmatpush2.bf16.msra.mxu0 %v3379_v34  ;;  %v3459_v34 = vld [vmem:[%s5212_s1 + $0x220] ss:$8 sps:$4 sm:$0xff]  }
  0x24   :  { %2276 = vmatpush2.bf16.msra.mxu1 %v3380_v35  ;;  %2204 = vmatprep.subr.bf16.mxu0 %v3381_v36  ;;  %v3513_v35 = vld [vmem:[%s5213_s0 + $0x1b4] ss:$72 sps:$4 sm:$0x3f]   ;;  %v3462_v36 = vld [vmem:[%s5212_s1 + $0x320] ss:$8 sps:$4 sm:$0xff]  }
  0x25   :  { %2277 = vmatprep.subr.bf16.mxu1 %v3383_v37  ;;  %v3467_v37 = vld [vmem:[%s5212_s1 + $0x214] ss:$8 sps:$4 sm:$0xff]  }
  0x27   :  { %2205 = vmatpush2.bf16.msra.mxu0 %v3385_v38  ;;  %v3470_v38 = vld [vmem:[%s5212_s1 + $0x314] ss:$8 sps:$4 sm:$0xff]  }
  0x28   :  { %2278 = vmatpush2.bf16.msra.mxu1 %v3386_v39  ;;  %2206 = vmatprep.subr.bf16.mxu0 %v3387_v40  ;;  %v3465_v39 = vld [vmem:[%s5212_s1 + $0x210] ss:$8 sps:$4 sm:$0xff]  }
  0x29   :  { %2279 = vmatprep.subr.bf16.mxu1 %v3389_v41  ;;  %v3468_v40 = vld [vmem:[%s5212_s1 + $0x310] ss:$8 sps:$4 sm:$0xff]  }
  0x2a   :  { %v3521_v41 = vld [vmem:[%s5213_s0 + $0x1b0] ss:$72 sps:$4 sm:$0x3f]  }
  0x2b   :  { %2207 = vmatpush2.bf16.msra.mxu0 %v3391_v42  ;;  %v3522_v42 = vld [vmem:[%s5213_s0 + $0x1bc] ss:$72 sps:$4 sm:$0x3f]  }
  0x2c   :  { %2280 = vmatpush2.bf16.msra.mxu1 %v3392_v43  ;;  %2208 = vmatprep.subr.bf16.mxu0 %v3393_v44  ;;  %v3473_v43 = vld [vmem:[%s5212_s1 + $0x204] ss:$8 sps:$4 sm:$0xff]   ;;  %v3524_v44 = vld [vmem:[%s5213_s0 + $0x1b8] ss:$72 sps:$4 sm:$0x3f]  }
  0x2d   :  { %2281 = vmatprep.subr.bf16.mxu1 %v3395_v45  ;;  %v3476_v45 = vld [vmem:[%s5212_s1 + $0x304] ss:$8 sps:$4 sm:$0xff]  }
  0x2f   :  { %2209 = vmatpush2.bf16.msra.mxu0 %v3397_v46  ;;  %v3471_v46 = vld [vmem:[%s5212_s1 + $0x200] ss:$8 sps:$4 sm:$0xff]  }
  0x30   :  { %2282 = vmatpush2.bf16.msra.mxu1 %v3398_v47  ;;  %2210 = vmatprep.subr.bf16.mxu0 %v3399_v48  ;;  %v3474_v47 = vld [vmem:[%s5212_s1 + $0x300] ss:$8 sps:$4 sm:$0xff]   ;;  %v3481_v48 = vld [vmem:[%s5212_s1 + $0x2f4] ss:$8 sps:$4 sm:$0xff]  }
  0x31   :  { %2283 = vmatprep.subr.bf16.mxu1 %v3401_v50  ;;  %v3479_v50 = vld [vmem:[%s5212_s1 + $0x2f0] ss:$8 sps:$4 sm:$0xff]  }
  0x33   :  { %2211 = vmatpush2.bf16.msra.mxu0 %v3403_v52  ;;  %v3491_v52 = vld [vmem:[%s5212_s1 + $0x2e4] ss:$8 sps:$4 sm:$0xff]  }
  0x34   :  { %2284 = vmatpush2.bf16.msra.mxu1 %v3404_v53  ;;  %2212 = vmatprep.subr.bf16.mxu0 %v3405_v54  ;;  %v3494_v53 = vld [vmem:[%s5212_s1 + $0x3e4] ss:$8 sps:$4 sm:$0xff]   ;;  %v3545_v54 = vld [vmem:[%s5213_s0 + $0x14] ss:$72 sps:$4 sm:$0xff]  }
  0x35   :  { %2285 = vmatprep.subr.bf16.mxu1 %v3407_v55  ;;  %v3548_v55 = vld [vmem:[%s5213_s0 + $0x1c] ss:$72 sps:$4 sm:$0xff]  }
  0x37   :  { %2213 = vmatpush2.bf16.msra.mxu0 %v3409_v56  ;;  %v3489_v56 = vld [vmem:[%s5212_s1 + $0x2e0] ss:$8 sps:$4 sm:$0xff]  }
  0x38   :  { %2286 = vmatpush2.bf16.msra.mxu1 %v3410_v57  ;;  %2214 = vmatprep.subr.bf16.mxu0 %v3411_v58  ;;  %v3492_v57 = vld [vmem:[%s5212_s1 + $0x3e0] ss:$8 sps:$4 sm:$0xff]   ;;  %v3499_v58 = vld [vmem:[%s5212_s1 + $0x2d4] ss:$8 sps:$4 sm:$0xff]  }
  0x39   :  { %2287 = vmatprep.subr.bf16.mxu1 %v3413_v59  ;;  %v3502_v59 = vld [vmem:[%s5212_s1 + $0x3d4] ss:$8 sps:$4 sm:$0xff]  }
  0x3b   :  { %2215 = vmatpush2.bf16.msra.mxu0 %v3415_v60  ;;  %v3497_v60 = vld [vmem:[%s5212_s1 + $0x2d0] ss:$8 sps:$4 sm:$0xff]  }
  0x3c   :  { %2288 = vmatpush2.bf16.msra.mxu1 %v3416_v61  ;;  %2216 = vmatprep.subr.bf16.mxu0 %v3417_v62  ;;  %v3500_v61 = vld [vmem:[%s5212_s1 + $0x3d0] ss:$8 sps:$4 sm:$0xff]   ;;  %v3509_v62 = vld [vmem:[%s5212_s1 + $0x2c4] ss:$8 sps:$4 sm:$0xff]  }
  0x3d   :  { %2289 = vmatprep.subr.bf16.mxu1 %v3419_v63  ;;  %v3512_v63 = vld [vmem:[%s5212_s1 + $0x3c4] ss:$8 sps:$4 sm:$0xff]  }
  0x3f   :  { %2217 = vmatpush2.bf16.msra.mxu0 %v3421_v0  ;;  %v3507_v0 = vld [vmem:[%s5212_s1 + $0x2c0] ss:$8 sps:$4 sm:$0xff]  }
  0x40   :  { %2290 = vmatpush2.bf16.msra.mxu1 %v3422_v1  ;;  %2332 = vmatprep.subr.bf16.mxu0 %v3431_v2  ;;  %v3510_v1 = vld [vmem:[%s5212_s1 + $0x3c0] ss:$8 sps:$4 sm:$0xff]   ;;  %v3517_v2 = vld [vmem:[%s5212_s1 + $0x2b4] ss:$8 sps:$4 sm:$0xff]  }
  0x41   :  { %2405 = vmatprep.subr.bf16.mxu1 %v3434_v3  ;;  %v3520_v3 = vld [vmem:[%s5212_s1 + $0x3b4] ss:$8 sps:$4 sm:$0xff]  }
  0x42   :  { %2219 = vmatmul.mubr.bf16.vlgmr.msra.gmra.mxu0 %v3423_v4  ;;  %v3515_v4 = vld [vmem:[%s5212_s1 + $0x2b0] ss:$8 sps:$4 sm:$0xff]  }
  0x43   :  { %2292 = vmatmul.mubr.bf16.vlgmr.msra.gmra.mxu1 %v3426_v5  ;;  %2333 = vmatpush1.bf16.msra.mxu0 %v3429_v6  ;;  %v3518_v5 = vld [vmem:[%s5212_s1 + $0x3b0] ss:$8 sps:$4 sm:$0xff]   ;;  %v3527_v6 = vld [vmem:[%s5212_s1 + $0x2a4] ss:$8 sps:$4 sm:$0xff]  }
  0x44   :  { %2406 = vmatpush1.bf16.msra.mxu1 %v3432_v7  ;;  %2334 = vmatprep.subr.bf16.mxu0 %v3437_v8  ;;  %v3530_v7 = vld [vmem:[%s5212_s1 + $0x3a4] ss:$8 sps:$4 sm:$0xff]   ;;  %v3525_v8 = vld [vmem:[%s5212_s1 + $0x2a0] ss:$8 sps:$4 sm:$0xff]  }
  0x45   :  { %2407 = vmatprep.subr.bf16.mxu1 %v3440_v9  ;;  %2228 = vmatprep.mubr.bf16.mxu0 %v3477_v11  ;;  %v3528_v9 = vld [vmem:[%s5212_s1 + $0x3a0] ss:$8 sps:$4 sm:$0xff]   ;;  %v3536_v11 = vld [vmem:[%s5212_s1 + $0x394] ss:$8 sps:$4 sm:$0xff]  }
  0x46   :  { %2301 = vmatprep.mubr.bf16.mxu1 %v3486_v18  ;;  %v3551_v18 = vld [vmem:[%s5212_s1 + $0x474] ss:$8 sps:$4 sm:$0xff]  }
  0x47   :  { %2335 = vmatpush1.bf16.msra.mxu0 %v3435_v10  ;;  %v3533_v10 = vld [vmem:[%s5212_s1 + $0x294] ss:$8 sps:$4 sm:$0xff]  }
  0x48   :  { %2408 = vmatpush1.bf16.msra.mxu1 %v3438_v12  ;;  %2336 = vmatprep.subr.bf16.mxu0 %v3443_v13  ;;  %v3531_v12 = vld [vmem:[%s5212_s1 + $0x290] ss:$8 sps:$4 sm:$0xff]  }
  0x49   :  { %2409 = vmatprep.subr.bf16.mxu1 %v3446_v14  ;;  %v3534_v13 = vld [vmem:[%s5212_s1 + $0x390] ss:$8 sps:$4 sm:$0xff]   ;;  %v3539_v14 = vld [vmem:[%s5212_s1 + $0x284] ss:$8 sps:$4 sm:$0xff]  }
  0x4a   :  { %2229 = vmatmul.mubr.bf16.gmra.mxu0 %v3485_v17  ;;  %v3540_v17 = vld [vmem:[%s5212_s1 + $0x380] ss:$8 sps:$4 sm:$0xff]  }
  0x4b   :  { %2302 = vmatmul.mubr.bf16.gmra.mxu1 %v3488_v19  ;;  %2337 = vmatpush1.bf16.msra.mxu0 %v3441_v15  ;;  %v3542_v15 = vld [vmem:[%s5212_s1 + $0x384] ss:$8 sps:$4 sm:$0xff]   ;;  %v3554_v19 = vld [vmem:[%s5212_s1 + $0x574] ss:$8 sps:$4 sm:$0xff]  }
  0x4c   :  { %2410 = vmatpush1.bf16.msra.mxu1 %v3444_v16  ;;  %2338 = vmatprep.subr.bf16.mxu0 %v3449_v20  ;;  %v3537_v16 = vld [vmem:[%s5212_s1 + $0x280] ss:$8 sps:$4 sm:$0xff]   ;;  %v3543_v20 = vld [vmem:[%s5213_s0 + $0x10] ss:$72 sps:$4 sm:$0xff]  }
  0x4d   :  { %2411 = vmatprep.subr.bf16.mxu1 %v3452_v21  ;;  %2238 = vmatprep.mubr.bf16.mxu0 %v3495_v23  ;;  %v3546_v21 = vld [vmem:[%s5213_s0 + $0x18] ss:$72 sps:$4 sm:$0xff]  }
  0x4e   :  { %2311 = vmatprep.mubr.bf16.mxu1 %v3504_v30  ;;  %v3552_v23 = vld [vmem:[%s5212_s1 + $0x570] ss:$8 sps:$4 sm:$0xff]   ;;  %v3566_v30 = vld [vmem:[%s5212_s1 + $0x454] ss:$8 sps:$4 sm:$0xff]  }
  0x4f   :  { %2339 = vmatpush1.bf16.msra.mxu0 %v3447_v22  ;;  %v3549_v22 = vld [vmem:[%s5212_s1 + $0x470] ss:$8 sps:$4 sm:$0xff]  }
  0x50   :  { %2412 = vmatpush1.bf16.msra.mxu1 %v3450_v24  ;;  %2340 = vmatprep.subr.bf16.mxu0 %v3455_v25  ;;  %v3557_v24 = vld [vmem:[%s5212_s1 + $0x464] ss:$8 sps:$4 sm:$0xff]  }
  0x51   :  { %2413 = vmatprep.subr.bf16.mxu1 %v3458_v26  ;;  %v3560_v25 = vld [vmem:[%s5212_s1 + $0x564] ss:$8 sps:$4 sm:$0xff]  }
  0x52   :  { %2239 = vmatmul.mubr.bf16.gmra.mxu0 %v3503_v29  ;;  %v3561_v26 = vld [vmem:[%s5213_s0 + $0xa4] ss:$72 sps:$4 sm:$0xff]   ;;  %v3558_v29 = vld [vmem:[%s5212_s1 + $0x560] ss:$8 sps:$4 sm:$0xff]  }
  0x53   :  { %2312 = vmatmul.mubr.bf16.gmra.mxu1 %v3506_v31  ;;  %2341 = vmatpush1.bf16.msra.mxu0 %v3453_v27  ;;  %v3570_v27 = vld [vmem:[%s5213_s0 + $0xac] ss:$72 sps:$4 sm:$0xff]  }
  0x54   :  { %2414 = vmatpush1.bf16.msra.mxu1 %v3456_v28  ;;  %2342 = vmatprep.subr.bf16.mxu0 %v3461_v32  ;;  %v3555_v28 = vld [vmem:[%s5212_s1 + $0x460] ss:$8 sps:$4 sm:$0xff]   ;;  %v3569_v31 = vld [vmem:[%s5212_s1 + $0x554] ss:$8 sps:$4 sm:$0xff]  }
  0x55   :  { %2415 = vmatprep.subr.bf16.mxu1 %v3464_v33  ;;  %2248 = vmatprep.mubr.bf16.mxu0 %v3513_v35  ;;  %v3563_v32 = vld [vmem:[%s5213_s0 + $0xa0] ss:$72 sps:$4 sm:$0xff]   ;;  %v3564_v33 = vld [vmem:[%s5212_s1 + $0x450] ss:$8 sps:$4 sm:$0xff]  }
  0x56   :  { %2321 = vmatprep.mubr.bf16.mxu1 %v3522_v42  ;;  %v3572_v35 = vld [vmem:[%s5213_s0 + $0xa8] ss:$72 sps:$4 sm:$0xff]   ;;  %v3584_v42 = vld [vmem:[%s5212_s1 + $0x434] ss:$8 sps:$4 sm:$0xff]  }
  0x57   :  { %2343 = vmatpush1.bf16.msra.mxu0 %v3459_v34  ;;  %v3567_v34 = vld [vmem:[%s5212_s1 + $0x550] ss:$8 sps:$4 sm:$0xff]  }
  0x58   :  { %2416 = vmatpush1.bf16.msra.mxu1 %v3462_v36  ;;  %2344 = vmatprep.subr.bf16.mxu0 %v3467_v37  ;;  %v3575_v36 = vld [vmem:[%s5212_s1 + $0x444] ss:$8 sps:$4 sm:$0xff]  }
  0x59   :  { %2417 = vmatprep.subr.bf16.mxu1 %v3470_v38  ;;  %v3578_v37 = vld [vmem:[%s5212_s1 + $0x544] ss:$8 sps:$4 sm:$0xff]   ;;  %v3579_v38 = vld [vmem:[%s5213_s0 + $0x134] ss:$72 sps:$4 sm:$0xff]  }
  0x5a   :  { %2249 = vmatmul.mubr.bf16.gmra.mxu0 %v3521_v41  ;;  %v3576_v41 = vld [vmem:[%s5212_s1 + $0x540] ss:$8 sps:$4 sm:$0xff]  }
  0x5b   :  { %2322 = vmatmul.mubr.bf16.gmra.mxu1 %v3524_v44  ;;  %2345 = vmatpush1.bf16.msra.mxu0 %v3465_v39  ;;  %v3588_v39 = vld [vmem:[%s5213_s0 + $0x13c] ss:$72 sps:$4 sm:$0xff]  }
  0x5c   :  { %2418 = vmatpush1.bf16.msra.mxu1 %v3468_v40  ;;  %2346 = vmatprep.subr.bf16.mxu0 %v3473_v43  ;;  %v3573_v40 = vld [vmem:[%s5212_s1 + $0x440] ss:$8 sps:$4 sm:$0xff]   ;;  %v3581_v43 = vld [vmem:[%s5213_s0 + $0x130] ss:$72 sps:$4 sm:$0xff]   ;;  %v3587_v44 = vld [vmem:[%s5212_s1 + $0x534] ss:$8 sps:$4 sm:$0xff]  }
  0x5d   :  { %2419 = vmatprep.subr.bf16.mxu1 %v3476_v45  ;;  %2364 = vmatprep.mubr.bf16.mxu0 %v3545_v54  ;;  %v3582_v45 = vld [vmem:[%s5212_s1 + $0x430] ss:$8 sps:$4 sm:$0xff]   ;;  %v3602_v54 = vld [vmem:[%s5212_s1 + $0x414] ss:$8 sps:$4 sm:$0xff]  }
  0x5e   :  { %2437 = vmatprep.mubr.bf16.mxu1 %v3548_v55  ;;  %v3605_v55 = vld [vmem:[%s5212_s1 + $0x514] ss:$8 sps:$4 sm:$0xff]  }
  0x5f   :  { %2347 = vmatpush1.bf16.msra.mxu0 %v3471_v46  ;;  %v3585_v46 = vld [vmem:[%s5212_s1 + $0x530] ss:$8 sps:$4 sm:$0xff]  }
  0x60   :  { %2420 = vmatpush1.bf16.msra.mxu1 %v3474_v47  ;;  %2348 = vmatprep.subr.bf16.mxu0 %v3481_v48  ;;  %v3590_v47 = vld [vmem:[%s5213_s0 + $0x138] ss:$72 sps:$4 sm:$0xff]   ;;  %v3593_v48 = vld [vmem:[%s5212_s1 + $0x424] ss:$8 sps:$4 sm:$0xff]  }
  0x61   :  { %2421 = vmatprep.subr.bf16.mxu1 %v3484_v49  ;;  %v3596_v49 = vld [vmem:[%s5212_s1 + $0x524] ss:$8 sps:$4 sm:$0xff]  }
  0x63   :  { %2349 = vmatpush2.bf16.msra.mxu0 %v3479_v50  ;;  %v3597_v50 = vld [vmem:[%s5213_s0 + $0x1c4] ss:$72 sps:$4 sm:$0x3f]  }
  0x64   :  { %2422 = vmatpush2.bf16.msra.mxu1 %v3482_v51  ;;  %2350 = vmatprep.subr.bf16.mxu0 %v3491_v52  ;;  %v3606_v51 = vld [vmem:[%s5213_s0 + $0x1cc] ss:$72 sps:$4 sm:$0x3f]   ;;  %v3591_v52 = vld [vmem:[%s5212_s1 + $0x420] ss:$8 sps:$4 sm:$0xff]  }
  0x65   :  { %2423 = vmatprep.subr.bf16.mxu1 %v3494_v53  ;;  %v3594_v53 = vld [vmem:[%s5212_s1 + $0x520] ss:$8 sps:$4 sm:$0xff]  }
  0x67   :  { %2351 = vmatpush2.bf16.msra.mxu0 %v3489_v56  ;;  %v3599_v56 = vld [vmem:[%s5213_s0 + $0x1c0] ss:$72 sps:$4 sm:$0x3f]  }
  0x68   :  { %2424 = vmatpush2.bf16.msra.mxu1 %v3492_v57  ;;  %2352 = vmatprep.subr.bf16.mxu0 %v3499_v58  ;;  %v3600_v57 = vld [vmem:[%s5212_s1 + $0x410] ss:$8 sps:$4 sm:$0xff]  }
  0x69   :  { %2425 = vmatprep.subr.bf16.mxu1 %v3502_v59  ;;  %v3603_v58 = vld [vmem:[%s5212_s1 + $0x510] ss:$8 sps:$4 sm:$0xff]  }
  0x6a   :  { %v3608_v59 = vld [vmem:[%s5213_s0 + $0x1c8] ss:$72 sps:$4 sm:$0x3f]  }
  0x6b   :  { %2353 = vmatpush2.bf16.msra.mxu0 %v3497_v60  ;;  %v3611_v60 = vld [vmem:[%s5212_s1 + $0x404] ss:$8 sps:$4 sm:$0xff]  }
  0x6c   :  { %2426 = vmatpush2.bf16.msra.mxu1 %v3500_v61  ;;  %2354 = vmatprep.subr.bf16.mxu0 %v3509_v62  ;;  %v3614_v61 = vld [vmem:[%s5212_s1 + $0x504] ss:$8 sps:$4 sm:$0xff]  }
  0x6d   :  { %2427 = vmatprep.subr.bf16.mxu1 %v3512_v63  ;;  %v3665_v62 = vld [vmem:[%s5213_s0 + $0x24] ss:$72 sps:$4 sm:$0xff]  }
  0x6e   :  { %v3668_v63 = vld [vmem:[%s5213_s0 + $0x2c] ss:$72 sps:$4 sm:$0xff]  }
  0x6f   :  { %2355 = vmatpush2.bf16.msra.mxu0 %v3507_v0  ;;  %v3609_v0 = vld [vmem:[%s5212_s1 + $0x400] ss:$8 sps:$4 sm:$0xff]  }
  0x70   :  { %2428 = vmatpush2.bf16.msra.mxu1 %v3510_v1  ;;  %2356 = vmatprep.subr.bf16.mxu0 %v3517_v2  ;;  %v3612_v1 = vld [vmem:[%s5212_s1 + $0x500] ss:$8 sps:$4 sm:$0xff]   ;;  %v3617_v2 = vld [vmem:[%s5212_s1 + $0x4f4] ss:$8 sps:$4 sm:$0xff]  }
  0x71   :  { %2429 = vmatprep.subr.bf16.mxu1 %v3520_v3  ;;  %v3620_v3 = vld [vmem:[%s5212_s1 + $0x5f4] ss:$8 sps:$4 sm:$0xff]  }
  0x73   :  { %2357 = vmatpush2.bf16.msra.mxu0 %v3515_v4  ;;  %v3615_v4 = vld [vmem:[%s5212_s1 + $0x4f0] ss:$8 sps:$4 sm:$0xff]  }
  0x74   :  { %2430 = vmatpush2.bf16.msra.mxu1 %v3518_v5  ;;  %2358 = vmatprep.subr.bf16.mxu0 %v3527_v6  ;;  %v3618_v5 = vld [vmem:[%s5212_s1 + $0x5f0] ss:$8 sps:$4 sm:$0xff]   ;;  %v3623_v6 = vld [vmem:[%s5212_s1 + $0x4e4] ss:$8 sps:$4 sm:$0xff]  }
  0x75   :  { %2431 = vmatprep.subr.bf16.mxu1 %v3530_v7  ;;  %v3626_v7 = vld [vmem:[%s5212_s1 + $0x5e4] ss:$8 sps:$4 sm:$0xff]  }
  0x77   :  { %2359 = vmatpush2.bf16.msra.mxu0 %v3525_v8  ;;  %v3621_v8 = vld [vmem:[%s5212_s1 + $0x4e0] ss:$8 sps:$4 sm:$0xff]  }
  0x78   :  { %2432 = vmatpush2.bf16.msra.mxu1 %v3528_v9  ;;  %2360 = vmatprep.subr.bf16.mxu0 %v3533_v10  ;;  %v3624_v9 = vld [vmem:[%s5212_s1 + $0x5e0] ss:$8 sps:$4 sm:$0xff]   ;;  %v3629_v10 = vld [vmem:[%s5212_s1 + $0x4d4] ss:$8 sps:$4 sm:$0xff]  }
  0x79   :  { %2433 = vmatprep.subr.bf16.mxu1 %v3536_v11  ;;  %v3632_v11 = vld [vmem:[%s5212_s1 + $0x5d4] ss:$8 sps:$4 sm:$0xff]  }
  0x7b   :  { %2361 = vmatpush2.bf16.msra.mxu0 %v3531_v12  ;;  %v3627_v12 = vld [vmem:[%s5212_s1 + $0x4d0] ss:$8 sps:$4 sm:$0xff]  }
  0x7c   :  { %2434 = vmatpush2.bf16.msra.mxu1 %v3534_v13  ;;  %2362 = vmatprep.subr.bf16.mxu0 %v3539_v14  ;;  %v3630_v13 = vld [vmem:[%s5212_s1 + $0x5d0] ss:$8 sps:$4 sm:$0xff]   ;;  %v3635_v14 = vld [vmem:[%s5212_s1 + $0x4c4] ss:$8 sps:$4 sm:$0xff]  }
  0x7d   :  { %2435 = vmatprep.subr.bf16.mxu1 %v3542_v15  ;;  %v3638_v15 = vld [vmem:[%s5212_s1 + $0x5c4] ss:$8 sps:$4 sm:$0xff]  }
  0x7f   :  { %2363 = vmatpush2.bf16.msra.mxu0 %v3537_v16  ;;  %v3633_v16 = vld [vmem:[%s5212_s1 + $0x4c0] ss:$8 sps:$4 sm:$0xff]  }
  0x80   :  { %2436 = vmatpush2.bf16.msra.mxu1 %v3540_v17  ;;  %2478 = vmatprep.subr.bf16.mxu0 %v3551_v18  ;;  %v3636_v17 = vld [vmem:[%s5212_s1 + $0x5c0] ss:$8 sps:$4 sm:$0xff]   ;;  %v3641_v18 = vld [vmem:[%s5212_s1 + $0x4b4] ss:$8 sps:$4 sm:$0xff]  }
  0x81   :  { %2551 = vmatprep.subr.bf16.mxu1 %v3554_v19  ;;  %v3644_v19 = vld [vmem:[%s5212_s1 + $0x5b4] ss:$8 sps:$4 sm:$0xff]  }
  0x82   :  { %2365 = vmatmul.mubr.bf16.vlgmr.msra.gmra.mxu0 %v3543_v20  ;;  %v3639_v20 = vld [vmem:[%s5212_s1 + $0x4b0] ss:$8 sps:$4 sm:$0xff]  }
  0x83   :  { %2438 = vmatmul.mubr.bf16.vlgmr.msra.gmra.mxu1 %v3546_v21  ;;  %2479 = vmatpush1.bf16.msra.mxu0 %v3549_v22  ;;  %v3642_v21 = vld [vmem:[%s5212_s1 + $0x5b0] ss:$8 sps:$4 sm:$0xff]   ;;  %v3647_v22 = vld [vmem:[%s5212_s1 + $0x4a4] ss:$8 sps:$4 sm:$0xff]  }
  0x84   :  { %2552 = vmatpush1.bf16.msra.mxu1 %v3552_v23  ;;  %2480 = vmatprep.subr.bf16.mxu0 %v3557_v24  ;;  %v3650_v23 = vld [vmem:[%s5212_s1 + $0x5a4] ss:$8 sps:$4 sm:$0xff]   ;;  %v3645_v24 = vld [vmem:[%s5212_s1 + $0x4a0] ss:$8 sps:$4 sm:$0xff]  }
  0x85   :  { %2553 = vmatprep.subr.bf16.mxu1 %v3560_v25  ;;  %2374 = vmatprep.mubr.bf16.mxu0 %v3561_v26  ;;  %v3648_v25 = vld [vmem:[%s5212_s1 + $0x5a0] ss:$8 sps:$4 sm:$0xff]   ;;  %v3653_v26 = vld [vmem:[%s5212_s1 + $0x494] ss:$8 sps:$4 sm:$0xff]  }
  0x86   :  { %2447 = vmatprep.mubr.bf16.mxu1 %v3570_v27  ;;  %v3656_v27 = vld [vmem:[%s5212_s1 + $0x594] ss:$8 sps:$4 sm:$0xff]  }
  0x87   :  { %2481 = vmatpush1.bf16.msra.mxu0 %v3555_v28  ;;  %v3651_v28 = vld [vmem:[%s5212_s1 + $0x490] ss:$8 sps:$4 sm:$0xff]  }
  0x88   :  { %2554 = vmatpush1.bf16.msra.mxu1 %v3558_v29  ;;  %2482 = vmatprep.subr.bf16.mxu0 %v3566_v30  ;;  %v3654_v29 = vld [vmem:[%s5212_s1 + $0x590] ss:$8 sps:$4 sm:$0xff]   ;;  %v3659_v30 = vld [vmem:[%s5212_s1 + $0x484] ss:$8 sps:$4 sm:$0xff]  }
  0x89   :  { %2555 = vmatprep.subr.bf16.mxu1 %v3569_v31  ;;  %v3662_v31 = vld [vmem:[%s5212_s1 + $0x584] ss:$8 sps:$4 sm:$0xff]  }
  0x8a   :  { %2375 = vmatmul.mubr.bf16.gmra.mxu0 %v3563_v32  ;;  %v3657_v32 = vld [vmem:[%s5212_s1 + $0x480] ss:$8 sps:$4 sm:$0xff]  }
  0x8b   :  { %2448 = vmatmul.mubr.bf16.gmra.mxu1 %v3572_v35  ;;  %2483 = vmatpush1.bf16.msra.mxu0 %v3564_v33  ;;  %v3660_v33 = vld [vmem:[%s5212_s1 + $0x580] ss:$8 sps:$4 sm:$0xff]   ;;  %v3674_v35 = vld [vmem:[%s5212_s1 + $0x774] ss:$8 sps:$4 sm:$0xff]  }
  0x8c   :  { %2556 = vmatpush1.bf16.msra.mxu1 %v3567_v34  ;;  %2484 = vmatprep.subr.bf16.mxu0 %v3575_v36  ;;  %v3671_v34 = vld [vmem:[%s5212_s1 + $0x674] ss:$8 sps:$4 sm:$0xff]   ;;  %v3663_v36 = vld [vmem:[%s5213_s0 + $0x20] ss:$72 sps:$4 sm:$0xff]  }
  0x8d   :  { %2557 = vmatprep.subr.bf16.mxu1 %v3578_v37  ;;  %2384 = vmatprep.mubr.bf16.mxu0 %v3579_v38  ;;  %v3666_v37 = vld [vmem:[%s5213_s0 + $0x28] ss:$72 sps:$4 sm:$0xff]  }
  0x8e   :  { %2457 = vmatprep.mubr.bf16.mxu1 %v3588_v39  ;;  %v3669_v38 = vld [vmem:[%s5212_s1 + $0x670] ss:$8 sps:$4 sm:$0xff]  }
  0x8f   :  { %2485 = vmatpush1.bf16.msra.mxu0 %v3573_v40  ;;  %v3672_v39 = vld [vmem:[%s5212_s1 + $0x770] ss:$8 sps:$4 sm:$0xff]   ;;  %v3677_v40 = vld [vmem:[%s5212_s1 + $0x664] ss:$8 sps:$4 sm:$0xff]  }
  0x90   :  { %2558 = vmatpush1.bf16.msra.mxu1 %v3576_v41  ;;  %2486 = vmatprep.subr.bf16.mxu0 %v3584_v42  ;;  %v3680_v41 = vld [vmem:[%s5212_s1 + $0x764] ss:$8 sps:$4 sm:$0xff]   ;;  %v3681_v42 = vld [vmem:[%s5213_s0 + $0xb4] ss:$72 sps:$4 sm:$0xff]  }
  0x91   :  { %2559 = vmatprep.subr.bf16.mxu1 %v3587_v44  ;;  %v3675_v44 = vld [vmem:[%s5212_s1 + $0x660] ss:$8 sps:$4 sm:$0xff]  }
  0x92   :  { %2385 = vmatmul.mubr.bf16.gmra.mxu0 %v3581_v43  ;;  %v3690_v43 = vld [vmem:[%s5213_s0 + $0xbc] ss:$72 sps:$4 sm:$0xff]  }
  0x93   :  { %2458 = vmatmul.mubr.bf16.gmra.mxu1 %v3590_v47  ;;  %2487 = vmatpush1.bf16.msra.mxu0 %v3582_v45  ;;  %v3678_v45 = vld [vmem:[%s5212_s1 + $0x760] ss:$8 sps:$4 sm:$0xff]   ;;  %v3689_v47 = vld [vmem:[%s5212_s1 + $0x754] ss:$8 sps:$4 sm:$0xff]  }
  0x94   :  { %2560 = vmatpush1.bf16.msra.mxu1 %v3585_v46  ;;  %2488 = vmatprep.subr.bf16.mxu0 %v3593_v48  ;;  %v3686_v46 = vld [vmem:[%s5212_s1 + $0x654] ss:$8 sps:$4 sm:$0xff]   ;;  %v3683_v48 = vld [vmem:[%s5213_s0 + $0xb0] ss:$72 sps:$4 sm:$0xff]  }
  0x95   :  { %2561 = vmatprep.subr.bf16.mxu1 %v3596_v49  ;;  %2394 = vmatprep.mubr.bf16.mxu0 %v3597_v50  ;;  %v3684_v49 = vld [vmem:[%s5212_s1 + $0x650] ss:$8 sps:$4 sm:$0xff]  }
  0x96   :  { %2467 = vmatprep.mubr.bf16.mxu1 %v3606_v51  ;;  %v3692_v50 = vld [vmem:[%s5213_s0 + $0xb8] ss:$72 sps:$4 sm:$0xff]  }
  0x97   :  { %2489 = vmatpush1.bf16.msra.mxu0 %v3591_v52  ;;  %v3687_v51 = vld [vmem:[%s5212_s1 + $0x750] ss:$8 sps:$4 sm:$0xff]   ;;  %v3695_v52 = vld [vmem:[%s5212_s1 + $0x644] ss:$8 sps:$4 sm:$0xff]  }
  0x98   :  { %2562 = vmatpush1.bf16.msra.mxu1 %v3594_v53  ;;  %2490 = vmatprep.subr.bf16.mxu0 %v3602_v54  ;;  %v3698_v53 = vld [vmem:[%s5212_s1 + $0x744] ss:$8 sps:$4 sm:$0xff]  }
  0x99   :  { %2563 = vmatprep.subr.bf16.mxu1 %v3605_v55  ;;  %v3699_v54 = vld [vmem:[%s5213_s0 + $0x144] ss:$72 sps:$4 sm:$0xff]  }
  0x9a   :  { %2395 = vmatmul.mubr.bf16.gmra.mxu0 %v3599_v56  ;;  %v3708_v55 = vld [vmem:[%s5213_s0 + $0x14c] ss:$72 sps:$4 sm:$0xff]   ;;  %v3693_v56 = vld [vmem:[%s5212_s1 + $0x640] ss:$8 sps:$4 sm:$0xff]  }
  0x9b   :  { %2468 = vmatmul.mubr.bf16.gmra.mxu1 %v3608_v59  ;;  %2491 = vmatpush1.bf16.msra.mxu0 %v3600_v57  ;;  %v3696_v57 = vld [vmem:[%s5212_s1 + $0x740] ss:$8 sps:$4 sm:$0xff]   ;;  %v3704_v59 = vld [vmem:[%s5212_s1 + $0x634] ss:$8 sps:$4 sm:$0xff]  }
  0x9c   :  { %2564 = vmatpush1.bf16.msra.mxu1 %v3603_v58  ;;  %2492 = vmatprep.subr.bf16.mxu0 %v3611_v60  ;;  %v3701_v58 = vld [vmem:[%s5213_s0 + $0x140] ss:$72 sps:$4 sm:$0xff]   ;;  %v3707_v60 = vld [vmem:[%s5212_s1 + $0x734] ss:$8 sps:$4 sm:$0xff]  }
  0x9d   :  { %2565 = vmatprep.subr.bf16.mxu1 %v3614_v61  ;;  %2510 = vmatprep.mubr.bf16.mxu0 %v3665_v62  ;;  %v3702_v61 = vld [vmem:[%s5212_s1 + $0x630] ss:$8 sps:$4 sm:$0xff]  }
  0x9e   :  { %2583 = vmatprep.mubr.bf16.mxu1 %v3668_v63  ;;  %v3710_v62 = vld [vmem:[%s5213_s0 + $0x148] ss:$72 sps:$4 sm:$0xff]  }
  0x9f   :  { %2493 = vmatpush1.bf16.msra.mxu0 %v3609_v0  ;;  %v3705_v63 = vld [vmem:[%s5212_s1 + $0x730] ss:$8 sps:$4 sm:$0xff]   ;;  %v3713_v0 = vld [vmem:[%s5212_s1 + $0x624] ss:$8 sps:$4 sm:$0xff]  }
  0xa0   :  { %2566 = vmatpush1.bf16.msra.mxu1 %v3612_v1  ;;  %2494 = vmatprep.subr.bf16.mxu0 %v3617_v2  ;;  %v3716_v1 = vld [vmem:[%s5212_s1 + $0x724] ss:$8 sps:$4 sm:$0xff]   ;;  %v3717_v2 = vld [vmem:[%s5213_s0 + $0x1d4] ss:$72 sps:$4 sm:$0x3f]  }
  0xa1   :  { %2567 = vmatprep.subr.bf16.mxu1 %v3620_v3  ;;  %v3726_v3 = vld [vmem:[%s5213_s0 + $0x1dc] ss:$72 sps:$4 sm:$0x3f]  }
  0xa3   :  { %2495 = vmatpush2.bf16.msra.mxu0 %v3615_v4  ;;  %v3711_v4 = vld [vmem:[%s5212_s1 + $0x620] ss:$8 sps:$4 sm:$0xff]  }
  0xa4   :  { %2568 = vmatpush2.bf16.msra.mxu1 %v3618_v5  ;;  %2496 = vmatprep.subr.bf16.mxu0 %v3623_v6  ;;  %v3714_v5 = vld [vmem:[%s5212_s1 + $0x720] ss:$8 sps:$4 sm:$0xff]   ;;  %v3719_v6 = vld [vmem:[%s5213_s0 + $0x1d0] ss:$72 sps:$4 sm:$0x3f]  }
  0xa5   :  { %2569 = vmatprep.subr.bf16.mxu1 %v3626_v7  ;;  %v3722_v7 = vld [vmem:[%s5212_s1 + $0x614] ss:$8 sps:$4 sm:$0xff]  }
  0xa7   :  { %2497 = vmatpush2.bf16.msra.mxu0 %v3621_v8  ;;  %v3725_v8 = vld [vmem:[%s5212_s1 + $0x714] ss:$8 sps:$4 sm:$0xff]  }
  0xa8   :  { %2570 = vmatpush2.bf16.msra.mxu1 %v3624_v9  ;;  %2498 = vmatprep.subr.bf16.mxu0 %v3629_v10  ;;  %v3720_v9 = vld [vmem:[%s5212_s1 + $0x610] ss:$8 sps:$4 sm:$0xff]  }
  0xa9   :  { %2571 = vmatprep.subr.bf16.mxu1 %v3632_v11  ;;  %v3728_v10 = vld [vmem:[%s5213_s0 + $0x1d8] ss:$72 sps:$4 sm:$0x3f]  }
  0xaa   :  { %v3723_v11 = vld [vmem:[%s5212_s1 + $0x710] ss:$8 sps:$4 sm:$0xff]  }
  0xab   :  { %2499 = vmatpush2.bf16.msra.mxu0 %v3627_v12  ;;  %v3731_v12 = vld [vmem:[%s5212_s1 + $0x604] ss:$8 sps:$4 sm:$0xff]  }
  0xac   :  { %2572 = vmatpush2.bf16.msra.mxu1 %v3630_v13  ;;  %2500 = vmatprep.subr.bf16.mxu0 %v3635_v14  ;;  %v3734_v13 = vld [vmem:[%s5212_s1 + $0x704] ss:$8 sps:$4 sm:$0xff]   ;;  %v3785_v14 = vld [vmem:[%s5213_s0 + $0x34] ss:$72 sps:$4 sm:$0xff]  }
  0xad   :  { %2573 = vmatprep.subr.bf16.mxu1 %v3638_v15  ;;  %v3788_v15 = vld [vmem:[%s5213_s0 + $0x3c] ss:$72 sps:$4 sm:$0xff]  }
  0xaf   :  { %2501 = vmatpush2.bf16.msra.mxu0 %v3633_v16  ;;  %v3729_v16 = vld [vmem:[%s5212_s1 + $0x600] ss:$8 sps:$4 sm:$0xff]  }
  0xb0   :  { %2574 = vmatpush2.bf16.msra.mxu1 %v3636_v17  ;;  %2502 = vmatprep.subr.bf16.mxu0 %v3641_v18  ;;  %v3732_v17 = vld [vmem:[%s5212_s1 + $0x700] ss:$8 sps:$4 sm:$0xff]   ;;  %v3737_v18 = vld [vmem:[%s5212_s1 + $0x6f4] ss:$8 sps:$4 sm:$0xff]  }
  0xb1   :  { %2575 = vmatprep.subr.bf16.mxu1 %v3644_v19  ;;  %v3740_v19 = vld [vmem:[%s5212_s1 + $0x7f4] ss:$8 sps:$4 sm:$0xff]  }
  0xb3   :  { %2503 = vmatpush2.bf16.msra.mxu0 %v3639_v20  ;;  %v3735_v20 = vld [vmem:[%s5212_s1 + $0x6f0] ss:$8 sps:$4 sm:$0xff]  }
  0xb4   :  { %2576 = vmatpush2.bf16.msra.mxu1 %v3642_v21  ;;  %2504 = vmatprep.subr.bf16.mxu0 %v3647_v22  ;;  %v3738_v21 = vld [vmem:[%s5212_s1 + $0x7f0] ss:$8 sps:$4 sm:$0xff]   ;;  %v3743_v22 = vld [vmem:[%s5212_s1 + $0x6e4] ss:$8 sps:$4 sm:$0xff]  }
  0xb5   :  { %2577 = vmatprep.subr.bf16.mxu1 %v3650_v23  ;;  %v3746_v23 = vld [vmem:[%s5212_s1 + $0x7e4] ss:$8 sps:$4 sm:$0xff]  }
  0xb7   :  { %2505 = vmatpush2.bf16.msra.mxu0 %v3645_v24  ;;  %v3741_v24 = vld [vmem:[%s5212_s1 + $0x6e0] ss:$8 sps:$4 sm:$0xff]  }
  0xb8   :  { %2578 = vmatpush2.bf16.msra.mxu1 %v3648_v25  ;;  %2506 = vmatprep.subr.bf16.mxu0 %v3653_v26  ;;  %v3744_v25 = vld [vmem:[%s5212_s1 + $0x7e0] ss:$8 sps:$4 sm:$0xff]   ;;  %v3749_v26 = vld [vmem:[%s5212_s1 + $0x6d4] ss:$8 sps:$4 sm:$0xff]  }
  0xb9   :  { %2579 = vmatprep.subr.bf16.mxu1 %v3656_v27  ;;  %v3752_v27 = vld [vmem:[%s5212_s1 + $0x7d4] ss:$8 sps:$4 sm:$0xff]  }
  0xbb   :  { %2507 = vmatpush2.bf16.msra.mxu0 %v3651_v28  ;;  %v3747_v28 = vld [vmem:[%s5212_s1 + $0x6d0] ss:$8 sps:$4 sm:$0xff]  }
  0xbc   :  { %2580 = vmatpush2.bf16.msra.mxu1 %v3654_v29  ;;  %2508 = vmatprep.subr.bf16.mxu0 %v3659_v30  ;;  %v3750_v29 = vld [vmem:[%s5212_s1 + $0x7d0] ss:$8 sps:$4 sm:$0xff]   ;;  %v3755_v30 = vld [vmem:[%s5212_s1 + $0x6c4] ss:$8 sps:$4 sm:$0xff]  }
  0xbd   :  { %2581 = vmatprep.subr.bf16.mxu1 %v3662_v31  ;;  %v3758_v31 = vld [vmem:[%s5212_s1 + $0x7c4] ss:$8 sps:$4 sm:$0xff]  }
  0xbf   :  { %2509 = vmatpush2.bf16.msra.mxu0 %v3657_v32  ;;  %v3753_v32 = vld [vmem:[%s5212_s1 + $0x6c0] ss:$8 sps:$4 sm:$0xff]  }
  0xc0   :  { %2582 = vmatpush2.bf16.msra.mxu1 %v3660_v33  ;;  %2624 = vmatprep.subr.bf16.mxu0 %v3671_v34  ;;  %v3756_v33 = vld [vmem:[%s5212_s1 + $0x7c0] ss:$8 sps:$4 sm:$0xff]   ;;  %v3761_v34 = vld [vmem:[%s5212_s1 + $0x6b4] ss:$8 sps:$4 sm:$0xff]  }
  0xc1   :  { %2697 = vmatprep.subr.bf16.mxu1 %v3674_v35  ;;  %v3764_v35 = vld [vmem:[%s5212_s1 + $0x7b4] ss:$8 sps:$4 sm:$0xff]  }
  0xc2   :  { %2511 = vmatmul.mubr.bf16.vlgmr.msra.gmra.mxu0 %v3663_v36  ;;  %v3759_v36 = vld [vmem:[%s5212_s1 + $0x6b0] ss:$8 sps:$4 sm:$0xff]  }
  0xc3   :  { %2584 = vmatmul.mubr.bf16.vlgmr.msra.gmra.mxu1 %v3666_v37  ;;  %2625 = vmatpush1.bf16.msra.mxu0 %v3669_v38  ;;  %v3762_v37 = vld [vmem:[%s5212_s1 + $0x7b0] ss:$8 sps:$4 sm:$0xff]   ;;  %v3767_v38 = vld [vmem:[%s5212_s1 + $0x6a4] ss:$8 sps:$4 sm:$0xff]  }
  0xc4   :  { %2698 = vmatpush1.bf16.msra.mxu1 %v3672_v39  ;;  %2626 = vmatprep.subr.bf16.mxu0 %v3677_v40  ;;  %v3770_v39 = vld [vmem:[%s5212_s1 + $0x7a4] ss:$8 sps:$4 sm:$0xff]   ;;  %v3765_v40 = vld [vmem:[%s5212_s1 + $0x6a0] ss:$8 sps:$4 sm:$0xff]  }
  0xc5   :  { %2699 = vmatprep.subr.bf16.mxu1 %v3680_v41  ;;  %2520 = vmatprep.mubr.bf16.mxu0 %v3681_v42  ;;  %v3768_v41 = vld [vmem:[%s5212_s1 + $0x7a0] ss:$8 sps:$4 sm:$0xff]   ;;  %v376_v42 = vlaneseq }
  0xc6   :  { %2593 = vmatprep.mubr.bf16.mxu1 %v3690_v43  ;;  %v3773_v43 = vld [vmem:[%s5212_s1 + $0x694] ss:$8 sps:$4 sm:$0xff]  }
  0xc7   :  { %2627 = vmatpush1.bf16.msra.mxu0 %v3675_v44  ;;  %v3776_v44 = vld [vmem:[%s5212_s1 + $0x794] ss:$8 sps:$4 sm:$0xff]  }
  0xc8   :  { %2700 = vmatpush1.bf16.msra.mxu1 %v3678_v45  ;;  %2628 = vmatprep.subr.bf16.mxu0 %v3686_v46  ;;  %v3771_v45 = vld [vmem:[%s5212_s1 + $0x690] ss:$8 sps:$4 sm:$0xff]  }
  0xc9   :  { %2701 = vmatprep.subr.bf16.mxu1 %v3689_v47  ;;  %v3774_v46 = vld [vmem:[%s5212_s1 + $0x790] ss:$8 sps:$4 sm:$0xff]   ;;  %v377_v47 = vshrl.u32 %v376_v42, 7 }
  0xca   :  { %2521 = vmatmul.mubr.bf16.gmra.mxu0 %v3683_v48  ;;  %v3779_v48 = vld [vmem:[%s5212_s1 + $0x684] ss:$8 sps:$4 sm:$0xff]  }
  0xcb   :  { %2594 = vmatmul.mubr.bf16.gmra.mxu1 %v3692_v50  ;;  %2629 = vmatpush1.bf16.msra.mxu0 %v3684_v49  ;;  %v3782_v49 = vld [vmem:[%s5212_s1 + $0x784] ss:$8 sps:$4 sm:$0xff]   ;;  %v3777_v50 = vld [vmem:[%s5212_s1 + $0x680] ss:$8 sps:$4 sm:$0xff]  }
  0xcc   :  { %2702 = vmatpush1.bf16.msra.mxu1 %v3687_v51  ;;  %2630 = vmatprep.subr.bf16.mxu0 %v3695_v52  ;;  %v3780_v51 = vld [vmem:[%s5212_s1 + $0x780] ss:$8 sps:$4 sm:$0xff]   ;;  %v378_v52 = vsub.s32 0, %v377_v47 }
  0xcd   :  { %2703 = vmatprep.subr.bf16.mxu1 %v3698_v53  ;;  %2530 = vmatprep.mubr.bf16.mxu0 %v3699_v54  ;;  %v374_v53 = vld [vmem:[%s5214_s2] sm:$0x3]  ;;  %v3791_v54 = vld [vmem:[%s5212_s1 + $0x874] ss:$8 sps:$4 sm:$0xff]  }
  0xce   :  { %2603 = vmatprep.mubr.bf16.mxu1 %v3708_v55  ;;  %v382_v55 = vsub.s32 1, %v377_v47 }
  0xcf   :  { %2631 = vmatpush1.bf16.msra.mxu0 %v3693_v56  ;;  %v3783_v56 = vld [vmem:[%s5213_s0 + $0x30] ss:$72 sps:$4 sm:$0xff]  }
  0xd0   :  { %2704 = vmatpush1.bf16.msra.mxu1 %v3696_v57  ;;  %2632 = vmatprep.subr.bf16.mxu0 %v3704_v59  ;;  %v3786_v57 = vld [vmem:[%s5213_s0 + $0x38] ss:$72 sps:$4 sm:$0xff]  }
  0xd1   :  { %2705 = vmatprep.subr.bf16.mxu1 %v3707_v60  ;;  %v3789_v59 = vld [vmem:[%s5212_s1 + $0x870] ss:$8 sps:$4 sm:$0xff]   ;;  %v3794_v60 = vld [vmem:[%s5212_s1 + $0x864] ss:$8 sps:$4 sm:$0xff]  }
  0xd2   :  { %2531 = vmatmul.mubr.bf16.gmra.mxu0 %v3701_v58  ;;  %v4817_v58 = vrot.slane %v374_v53, %v378_v52  ;;  %v3824_v52 = vld [vmem:[%s5212_s1 + $0x814] ss:$8 sps:$4 sm:$0xff]  }
  0xd3   :  { %2604 = vmatmul.mubr.bf16.gmra.mxu1 %v3710_v62  ;;  %2633 = vmatpush1.bf16.msra.mxu0 %v3702_v61  ;;  %v4825_v61 = vrot.slane %v374_v53, %v382_v55  ;;  %v3795_v62 = vld [vmem:[%s5213_s0 + $0xc4] ss:$72 sps:$4 sm:$0xff]  }
  0xd4   :  { %2706 = vmatpush1.bf16.msra.mxu1 %v3705_v63  ;;  %2634 = vmatprep.subr.bf16.mxu0 %v3713_v0  ;;  %v3801_v63 = vld [vmem:[%s5213_s0 + $0xcc] ss:$72 sps:$4 sm:$0xff]  }
  0xd5   :  { %2707 = vmatprep.subr.bf16.mxu1 %v3716_v1  ;;  %2540 = vmatprep.mubr.bf16.mxu0 %v3717_v2 }
  0xd6   :  { %2613 = vmatprep.mubr.bf16.mxu1 %v3726_v3  ;;  %v3792_v3 = vld [vmem:[%s5212_s1 + $0x860] ss:$8 sps:$4 sm:$0xff]  }
  0xd7   :  { %2635 = vmatpush1.bf16.msra.mxu0 %v3711_v4 }
  0xd8   :  { %2708 = vmatpush1.bf16.msra.mxu1 %v3714_v5  ;;  %2636 = vmatprep.subr.bf16.mxu0 %v3722_v7 }
  0xd9   :  { %2709 = vmatprep.subr.bf16.mxu1 %v3725_v8 }
  0xda   :  { %2541 = vmatmul.mubr.bf16.gmra.mxu0 %v3719_v6  ;;  %v3800_v6 = vld [vmem:[%s5212_s1 + $0x854] ss:$8 sps:$4 sm:$0xff]  }
  0xdb   :  { %2614 = vmatmul.mubr.bf16.gmra.mxu1 %v3728_v10  ;;  %2637 = vmatpush1.bf16.msra.mxu0 %v3720_v9 }
  0xdc   :  { %2710 = vmatpush1.bf16.msra.mxu1 %v3723_v11  ;;  %2638 = vmatprep.subr.bf16.mxu0 %v3731_v12  ;;  %v3797_v11 = vld [vmem:[%s5213_s0 + $0xc0] ss:$72 sps:$4 sm:$0xff]  }
  0xdd   :  { %2711 = vmatprep.subr.bf16.mxu1 %v3734_v13  ;;  %2656 = vmatprep.mubr.bf16.mxu0 %v3785_v14  ;;  %v3803_v12 = vld [vmem:[%s5213_s0 + $0xc8] ss:$72 sps:$4 sm:$0xff]  }
  0xde   :  { %2729 = vmatprep.mubr.bf16.mxu1 %v3788_v15  ;;  %v3798_v15 = vld [vmem:[%s5212_s1 + $0x850] ss:$8 sps:$4 sm:$0xff]  }
  0xdf   :  { %2639 = vmatpush1.bf16.msra.mxu0 %v3729_v16 }
  0xe0   :  { %2712 = vmatpush1.bf16.msra.mxu1 %v3732_v17  ;;  %2640 = vmatprep.subr.bf16.mxu0 %v3737_v18  ;;  %v3806_v18 = vld [vmem:[%s5212_s1 + $0x844] ss:$8 sps:$4 sm:$0xff]  }
  0xe1   :  { %2713 = vmatprep.subr.bf16.mxu1 %v3740_v19 }
  0xe3   :  { %2641 = vmatpush2.bf16.msra.mxu0 %v3735_v20 }
  0xe4   :  { %2714 = vmatpush2.bf16.msra.mxu1 %v3738_v21  ;;  %2642 = vmatprep.subr.bf16.mxu0 %v3743_v22  ;;  %v3807_v21 = vld [vmem:[%s5213_s0 + $0x154] ss:$72 sps:$4 sm:$0xff]  }
  0xe5   :  { %2715 = vmatprep.subr.bf16.mxu1 %v3746_v23  ;;  %v3813_v22 = vld [vmem:[%s5213_s0 + $0x15c] ss:$72 sps:$4 sm:$0xff]  }
  0xe7   :  { %2643 = vmatpush2.bf16.msra.mxu0 %v3741_v24 }
  0xe8   :  { %2716 = vmatpush2.bf16.msra.mxu1 %v3744_v25  ;;  %2644 = vmatprep.subr.bf16.mxu0 %v3749_v26  ;;  %v3804_v26 = vld [vmem:[%s5212_s1 + $0x840] ss:$8 sps:$4 sm:$0xff]  }
  0xe9   :  { %2717 = vmatprep.subr.bf16.mxu1 %v3752_v27 }
  0xeb   :  { %2645 = vmatpush2.bf16.msra.mxu0 %v3747_v28  ;;  %v3812_v28 = vld [vmem:[%s5212_s1 + $0x834] ss:$8 sps:$4 sm:$0xff]  }
  0xec   :  { %2718 = vmatpush2.bf16.msra.mxu1 %v3750_v29  ;;  %2646 = vmatprep.subr.bf16.mxu0 %v3755_v30 }
  0xed   :  { %2719 = vmatprep.subr.bf16.mxu1 %v3758_v31 }
  0xef   :  { %2647 = vmatpush2.bf16.msra.mxu0 %v3753_v32 }
  0xf0   :  { %2720 = vmatpush2.bf16.msra.mxu1 %v3756_v33  ;;  %2648 = vmatprep.subr.bf16.mxu0 %v3761_v34  ;;  %v3809_v33 = vld [vmem:[%s5213_s0 + $0x150] ss:$72 sps:$4 sm:$0xff]  }
  0xf1   :  { %2721 = vmatprep.subr.bf16.mxu1 %v3764_v35  ;;  %v3815_v34 = vld [vmem:[%s5213_s0 + $0x158] ss:$72 sps:$4 sm:$0xff]  }
  0xf3   :  { %2649 = vmatpush2.bf16.msra.mxu0 %v3759_v36 }
  0xf4   :  { %2722 = vmatpush2.bf16.msra.mxu1 %v3762_v37  ;;  %2650 = vmatprep.subr.bf16.mxu0 %v3767_v38  ;;  %v3810_v37 = vld [vmem:[%s5212_s1 + $0x830] ss:$8 sps:$4 sm:$0xff]  }
  0xf5   :  { %2723 = vmatprep.subr.bf16.mxu1 %v3770_v39 }
  0xf7   :  { %2651 = vmatpush2.bf16.msra.mxu0 %v3765_v40  ;;  %v3818_v40 = vld [vmem:[%s5212_s1 + $0x824] ss:$8 sps:$4 sm:$0xff]  }
  0xf8   :  { %2724 = vmatpush2.bf16.msra.mxu1 %v3768_v41  ;;  %2652 = vmatprep.subr.bf16.mxu0 %v3773_v43  ;;  %v3819_v43 = vld [vmem:[%s5213_s0 + $0x1e4] ss:$72 sps:$4 sm:$0x3f]  }
  0xf9   :  { %2725 = vmatprep.subr.bf16.mxu1 %v3776_v44  ;;  %v3825_v44 = vld [vmem:[%s5213_s0 + $0x1ec] ss:$72 sps:$4 sm:$0x3f]  }
  0xfb   :  { %2653 = vmatpush2.bf16.msra.mxu0 %v3771_v45 }
  0xfc   :  { %2726 = vmatpush2.bf16.msra.mxu1 %v3774_v46  ;;  %2654 = vmatprep.subr.bf16.mxu0 %v3779_v48 }
  0xfd   :  { %2727 = vmatprep.subr.bf16.mxu1 %v3782_v49  ;;  %v3816_v49 = vld [vmem:[%s5212_s1 + $0x820] ss:$8 sps:$4 sm:$0xff]  }
  0xff   :  { %2655 = vmatpush2.bf16.msra.mxu0 %v3777_v50 }
 0x100   :  { %2728 = vmatpush2.bf16.msra.mxu1 %v3780_v51  ;;  %2770 = vmatprep.subr.bf16.mxu0 %v3791_v54 }
 0x101   :  { %3295 = vmatprep.subr.bf16.mxu1 %v3791_v54 }
 0x102   :  { %v2220_v0 = vpop.f32.mrf.mxu0  ;;  %2657 = vmatmul.mubr.bf16.vlgmr.msra.gmra.mxu0 %v3783_v56 }
 0x103   :  { %v2293_v1 = vpop.f32.mrf.mxu1  ;;  %2730 = vmatmul.mubr.bf16.vlgmr.msra.gmra.mxu1 %v3786_v57  ;;  %v2221_v2 = vadd.f32 %v2220_v0, %v4817_v58  ;;  %2771 = vmatpush1.bf16.msra.mxu0 %v3789_v59  ;;  %v3821_v57 = vld [vmem:[%s5213_s0 + $0x1e0] ss:$72 sps:$4 sm:$0x3f]  }
 0x104   :  { %3311 = vmatpush1.bf16.msra.mxu1 %v3789_v59  ;;  %v2222_v4 = vpop.f32.mrf.mxu0  ;;  %2772 = vmatprep.subr.bf16.mxu0 %v3794_v60  ;;  %v3827_v59 = vld [vmem:[%s5213_s0 + $0x1e8] ss:$72 sps:$4 sm:$0x3f]  }
 0x105   :  { %v2295_v5 = vpop.f32.mrf.mxu1  ;;  %3296 = vmatprep.subr.bf16.mxu1 %v3794_v60  ;;  %v4840_v7 = vadd.f32 %v2293_v1, %v2221_v2  ;;  %v2223_v8 = vadd.f32 %v2222_v4, %v4825_v61  ;;  %2666 = vmatprep.mubr.bf16.mxu0 %v3795_v62  ;;  %v3830_v2 = vld [vmem:[%s5212_s1 + $0x804] ss:$8 sps:$4 sm:$0xff]  }
 0x106   :  { %2739 = vmatprep.mubr.bf16.mxu1 %v3801_v63  ;;  %v2224_v9 = vpop.f32.mrf.mxu0  ;;  %v3822_v63 = vld [vmem:[%s5212_s1 + $0x810] ss:$8 sps:$4 sm:$0xff]  }
 0x107   :  { %v2297_v10 = vpop.f32.mrf.mxu1  ;;  %v4849_v13 = vadd.f32 %v2295_v5, %v2223_v8  ;;  %v2225_v14 = vadd.f32 %v2224_v9, %v4817_v58  ;;  %2773 = vmatpush1.bf16.msra.mxu0 %v3792_v3  ;;  %v3857_v8 = vld [vmem:[%s5213_s0 + $0x44] ss:$72 sps:$4 sm:$0xff]  }
 0x108   :  { %3312 = vmatpush1.bf16.msra.mxu1 %v3792_v3  ;;  %v2226_v16 = vpop.f32.mrf.mxu0  ;;  %2774 = vmatprep.subr.bf16.mxu0 %v3800_v6  ;;  %v3860_v9 = vld [vmem:[%s5213_s0 + $0x164] ss:$72 sps:$4 sm:$0xff]  }
 0x109   :  { %v2299_v17 = vpop.f32.mrf.mxu1  ;;  %3297 = vmatprep.subr.bf16.mxu1 %v3800_v6  ;;  %v4858_v19 = vadd.f32 %v2297_v10, %v2225_v14  ;;  %v2227_v20 = vadd.f32 %v2226_v16, %v4825_v61  ;;  %v3833_v16 = vld [vmem:[%s5212_s1 + $0x8f4] ss:$8 sps:$4 sm:$0xff]  }
 0x10a   :  { %2667 = vmatmul.mubr.bf16.gmra.mxu0 %v3797_v11  ;;  %v2230_v23 = vpop.f32.mrf.mxu0 }
 0x10b   :  { %2740 = vmatmul.mubr.bf16.gmra.mxu1 %v3803_v12  ;;  %v2303_v24 = vpop.f32.mrf.mxu1  ;;  %v4867_v25 = vadd.f32 %v2299_v17, %v2227_v20  ;;  %2775 = vmatpush1.bf16.msra.mxu0 %v3798_v15  ;;  %v2231_v27 = vadd.f32 %v2230_v23, %v4817_v58  ;;  %v3828_v12 = vld [vmem:[%s5212_s1 + $0x800] ss:$8 sps:$4 sm:$0xff]  }
 0x10c   :  { %3313 = vmatpush1.bf16.msra.mxu1 %v3798_v15  ;;  %2776 = vmatprep.subr.bf16.mxu0 %v3806_v18  ;;  %v2232_v29 = vpop.f32.mrf.mxu0 }
 0x10d   :  { %3298 = vmatprep.subr.bf16.mxu1 %v3806_v18  ;;  %v2305_v30 = vpop.f32.mrf.mxu1  ;;  %2676 = vmatprep.mubr.bf16.mxu0 %v3807_v21  ;;  %v2233_v31 = vadd.f32 %v2232_v29, %v4825_v61  ;;  %v4877_v32 = vadd.f32 %v2303_v24, %v2231_v27  ;;  %v3831_v24 = vld [vmem:[%s5212_s1 + $0x8f0] ss:$8 sps:$4 sm:$0xff]  }
 0x10e   :  { %2749 = vmatprep.mubr.bf16.mxu1 %v3813_v22  ;;  %v2234_v35 = vpop.f32.mrf.mxu0 }
 0x10f   :  { %v2307_v36 = vpop.f32.mrf.mxu1  ;;  %2777 = vmatpush1.bf16.msra.mxu0 %v3804_v26  ;;  %v2235_v38 = vadd.f32 %v2234_v35, %v4817_v58  ;;  %v4889_v39 = vadd.f32 %v2305_v30, %v2233_v31  ;;  %v3839_v35 = vld [vmem:[%s5212_s1 + $0x8d4] ss:$8 sps:$4 sm:$0xff]  }
 0x110   :  { %3314 = vmatpush1.bf16.msra.mxu1 %v3804_v26  ;;  %2778 = vmatprep.subr.bf16.mxu0 %v3812_v28  ;;  %v2236_v41 = vpop.f32.mrf.mxu0 }
 0x111   :  { %3299 = vmatprep.subr.bf16.mxu1 %v3812_v28  ;;  %v2309_v42 = vpop.f32.mrf.mxu1  ;;  %v2237_v45 = vadd.f32 %v2236_v41, %v4825_v61  ;;  %v4901_v46 = vadd.f32 %v2307_v36, %v2235_v38  ;;  %v3836_v28 = vld [vmem:[%s5212_s1 + $0x8e4] ss:$8 sps:$4 sm:$0xff]   ;;  %v3845_v38 = vld [vmem:[%s5212_s1 + $0x8b4] ss:$8 sps:$4 sm:$0xff]  }
 0x112   :  { %2677 = vmatmul.mubr.bf16.gmra.mxu0 %v3809_v33  ;;  %v2240_v47 = vpop.f32.mrf.mxu0  ;;  %v3842_v36 = vld [vmem:[%s5212_s1 + $0x8c4] ss:$8 sps:$4 sm:$0xff]  }
 0x113   :  { %2750 = vmatmul.mubr.bf16.gmra.mxu1 %v3815_v34  ;;  %v2313_v48 = vpop.f32.mrf.mxu1  ;;  %2779 = vmatpush1.bf16.msra.mxu0 %v3810_v37  ;;  %v2241_v50 = vadd.f32 %v2240_v47, %v4817_v58  ;;  %v4907_v51 = vadd.f32 %v2309_v42, %v2237_v45  ;;  %v3848_v41 = vld [vmem:[%s5212_s1 + $0x8a4] ss:$8 sps:$4 sm:$0xff]   ;;  %v3846_v42 = vld [vmem:[%s5212_s1 + $0x8a0] ss:$8 sps:$4 sm:$0xff]  }
 0x114   :  { %3315 = vmatpush1.bf16.msra.mxu1 %v3810_v37  ;;  %2780 = vmatprep.subr.bf16.mxu0 %v3818_v40  ;;  %v2242_v53 = vpop.f32.mrf.mxu0  ;;  %v3840_v37 = vld [vmem:[%s5212_s1 + $0x8c0] ss:$8 sps:$4 sm:$0xff]   ;;  %v3854_v45 = vld [vmem:[%s5212_s1 + $0x884] ss:$8 sps:$4 sm:$0xff]  }
 0x115   :  { %3300 = vmatprep.subr.bf16.mxu1 %v3818_v40  ;;  %v2315_v54 = vpop.f32.mrf.mxu1  ;;  %2686 = vmatprep.mubr.bf16.mxu0 %v3819_v43  ;;  %v2243_v55 = vadd.f32 %v2242_v53, %v4825_v61  ;;  %v4913_v56 = vadd.f32 %v2313_v48, %v2241_v50  ;;  %v3843_v40 = vld [vmem:[%s5212_s1 + $0x8b0] ss:$8 sps:$4 sm:$0xff]   ;;  %v3851_v43 = vld [vmem:[%s5212_s1 + $0x894] ss:$8 sps:$4 sm:$0xff]   ;;  %v3852_v47 = vld [vmem:[%s5212_s1 + $0x880] ss:$8 sps:$4 sm:$0xff]  }
 0x116   :  { %2759 = vmatprep.mubr.bf16.mxu1 %v3825_v44  ;;  %v2244_v60 = vpop.f32.mrf.mxu0  ;;  %v3849_v44 = vld [vmem:[%s5212_s1 + $0x890] ss:$8 sps:$4 sm:$0xff]   ;;  %v3855_v48 = vld [vmem:[%s5213_s0 + $0x40] ss:$72 sps:$4 sm:$0xff]   ;;  %v3861_v50 = vld [vmem:[%s5213_s0 + $0xd4] ss:$72 sps:$4 sm:$0xff]  }
 0x117   :  { %v2317_v62 = vpop.f32.mrf.mxu1  ;;  %2781 = vmatpush1.bf16.msra.mxu0 %v3816_v49  ;;  %v2245_v0 = vadd.f32 %v2244_v60, %v4817_v58  ;;  %v4925_v1 = vadd.f32 %v2315_v54, %v2243_v55 }
 0x118   :  { %3316 = vmatpush1.bf16.msra.mxu1 %v3816_v49  ;;  %2782 = vmatprep.subr.bf16.mxu0 %v3824_v52  ;;  %v2246_v3 = vpop.f32.mrf.mxu0  ;;  %v3858_v49 = vld [vmem:[%s5213_s0 + $0x160] ss:$72 sps:$4 sm:$0xff]  }
 0x119   :  { %3301 = vmatprep.subr.bf16.mxu1 %v3824_v52  ;;  %v2319_v4 = vpop.f32.mrf.mxu1  ;;  %v2247_v5 = vadd.f32 %v2246_v3, %v4825_v61  ;;  %v4931_v6 = vadd.f32 %v2317_v62, %v2245_v0  ;;  %v3863_v52 = vld [vmem:[%s5213_s0 + $0x1f4] ss:$72 sps:$4 sm:$0x3f]   ;;  %v3866_v3 = vld [vmem:[%s5213_s0 + $0x1f0] ss:$72 sps:$4 sm:$0x3f]  }
 0x11a   :  { %2687 = vmatmul.mubr.bf16.gmra.mxu0 %v3821_v57  ;;  %v2250_v10 = vpop.f32.mrf.mxu0 }
 0x11b   :  { %2760 = vmatmul.mubr.bf16.gmra.mxu1 %v3827_v59  ;;  %v2323_v11 = vpop.f32.mrf.mxu1  ;;  %2783 = vmatpush1.bf16.msra.mxu0 %v3822_v63  ;;  %v2251_v14 = vadd.f32 %v2250_v10, %v4817_v58  ;;  %v4943_v15 = vadd.f32 %v2319_v4, %v2247_v5 }
 0x11c   :  { %3317 = vmatpush1.bf16.msra.mxu1 %v3822_v63  ;;  %2784 = vmatprep.subr.bf16.mxu0 %v3830_v2  ;;  %v2252_v17 = vpop.f32.mrf.mxu0 }
 0x11d   :  { %3302 = vmatprep.subr.bf16.mxu1 %v3830_v2  ;;  %v2325_v18 = vpop.f32.mrf.mxu1  ;;  %v2253_v20 = vadd.f32 %v2252_v17, %v4825_v61  ;;  %v4949_v21 = vadd.f32 %v2323_v11, %v2251_v14  ;;  %2802 = vmatprep.mubr.bf16.mxu0 %v3857_v8  ;;  %v3865_v2 = vld [vmem:[%s5213_s0 + $0xd0] ss:$72 sps:$4 sm:$0xff]  }
 0x11e   :  { %2822 = vmatprep.mubr.bf16.mxu1 %v3860_v9  ;;  %v2254_v22 = vpop.f32.mrf.mxu0 }
 0x11f   :  { %v2327_v23 = vpop.f32.mrf.mxu1  ;;  %2785 = vmatpush1.bf16.msra.mxu0 %v3828_v12  ;;  %v2255_v26 = vadd.f32 %v2254_v22, %v4817_v58  ;;  %v4955_v27 = vadd.f32 %v2325_v18, %v2253_v20  ;;  %v3834_v58 = vld [vmem:[%s5212_s1 + $0x8e0] ss:$8 sps:$4 sm:$0xff]  }
 0x120   :  { %3318 = vmatpush1.bf16.msra.mxu1 %v3828_v12  ;;  %2786 = vmatprep.subr.bf16.mxu0 %v3833_v16  ;;  %v2256_v29 = vpop.f32.mrf.mxu0 }
 0x121   :  { %3303 = vmatprep.subr.bf16.mxu1 %v3833_v16  ;;  %v2329_v30 = vpop.f32.mrf.mxu1  ;;  %v2257_v31 = vadd.f32 %v2256_v29, %v4825_v61  ;;  %v4961_v33 = vadd.f32 %v2327_v23, %v2255_v26  ;;  %v3837_v61 = vld [vmem:[%s5212_s1 + $0x8d0] ss:$8 sps:$4 sm:$0xff]  }
 0x123   :  { %2787 = vmatpush2.bf16.msra.mxu0 %v3831_v24  ;;  %v4966_v34 = vadd.f32 %v2329_v30, %v2257_v31 }
 0x124   :  { %3319 = vmatpush2.bf16.msra.mxu1 %v3831_v24  ;;  %2788 = vmatprep.subr.bf16.mxu0 %v3836_v28 }
 0x125   :  { %3304 = vmatprep.subr.bf16.mxu1 %v3836_v28 }
 0x127   :  { %2789 = vmatpush2.bf16.msra.mxu0 %v3834_v58 }
 0x128   :  { %3320 = vmatpush2.bf16.msra.mxu1 %v3834_v58  ;;  %2790 = vmatprep.subr.bf16.mxu0 %v3839_v35 }
 0x129   :  { %3305 = vmatprep.subr.bf16.mxu1 %v3839_v35 }
 0x12b   :  { %2791 = vmatpush2.bf16.msra.mxu0 %v3837_v61 }
 0x12c   :  { %3321 = vmatpush2.bf16.msra.mxu1 %v3837_v61  ;;  %2792 = vmatprep.subr.bf16.mxu0 %v3842_v36 }
 0x12d   :  { %3306 = vmatprep.subr.bf16.mxu1 %v3842_v36 }
 0x12f   :  { %2793 = vmatpush2.bf16.msra.mxu0 %v3840_v37 }
 0x130   :  { %3322 = vmatpush2.bf16.msra.mxu1 %v3840_v37  ;;  %2794 = vmatprep.subr.bf16.mxu0 %v3845_v38 }
 0x131   :  { %3307 = vmatprep.subr.bf16.mxu1 %v3845_v38 }
 0x133   :  { %2795 = vmatpush2.bf16.msra.mxu0 %v3843_v40 }
 0x134   :  { %3323 = vmatpush2.bf16.msra.mxu1 %v3843_v40  ;;  %2796 = vmatprep.subr.bf16.mxu0 %v3848_v41 }
 0x135   :  { %3308 = vmatprep.subr.bf16.mxu1 %v3848_v41 }
 0x137   :  { %2797 = vmatpush2.bf16.msra.mxu0 %v3846_v42 }
 0x138   :  { %3324 = vmatpush2.bf16.msra.mxu1 %v3846_v42  ;;  %2798 = vmatprep.subr.bf16.mxu0 %v3851_v43 }
 0x139   :  { %3309 = vmatprep.subr.bf16.mxu1 %v3851_v43 }
 0x13b   :  { %2799 = vmatpush2.bf16.msra.mxu0 %v3849_v44 }
 0x13c   :  { %3325 = vmatpush2.bf16.msra.mxu1 %v3849_v44  ;;  %2800 = vmatprep.subr.bf16.mxu0 %v3854_v45 }
 0x13d   :  { %3310 = vmatprep.subr.bf16.mxu1 %v3854_v45 }
 0x13f   :  { %2801 = vmatpush2.bf16.msra.mxu0 %v3852_v47 }
 0x140   :  { %3326 = vmatpush2.bf16.msra.mxu1 %v3852_v47 }
 0x142   :  { %v2366_v53 = vpop.f32.mrf.mxu0  ;;  %2803 = vmatmul.mubr.bf16.vlgmr.msra.gmra.mxu0 %v3855_v48 }
 0x143   :  { %v2439_v54 = vpop.f32.mrf.mxu1  ;;  %2823 = vmatmul.mubr.bf16.vlgmr.msra.gmra.mxu1 %v3858_v49  ;;  %v2367_v55 = vadd.f32 %v2366_v53, %v4840_v7  ;;  %2812 = vmatprep.mubr.bf16.mxu0 %v3861_v50 }
 0x144   :  { %2832 = vmatprep.mubr.bf16.mxu1 %v3863_v52  ;;  %v2368_v57 = vpop.f32.mrf.mxu0 }
 0x145   :  { %v2441_v59 = vpop.f32.mrf.mxu1  ;;  %v5017_v60 = vadd.f32 %v2439_v54, %v2367_v55  ;;  %v2369_v62 = vadd.f32 %v2368_v57, %v4849_v13 }
 0x146   :  { %v2370_v63 = vpop.f32.mrf.mxu0 }
 0x147   :  { %v2443_v0 = vpop.f32.mrf.mxu1  ;;  %v5026_v4 = vadd.f32 %v2441_v59, %v2369_v62  ;;  %v2371_v7 = vadd.f32 %v2370_v63, %v4858_v19 }
 0x148   :  { %v2372_v5 = vpop.f32.mrf.mxu0 }
 0x149   :  { %v2445_v8 = vpop.f32.mrf.mxu1  ;;  %v5029_v9 = vadd.f32 %v2443_v0, %v2371_v7  ;;  %v2373_v13 = vadd.f32 %v2372_v5, %v4867_v25 }
 0x14a   :  { %v2376_v10 = vpop.f32.mrf.mxu0  ;;  %2813 = vmatmul.mubr.bf16.gmra.mxu0 %v3865_v2 }
 0x14b   :  { %2833 = vmatmul.mubr.bf16.gmra.mxu1 %v3866_v3  ;;  %v2449_v11 = vpop.f32.mrf.mxu1  ;;  %v5032_v12 = vadd.f32 %v2445_v8, %v2373_v13  ;;  %v2377_v14 = vadd.f32 %v2376_v10, %v4877_v32 }
 0x14c   :  { %v2378_v16 = vpop.f32.mrf.mxu0 }
 0x14d   :  { %v2451_v17 = vpop.f32.mrf.mxu1  ;;  %v2379_v18 = vadd.f32 %v2378_v16, %v4889_v39  ;;  %v5036_v20 = vadd.f32 %v2449_v11, %v2377_v14 }
 0x14e   :  { %v2380_v19 = vpop.f32.mrf.mxu0 }
 0x14f   :  { %v2453_v22 = vpop.f32.mrf.mxu1  ;;  %v2381_v23 = vadd.f32 %v2380_v19, %v4901_v46  ;;  %v5039_v24 = vadd.f32 %v2451_v17, %v2379_v18 }
 0x150   :  { %v2382_v25 = vpop.f32.mrf.mxu0 }
 0x151   :  { %v2455_v26 = vpop.f32.mrf.mxu1  ;;  %v2383_v28 = vadd.f32 %v2382_v25, %v4907_v51  ;;  %v5042_v29 = vadd.f32 %v2453_v22, %v2381_v23 }
 0x152   :  { %v2386_v30 = vpop.f32.mrf.mxu0 }
 0x153   :  { %v2459_v32 = vpop.f32.mrf.mxu1  ;;  %v2387_v31 = vadd.f32 %v2386_v30, %v4913_v56  ;;  %v5045_v58 = vadd.f32 %v2455_v26, %v2383_v28 }
 0x154   :  { %v2388_v39 = vpop.f32.mrf.mxu0 }
 0x155   :  { %v2461_v35 = vpop.f32.mrf.mxu1  ;;  %v2389_v61 = vadd.f32 %v2388_v39, %v4925_v1  ;;  %v5048_v36 = vadd.f32 %v2459_v32, %v2387_v31 }
 0x156   :  { %v2390_v46 = vpop.f32.mrf.mxu0 }
 0x157   :  { %v2463_v37 = vpop.f32.mrf.mxu1  ;;  %v2391_v38 = vadd.f32 %v2390_v46, %v4931_v6  ;;  %v5051_v40 = vadd.f32 %v2461_v35, %v2389_v61 }
 0x158   :  { %v2392_v51 = vpop.f32.mrf.mxu0 }
 0x159   :  { %v2465_v41 = vpop.f32.mrf.mxu1  ;;  %v2393_v42 = vadd.f32 %v2392_v51, %v4943_v15  ;;  %v5054_v43 = vadd.f32 %v2463_v37, %v2391_v38 }
 0x15a   :  { %v2396_v56 = vpop.f32.mrf.mxu0 }
 0x15b   :  { %v2469_v44 = vpop.f32.mrf.mxu1  ;;  %v2397_v45 = vadd.f32 %v2396_v56, %v4949_v21  ;;  %v5057_v47 = vadd.f32 %v2465_v41, %v2393_v42 }
 0x15c   :  { %v2398_v1 = vpop.f32.mrf.mxu0 }
 0x15d   :  { %v2471_v48 = vpop.f32.mrf.mxu1  ;;  %v2399_v49 = vadd.f32 %v2398_v1, %v4955_v27  ;;  %v5060_v50 = vadd.f32 %v2469_v44, %v2397_v45 }
 0x15e   :  { %v2400_v6 = vpop.f32.mrf.mxu0 }
 0x15f   :  { %v2473_v52 = vpop.f32.mrf.mxu1  ;;  %v2401_v53 = vadd.f32 %v2400_v6, %v4961_v33  ;;  %v5063_v54 = vadd.f32 %v2471_v48, %v2399_v49 }
 0x160   :  { %v2402_v15 = vpop.f32.mrf.mxu0 }
 0x161   :  { %v2475_v55 = vpop.f32.mrf.mxu1  ;;  %v2403_v57 = vadd.f32 %v2402_v15, %v4966_v34  ;;  %v5066_v59 = vadd.f32 %v2473_v52, %v2401_v53 }
 0x163   :  { %v5068_v21 = vadd.f32 %v2475_v55, %v2403_v57 }
 0x165   :  { %5216 = vst [vmem:[#allocation2_spill] sm:$0xff] %v5068_v21 }
 0x182   :  { %v2512_v62 = vpop.f32.mrf.mxu0 }
 0x183   :  { %v5070_v63 = vpop.f32.mrf.mxu1 }
 0x184   :  { %v2514_v27 = vpop.f32.mrf.mxu0 }
 0x185   :  { %v5072_v0 = vpop.f32.mrf.mxu1 }
 0x186   :  { %v2516_v2 = vpop.f32.mrf.mxu0 }
 0x187   :  { %v5074_v3 = vpop.f32.mrf.mxu1 }
 0x188   :  { %v2518_v33 = vpop.f32.mrf.mxu0 }
 0x189   :  { %v5076_v7 = vpop.f32.mrf.mxu1 }
 0x18a   :  { %v2522_v5 = vpop.f32.mrf.mxu0 }
 0x18b   :  { %v5078_v8 = vpop.f32.mrf.mxu1 }
 0x18c   :  { %v2524_v34 = vpop.f32.mrf.mxu0 }
 0x18d   :  { %v5080_v13 = vpop.f32.mrf.mxu1  ;;  %v2525_v21 = vadd.f32 %v2524_v34, %v5039_v24 }
 0x18e   :  { %v2526_v10 = vpop.f32.mrf.mxu0 }
 0x18f   :  { %v5082_v11 = vpop.f32.mrf.mxu1 }
 0x190   :  { %v2528_v14 = vpop.f32.mrf.mxu0 }
 0x191   :  { %v5084_v16 = vpop.f32.mrf.mxu1 }
 0x192   :  { %v2532_v17 = vpop.f32.mrf.mxu0 }
 0x193   :  { %v2605_v18 = vpop.f32.mrf.mxu1 }
 0x194   :  { %v2534_v19 = vpop.f32.mrf.mxu0 }
 0x195   :  { %v2607_v22 = vpop.f32.mrf.mxu1 }
 0x196   :  { %v2536_v23 = vpop.f32.mrf.mxu0 }
 0x197   :  { %v5086_v25 = vpop.f32.mrf.mxu1 }
 0x198   :  { %v2538_v26 = vpop.f32.mrf.mxu0 }
 0x199   :  { %v5088_v28 = vpop.f32.mrf.mxu1 }
 0x19a   :  { %5217 = vst [vmem:[#allocation3_spill] sm:$0xff] %v5088_v28  ;;  %v2542_v30 = vpop.f32.mrf.mxu0 }
 0x19b   :  { %v5090_v32 = vpop.f32.mrf.mxu1  ;;  %v2543_v24 = vadd.f32 %v2542_v30, %v5060_v50 }
 0x19c   :  { %5218 = vst [vmem:[#allocation4_spill] sm:$0xff] %v5090_v32  ;;  %v2544_v31 = vpop.f32.mrf.mxu0 }
 0x19d   :  { %v5092_v39 = vpop.f32.mrf.mxu1 }
 0x19e   :  { %5219 = vst [vmem:[#allocation5_spill] sm:$0xff] %v5092_v39  ;;  %v5094_v35 = vpop.f32.mrf.mxu0 }
 0x19f   :  { %v5096_v61 = vpop.f32.mrf.mxu1  ;;  %v2547_v50 = vadd.f32 %v5094_v35, %v5066_v59 }
 0x1a0   :  { %5220 = vst [vmem:[#allocation6_spill] sm:$0xff] %v5096_v61  ;;  %v2548_v46 = vpop.f32.mrf.mxu0 }
 0x1a1   :  { %v5098_v37 = vpop.f32.mrf.mxu1 }
 0x1a2   :  { %5221 = vst [vmem:[#allocation7_spill] sm:$0xff] %v5098_v37 }
 0x1c2   :  { %v2658_v38 = vpop.f32.mrf.mxu0 }
 0x1c3   :  { %v5100_v51 = vpop.f32.mrf.mxu1 }
 0x1c4   :  { %5222 = vst [vmem:[#allocation8_spill] sm:$0xff] %v5100_v51  ;;  %v2660_v41 = vpop.f32.mrf.mxu0  ;;  %v2535_v51 = vadd.f32 %v2534_v19, %v5051_v40 }
 0x1c5   :  { %v5102_v42 = vpop.f32.mrf.mxu1 }
 0x1c6   :  { %5223 = vst [vmem:[#allocation9_spill] sm:$0xff] %v5102_v42  ;;  %v2662_v56 = vpop.f32.mrf.mxu0 }
 0x1c7   :  { %v5104_v44 = vpop.f32.mrf.mxu1 }
 0x1c8   :  { %5224 = vst [vmem:[#allocation10_spill] sm:$0xff] %v5104_v44  ;;  %v5106_v45 = vpop.f32.mrf.mxu0 }
 0x1c9   :  { %5225 = vst [vmem:[#allocation11_spill] sm:$0xff] %v5106_v45  ;;  %v5108_v1 = vpop.f32.mrf.mxu1 }
 0x1ca   :  { %5226 = vst [vmem:[#allocation12_spill] sm:$0xff] %v5108_v1  ;;  %v2668_v48 = vpop.f32.mrf.mxu0 }
 0x1cb   :  { %v5110_v49 = vpop.f32.mrf.mxu1 }
 0x1cc   :  { %5227 = vst [vmem:[#allocation13_spill] sm:$0xff] %v5110_v49  ;;  %v5112_v6 = vpop.f32.mrf.mxu0 }
 0x1cd   :  { %5228 = vst [vmem:[#allocation14_spill] sm:$0xff] %v5112_v6  ;;  %v5114_v52 = vpop.f32.mrf.mxu1 }
 0x1ce   :  { %5229 = vst [vmem:[#allocation15_spill] sm:$0xff] %v5114_v52  ;;  %v5116_v53 = vpop.f32.mrf.mxu0 }
 0x1cf   :  { %5230 = vst [vmem:[#allocation16_spill] sm:$0xff] %v5116_v53  ;;  %v5118_v15 = vpop.f32.mrf.mxu1  ;;  %v2513_v53 = vadd.f32 %v2512_v62, %v5017_v60  ;;  %v2527_v60 = vadd.f32 %v2526_v10, %v5042_v29  ;;  %v2537_v62 = vadd.f32 %v2536_v23, %v5054_v43  ;;  %v5241_v23 = vld [vmem:[#allocation5_spill] sm:$0xff] }
 0x1d0   :  { %5231 = vst [vmem:[#allocation17_spill] sm:$0xff] %v5118_v15  ;;  %v5120_v55 = vpop.f32.mrf.mxu0  ;;  %v2533_v15 = vadd.f32 %v2532_v17, %v5048_v36  ;;  %v2529_v36 = vadd.f32 %v2528_v14, %v5045_v58  ;;  %v5237_v14 = vld [vmem:[#allocation2_spill] sm:$0xff]  ;;  %v5242_v30 = vld [vmem:[#allocation11_spill] sm:$0xff] }
 0x1d1   :  { %5232 = vst [vmem:[#allocation18_spill] sm:$0xff] %v5120_v55  ;;  %v5122_v57 = vpop.f32.mrf.mxu1  ;;  %v2515_v55 = vadd.f32 %v2514_v27, %v5026_v4  ;;  %v2608_v27 = vadd.f32 %v2607_v22, %v2535_v51  ;;  %v2600_v43 = vadd.f32 %v5082_v11, %v2527_v60  ;;  %v2549_v17 = vadd.f32 %v2548_v46, %v5237_v14  ;;  %v5240_v11 = vld [vmem:[#allocation8_spill] sm:$0xff] }
 0x1d2   :  { %5233 = vst [vmem:[#allocation19_spill] sm:$0xff] %v5122_v57  ;;  %v2678_v44 = vpop.f32.mrf.mxu0  ;;  %v2517_v57 = vadd.f32 %v2516_v2, %v5029_v9  ;;  %v2606_v4 = vadd.f32 %v2605_v18, %v2533_v15 }
 0x1d3   :  { %v2751_v37 = vpop.f32.mrf.mxu1  ;;  %v2588_v9 = vadd.f32 %v5072_v0, %v2515_v55  ;;  %v2598_v0 = vadd.f32 %v5080_v13, %v2525_v21  ;;  %v5238_v21 = vld [vmem:[#allocation3_spill] sm:$0xff] }
 0x1d4   :  { %v2680_v61 = vpop.f32.mrf.mxu0  ;;  %v2590_v40 = vadd.f32 %v5074_v3, %v2517_v57  ;;  %v2679_v29 = vadd.f32 %v2678_v44, %v2606_v4  ;;  %v2545_v3 = vadd.f32 %v2544_v31, %v5063_v54  ;;  %v5239_v54 = vld [vmem:[#allocation4_spill] sm:$0xff]  ;;  %v5247_v60 = vld [vmem:[#allocation14_spill] sm:$0xff] }
 0x1d5   :  { %v2753_v42 = vpop.f32.mrf.mxu1  ;;  %v2661_v34 = vadd.f32 %v2660_v41, %v2588_v9  ;;  %v2681_v10 = vadd.f32 %v2680_v61, %v2608_v27  ;;  %v2616_v19 = vadd.f32 %v5239_v54, %v2543_v24  ;;  %v5243_v61 = vld [vmem:[#allocation9_spill] sm:$0xff]  ;;  %v5248_v9 = vld [vmem:[#allocation12_spill] sm:$0xff] }
 0x1d6   :  { %v2682_v1 = vpop.f32.mrf.mxu0 }
 0x1d7   :  { %v5124_v45 = vpop.f32.mrf.mxu1  ;;  %v2734_v46 = vadd.f32 %v5243_v61, %v2661_v34  ;;  %v5251_v34 = vld [vmem:[#allocation16_spill] sm:$0xff] }
 0x1d8   :  { %5234 = vst [vmem:[#allocation20_spill] sm:$0xff] %v5124_v45  ;;  %v2684_v49 = vpop.f32.mrf.mxu0  ;;  %v2519_v45 = vadd.f32 %v2518_v33, %v5032_v12 }
 0x1d9   :  { %v5126_v39 = vpop.f32.mrf.mxu1 }
 0x1da   :  { %5235 = vst [vmem:[#allocation21_spill] sm:$0xff] %v5126_v39  ;;  %v2688_v6 = vpop.f32.mrf.mxu0  ;;  %v2523_v39 = vadd.f32 %v2522_v5, %v5036_v20  ;;  %v2539_v20 = vadd.f32 %v2538_v26, %v5057_v47  ;;  %v2592_v58 = vadd.f32 %v5076_v7, %v2519_v45  ;;  %v2602_v5 = vadd.f32 %v5084_v16, %v2529_v36  ;;  %v5245_v45 = vld [vmem:[#allocation7_spill] sm:$0xff] }
 0x1db   :  { %v5128_v52 = vpop.f32.mrf.mxu1  ;;  %v2610_v47 = vadd.f32 %v5086_v25, %v2537_v62  ;;  %v2663_v7 = vadd.f32 %v2662_v56, %v2590_v40  ;;  %v2752_v16 = vadd.f32 %v2751_v37, %v2679_v29  ;;  %v2618_v26 = vadd.f32 %v5241_v23, %v2545_v3  ;;  %v5244_v56 = vld [vmem:[#allocation6_spill] sm:$0xff]  ;;  %v5249_v62 = vld [vmem:[#allocation13_spill] sm:$0xff] }
 0x1dc   :  { %5236 = vst [vmem:[#allocation22_spill] sm:$0xff] %v5128_v52  ;;  %v2690_v32 = vpop.f32.mrf.mxu0  ;;  %v2586_v52 = vadd.f32 %v5070_v63, %v2513_v53  ;;  %v2596_v33 = vadd.f32 %v5078_v8, %v2523_v39  ;;  %v2612_v13 = vadd.f32 %v5238_v21, %v2539_v20  ;;  %v2665_v25 = vadd.f32 %v5242_v30, %v2592_v58  ;;  %v5246_v53 = vld [vmem:[#allocation10_spill] sm:$0xff] }
 0x1dd   :  { %v5135_v28 = vpop.f32.mrf.mxu1  ;;  %v2683_v39 = vadd.f32 %v2682_v1, %v2610_v47  ;;  %v2620_v44 = vadd.f32 %v5244_v56, %v2547_v50  ;;  %v2736_v15 = vadd.f32 %v5246_v53, %v2663_v7  ;;  %v2671_v36 = vadd.f32 %v5247_v60, %v2598_v0  ;;  %v5253_v7 = vld [vmem:[#allocation15_spill] sm:$0xff] }
 0x1de   :  { %v5146_v2 = vpop.f32.mrf.mxu0  ;;  %v2659_v63 = vadd.f32 %v2658_v38, %v2586_v52  ;;  %v2669_v31 = vadd.f32 %v2668_v48, %v2596_v33  ;;  %v2754_v38 = vadd.f32 %v2753_v42, %v2681_v10  ;;  %v2622_v52 = vadd.f32 %v5245_v45, %v2549_v17  ;;  %v5257_v60 = vld [vmem:[#allocation19_spill] sm:$0xff] }
 0x1df   :  { %v5148_v12 = vpop.f32.mrf.mxu1  ;;  %v2685_v37 = vadd.f32 %v2684_v49, %v2612_v13  ;;  %v2689_v48 = vadd.f32 %v2688_v6, %v2616_v19  ;;  %v2738_v40 = vadd.f32 %v5248_v9, %v2665_v25  ;;  %v5250_v27 = vld [vmem:[#allocation20_spill] sm:$0xff]  ;;  %v2691_v24 = vadd.f32 %v2690_v32, %v2618_v26 }
 0x1e0   :  { %v2694_v18 = vpop.f32.mrf.mxu0  ;;  %v2732_v22 = vadd.f32 %v5240_v11, %v2659_v63  ;;  %v2742_v42 = vadd.f32 %v5249_v62, %v2669_v31  ;;  %v2756_v20 = vadd.f32 %v5250_v27, %v2683_v39  ;;  %v2673_v10 = vadd.f32 %v5251_v34, %v2600_v43  ;;  %v5255_v11 = vld [vmem:[#allocation18_spill] sm:$0xff] }
 0x1e1   :  { %v5162_v8 = vpop.f32.mrf.mxu1  ;;  %v5252_v47 = vld [vmem:[#allocation21_spill] sm:$0xff]  ;;  %v2744_v21 = vadd.f32 %v5253_v7, %v2671_v36  ;;  %v2764_v25 = vadd.f32 %v5135_v28, %v2691_v24  ;;  %v2695_v31 = vadd.f32 %v2694_v18, %v2622_v52 }
 0x1e2   :  { %v2758_v0 = vadd.f32 %v5252_v47, %v2685_v37  ;;  %v5256_v28 = vld [vmem:[#allocation17_spill] sm:$0xff] }
 0x1e3   :  { %v5254_v13 = vld [vmem:[#allocation22_spill] sm:$0xff]  ;;  %v2746_v18 = vadd.f32 %v5256_v28, %v2673_v10 }
 0x1e4   :  { %v2762_v54 = vadd.f32 %v5254_v13, %v2689_v48  ;;  %v2768_v48 = vadd.f32 %v5162_v8, %v2695_v31 }
 0x202   :  { %v2804_v59 = vpop.f32.mrf.mxu0 }
 0x203   :  { %v2824_v35 = vpop.f32.mrf.mxu1  ;;  %v2805_v51 = vadd.f32 %v2804_v59, %v2732_v22  ;;  %v2675_v22 = vadd.f32 %v5255_v11, %v2602_v5 }
 0x204   :  { %v2825_v41 = vadd.f32 %v2824_v35, %v2752_v16  ;;  %v2806_v55 = vpop.f32.mrf.mxu0  ;;  %v2693_v16 = vadd.f32 %v5146_v2, %v2620_v44 }
 0x205   :  { %v2826_v57 = vpop.f32.mrf.mxu1  ;;  %v2807_v1 = vadd.f32 %v2806_v55, %v2734_v46  ;;  %v2843_v58 = vmax.f32 %v2805_v51, 0.0  ;;  %v2748_v36 = vadd.f32 %v5257_v60, %v2675_v22 }
 0x206   :  { %v2827_v4 = vadd.f32 %v2826_v57, %v2754_v38  ;;  %v2808_v63 = vpop.f32.mrf.mxu0  ;;  %v2851_v33 = vmax.f32 %v2825_v41, 0.0  ;;  %v2766_v56 = vadd.f32 %v5148_v12, %v2693_v16 }
 0x207   :  { %v2828_v29 = vpop.f32.mrf.mxu1  ;;  %v2844_v3 = vmax.f32 %v2807_v1, 0.0  ;;  %v2809_v6 = vadd.f32 %v2808_v63, %v2736_v15 }
 0x208   :  { %v2852_v49 = vmax.f32 %v2827_v4, 0.0  ;;  %v2829_v50 = vadd.f32 %v2828_v29, %v2756_v20  ;;  %v2810_v14 = vpop.f32.mrf.mxu0 }
 0x209   :  { %v2830_v17 = vpop.f32.mrf.mxu1  ;;  %v3287_v19 = vpack.c.bf16 %v2844_v3, %v2843_v58  ;;  %v2811_v23 = vadd.f32 %v2810_v14, %v2738_v40  ;;  %v2845_v5 = vmax.f32 %v2809_v6, 0.0 }
 0x20a   :  { %v3291_v32 = vpack.c.bf16 %v2852_v49, %v2851_v33  ;;  %v2831_v26 = vadd.f32 %v2830_v17, %v2758_v0  ;;  %v2814_v30 = vpop.f32.mrf.mxu0  ;;  %v2853_v35 = vmax.f32 %v2829_v50, 0.0 }
 0x20b   :  { %v2834_v43 = vpop.f32.mrf.mxu1  ;;  %2907 = vst [vmem:[%s5215_s3] sm:$0xff] %v3287_v19  ;;  %v2815_v39 = vadd.f32 %v2814_v30, %v2742_v42  ;;  %v2846_v2 = vmax.f32 %v2811_v23, 0.0 }
 0x20c   :  { %2911 = vst [vmem:[%s5215_s3 + $0x20] sm:$0xff] %v3291_v32  ;;  %v2835_v59 = vadd.f32 %v2834_v43, %v2762_v54  ;;  %v2854_v61 = vmax.f32 %v2831_v26, 0.0  ;;  %v2816_v46 = vpop.f32.mrf.mxu0 }
 0x20d   :  { %v2836_v38 = vpop.f32.mrf.mxu1  ;;  %v2817_v51 = vadd.f32 %v2816_v46, %v2744_v21  ;;  %v3288_v44 = vpack.c.bf16 %v2846_v2, %v2845_v5  ;;  %v2847_v15 = vmax.f32 %v2815_v39, 0.0 }
 0x20e   :  { %v2837_v41 = vadd.f32 %v2836_v38, %v2764_v25  ;;  %v3292_v45 = vpack.c.bf16 %v2854_v61, %v2853_v35  ;;  %v2818_v52 = vpop.f32.mrf.mxu0  ;;  %v2855_v37 = vmax.f32 %v2835_v59, 0.0 }
 0x20f   :  { %v2838_v53 = vpop.f32.mrf.mxu1  ;;  %v2848_v55 = vmax.f32 %v2817_v51, 0.0  ;;  %2908 = vst [vmem:[%s5215_s3 + $0x8] sm:$0xff] %v3288_v44  ;;  %v2819_v12 = vadd.f32 %v2818_v52, %v2746_v18 }
 0x210   :  { %v2856_v57 = vmax.f32 %v2837_v41, 0.0  ;;  %2912 = vst [vmem:[%s5215_s3 + $0x28] sm:$0xff] %v3292_v45  ;;  %v2839_v1 = vadd.f32 %v2838_v53, %v2766_v56  ;;  %v2820_v4 = vpop.f32.mrf.mxu0 }
 0x211   :  { %v2840_v9 = vpop.f32.mrf.mxu1  ;;  %v3289_v40 = vpack.c.bf16 %v2848_v55, %v2847_v15  ;;  %v2821_v42 = vadd.f32 %v2820_v4, %v2748_v36  ;;  %v2849_v8 = vmax.f32 %v2819_v12, 0.0 }
 0x212   :  { %v3293_v62 = vpack.c.bf16 %v2856_v57, %v2855_v37  ;;  %v2841_v27 = vadd.f32 %v2840_v9, %v2768_v48  ;;  %v2857_v20 = vmax.f32 %v2839_v1, 0.0 }
 0x213   :  { %2909 = vst [vmem:[%s5215_s3 + $0x10] sm:$0xff] %v3289_v40  ;;  %v2850_v24 = vmax.f32 %v2821_v42, 0.0 }
 0x214   :  { %2913 = vst [vmem:[%s5215_s3 + $0x30] sm:$0xff] %v3293_v62  ;;  %v2858_v63 = vmax.f32 %v2841_v27, 0.0 }
 0x215   :  { %v3290_v29 = vpack.c.bf16 %v2850_v24, %v2849_v8 }
 0x216   :  { %v3294_v58 = vpack.c.bf16 %v2858_v63, %v2857_v20 }
 0x217   :  { %2910 = vst [vmem:[%s5215_s3 + $0x18] sm:$0xff] %v3290_v29 }
 0x218   :  { %2914 = vst [vmem:[%s5215_s3 + $0x38] sm:$0x33] %v3294_v58 }

// kernel: tone_cnn_forward.9
= control target key start
LH: loop header
LB: loop body
LE: loop exit
PB: predicated region body
PF: predicated region fallthrough
CT: control target
= control target key end

     0   :  { %s12654_s0 = inlined_call_operand.vmem [shape: bf16[20,2304], index: 0, kind: input, shape index: {}]   ;;  %s12655_s1 = inlined_call_operand.vmem [shape: bf16[2304,512], index: 1, kind: input, shape index: {}]   ;;  %s12656_s2 = inlined_call_operand.vmem [shape: f32[1,512], index: 2, kind: input, shape index: {}]   ;;  %s12657_s3 = inlined_call_operand.vmem [shape: f32[2,20], index: 3, kind: input, shape index: {}]   ;;  %s12658_s4 = inlined_call_operand.vmem [shape: bf16[512,1024], index: 4, kind: input, shape index: {}]   ;;  %s12659_s5 = inlined_call_operand.vmem [shape: f32[1,1024], index: 5, kind: input, shape index: {}]   ;;  %s12660_s6 = inlined_call_operand.vmem [shape: bf16[1024,128], index: 6, kind: input, shape index: {}]   ;;  %s12661_s7 = inlined_call_operand.vmem [shape: f32[1,128], index: 7, kind: input, shape index: {}]   ;;  %s12662_s8 = inlined_call_operand.hbm [shape: f32[2,128], index: 8, kind: output, shape index: {}]  }
   0x1   :  { %v8428_v0 = vld [vmem:[%s12655_s1 + $0xe4] ss:$16 sps:$4 sm:$0xff]   ;;  %v8432_v2 = vld [vmem:[%s12655_s1 + $0xe0] ss:$16 sps:$4 sm:$0xff]  }
   0x2   :  { %v8430_v1 = vld [vmem:[%s12655_s1 + $0x2e4] ss:$16 sps:$4 sm:$0xff]   ;;  %3689 = vmatprep.subr.bf16.mxu0 %v8428_v0  ;;  %v8433_v3 = vld [vmem:[%s12655_s1 + $0x2e0] ss:$16 sps:$4 sm:$0xff]  }
   0x3   :  { %3740 = vmatprep.subr.bf16.mxu1 %v8430_v1  ;;  %v8434_v4 = vld [vmem:[%s12655_s1 + $0xc4] ss:$16 sps:$4 sm:$0xff]   ;;  %3690 = vmatpush1.bf16.msra.mxu0 %v8432_v2  ;;  %v8438_v6 = vld [vmem:[%s12655_s1 + $0xc0] ss:$16 sps:$4 sm:$0xff]  }
   0x4   :  { %3741 = vmatpush1.bf16.msra.mxu1 %v8433_v3  ;;  %v8436_v5 = vld [vmem:[%s12655_s1 + $0x2c4] ss:$16 sps:$4 sm:$0xff]   ;;  %3691 = vmatprep.subr.bf16.mxu0 %v8434_v4  ;;  %v8439_v7 = vld [vmem:[%s12655_s1 + $0x2c0] ss:$16 sps:$4 sm:$0xff]  }
   0x5   :  { %3742 = vmatprep.subr.bf16.mxu1 %v8436_v5  ;;  %v8440_v8 = vld [vmem:[%s12655_s1 + $0xa4] ss:$16 sps:$4 sm:$0xff]   ;;  %v8444_v10 = vld [vmem:[%s12655_s1 + $0xa0] ss:$16 sps:$4 sm:$0xff]  }
   0x6   :  { %v8442_v9 = vld [vmem:[%s12655_s1 + $0x2a4] ss:$16 sps:$4 sm:$0xff]   ;;  %v8445_v11 = vld [vmem:[%s12655_s1 + $0x2a0] ss:$16 sps:$4 sm:$0xff]  }
   0x7   :  { %3692 = vmatpush1.bf16.msra.mxu0 %v8438_v6  ;;  %v8446_v12 = vld [vmem:[%s12655_s1 + $0x84] ss:$16 sps:$4 sm:$0xff]   ;;  %v8450_v14 = vld [vmem:[%s12655_s1 + $0x80] ss:$16 sps:$4 sm:$0xff]  }
   0x8   :  { %3743 = vmatpush1.bf16.msra.mxu1 %v8439_v7  ;;  %3693 = vmatprep.subr.bf16.mxu0 %v8440_v8  ;;  %v8448_v13 = vld [vmem:[%s12655_s1 + $0x284] ss:$16 sps:$4 sm:$0xff]   ;;  %v8451_v15 = vld [vmem:[%s12655_s1 + $0x280] ss:$16 sps:$4 sm:$0xff]  }
   0x9   :  { %3744 = vmatprep.subr.bf16.mxu1 %v8442_v9  ;;  %v8452_v16 = vld [vmem:[%s12655_s1 + $0x64] ss:$16 sps:$4 sm:$0xff]   ;;  %v8456_v18 = vld [vmem:[%s12655_s1 + $0x60] ss:$16 sps:$4 sm:$0xff]  }
   0xa   :  { %v8454_v17 = vld [vmem:[%s12655_s1 + $0x264] ss:$16 sps:$4 sm:$0xff]   ;;  %v8457_v19 = vld [vmem:[%s12655_s1 + $0x260] ss:$16 sps:$4 sm:$0xff]  }
   0xb   :  { %3694 = vmatpush1.bf16.msra.mxu0 %v8444_v10  ;;  %v8458_v20 = vld [vmem:[%s12655_s1 + $0x44] ss:$16 sps:$4 sm:$0xff]   ;;  %v8462_v22 = vld [vmem:[%s12655_s1 + $0x40] ss:$16 sps:$4 sm:$0xff]  }
   0xc   :  { %3745 = vmatpush1.bf16.msra.mxu1 %v8445_v11  ;;  %3695 = vmatprep.subr.bf16.mxu0 %v8446_v12  ;;  %v8460_v21 = vld [vmem:[%s12655_s1 + $0x244] ss:$16 sps:$4 sm:$0xff]   ;;  %v8463_v23 = vld [vmem:[%s12655_s1 + $0x240] ss:$16 sps:$4 sm:$0xff]  }
   0xd   :  { %3746 = vmatprep.subr.bf16.mxu1 %v8448_v13  ;;  %v8464_v24 = vld [vmem:[%s12655_s1 + $0x24] ss:$16 sps:$4 sm:$0xff]   ;;  %v8468_v26 = vld [vmem:[%s12655_s1 + $0x20] ss:$16 sps:$4 sm:$0xff]  }
   0xe   :  { %v8466_v25 = vld [vmem:[%s12655_s1 + $0x224] ss:$16 sps:$4 sm:$0xff]   ;;  %v8469_v27 = vld [vmem:[%s12655_s1 + $0x220] ss:$16 sps:$4 sm:$0xff]  }
   0xf   :  { %3696 = vmatpush1.bf16.msra.mxu0 %v8450_v14  ;;  %v8470_v28 = vld [vmem:[%s12655_s1 + $0x4] ss:$16 sps:$4 sm:$0xff]   ;;  %v8474_v30 = vld [vmem:[%s12655_s1] ss:$16 sps:$4 sm:$0xff]  }
  0x10   :  { %3747 = vmatpush1.bf16.msra.mxu1 %v8451_v15  ;;  %3697 = vmatprep.subr.bf16.mxu0 %v8452_v16  ;;  %v8472_v29 = vld [vmem:[%s12655_s1 + $0x204] ss:$16 sps:$4 sm:$0xff]   ;;  %v8475_v31 = vld [vmem:[%s12655_s1 + $0x200] ss:$16 sps:$4 sm:$0xff]  }
  0x11   :  { %3748 = vmatprep.subr.bf16.mxu1 %v8454_v17  ;;  %v8476_v32 = vld [vmem:[%s12655_s1 + $0x1e4] ss:$16 sps:$4 sm:$0xff]   ;;  %v8480_v34 = vld [vmem:[%s12655_s1 + $0x1e0] ss:$16 sps:$4 sm:$0xff]  }
  0x12   :  { %v8478_v33 = vld [vmem:[%s12655_s1 + $0x3e4] ss:$16 sps:$4 sm:$0xff]   ;;  %v8481_v35 = vld [vmem:[%s12655_s1 + $0x3e0] ss:$16 sps:$4 sm:$0xff]  }
  0x13   :  { %3698 = vmatpush1.bf16.msra.mxu0 %v8456_v18  ;;  %v8482_v36 = vld [vmem:[%s12655_s1 + $0x1c4] ss:$16 sps:$4 sm:$0xff]   ;;  %v8486_v38 = vld [vmem:[%s12655_s1 + $0x1c0] ss:$16 sps:$4 sm:$0xff]  }
  0x14   :  { %3749 = vmatpush1.bf16.msra.mxu1 %v8457_v19  ;;  %3699 = vmatprep.subr.bf16.mxu0 %v8458_v20  ;;  %v8484_v37 = vld [vmem:[%s12655_s1 + $0x3c4] ss:$16 sps:$4 sm:$0xff]   ;;  %v8487_v39 = vld [vmem:[%s12655_s1 + $0x3c0] ss:$16 sps:$4 sm:$0xff]  }
  0x15   :  { %3750 = vmatprep.subr.bf16.mxu1 %v8460_v21  ;;  %v8488_v40 = vld [vmem:[%s12655_s1 + $0x1a4] ss:$16 sps:$4 sm:$0xff]   ;;  %v8492_v42 = vld [vmem:[%s12655_s1 + $0x1a0] ss:$16 sps:$4 sm:$0xff]  }
  0x16   :  { %v8490_v41 = vld [vmem:[%s12655_s1 + $0x3a4] ss:$16 sps:$4 sm:$0xff]   ;;  %v8493_v43 = vld [vmem:[%s12655_s1 + $0x3a0] ss:$16 sps:$4 sm:$0xff]  }
  0x17   :  { %3700 = vmatpush1.bf16.msra.mxu0 %v8462_v22  ;;  %v8494_v44 = vld [vmem:[%s12655_s1 + $0x184] ss:$16 sps:$4 sm:$0xff]   ;;  %v8498_v46 = vld [vmem:[%s12655_s1 + $0x180] ss:$16 sps:$4 sm:$0xff]  }
  0x18   :  { %3751 = vmatpush1.bf16.msra.mxu1 %v8463_v23  ;;  %3701 = vmatprep.subr.bf16.mxu0 %v8464_v24  ;;  %v8496_v45 = vld [vmem:[%s12655_s1 + $0x384] ss:$16 sps:$4 sm:$0xff]   ;;  %v8499_v47 = vld [vmem:[%s12655_s1 + $0x380] ss:$16 sps:$4 sm:$0xff]  }
  0x19   :  { %3752 = vmatprep.subr.bf16.mxu1 %v8466_v25  ;;  %v8500_v48 = vld [vmem:[%s12655_s1 + $0x164] ss:$16 sps:$4 sm:$0xff]   ;;  %v8504_v52 = vld [vmem:[%s12655_s1 + $0x160] ss:$16 sps:$4 sm:$0xff]   ;;  %v50_v25 = vld [vmem:[%s12654_s0 + $0x98] sm:$0x33] }
  0x1a   :  { %v8526_v49 = vld [vmem:[%s12654_s0 + $0x4] ss:$72 sps:$4 sm:$0xff]   ;;  %v8505_v53 = vld [vmem:[%s12655_s1 + $0x360] ss:$16 sps:$4 sm:$0xff]  }
  0x1b   :  { %3702 = vmatpush1.bf16.msra.mxu0 %v8468_v26  ;;  %v8502_v50 = vld [vmem:[%s12655_s1 + $0x364] ss:$16 sps:$4 sm:$0xff]   ;;  %3721 = vmatprep.mubr.bf16.mxu0 %v8526_v49  ;;  %v8510_v56 = vld [vmem:[%s12655_s1 + $0x140] ss:$16 sps:$4 sm:$0xff]  }
  0x1c   :  { %3753 = vmatpush1.bf16.msra.mxu1 %v8469_v27  ;;  %3703 = vmatprep.subr.bf16.mxu0 %v8470_v28  ;;  %v8529_v51 = vld [vmem:[%s12654_s0 + $0xc] ss:$72 sps:$4 sm:$0xff]   ;;  %v8511_v57 = vld [vmem:[%s12655_s1 + $0x340] ss:$16 sps:$4 sm:$0xff]  }
  0x1d   :  { %3754 = vmatprep.subr.bf16.mxu1 %v8472_v29  ;;  %3772 = vmatprep.mubr.bf16.mxu1 %v8529_v51  ;;  %v8506_v54 = vld [vmem:[%s12655_s1 + $0x144] ss:$16 sps:$4 sm:$0xff]   ;;  %v8516_v60 = vld [vmem:[%s12655_s1 + $0x120] ss:$16 sps:$4 sm:$0xff]   ;;  %v9767_v29 = vcombine.high %v50_v25, %v50_v25 }
  0x1e   :  { %v8508_v55 = vld [vmem:[%s12655_s1 + $0x344] ss:$16 sps:$4 sm:$0xff]   ;;  %v8517_v61 = vld [vmem:[%s12655_s1 + $0x320] ss:$16 sps:$4 sm:$0xff]  }
  0x1f   :  { %3704 = vmatpush1.bf16.msra.mxu0 %v8474_v30  ;;  %v8512_v58 = vld [vmem:[%s12655_s1 + $0x124] ss:$16 sps:$4 sm:$0xff]   ;;  %v8522_v0 = vld [vmem:[%s12655_s1 + $0x100] ss:$16 sps:$4 sm:$0xff]  }
  0x20   :  { %3755 = vmatpush1.bf16.msra.mxu1 %v8475_v31  ;;  %3705 = vmatprep.subr.bf16.mxu0 %v8476_v32  ;;  %v8514_v59 = vld [vmem:[%s12655_s1 + $0x324] ss:$16 sps:$4 sm:$0xff]   ;;  %v8523_v1 = vld [vmem:[%s12655_s1 + $0x300] ss:$16 sps:$4 sm:$0xff]   ;;  %v9771_v31 = vcombine.low %v50_v25, %v50_v25 }
  0x21   :  { %3756 = vmatprep.subr.bf16.mxu1 %v8478_v33  ;;  %v8518_v62 = vld [vmem:[%s12655_s1 + $0x104] ss:$16 sps:$4 sm:$0xff]   ;;  %v8524_v4 = vld [vmem:[%s12654_s0] ss:$72 sps:$4 sm:$0xff]  }
  0x22   :  { %v8520_v63 = vld [vmem:[%s12655_s1 + $0x304] ss:$16 sps:$4 sm:$0xff]   ;;  %v8527_v5 = vld [vmem:[%s12654_s0 + $0x8] ss:$72 sps:$4 sm:$0xff]  }
  0x23   :  { %3706 = vmatpush2.bf16.msra.mxu0 %v8480_v34  ;;  %v8532_v2 = vld [vmem:[%s12655_s1 + $0x4e4] ss:$16 sps:$4 sm:$0xff]   ;;  %v8530_v6 = vld [vmem:[%s12655_s1 + $0x4e0] ss:$16 sps:$4 sm:$0xff]  }
  0x24   :  { %3757 = vmatpush2.bf16.msra.mxu1 %v8481_v35  ;;  %3707 = vmatprep.subr.bf16.mxu0 %v8482_v36  ;;  %v8535_v3 = vld [vmem:[%s12655_s1 + $0x6e4] ss:$16 sps:$4 sm:$0xff]   ;;  %v8533_v7 = vld [vmem:[%s12655_s1 + $0x6e0] ss:$16 sps:$4 sm:$0xff]  }
  0x25   :  { %3758 = vmatprep.subr.bf16.mxu1 %v8484_v37  ;;  %v8538_v8 = vld [vmem:[%s12655_s1 + $0x4c4] ss:$16 sps:$4 sm:$0xff]   ;;  %v8536_v10 = vld [vmem:[%s12655_s1 + $0x4c0] ss:$16 sps:$4 sm:$0xff]  }
  0x26   :  { %v8541_v9 = vld [vmem:[%s12655_s1 + $0x6c4] ss:$16 sps:$4 sm:$0xff]   ;;  %v8539_v11 = vld [vmem:[%s12655_s1 + $0x6c0] ss:$16 sps:$4 sm:$0xff]  }
  0x27   :  { %3708 = vmatpush2.bf16.msra.mxu0 %v8486_v38  ;;  %v8544_v12 = vld [vmem:[%s12655_s1 + $0x4a4] ss:$16 sps:$4 sm:$0xff]   ;;  %v8542_v14 = vld [vmem:[%s12655_s1 + $0x4a0] ss:$16 sps:$4 sm:$0xff]  }
  0x28   :  { %3759 = vmatpush2.bf16.msra.mxu1 %v8487_v39  ;;  %3709 = vmatprep.subr.bf16.mxu0 %v8488_v40  ;;  %v8547_v13 = vld [vmem:[%s12655_s1 + $0x6a4] ss:$16 sps:$4 sm:$0xff]   ;;  %v8545_v15 = vld [vmem:[%s12655_s1 + $0x6a0] ss:$16 sps:$4 sm:$0xff]  }
  0x29   :  { %3760 = vmatprep.subr.bf16.mxu1 %v8490_v41  ;;  %v8550_v16 = vld [vmem:[%s12655_s1 + $0x484] ss:$16 sps:$4 sm:$0xff]   ;;  %v8548_v18 = vld [vmem:[%s12655_s1 + $0x480] ss:$16 sps:$4 sm:$0xff]  }
  0x2a   :  { %v8553_v17 = vld [vmem:[%s12655_s1 + $0x684] ss:$16 sps:$4 sm:$0xff]   ;;  %v8551_v19 = vld [vmem:[%s12655_s1 + $0x680] ss:$16 sps:$4 sm:$0xff]  }
  0x2b   :  { %3710 = vmatpush2.bf16.msra.mxu0 %v8492_v42  ;;  %v8556_v20 = vld [vmem:[%s12655_s1 + $0x464] ss:$16 sps:$4 sm:$0xff]   ;;  %v8554_v22 = vld [vmem:[%s12655_s1 + $0x460] ss:$16 sps:$4 sm:$0xff]  }
  0x2c   :  { %3761 = vmatpush2.bf16.msra.mxu1 %v8493_v43  ;;  %3711 = vmatprep.subr.bf16.mxu0 %v8494_v44  ;;  %v8559_v21 = vld [vmem:[%s12655_s1 + $0x664] ss:$16 sps:$4 sm:$0xff]   ;;  %v8557_v23 = vld [vmem:[%s12655_s1 + $0x660] ss:$16 sps:$4 sm:$0xff]  }
  0x2d   :  { %3762 = vmatprep.subr.bf16.mxu1 %v8496_v45  ;;  %v49_v24 = vld [vmem:[%s12654_s0 + $0x90] sm:$0x33]  ;;  %v8635_v41 = vld [vmem:[%s12654_s0 + $0x1c] ss:$72 sps:$4 sm:$0xff]  }
  0x2e   :  { %v8562_v26 = vld [vmem:[%s12655_s1 + $0x444] ss:$16 sps:$4 sm:$0xff]   ;;  %v9765_v28 = vcombine.high %v49_v24, %v49_v24  ;;  %v9769_v30 = vcombine.low %v49_v24, %v49_v24  ;;  %v8560_v32 = vld [vmem:[%s12655_s1 + $0x440] ss:$16 sps:$4 sm:$0xff]  }
  0x2f   :  { %3712 = vmatpush2.bf16.msra.mxu0 %v8498_v46  ;;  %v8565_v27 = vld [vmem:[%s12655_s1 + $0x644] ss:$16 sps:$4 sm:$0xff]   ;;  %v8563_v33 = vld [vmem:[%s12655_s1 + $0x640] ss:$16 sps:$4 sm:$0xff]  }
  0x30   :  { %3763 = vmatpush2.bf16.msra.mxu1 %v8499_v47  ;;  %3713 = vmatprep.subr.bf16.mxu0 %v8500_v48  ;;  %v8568_v34 = vld [vmem:[%s12655_s1 + $0x424] ss:$16 sps:$4 sm:$0xff]   ;;  %v8566_v36 = vld [vmem:[%s12655_s1 + $0x420] ss:$16 sps:$4 sm:$0xff]  }
  0x31   :  { %3764 = vmatprep.subr.bf16.mxu1 %v8502_v50  ;;  %v8571_v35 = vld [vmem:[%s12655_s1 + $0x624] ss:$16 sps:$4 sm:$0xff]   ;;  %v8569_v37 = vld [vmem:[%s12655_s1 + $0x620] ss:$16 sps:$4 sm:$0xff]  }
  0x32   :  { %v8574_v38 = vld [vmem:[%s12655_s1 + $0x404] ss:$16 sps:$4 sm:$0xff]   ;;  %v8572_v42 = vld [vmem:[%s12655_s1 + $0x400] ss:$16 sps:$4 sm:$0xff]  }
  0x33   :  { %3714 = vmatpush2.bf16.msra.mxu0 %v8504_v52  ;;  %v8577_v39 = vld [vmem:[%s12655_s1 + $0x604] ss:$16 sps:$4 sm:$0xff]   ;;  %v8575_v43 = vld [vmem:[%s12655_s1 + $0x600] ss:$16 sps:$4 sm:$0xff]  }
  0x34   :  { %3765 = vmatpush2.bf16.msra.mxu1 %v8505_v53  ;;  %3715 = vmatprep.subr.bf16.mxu0 %v8506_v54  ;;  %v8632_v40 = vld [vmem:[%s12654_s0 + $0x14] ss:$72 sps:$4 sm:$0xff]   ;;  %v8578_v46 = vld [vmem:[%s12655_s1 + $0x5e0] ss:$16 sps:$4 sm:$0xff]  }
  0x35   :  { %3766 = vmatprep.subr.bf16.mxu1 %v8508_v55  ;;  %v8580_v44 = vld [vmem:[%s12655_s1 + $0x5e4] ss:$16 sps:$4 sm:$0xff]   ;;  %v8581_v47 = vld [vmem:[%s12655_s1 + $0x7e0] ss:$16 sps:$4 sm:$0xff]  }
  0x36   :  { %v8583_v45 = vld [vmem:[%s12655_s1 + $0x7e4] ss:$16 sps:$4 sm:$0xff]   ;;  %v8584_v50 = vld [vmem:[%s12655_s1 + $0x5c0] ss:$16 sps:$4 sm:$0xff]  }
  0x37   :  { %3716 = vmatpush2.bf16.msra.mxu0 %v8510_v56  ;;  %v8586_v48 = vld [vmem:[%s12655_s1 + $0x5c4] ss:$16 sps:$4 sm:$0xff]   ;;  %v8587_v51 = vld [vmem:[%s12655_s1 + $0x7c0] ss:$16 sps:$4 sm:$0xff]  }
  0x38   :  { %3767 = vmatpush2.bf16.msra.mxu1 %v8511_v57  ;;  %3717 = vmatprep.subr.bf16.mxu0 %v8512_v58  ;;  %v8589_v49 = vld [vmem:[%s12655_s1 + $0x7c4] ss:$16 sps:$4 sm:$0xff]   ;;  %v8590_v54 = vld [vmem:[%s12655_s1 + $0x5a0] ss:$16 sps:$4 sm:$0xff]  }
  0x39   :  { %3768 = vmatprep.subr.bf16.mxu1 %v8514_v59  ;;  %v8592_v52 = vld [vmem:[%s12655_s1 + $0x5a4] ss:$16 sps:$4 sm:$0xff]   ;;  %v8593_v55 = vld [vmem:[%s12655_s1 + $0x7a0] ss:$16 sps:$4 sm:$0xff]  }
  0x3a   :  { %v8595_v53 = vld [vmem:[%s12655_s1 + $0x7a4] ss:$16 sps:$4 sm:$0xff]   ;;  %v8596_v58 = vld [vmem:[%s12655_s1 + $0x580] ss:$16 sps:$4 sm:$0xff]  }
  0x3b   :  { %3718 = vmatpush2.bf16.msra.mxu0 %v8516_v60  ;;  %v8598_v56 = vld [vmem:[%s12655_s1 + $0x584] ss:$16 sps:$4 sm:$0xff]   ;;  %v8599_v59 = vld [vmem:[%s12655_s1 + $0x780] ss:$16 sps:$4 sm:$0xff]  }
  0x3c   :  { %3769 = vmatpush2.bf16.msra.mxu1 %v8517_v61  ;;  %3719 = vmatprep.subr.bf16.mxu0 %v8518_v62  ;;  %v8601_v57 = vld [vmem:[%s12655_s1 + $0x784] ss:$16 sps:$4 sm:$0xff]   ;;  %v8602_v62 = vld [vmem:[%s12655_s1 + $0x560] ss:$16 sps:$4 sm:$0xff]  }
  0x3d   :  { %3770 = vmatprep.subr.bf16.mxu1 %v8520_v63  ;;  %v8604_v60 = vld [vmem:[%s12655_s1 + $0x564] ss:$16 sps:$4 sm:$0xff]   ;;  %v8605_v63 = vld [vmem:[%s12655_s1 + $0x760] ss:$16 sps:$4 sm:$0xff]  }
  0x3e   :  { %v8607_v61 = vld [vmem:[%s12655_s1 + $0x764] ss:$16 sps:$4 sm:$0xff]   ;;  %v8642_v24 = vld [vmem:[%s12655_s1 + $0x8c0] ss:$16 sps:$4 sm:$0xff]  }
  0x3f   :  { %3720 = vmatpush2.bf16.msra.mxu0 %v8522_v0  ;;  %v8613_v0 = vld [vmem:[%s12655_s1 + $0x544] ss:$16 sps:$4 sm:$0xff]   ;;  %v8645_v25 = vld [vmem:[%s12655_s1 + $0xac0] ss:$16 sps:$4 sm:$0xff]  }
  0x40   :  { %3771 = vmatpush2.bf16.msra.mxu1 %v8523_v1  ;;  %3791 = vmatprep.subr.bf16.mxu0 %v8532_v2  ;;  %v8616_v1 = vld [vmem:[%s12655_s1 + $0x744] ss:$16 sps:$4 sm:$0xff]   ;;  %v8611_v2 = vld [vmem:[%s12655_s1 + $0x540] ss:$16 sps:$4 sm:$0xff]  }
  0x41   :  { %3842 = vmatprep.subr.bf16.mxu1 %v8535_v3  ;;  %v8614_v3 = vld [vmem:[%s12655_s1 + $0x740] ss:$16 sps:$4 sm:$0xff]  }
  0x42   :  { %3722 = vmatmul.mubr.bf16.vlgmr.msra.gmra.mxu0 %v8524_v4  ;;  %v8620_v4 = vld [vmem:[%s12655_s1 + $0x524] ss:$16 sps:$4 sm:$0xff]  }
  0x43   :  { %3773 = vmatmul.mubr.bf16.vlgmr.msra.gmra.mxu1 %v8527_v5  ;;  %3792 = vmatpush1.bf16.msra.mxu0 %v8530_v6  ;;  %v8623_v5 = vld [vmem:[%s12655_s1 + $0x724] ss:$16 sps:$4 sm:$0xff]   ;;  %v8618_v6 = vld [vmem:[%s12655_s1 + $0x520] ss:$16 sps:$4 sm:$0xff]  }
  0x44   :  { %3843 = vmatpush1.bf16.msra.mxu1 %v8533_v7  ;;  %3793 = vmatprep.subr.bf16.mxu0 %v8538_v8  ;;  %v8621_v7 = vld [vmem:[%s12655_s1 + $0x720] ss:$16 sps:$4 sm:$0xff]   ;;  %v8626_v8 = vld [vmem:[%s12655_s1 + $0x504] ss:$16 sps:$4 sm:$0xff]  }
  0x45   :  { %3844 = vmatprep.subr.bf16.mxu1 %v8541_v9  ;;  %3731 = vmatprep.mubr.bf16.mxu0 %v9765_v28  ;;  %v8629_v9 = vld [vmem:[%s12655_s1 + $0x704] ss:$16 sps:$4 sm:$0xff]  }
  0x46   :  { %3782 = vmatprep.mubr.bf16.mxu1 %v9767_v29 }
  0x47   :  { %3794 = vmatpush1.bf16.msra.mxu0 %v8536_v10  ;;  %v8624_v10 = vld [vmem:[%s12655_s1 + $0x500] ss:$16 sps:$4 sm:$0xff]  }
  0x48   :  { %3845 = vmatpush1.bf16.msra.mxu1 %v8539_v11  ;;  %3795 = vmatprep.subr.bf16.mxu0 %v8544_v12  ;;  %v8627_v11 = vld [vmem:[%s12655_s1 + $0x700] ss:$16 sps:$4 sm:$0xff]   ;;  %v8638_v12 = vld [vmem:[%s12655_s1 + $0x8e4] ss:$16 sps:$4 sm:$0xff]  }
  0x49   :  { %3846 = vmatprep.subr.bf16.mxu1 %v8547_v13  ;;  %v8630_v13 = vld [vmem:[%s12654_s0 + $0x10] ss:$72 sps:$4 sm:$0xff]  }
  0x4a   :  { %3732 = vmatmul.mubr.bf16.gmra.mxu0 %v9769_v30 }
  0x4b   :  { %3796 = vmatpush1.bf16.msra.mxu0 %v8542_v14  ;;  %3783 = vmatmul.mubr.bf16.gmra.mxu1 %v9771_v31  ;;  %v8633_v14 = vld [vmem:[%s12654_s0 + $0x18] ss:$72 sps:$4 sm:$0xff]  }
  0x4c   :  { %3847 = vmatpush1.bf16.msra.mxu1 %v8545_v15  ;;  %3797 = vmatprep.subr.bf16.mxu0 %v8550_v16  ;;  %v8641_v15 = vld [vmem:[%s12655_s1 + $0xae4] ss:$16 sps:$4 sm:$0xff]   ;;  %v8636_v16 = vld [vmem:[%s12655_s1 + $0x8e0] ss:$16 sps:$4 sm:$0xff]  }
  0x4d   :  { %3848 = vmatprep.subr.bf16.mxu1 %v8553_v17  ;;  %3823 = vmatprep.mubr.bf16.mxu0 %v8632_v40  ;;  %v8639_v17 = vld [vmem:[%s12655_s1 + $0xae0] ss:$16 sps:$4 sm:$0xff]  }
  0x4e   :  { %3874 = vmatprep.mubr.bf16.mxu1 %v8635_v41  ;;  %v8658_v40 = vld [vmem:[%s12655_s1 + $0x880] ss:$16 sps:$4 sm:$0xff]  }
  0x4f   :  { %3798 = vmatpush1.bf16.msra.mxu0 %v8548_v18  ;;  %v51_v18 = vld [vmem:[%s12654_s0 + $0xa0] sm:$0x33] }
  0x50   :  { %3849 = vmatpush1.bf16.msra.mxu1 %v8551_v19  ;;  %3799 = vmatprep.subr.bf16.mxu0 %v8556_v20  ;;  %v52_v19 = vld [vmem:[%s12654_s0 + $0xa8] sm:$0x33]  ;;  %v8644_v20 = vld [vmem:[%s12655_s1 + $0x8c4] ss:$16 sps:$4 sm:$0xff]   ;;  %v8661_v41 = vld [vmem:[%s12655_s1 + $0xa80] ss:$16 sps:$4 sm:$0xff]  }
  0x51   :  { %3850 = vmatprep.subr.bf16.mxu1 %v8559_v21  ;;  %v8647_v21 = vld [vmem:[%s12655_s1 + $0xac4] ss:$16 sps:$4 sm:$0xff]  }
  0x53   :  { %3800 = vmatpush1.bf16.msra.mxu0 %v8554_v22  ;;  %v9939_v22 = vcombine.high %v51_v18, %v51_v18 }
  0x54   :  { %3851 = vmatpush1.bf16.msra.mxu1 %v8557_v23  ;;  %3801 = vmatprep.subr.bf16.mxu0 %v8562_v26  ;;  %v9941_v23 = vcombine.high %v52_v19, %v52_v19  ;;  %v8652_v26 = vld [vmem:[%s12655_s1 + $0x8a4] ss:$16 sps:$4 sm:$0xff]  }
  0x55   :  { %3852 = vmatprep.subr.bf16.mxu1 %v8565_v27  ;;  %v8655_v27 = vld [vmem:[%s12655_s1 + $0xaa4] ss:$16 sps:$4 sm:$0xff]  }
  0x57   :  { %3802 = vmatpush1.bf16.msra.mxu0 %v8560_v32  ;;  %v9957_v32 = vcombine.low %v51_v18, %v51_v18  ;;  %v8726_v18 = vld [vmem:[%s12655_s1 + $0x924] ss:$16 sps:$4 sm:$0xff]  }
  0x58   :  { %3853 = vmatpush1.bf16.msra.mxu1 %v8563_v33  ;;  %3803 = vmatprep.subr.bf16.mxu0 %v8568_v34  ;;  %v8650_v33 = vld [vmem:[%s12655_s1 + $0x8a0] ss:$16 sps:$4 sm:$0xff]  }
  0x59   :  { %3854 = vmatprep.subr.bf16.mxu1 %v8571_v35  ;;  %v8653_v34 = vld [vmem:[%s12655_s1 + $0xaa0] ss:$16 sps:$4 sm:$0xff]   ;;  %v9965_v35 = vcombine.low %v52_v19, %v52_v19  ;;  %v8729_v19 = vld [vmem:[%s12655_s1 + $0xb24] ss:$16 sps:$4 sm:$0xff]  }
  0x5b   :  { %3804 = vmatpush1.bf16.msra.mxu0 %v8566_v36  ;;  %v8660_v36 = vld [vmem:[%s12655_s1 + $0x884] ss:$16 sps:$4 sm:$0xff]  }
  0x5c   :  { %3855 = vmatpush1.bf16.msra.mxu1 %v8569_v37  ;;  %3805 = vmatprep.subr.bf16.mxu0 %v8574_v38  ;;  %v8663_v37 = vld [vmem:[%s12655_s1 + $0xa84] ss:$16 sps:$4 sm:$0xff]  }
  0x5d   :  { %3856 = vmatprep.subr.bf16.mxu1 %v8577_v39  ;;  %v8738_v38 = vld [vmem:[%s12654_s0 + $0x24] ss:$72 sps:$4 sm:$0xff]  }
  0x5e   :  { %v8741_v39 = vld [vmem:[%s12654_s0 + $0x2c] ss:$72 sps:$4 sm:$0xff]  }
  0x5f   :  { %3806 = vmatpush1.bf16.msra.mxu0 %v8572_v42  ;;  %v8666_v42 = vld [vmem:[%s12655_s1 + $0x864] ss:$16 sps:$4 sm:$0xff]  }
  0x60   :  { %3857 = vmatpush1.bf16.msra.mxu1 %v8575_v43  ;;  %3807 = vmatprep.subr.bf16.mxu0 %v8580_v44  ;;  %v8669_v43 = vld [vmem:[%s12655_s1 + $0xa64] ss:$16 sps:$4 sm:$0xff]   ;;  %v8664_v44 = vld [vmem:[%s12655_s1 + $0x860] ss:$16 sps:$4 sm:$0xff]  }
  0x61   :  { %3858 = vmatprep.subr.bf16.mxu1 %v8583_v45  ;;  %v8667_v45 = vld [vmem:[%s12655_s1 + $0xa60] ss:$16 sps:$4 sm:$0xff]  }
  0x63   :  { %3808 = vmatpush2.bf16.msra.mxu0 %v8578_v46  ;;  %v8672_v46 = vld [vmem:[%s12655_s1 + $0x844] ss:$16 sps:$4 sm:$0xff]  }
  0x64   :  { %3859 = vmatpush2.bf16.msra.mxu1 %v8581_v47  ;;  %3809 = vmatprep.subr.bf16.mxu0 %v8586_v48  ;;  %v8675_v47 = vld [vmem:[%s12655_s1 + $0xa44] ss:$16 sps:$4 sm:$0xff]   ;;  %v8670_v48 = vld [vmem:[%s12655_s1 + $0x840] ss:$16 sps:$4 sm:$0xff]  }
  0x65   :  { %3860 = vmatprep.subr.bf16.mxu1 %v8589_v49  ;;  %v8673_v49 = vld [vmem:[%s12655_s1 + $0xa40] ss:$16 sps:$4 sm:$0xff]  }
  0x67   :  { %3810 = vmatpush2.bf16.msra.mxu0 %v8584_v50  ;;  %v8678_v50 = vld [vmem:[%s12655_s1 + $0x824] ss:$16 sps:$4 sm:$0xff]  }
  0x68   :  { %3861 = vmatpush2.bf16.msra.mxu1 %v8587_v51  ;;  %3811 = vmatprep.subr.bf16.mxu0 %v8592_v52  ;;  %v8681_v51 = vld [vmem:[%s12655_s1 + $0xa24] ss:$16 sps:$4 sm:$0xff]   ;;  %v8676_v52 = vld [vmem:[%s12655_s1 + $0x820] ss:$16 sps:$4 sm:$0xff]  }
  0x69   :  { %3862 = vmatprep.subr.bf16.mxu1 %v8595_v53  ;;  %v8679_v53 = vld [vmem:[%s12655_s1 + $0xa20] ss:$16 sps:$4 sm:$0xff]  }
  0x6b   :  { %3812 = vmatpush2.bf16.msra.mxu0 %v8590_v54  ;;  %v8684_v54 = vld [vmem:[%s12655_s1 + $0x804] ss:$16 sps:$4 sm:$0xff]  }
  0x6c   :  { %3863 = vmatpush2.bf16.msra.mxu1 %v8593_v55  ;;  %3813 = vmatprep.subr.bf16.mxu0 %v8598_v56  ;;  %v8687_v55 = vld [vmem:[%s12655_s1 + $0xa04] ss:$16 sps:$4 sm:$0xff]   ;;  %v8682_v56 = vld [vmem:[%s12655_s1 + $0x800] ss:$16 sps:$4 sm:$0xff]  }
  0x6d   :  { %3864 = vmatprep.subr.bf16.mxu1 %v8601_v57  ;;  %v8685_v57 = vld [vmem:[%s12655_s1 + $0xa00] ss:$16 sps:$4 sm:$0xff]  }
  0x6f   :  { %3814 = vmatpush2.bf16.msra.mxu0 %v8596_v58  ;;  %v8690_v58 = vld [vmem:[%s12655_s1 + $0x9e4] ss:$16 sps:$4 sm:$0xff]  }
  0x70   :  { %3865 = vmatpush2.bf16.msra.mxu1 %v8599_v59  ;;  %3815 = vmatprep.subr.bf16.mxu0 %v8604_v60  ;;  %v8693_v59 = vld [vmem:[%s12655_s1 + $0xbe4] ss:$16 sps:$4 sm:$0xff]   ;;  %v8688_v60 = vld [vmem:[%s12655_s1 + $0x9e0] ss:$16 sps:$4 sm:$0xff]  }
  0x71   :  { %3866 = vmatprep.subr.bf16.mxu1 %v8607_v61  ;;  %v8691_v61 = vld [vmem:[%s12655_s1 + $0xbe0] ss:$16 sps:$4 sm:$0xff]  }
  0x73   :  { %3816 = vmatpush2.bf16.msra.mxu0 %v8602_v62  ;;  %v8696_v62 = vld [vmem:[%s12655_s1 + $0x9c4] ss:$16 sps:$4 sm:$0xff]  }
  0x74   :  { %3867 = vmatpush2.bf16.msra.mxu1 %v8605_v63  ;;  %3817 = vmatprep.subr.bf16.mxu0 %v8613_v0  ;;  %v8699_v63 = vld [vmem:[%s12655_s1 + $0xbc4] ss:$16 sps:$4 sm:$0xff]   ;;  %v8694_v0 = vld [vmem:[%s12655_s1 + $0x9c0] ss:$16 sps:$4 sm:$0xff]  }
  0x75   :  { %3868 = vmatprep.subr.bf16.mxu1 %v8616_v1  ;;  %v8697_v1 = vld [vmem:[%s12655_s1 + $0xbc0] ss:$16 sps:$4 sm:$0xff]  }
  0x77   :  { %3818 = vmatpush2.bf16.msra.mxu0 %v8611_v2  ;;  %v8702_v2 = vld [vmem:[%s12655_s1 + $0x9a4] ss:$16 sps:$4 sm:$0xff]  }
  0x78   :  { %3869 = vmatpush2.bf16.msra.mxu1 %v8614_v3  ;;  %3819 = vmatprep.subr.bf16.mxu0 %v8620_v4  ;;  %v8705_v3 = vld [vmem:[%s12655_s1 + $0xba4] ss:$16 sps:$4 sm:$0xff]   ;;  %v8700_v4 = vld [vmem:[%s12655_s1 + $0x9a0] ss:$16 sps:$4 sm:$0xff]  }
  0x79   :  { %3870 = vmatprep.subr.bf16.mxu1 %v8623_v5  ;;  %v8703_v5 = vld [vmem:[%s12655_s1 + $0xba0] ss:$16 sps:$4 sm:$0xff]  }
  0x7b   :  { %3820 = vmatpush2.bf16.msra.mxu0 %v8618_v6  ;;  %v8708_v6 = vld [vmem:[%s12655_s1 + $0x984] ss:$16 sps:$4 sm:$0xff]  }
  0x7c   :  { %3871 = vmatpush2.bf16.msra.mxu1 %v8621_v7  ;;  %3821 = vmatprep.subr.bf16.mxu0 %v8626_v8  ;;  %v8711_v7 = vld [vmem:[%s12655_s1 + $0xb84] ss:$16 sps:$4 sm:$0xff]   ;;  %v8706_v8 = vld [vmem:[%s12655_s1 + $0x980] ss:$16 sps:$4 sm:$0xff]  }
  0x7d   :  { %3872 = vmatprep.subr.bf16.mxu1 %v8629_v9  ;;  %v8709_v9 = vld [vmem:[%s12655_s1 + $0xb80] ss:$16 sps:$4 sm:$0xff]  }
  0x7f   :  { %3822 = vmatpush2.bf16.msra.mxu0 %v8624_v10  ;;  %v8714_v10 = vld [vmem:[%s12655_s1 + $0x964] ss:$16 sps:$4 sm:$0xff]  }
  0x80   :  { %3873 = vmatpush2.bf16.msra.mxu1 %v8627_v11  ;;  %3893 = vmatprep.subr.bf16.mxu0 %v8638_v12  ;;  %v8717_v11 = vld [vmem:[%s12655_s1 + $0xb64] ss:$16 sps:$4 sm:$0xff]   ;;  %v8712_v12 = vld [vmem:[%s12655_s1 + $0x960] ss:$16 sps:$4 sm:$0xff]  }
  0x81   :  { %3944 = vmatprep.subr.bf16.mxu1 %v8641_v15  ;;  %v8723_v15 = vld [vmem:[%s12655_s1 + $0xb44] ss:$16 sps:$4 sm:$0xff]  }
  0x82   :  { %3824 = vmatmul.mubr.bf16.vlgmr.msra.gmra.mxu0 %v8630_v13  ;;  %v8715_v13 = vld [vmem:[%s12655_s1 + $0xb60] ss:$16 sps:$4 sm:$0xff]  }
  0x83   :  { %3875 = vmatmul.mubr.bf16.vlgmr.msra.gmra.mxu1 %v8633_v14  ;;  %3894 = vmatpush1.bf16.msra.mxu0 %v8636_v16  ;;  %v8720_v14 = vld [vmem:[%s12655_s1 + $0x944] ss:$16 sps:$4 sm:$0xff]   ;;  %v8718_v16 = vld [vmem:[%s12655_s1 + $0x940] ss:$16 sps:$4 sm:$0xff]  }
  0x84   :  { %3945 = vmatpush1.bf16.msra.mxu1 %v8639_v17  ;;  %3895 = vmatprep.subr.bf16.mxu0 %v8644_v20  ;;  %v8721_v17 = vld [vmem:[%s12655_s1 + $0xb40] ss:$16 sps:$4 sm:$0xff]  }
  0x85   :  { %3946 = vmatprep.subr.bf16.mxu1 %v8647_v21  ;;  %3833 = vmatprep.mubr.bf16.mxu0 %v9939_v22  ;;  %v8724_v20 = vld [vmem:[%s12655_s1 + $0x920] ss:$16 sps:$4 sm:$0xff]  }
  0x86   :  { %3884 = vmatprep.mubr.bf16.mxu1 %v9941_v23  ;;  %v8727_v21 = vld [vmem:[%s12655_s1 + $0xb20] ss:$16 sps:$4 sm:$0xff]  }
  0x87   :  { %3896 = vmatpush1.bf16.msra.mxu0 %v8642_v24  ;;  %v8732_v24 = vld [vmem:[%s12655_s1 + $0x904] ss:$16 sps:$4 sm:$0xff]  }
  0x88   :  { %3947 = vmatpush1.bf16.msra.mxu1 %v8645_v25  ;;  %3897 = vmatprep.subr.bf16.mxu0 %v8652_v26  ;;  %v8735_v25 = vld [vmem:[%s12655_s1 + $0xb04] ss:$16 sps:$4 sm:$0xff]   ;;  %v8730_v26 = vld [vmem:[%s12655_s1 + $0x900] ss:$16 sps:$4 sm:$0xff]  }
  0x89   :  { %3948 = vmatprep.subr.bf16.mxu1 %v8655_v27  ;;  %v8733_v27 = vld [vmem:[%s12655_s1 + $0xb00] ss:$16 sps:$4 sm:$0xff]  }
  0x8a   :  { %3834 = vmatmul.mubr.bf16.gmra.mxu0 %v9957_v32 }
  0x8b   :  { %3885 = vmatmul.mubr.bf16.gmra.mxu1 %v9965_v35  ;;  %3898 = vmatpush1.bf16.msra.mxu0 %v8650_v33  ;;  %v8744_v33 = vld [vmem:[%s12655_s1 + $0xce4] ss:$16 sps:$4 sm:$0xff]  }
  0x8c   :  { %3949 = vmatpush1.bf16.msra.mxu1 %v8653_v34  ;;  %3899 = vmatprep.subr.bf16.mxu0 %v8660_v36  ;;  %v8736_v34 = vld [vmem:[%s12654_s0 + $0x20] ss:$72 sps:$4 sm:$0xff]   ;;  %v8747_v36 = vld [vmem:[%s12655_s1 + $0xee4] ss:$16 sps:$4 sm:$0xff]  }
  0x8d   :  { %3950 = vmatprep.subr.bf16.mxu1 %v8663_v37  ;;  %3925 = vmatprep.mubr.bf16.mxu0 %v8738_v38  ;;  %v8739_v37 = vld [vmem:[%s12654_s0 + $0x28] ss:$72 sps:$4 sm:$0xff]  }
  0x8e   :  { %3976 = vmatprep.mubr.bf16.mxu1 %v8741_v39  ;;  %v8742_v38 = vld [vmem:[%s12655_s1 + $0xce0] ss:$16 sps:$4 sm:$0xff]  }
  0x8f   :  { %3900 = vmatpush1.bf16.msra.mxu0 %v8658_v40  ;;  %v53_v39 = vld [vmem:[%s12654_s0 + $0xb0] sm:$0x33]  ;;  %v54_v40 = vld [vmem:[%s12654_s0 + $0xb8] sm:$0x33] }
  0x90   :  { %3951 = vmatpush1.bf16.msra.mxu1 %v8661_v41  ;;  %3901 = vmatprep.subr.bf16.mxu0 %v8666_v42  ;;  %v8745_v41 = vld [vmem:[%s12655_s1 + $0xee0] ss:$16 sps:$4 sm:$0xff]   ;;  %v8750_v42 = vld [vmem:[%s12655_s1 + $0xcc4] ss:$16 sps:$4 sm:$0xff]  }
  0x91   :  { %3952 = vmatprep.subr.bf16.mxu1 %v8669_v43  ;;  %v8753_v43 = vld [vmem:[%s12655_s1 + $0xec4] ss:$16 sps:$4 sm:$0xff]  }
  0x93   :  { %3902 = vmatpush1.bf16.msra.mxu0 %v8664_v44  ;;  %v10161_v44 = vcombine.high %v53_v39, %v53_v39 }
  0x94   :  { %3953 = vmatpush1.bf16.msra.mxu1 %v8667_v45  ;;  %3903 = vmatprep.subr.bf16.mxu0 %v8672_v46  ;;  %v10163_v45 = vcombine.high %v54_v40, %v54_v40  ;;  %v8748_v46 = vld [vmem:[%s12655_s1 + $0xcc0] ss:$16 sps:$4 sm:$0xff]  }
  0x95   :  { %3954 = vmatprep.subr.bf16.mxu1 %v8675_v47  ;;  %v8751_v47 = vld [vmem:[%s12655_s1 + $0xec0] ss:$16 sps:$4 sm:$0xff]  }
  0x97   :  { %3904 = vmatpush1.bf16.msra.mxu0 %v8670_v48  ;;  %v8758_v48 = vld [vmem:[%s12655_s1 + $0xca4] ss:$16 sps:$4 sm:$0xff]  }
  0x98   :  { %3955 = vmatpush1.bf16.msra.mxu1 %v8673_v49  ;;  %3905 = vmatprep.subr.bf16.mxu0 %v8678_v50  ;;  %v8761_v49 = vld [vmem:[%s12655_s1 + $0xea4] ss:$16 sps:$4 sm:$0xff]   ;;  %v10179_v50 = vcombine.low %v53_v39, %v53_v39  ;;  %v8821_v39 = vld [vmem:[%s12655_s1 + $0xf60] ss:$16 sps:$4 sm:$0xff]  }
  0x99   :  { %3956 = vmatprep.subr.bf16.mxu1 %v8681_v51  ;;  %v8756_v51 = vld [vmem:[%s12655_s1 + $0xca0] ss:$16 sps:$4 sm:$0xff]  }
  0x9b   :  { %3906 = vmatpush1.bf16.msra.mxu0 %v8676_v52  ;;  %v10184_v52 = vcombine.low %v54_v40, %v54_v40  ;;  %v8826_v40 = vld [vmem:[%s12655_s1 + $0xd44] ss:$16 sps:$4 sm:$0xff]  }
  0x9c   :  { %3957 = vmatpush1.bf16.msra.mxu1 %v8679_v53  ;;  %3907 = vmatprep.subr.bf16.mxu0 %v8684_v54  ;;  %v8759_v53 = vld [vmem:[%s12655_s1 + $0xea0] ss:$16 sps:$4 sm:$0xff]   ;;  %v8766_v54 = vld [vmem:[%s12655_s1 + $0xc84] ss:$16 sps:$4 sm:$0xff]  }
  0x9d   :  { %3958 = vmatprep.subr.bf16.mxu1 %v8687_v55  ;;  %v8769_v55 = vld [vmem:[%s12655_s1 + $0xe84] ss:$16 sps:$4 sm:$0xff]  }
  0x9f   :  { %3908 = vmatpush1.bf16.msra.mxu0 %v8682_v56  ;;  %v8844_v56 = vld [vmem:[%s12654_s0 + $0x34] ss:$72 sps:$4 sm:$0xff]  }
  0xa0   :  { %3959 = vmatpush1.bf16.msra.mxu1 %v8685_v57  ;;  %3909 = vmatprep.subr.bf16.mxu0 %v8690_v58  ;;  %v8847_v57 = vld [vmem:[%s12654_s0 + $0x3c] ss:$72 sps:$4 sm:$0xff]   ;;  %v8764_v58 = vld [vmem:[%s12655_s1 + $0xc80] ss:$16 sps:$4 sm:$0xff]  }
  0xa1   :  { %3960 = vmatprep.subr.bf16.mxu1 %v8693_v59  ;;  %v8767_v59 = vld [vmem:[%s12655_s1 + $0xe80] ss:$16 sps:$4 sm:$0xff]  }
  0xa3   :  { %3910 = vmatpush2.bf16.msra.mxu0 %v8688_v60  ;;  %v8772_v60 = vld [vmem:[%s12655_s1 + $0xc64] ss:$16 sps:$4 sm:$0xff]  }
  0xa4   :  { %3961 = vmatpush2.bf16.msra.mxu1 %v8691_v61  ;;  %3911 = vmatprep.subr.bf16.mxu0 %v8696_v62  ;;  %v8775_v61 = vld [vmem:[%s12655_s1 + $0xe64] ss:$16 sps:$4 sm:$0xff]   ;;  %v8770_v62 = vld [vmem:[%s12655_s1 + $0xc60] ss:$16 sps:$4 sm:$0xff]  }
  0xa5   :  { %3962 = vmatprep.subr.bf16.mxu1 %v8699_v63  ;;  %v8773_v63 = vld [vmem:[%s12655_s1 + $0xe60] ss:$16 sps:$4 sm:$0xff]  }
  0xa7   :  { %3912 = vmatpush2.bf16.msra.mxu0 %v8694_v0  ;;  %v8778_v0 = vld [vmem:[%s12655_s1 + $0xc44] ss:$16 sps:$4 sm:$0xff]  }
  0xa8   :  { %3963 = vmatpush2.bf16.msra.mxu1 %v8697_v1  ;;  %3913 = vmatprep.subr.bf16.mxu0 %v8702_v2  ;;  %v8781_v1 = vld [vmem:[%s12655_s1 + $0xe44] ss:$16 sps:$4 sm:$0xff]   ;;  %v8776_v2 = vld [vmem:[%s12655_s1 + $0xc40] ss:$16 sps:$4 sm:$0xff]  }
  0xa9   :  { %3964 = vmatprep.subr.bf16.mxu1 %v8705_v3  ;;  %v8779_v3 = vld [vmem:[%s12655_s1 + $0xe40] ss:$16 sps:$4 sm:$0xff]  }
  0xab   :  { %3914 = vmatpush2.bf16.msra.mxu0 %v8700_v4  ;;  %v8784_v4 = vld [vmem:[%s12655_s1 + $0xc24] ss:$16 sps:$4 sm:$0xff]  }
  0xac   :  { %3965 = vmatpush2.bf16.msra.mxu1 %v8703_v5  ;;  %3915 = vmatprep.subr.bf16.mxu0 %v8708_v6  ;;  %v8787_v5 = vld [vmem:[%s12655_s1 + $0xe24] ss:$16 sps:$4 sm:$0xff]   ;;  %v8782_v6 = vld [vmem:[%s12655_s1 + $0xc20] ss:$16 sps:$4 sm:$0xff]  }
  0xad   :  { %3966 = vmatprep.subr.bf16.mxu1 %v8711_v7  ;;  %v8785_v7 = vld [vmem:[%s12655_s1 + $0xe20] ss:$16 sps:$4 sm:$0xff]  }
  0xaf   :  { %3916 = vmatpush2.bf16.msra.mxu0 %v8706_v8  ;;  %v8790_v8 = vld [vmem:[%s12655_s1 + $0xc04] ss:$16 sps:$4 sm:$0xff]  }
  0xb0   :  { %3967 = vmatpush2.bf16.msra.mxu1 %v8709_v9  ;;  %3917 = vmatprep.subr.bf16.mxu0 %v8714_v10  ;;  %v8793_v9 = vld [vmem:[%s12655_s1 + $0xe04] ss:$16 sps:$4 sm:$0xff]   ;;  %v8788_v10 = vld [vmem:[%s12655_s1 + $0xc00] ss:$16 sps:$4 sm:$0xff]  }
  0xb1   :  { %3968 = vmatprep.subr.bf16.mxu1 %v8717_v11  ;;  %v8791_v11 = vld [vmem:[%s12655_s1 + $0xe00] ss:$16 sps:$4 sm:$0xff]  }
  0xb3   :  { %3918 = vmatpush2.bf16.msra.mxu0 %v8712_v12  ;;  %v8796_v12 = vld [vmem:[%s12655_s1 + $0xde4] ss:$16 sps:$4 sm:$0xff]  }
  0xb4   :  { %3969 = vmatpush2.bf16.msra.mxu1 %v8715_v13  ;;  %3919 = vmatprep.subr.bf16.mxu0 %v8720_v14  ;;  %v8799_v13 = vld [vmem:[%s12655_s1 + $0xfe4] ss:$16 sps:$4 sm:$0xff]   ;;  %v8794_v14 = vld [vmem:[%s12655_s1 + $0xde0] ss:$16 sps:$4 sm:$0xff]  }
  0xb5   :  { %3970 = vmatprep.subr.bf16.mxu1 %v8723_v15  ;;  %v8797_v15 = vld [vmem:[%s12655_s1 + $0xfe0] ss:$16 sps:$4 sm:$0xff]  }
  0xb7   :  { %3920 = vmatpush2.bf16.msra.mxu0 %v8718_v16  ;;  %v8802_v16 = vld [vmem:[%s12655_s1 + $0xdc4] ss:$16 sps:$4 sm:$0xff]  }
  0xb8   :  { %3971 = vmatpush2.bf16.msra.mxu1 %v8721_v17  ;;  %3921 = vmatprep.subr.bf16.mxu0 %v8726_v18  ;;  %v8805_v17 = vld [vmem:[%s12655_s1 + $0xfc4] ss:$16 sps:$4 sm:$0xff]   ;;  %v8800_v18 = vld [vmem:[%s12655_s1 + $0xdc0] ss:$16 sps:$4 sm:$0xff]  }
  0xb9   :  { %3972 = vmatprep.subr.bf16.mxu1 %v8729_v19  ;;  %v8803_v19 = vld [vmem:[%s12655_s1 + $0xfc0] ss:$16 sps:$4 sm:$0xff]  }
  0xbb   :  { %3922 = vmatpush2.bf16.msra.mxu0 %v8724_v20  ;;  %v8808_v20 = vld [vmem:[%s12655_s1 + $0xda4] ss:$16 sps:$4 sm:$0xff]  }
  0xbc   :  { %3973 = vmatpush2.bf16.msra.mxu1 %v8727_v21  ;;  %3923 = vmatprep.subr.bf16.mxu0 %v8732_v24  ;;  %v8811_v21 = vld [vmem:[%s12655_s1 + $0xfa4] ss:$16 sps:$4 sm:$0xff]   ;;  %v8806_v24 = vld [vmem:[%s12655_s1 + $0xda0] ss:$16 sps:$4 sm:$0xff]  }
  0xbd   :  { %3974 = vmatprep.subr.bf16.mxu1 %v8735_v25  ;;  %v8809_v25 = vld [vmem:[%s12655_s1 + $0xfa0] ss:$16 sps:$4 sm:$0xff]  }
  0xbf   :  { %3924 = vmatpush2.bf16.msra.mxu0 %v8730_v26  ;;  %v8814_v26 = vld [vmem:[%s12655_s1 + $0xd84] ss:$16 sps:$4 sm:$0xff]  }
  0xc0   :  { %3975 = vmatpush2.bf16.msra.mxu1 %v8733_v27  ;;  %3995 = vmatprep.subr.bf16.mxu0 %v8744_v33  ;;  %v8817_v27 = vld [vmem:[%s12655_s1 + $0xf84] ss:$16 sps:$4 sm:$0xff]   ;;  %v8812_v33 = vld [vmem:[%s12655_s1 + $0xd80] ss:$16 sps:$4 sm:$0xff]  }
  0xc1   :  { %4046 = vmatprep.subr.bf16.mxu1 %v8747_v36  ;;  %v8820_v36 = vld [vmem:[%s12655_s1 + $0xd64] ss:$16 sps:$4 sm:$0xff]  }
  0xc2   :  { %3926 = vmatmul.mubr.bf16.vlgmr.msra.gmra.mxu0 %v8736_v34  ;;  %v8815_v34 = vld [vmem:[%s12655_s1 + $0xf80] ss:$16 sps:$4 sm:$0xff]  }
  0xc3   :  { %3977 = vmatmul.mubr.bf16.vlgmr.msra.gmra.mxu1 %v8739_v37  ;;  %3996 = vmatpush1.bf16.msra.mxu0 %v8742_v38  ;;  %v8823_v37 = vld [vmem:[%s12655_s1 + $0xf64] ss:$16 sps:$4 sm:$0xff]   ;;  %v8818_v38 = vld [vmem:[%s12655_s1 + $0xd60] ss:$16 sps:$4 sm:$0xff]  }
  0xc4   :  { %4047 = vmatpush1.bf16.msra.mxu1 %v8745_v41  ;;  %3997 = vmatprep.subr.bf16.mxu0 %v8750_v42  ;;  %v8829_v41 = vld [vmem:[%s12655_s1 + $0xf44] ss:$16 sps:$4 sm:$0xff]   ;;  %v8824_v42 = vld [vmem:[%s12655_s1 + $0xd40] ss:$16 sps:$4 sm:$0xff]  }
  0xc5   :  { %4048 = vmatprep.subr.bf16.mxu1 %v8753_v43  ;;  %3935 = vmatprep.mubr.bf16.mxu0 %v10161_v44  ;;  %v8827_v43 = vld [vmem:[%s12655_s1 + $0xf40] ss:$16 sps:$4 sm:$0xff]  }
  0xc6   :  { %3986 = vmatprep.mubr.bf16.mxu1 %v10163_v45 }
  0xc7   :  { %3998 = vmatpush1.bf16.msra.mxu0 %v8748_v46  ;;  %v636_v46 = vlaneseq }
  0xc8   :  { %4049 = vmatpush1.bf16.msra.mxu1 %v8751_v47  ;;  %3999 = vmatprep.subr.bf16.mxu0 %v8758_v48  ;;  %v8832_v47 = vld [vmem:[%s12655_s1 + $0xd24] ss:$16 sps:$4 sm:$0xff]  }
  0xc9   :  { %4050 = vmatprep.subr.bf16.mxu1 %v8761_v49  ;;  %v8835_v48 = vld [vmem:[%s12655_s1 + $0xf24] ss:$16 sps:$4 sm:$0xff]   ;;  %v8830_v49 = vld [vmem:[%s12655_s1 + $0xd20] ss:$16 sps:$4 sm:$0xff]  }
  0xca   :  { %3936 = vmatmul.mubr.bf16.gmra.mxu0 %v10179_v50 }
  0xcb   :  { %3987 = vmatmul.mubr.bf16.gmra.mxu1 %v10184_v52  ;;  %4000 = vmatpush1.bf16.msra.mxu0 %v8756_v51  ;;  %v8833_v51 = vld [vmem:[%s12655_s1 + $0xf20] ss:$16 sps:$4 sm:$0xff]  }
  0xcc   :  { %4051 = vmatpush1.bf16.msra.mxu1 %v8759_v53  ;;  %4001 = vmatprep.subr.bf16.mxu0 %v8766_v54  ;;  %v10341_v53 = vshrl.u32 %v636_v46, 7  ;;  %v8838_v54 = vld [vmem:[%s12655_s1 + $0xd04] ss:$16 sps:$4 sm:$0xff]  }
  0xcd   :  { %4052 = vmatprep.subr.bf16.mxu1 %v8769_v55  ;;  %4027 = vmatprep.mubr.bf16.mxu0 %v8844_v56  ;;  %v8841_v55 = vld [vmem:[%s12655_s1 + $0xf04] ss:$16 sps:$4 sm:$0xff]   ;;  %v8836_v56 = vld [vmem:[%s12655_s1 + $0xd00] ss:$16 sps:$4 sm:$0xff]  }
  0xce   :  { %4078 = vmatprep.mubr.bf16.mxu1 %v8847_v57  ;;  %v8839_v57 = vld [vmem:[%s12655_s1 + $0xf00] ss:$16 sps:$4 sm:$0xff]  }
  0xcf   :  { %4002 = vmatpush1.bf16.msra.mxu0 %v8764_v58  ;;  %v634_v58 = vld [vmem:[%s12656_s2] sm:$0xf] }
  0xd0   :  { %4053 = vmatpush1.bf16.msra.mxu1 %v8767_v59  ;;  %4003 = vmatprep.subr.bf16.mxu0 %v8772_v60  ;;  %v638_v59 = vsub.s32 0, %v10341_v53  ;;  %v8842_v60 = vld [vmem:[%s12654_s0 + $0x30] ss:$72 sps:$4 sm:$0xff]  }
  0xd1   :  { %4054 = vmatprep.subr.bf16.mxu1 %v8775_v61  ;;  %v8845_v61 = vld [vmem:[%s12654_s0 + $0x38] ss:$72 sps:$4 sm:$0xff]  }
  0xd3   :  { %4004 = vmatpush1.bf16.msra.mxu0 %v8770_v62  ;;  %v8850_v62 = vld [vmem:[%s12655_s1 + $0x10e4] ss:$16 sps:$4 sm:$0xff]  }
  0xd4   :  { %4055 = vmatpush1.bf16.msra.mxu1 %v8773_v63  ;;  %4005 = vmatprep.subr.bf16.mxu0 %v8778_v0  ;;  %v8853_v63 = vld [vmem:[%s12655_s1 + $0xec] ss:$16 sps:$4 sm:$0xff]   ;;  %v642_v0 = vsub.s32 1, %v10341_v53 }
  0xd5   :  { %4056 = vmatprep.subr.bf16.mxu1 %v8781_v1  ;;  %v55_v1 = vld [vmem:[%s12654_s0 + $0xc0] sm:$0x33] }
  0xd7   :  { %4006 = vmatpush1.bf16.msra.mxu0 %v8776_v2  ;;  %v56_v2 = vld [vmem:[%s12654_s0 + $0xc8] sm:$0x33] }
  0xd8   :  { %4057 = vmatpush1.bf16.msra.mxu1 %v8779_v3  ;;  %4007 = vmatprep.subr.bf16.mxu0 %v8784_v4  ;;  %v10380_v3 = vrot.slane %v634_v58, %v638_v59  ;;  %v8848_v4 = vld [vmem:[%s12655_s1 + $0x10e0] ss:$16 sps:$4 sm:$0xff]  }
  0xd9   :  { %4058 = vmatprep.subr.bf16.mxu1 %v8787_v5  ;;  %v8851_v5 = vld [vmem:[%s12655_s1 + $0xe8] ss:$16 sps:$4 sm:$0xff]  }
  0xdb   :  { %4008 = vmatpush1.bf16.msra.mxu0 %v8782_v6  ;;  %v8856_v6 = vld [vmem:[%s12655_s1 + $0x10c4] ss:$16 sps:$4 sm:$0xff]  }
  0xdc   :  { %4059 = vmatpush1.bf16.msra.mxu1 %v8785_v7  ;;  %4009 = vmatprep.subr.bf16.mxu0 %v8790_v8  ;;  %v8859_v7 = vld [vmem:[%s12655_s1 + $0xcc] ss:$16 sps:$4 sm:$0xff]   ;;  %v10396_v8 = vrot.slane %v634_v58, %v642_v0  ;;  %v8884_v58 = vld [vmem:[%s12655_s1 + $0x1044] ss:$16 sps:$4 sm:$0xff]  }
  0xdd   :  { %4060 = vmatprep.subr.bf16.mxu1 %v8793_v9  ;;  %v10398_v9 = vcombine.high %v55_v1, %v55_v1 }
  0xdf   :  { %4010 = vmatpush1.bf16.msra.mxu0 %v8788_v10  ;;  %v10400_v10 = vcombine.high %v56_v2, %v56_v2 }
  0xe0   :  { %4061 = vmatpush1.bf16.msra.mxu1 %v8791_v11  ;;  %4011 = vmatprep.subr.bf16.mxu0 %v8796_v12 }
  0xe1   :  { %4062 = vmatprep.subr.bf16.mxu1 %v8799_v13 }
  0xe3   :  { %4012 = vmatpush2.bf16.msra.mxu0 %v8794_v14  ;;  %v8854_v14 = vld [vmem:[%s12655_s1 + $0x10c0] ss:$16 sps:$4 sm:$0xff]  }
  0xe4   :  { %4063 = vmatpush2.bf16.msra.mxu1 %v8797_v15  ;;  %4013 = vmatprep.subr.bf16.mxu0 %v8802_v16  ;;  %v8857_v15 = vld [vmem:[%s12655_s1 + $0xc8] ss:$16 sps:$4 sm:$0xff]  }
  0xe5   :  { %4064 = vmatprep.subr.bf16.mxu1 %v8805_v17 }
  0xe7   :  { %4014 = vmatpush2.bf16.msra.mxu0 %v8800_v18  ;;  %v8864_v18 = vld [vmem:[%s12655_s1 + $0x10a4] ss:$16 sps:$4 sm:$0xff]  }
  0xe8   :  { %4065 = vmatpush2.bf16.msra.mxu1 %v8803_v19  ;;  %4015 = vmatprep.subr.bf16.mxu0 %v8808_v20  ;;  %v8867_v19 = vld [vmem:[%s12655_s1 + $0xac] ss:$16 sps:$4 sm:$0xff]  }
  0xe9   :  { %4066 = vmatprep.subr.bf16.mxu1 %v8811_v21 }
  0xeb   :  { %4016 = vmatpush2.bf16.msra.mxu0 %v8806_v24 }
  0xec   :  { %4067 = vmatpush2.bf16.msra.mxu1 %v8809_v25  ;;  %4017 = vmatprep.subr.bf16.mxu0 %v8814_v26  ;;  %v10420_v26 = vcombine.low %v55_v1, %v55_v1  ;;  %v8893_v1 = vld [vmem:[%s12655_s1 + $0x2c] ss:$16 sps:$4 sm:$0xff]  }
  0xed   :  { %4068 = vmatprep.subr.bf16.mxu1 %v8817_v27  ;;  %v10422_v27 = vcombine.low %v56_v2, %v56_v2 }
  0xef   :  { %4018 = vmatpush2.bf16.msra.mxu0 %v8812_v33 }
  0xf0   :  { %4069 = vmatpush2.bf16.msra.mxu1 %v8815_v34  ;;  %4019 = vmatprep.subr.bf16.mxu0 %v8820_v36  ;;  %v8862_v36 = vld [vmem:[%s12655_s1 + $0x10a0] ss:$16 sps:$4 sm:$0xff]  }
  0xf1   :  { %4070 = vmatprep.subr.bf16.mxu1 %v8823_v37  ;;  %v8865_v37 = vld [vmem:[%s12655_s1 + $0xa8] ss:$16 sps:$4 sm:$0xff]  }
  0xf3   :  { %4020 = vmatpush2.bf16.msra.mxu0 %v8818_v38 }
  0xf4   :  { %4071 = vmatpush2.bf16.msra.mxu1 %v8821_v39  ;;  %4021 = vmatprep.subr.bf16.mxu0 %v8826_v40  ;;  %v8872_v39 = vld [vmem:[%s12655_s1 + $0x1084] ss:$16 sps:$4 sm:$0xff]   ;;  %v8875_v40 = vld [vmem:[%s12655_s1 + $0x8c] ss:$16 sps:$4 sm:$0xff]  }
  0xf5   :  { %4072 = vmatprep.subr.bf16.mxu1 %v8829_v41 }
  0xf7   :  { %4022 = vmatpush2.bf16.msra.mxu0 %v8824_v42 }
  0xf8   :  { %4073 = vmatpush2.bf16.msra.mxu1 %v8827_v43  ;;  %4023 = vmatprep.subr.bf16.mxu0 %v8832_v47  ;;  %v8950_v43 = vld [vmem:[%s12654_s0 + $0x44] ss:$72 sps:$4 sm:$0xff]  }
  0xf9   :  { %4074 = vmatprep.subr.bf16.mxu1 %v8835_v48  ;;  %v8870_v48 = vld [vmem:[%s12655_s1 + $0x1080] ss:$16 sps:$4 sm:$0xff]  }
  0xfb   :  { %4024 = vmatpush2.bf16.msra.mxu0 %v8830_v49  ;;  %v8873_v49 = vld [vmem:[%s12655_s1 + $0x88] ss:$16 sps:$4 sm:$0xff]  }
  0xfc   :  { %4075 = vmatpush2.bf16.msra.mxu1 %v8833_v51  ;;  %4025 = vmatprep.subr.bf16.mxu0 %v8838_v54  ;;  %v8878_v51 = vld [vmem:[%s12655_s1 + $0x1064] ss:$16 sps:$4 sm:$0xff]   ;;  %v8881_v54 = vld [vmem:[%s12655_s1 + $0x6c] ss:$16 sps:$4 sm:$0xff]  }
  0xfd   :  { %4076 = vmatprep.subr.bf16.mxu1 %v8841_v55  ;;  %v9401_v55 = vld [vmem:[%s12654_s0 + $0x4] ss:$72 sps:$4 sm:$0xff]  }
  0xff   :  { %4026 = vmatpush2.bf16.msra.mxu0 %v8836_v56  ;;  %v8876_v56 = vld [vmem:[%s12655_s1 + $0x1060] ss:$16 sps:$4 sm:$0xff]  }
 0x100   :  { %4077 = vmatpush2.bf16.msra.mxu1 %v8839_v57  ;;  %4097 = vmatprep.subr.bf16.mxu0 %v8850_v62  ;;  %v8879_v57 = vld [vmem:[%s12655_s1 + $0x68] ss:$16 sps:$4 sm:$0xff]  }
 0x101   :  { %4148 = vmatprep.subr.bf16.mxu1 %v8853_v63  ;;  %v8885_v62 = vld [vmem:[%s12655_s1 + $0x48] ss:$16 sps:$4 sm:$0xff]   ;;  %v8890_v63 = vld [vmem:[%s12655_s1 + $0x1024] ss:$16 sps:$4 sm:$0xff]  }
 0x102   :  { %v3723_v11 = vpop.f32.mrf.mxu0  ;;  %4028 = vmatmul.mubr.bf16.vlgmr.msra.gmra.mxu0 %v8842_v60  ;;  %v8887_v60 = vld [vmem:[%s12655_s1 + $0x4c] ss:$16 sps:$4 sm:$0xff]  }
 0x103   :  { %v3774_v12 = vpop.f32.mrf.mxu1  ;;  %4079 = vmatmul.mubr.bf16.vlgmr.msra.gmra.mxu1 %v8845_v61  ;;  %v3724_v13 = vadd.f32 %v3723_v11, %v10380_v3  ;;  %4098 = vmatpush1.bf16.msra.mxu0 %v8848_v4  ;;  %v8882_v61 = vld [vmem:[%s12655_s1 + $0x1040] ss:$16 sps:$4 sm:$0xff]  }
 0x104   :  { %4149 = vmatpush1.bf16.msra.mxu1 %v8851_v5  ;;  %v3725_v16 = vpop.f32.mrf.mxu0  ;;  %4099 = vmatprep.subr.bf16.mxu0 %v8856_v6  ;;  %v8888_v6 = vld [vmem:[%s12655_s1 + $0x1020] ss:$16 sps:$4 sm:$0xff]  }
 0x105   :  { %v3776_v17 = vpop.f32.mrf.mxu1  ;;  %4150 = vmatprep.subr.bf16.mxu1 %v8859_v7  ;;  %v10415_v20 = vadd.f32 %v3774_v12, %v3724_v13  ;;  %v3726_v21 = vadd.f32 %v3725_v16, %v10396_v8  ;;  %4037 = vmatprep.mubr.bf16.mxu0 %v10398_v9  ;;  %v8891_v7 = vld [vmem:[%s12655_s1 + $0x28] ss:$16 sps:$4 sm:$0xff]   ;;  %v8896_v13 = vld [vmem:[%s12655_s1 + $0x1004] ss:$16 sps:$4 sm:$0xff]  }
 0x106   :  { %4088 = vmatprep.mubr.bf16.mxu1 %v10400_v10  ;;  %v3727_v24 = vpop.f32.mrf.mxu0 }
 0x107   :  { %v3778_v25 = vpop.f32.mrf.mxu1  ;;  %v10424_v33 = vadd.f32 %v3776_v17, %v3726_v21  ;;  %v3728_v34 = vadd.f32 %v3727_v24, %v10380_v3  ;;  %4100 = vmatpush1.bf16.msra.mxu0 %v8854_v14  ;;  %v8897_v21 = vld [vmem:[%s12655_s1 + $0x8] ss:$16 sps:$4 sm:$0xff]  }
 0x108   :  { %4151 = vmatpush1.bf16.msra.mxu1 %v8857_v15  ;;  %v3729_v38 = vpop.f32.mrf.mxu0  ;;  %4101 = vmatprep.subr.bf16.mxu0 %v8864_v18 }
 0x109   :  { %4152 = vmatprep.subr.bf16.mxu1 %v8867_v19  ;;  %v10439_v41 = vadd.f32 %v3778_v25, %v3728_v34  ;;  %v3730_v42 = vadd.f32 %v3729_v38, %v10396_v8  ;;  %v3780_v46 = vpop.f32.mrf.mxu1  ;;  %v8894_v19 = vld [vmem:[%s12655_s1 + $0x1000] ss:$16 sps:$4 sm:$0xff]   ;;  %v8905_v34 = vld [vmem:[%s12655_s1 + $0x1ec] ss:$16 sps:$4 sm:$0xff]   ;;  %v8908_v38 = vld [vmem:[%s12655_s1 + $0x11c4] ss:$16 sps:$4 sm:$0xff]  }
 0x10a   :  { %4038 = vmatmul.mubr.bf16.gmra.mxu0 %v10420_v26  ;;  %v3733_v2 = vpop.f32.mrf.mxu0 }
 0x10b   :  { %4089 = vmatmul.mubr.bf16.gmra.mxu1 %v10422_v27  ;;  %v10447_v47 = vadd.f32 %v3780_v46, %v3730_v42  ;;  %4102 = vmatpush1.bf16.msra.mxu0 %v8862_v36  ;;  %v3784_v4 = vpop.f32.mrf.mxu1  ;;  %v3734_v5 = vadd.f32 %v3733_v2, %v10380_v3  ;;  %v8899_v3 = vld [vmem:[%s12655_s1 + $0xc] ss:$16 sps:$4 sm:$0xff]   ;;  %v8900_v36 = vld [vmem:[%s12655_s1 + $0x11e0] ss:$16 sps:$4 sm:$0xff]   ;;  %v8909_v42 = vld [vmem:[%s12655_s1 + $0x1c8] ss:$16 sps:$4 sm:$0xff]  }
 0x10c   :  { %4153 = vmatpush1.bf16.msra.mxu1 %v8865_v37  ;;  %4103 = vmatprep.subr.bf16.mxu0 %v8872_v39  ;;  %v3735_v11 = vpop.f32.mrf.mxu0  ;;  %v8903_v37 = vld [vmem:[%s12655_s1 + $0x1e8] ss:$16 sps:$4 sm:$0xff]   ;;  %v8911_v39 = vld [vmem:[%s12655_s1 + $0x1cc] ss:$16 sps:$4 sm:$0xff]  }
 0x10d   :  { %4154 = vmatprep.subr.bf16.mxu1 %v8875_v40  ;;  %4129 = vmatprep.mubr.bf16.mxu0 %v8950_v43  ;;  %v3786_v12 = vpop.f32.mrf.mxu1  ;;  %v3736_v14 = vadd.f32 %v3735_v11, %v10396_v8  ;;  %v10502_v15 = vadd.f32 %v3784_v4, %v3734_v5  ;;  %v8902_v8 = vld [vmem:[%s12655_s1 + $0x11e4] ss:$16 sps:$4 sm:$0xff]   ;;  %v8906_v40 = vld [vmem:[%s12655_s1 + $0x11c0] ss:$16 sps:$4 sm:$0xff]   ;;  %v8917_v46 = vld [vmem:[%s12655_s1 + $0x1ac] ss:$16 sps:$4 sm:$0xff]  }
 0x10e   :  { %4180 = vmatprep.mubr.bf16.mxu1 %v9401_v55  ;;  %v3737_v16 = vpop.f32.mrf.mxu0  ;;  %v8914_v43 = vld [vmem:[%s12655_s1 + $0x11a4] ss:$16 sps:$4 sm:$0xff]   ;;  %v8918_v55 = vld [vmem:[%s12655_s1 + $0x1180] ss:$16 sps:$4 sm:$0xff]   ;;  %v8933_v2 = vld [vmem:[%s12655_s1 + $0x148] ss:$16 sps:$4 sm:$0xff]  }
 0x10f   :  { %4104 = vmatpush1.bf16.msra.mxu0 %v8870_v48  ;;  %v3788_v17 = vpop.f32.mrf.mxu1  ;;  %v10504_v18 = vadd.f32 %v3786_v12, %v3736_v14  ;;  %v8912_v48 = vld [vmem:[%s12655_s1 + $0x11a0] ss:$16 sps:$4 sm:$0xff]   ;;  %v8938_v4 = vld [vmem:[%s12655_s1 + $0x1124] ss:$16 sps:$4 sm:$0xff]   ;;  %v8941_v5 = vld [vmem:[%s12655_s1 + $0x12c] ss:$16 sps:$4 sm:$0xff]  }
 0x110   :  { %4155 = vmatpush1.bf16.msra.mxu1 %v8873_v49  ;;  %4105 = vmatprep.subr.bf16.mxu0 %v8878_v51  ;;  %v3738_v24 = vpop.f32.mrf.mxu0  ;;  %v8915_v49 = vld [vmem:[%s12655_s1 + $0x1a8] ss:$16 sps:$4 sm:$0xff]   ;;  %v8920_v51 = vld [vmem:[%s12655_s1 + $0x1184] ss:$16 sps:$4 sm:$0xff]   ;;  %v8947_v12 = vld [vmem:[%s12655_s1 + $0x10c] ss:$16 sps:$4 sm:$0xff]  }
 0x111   :  { %4156 = vmatprep.subr.bf16.mxu1 %v8881_v54  ;;  %v3789_v25 = vpop.f32.mrf.mxu1  ;;  %v8923_v54 = vld [vmem:[%s12655_s1 + $0x18c] ss:$16 sps:$4 sm:$0xff]   ;;  %v8944_v11 = vld [vmem:[%s12655_s1 + $0x1104] ss:$16 sps:$4 sm:$0xff]   ;;  %v8948_v16 = vld [vmem:[%s12654_s0 + $0x40] ss:$72 sps:$4 sm:$0xff]  }
 0x112   :  { %v8953_v14 = vld [vmem:[%s12655_s1 + $0x2ec] ss:$16 sps:$4 sm:$0xff]   ;;  %v8954_v24 = vld [vmem:[%s12655_s1 + $0x4e8] ss:$16 sps:$4 sm:$0xff]  }
 0x113   :  { %4106 = vmatpush1.bf16.msra.mxu0 %v8876_v56  ;;  %v8921_v56 = vld [vmem:[%s12655_s1 + $0x188] ss:$16 sps:$4 sm:$0xff]   ;;  %v8956_v17 = vld [vmem:[%s12655_s1 + $0x4ec] ss:$16 sps:$4 sm:$0xff]  }
 0x114   :  { %4157 = vmatpush1.bf16.msra.mxu1 %v8879_v57  ;;  %4107 = vmatprep.subr.bf16.mxu0 %v8884_v58  ;;  %v8926_v57 = vld [vmem:[%s12655_s1 + $0x1164] ss:$16 sps:$4 sm:$0xff]   ;;  %v8929_v58 = vld [vmem:[%s12655_s1 + $0x16c] ss:$16 sps:$4 sm:$0xff]  }
 0x115   :  { %4158 = vmatprep.subr.bf16.mxu1 %v8887_v60  ;;  %v8924_v60 = vld [vmem:[%s12655_s1 + $0x1160] ss:$16 sps:$4 sm:$0xff]   ;;  %v8959_v25 = vld [vmem:[%s12655_s1 + $0x2cc] ss:$16 sps:$4 sm:$0xff]  }
 0x117   :  { %4108 = vmatpush1.bf16.msra.mxu0 %v8882_v61  ;;  %v8927_v61 = vld [vmem:[%s12655_s1 + $0x168] ss:$16 sps:$4 sm:$0xff]  }
 0x118   :  { %4159 = vmatpush1.bf16.msra.mxu1 %v8885_v62  ;;  %4109 = vmatprep.subr.bf16.mxu0 %v8890_v63  ;;  %v8932_v62 = vld [vmem:[%s12655_s1 + $0x1144] ss:$16 sps:$4 sm:$0xff]   ;;  %v8935_v63 = vld [vmem:[%s12655_s1 + $0x14c] ss:$16 sps:$4 sm:$0xff]  }
 0x119   :  { %4160 = vmatprep.subr.bf16.mxu1 %v8893_v1  ;;  %v8930_v1 = vld [vmem:[%s12655_s1 + $0x1140] ss:$16 sps:$4 sm:$0xff]  }
 0x11b   :  { %4110 = vmatpush1.bf16.msra.mxu0 %v8888_v6  ;;  %v8936_v6 = vld [vmem:[%s12655_s1 + $0x1120] ss:$16 sps:$4 sm:$0xff]  }
 0x11c   :  { %4161 = vmatpush1.bf16.msra.mxu1 %v8891_v7  ;;  %4111 = vmatprep.subr.bf16.mxu0 %v8896_v13  ;;  %v8939_v7 = vld [vmem:[%s12655_s1 + $0x128] ss:$16 sps:$4 sm:$0xff]   ;;  %v8942_v13 = vld [vmem:[%s12655_s1 + $0x1100] ss:$16 sps:$4 sm:$0xff]  }
 0x11d   :  { %4162 = vmatprep.subr.bf16.mxu1 %v8899_v3  ;;  %v8945_v3 = vld [vmem:[%s12655_s1 + $0x108] ss:$16 sps:$4 sm:$0xff]  }
 0x11f   :  { %4112 = vmatpush1.bf16.msra.mxu0 %v8894_v19  ;;  %v57_v19 = vld [vmem:[%s12654_s0 + $0xd0] sm:$0x33] }
 0x120   :  { %4163 = vmatpush1.bf16.msra.mxu1 %v8897_v21  ;;  %4113 = vmatprep.subr.bf16.mxu0 %v8902_v8  ;;  %v8951_v21 = vld [vmem:[%s12655_s1 + $0x2e8] ss:$16 sps:$4 sm:$0xff]   ;;  %v8962_v8 = vld [vmem:[%s12655_s1 + $0x4cc] ss:$16 sps:$4 sm:$0xff]  }
 0x121   :  { %4164 = vmatprep.subr.bf16.mxu1 %v8905_v34  ;;  %v8957_v34 = vld [vmem:[%s12655_s1 + $0x2c8] ss:$16 sps:$4 sm:$0xff]  }
 0x123   :  { %4114 = vmatpush2.bf16.msra.mxu0 %v8900_v36  ;;  %v8960_v36 = vld [vmem:[%s12655_s1 + $0x4c8] ss:$16 sps:$4 sm:$0xff]  }
 0x124   :  { %4165 = vmatpush2.bf16.msra.mxu1 %v8903_v37  ;;  %4115 = vmatprep.subr.bf16.mxu0 %v8908_v38  ;;  %v10638_v37 = vcombine.high %v57_v19, %v57_v19 }
 0x125   :  { %4166 = vmatprep.subr.bf16.mxu1 %v8911_v39 }
 0x127   :  { %4116 = vmatpush2.bf16.msra.mxu0 %v8906_v40  ;;  %v9402_v40 = vld [vmem:[%s12654_s0] ss:$72 sps:$4 sm:$0xff]  }
 0x128   :  { %4167 = vmatpush2.bf16.msra.mxu1 %v8909_v42  ;;  %4117 = vmatprep.subr.bf16.mxu0 %v8914_v43 }
 0x129   :  { %4168 = vmatprep.subr.bf16.mxu1 %v8917_v46 }
 0x12b   :  { %4118 = vmatpush2.bf16.msra.mxu0 %v8912_v48  ;;  %v8967_v48 = vld [vmem:[%s12655_s1 + $0x2ac] ss:$16 sps:$4 sm:$0xff]  }
 0x12c   :  { %4169 = vmatpush2.bf16.msra.mxu1 %v8915_v49  ;;  %4119 = vmatprep.subr.bf16.mxu0 %v8920_v51  ;;  %v8970_v49 = vld [vmem:[%s12655_s1 + $0x4ac] ss:$16 sps:$4 sm:$0xff]  }
 0x12d   :  { %4170 = vmatprep.subr.bf16.mxu1 %v8923_v54 }
 0x12f   :  { %4120 = vmatpush2.bf16.msra.mxu0 %v8918_v55  ;;  %v8968_v55 = vld [vmem:[%s12655_s1 + $0x4a8] ss:$16 sps:$4 sm:$0xff]  }
 0x130   :  { %4171 = vmatpush2.bf16.msra.mxu1 %v8921_v56  ;;  %4121 = vmatprep.subr.bf16.mxu0 %v8926_v57 }
 0x131   :  { %4172 = vmatprep.subr.bf16.mxu1 %v8929_v58  ;;  %v10661_v58 = vcombine.low %v57_v19, %v57_v19 }
 0x133   :  { %4122 = vmatpush2.bf16.msra.mxu0 %v8924_v60 }
 0x134   :  { %4173 = vmatpush2.bf16.msra.mxu1 %v8927_v61  ;;  %4123 = vmatprep.subr.bf16.mxu0 %v8932_v62 }
 0x135   :  { %4174 = vmatprep.subr.bf16.mxu1 %v8935_v63  ;;  %v8973_v63 = vld [vmem:[%s12655_s1 + $0x28c] ss:$16 sps:$4 sm:$0xff]  }
 0x137   :  { %4124 = vmatpush2.bf16.msra.mxu0 %v8930_v1 }
 0x138   :  { %4175 = vmatpush2.bf16.msra.mxu1 %v8933_v2  ;;  %4125 = vmatprep.subr.bf16.mxu0 %v8938_v4  ;;  %v8974_v4 = vld [vmem:[%s12655_s1 + $0x488] ss:$16 sps:$4 sm:$0xff]  }
 0x139   :  { %4176 = vmatprep.subr.bf16.mxu1 %v8941_v5 }
 0x13b   :  { %4126 = vmatpush2.bf16.msra.mxu0 %v8936_v6 }
 0x13c   :  { %4177 = vmatpush2.bf16.msra.mxu1 %v8939_v7  ;;  %4127 = vmatprep.subr.bf16.mxu0 %v8944_v11 }
 0x13d   :  { %4178 = vmatprep.subr.bf16.mxu1 %v8947_v12 }
 0x13f   :  { %4128 = vmatpush2.bf16.msra.mxu0 %v8942_v13  ;;  %v8979_v13 = vld [vmem:[%s12655_s1 + $0x26c] ss:$16 sps:$4 sm:$0xff]  }
 0x140   :  { %4179 = vmatpush2.bf16.msra.mxu1 %v8945_v3  ;;  %4199 = vmatprep.subr.bf16.mxu0 %v8953_v14  ;;  %v8982_v3 = vld [vmem:[%s12655_s1 + $0x46c] ss:$16 sps:$4 sm:$0xff]  }
 0x141   :  { %4250 = vmatprep.subr.bf16.mxu1 %v8956_v17 }
 0x142   :  { %v3825_v38 = vpop.f32.mrf.mxu0  ;;  %4130 = vmatmul.mubr.bf16.vlgmr.msra.gmra.mxu0 %v8948_v16  ;;  %v9404_v16 = vld [vmem:[%s12654_s0 + $0x14] ss:$72 sps:$4 sm:$0xff]  }
 0x143   :  { %v3876_v39 = vpop.f32.mrf.mxu1  ;;  %4181 = vmatmul.mubr.bf16.vlgmr.msra.gmra.mxu1 %v9402_v40  ;;  %v3826_v42 = vadd.f32 %v3825_v38, %v10415_v20  ;;  %4200 = vmatpush1.bf16.msra.mxu0 %v8951_v21  ;;  %v8965_v20 = vld [vmem:[%s12655_s1 + $0x2a8] ss:$16 sps:$4 sm:$0xff]   ;;  %v8991_v40 = vld [vmem:[%s12655_s1 + $0x22c] ss:$16 sps:$4 sm:$0xff]  }
 0x144   :  { %4251 = vmatpush1.bf16.msra.mxu1 %v8954_v24  ;;  %v3827_v43 = vpop.f32.mrf.mxu0  ;;  %4201 = vmatprep.subr.bf16.mxu0 %v8959_v25  ;;  %v8980_v24 = vld [vmem:[%s12655_s1 + $0x468] ss:$16 sps:$4 sm:$0xff]   ;;  %v8985_v25 = vld [vmem:[%s12655_s1 + $0x24c] ss:$16 sps:$4 sm:$0xff]  }
 0x145   :  { %v3878_v46 = vpop.f32.mrf.mxu1  ;;  %4252 = vmatprep.subr.bf16.mxu1 %v8962_v8  ;;  %v10650_v51 = vadd.f32 %v3876_v39, %v3826_v42  ;;  %v3828_v54 = vadd.f32 %v3827_v43, %v10424_v33  ;;  %4139 = vmatprep.mubr.bf16.mxu0 %v10638_v37  ;;  %v8988_v8 = vld [vmem:[%s12655_s1 + $0x44c] ss:$16 sps:$4 sm:$0xff]   ;;  %v8983_v38 = vld [vmem:[%s12655_s1 + $0x248] ss:$16 sps:$4 sm:$0xff]  }
 0x146   :  { %4190 = vmatprep.mubr.bf16.mxu1 %v9765_v28  ;;  %v3829_v56 = vpop.f32.mrf.mxu0  ;;  %v8976_v28 = vld [vmem:[%s12655_s1 + $0x48c] ss:$16 sps:$4 sm:$0xff]   ;;  %v8986_v39 = vld [vmem:[%s12655_s1 + $0x448] ss:$16 sps:$4 sm:$0xff]  }
 0x147   :  { %v3880_v57 = vpop.f32.mrf.mxu1  ;;  %v10663_v60 = vadd.f32 %v3878_v46, %v3828_v54  ;;  %v3830_v33 = vadd.f32 %v3829_v56, %v10439_v41  ;;  %4202 = vmatpush1.bf16.msra.mxu0 %v8957_v34  ;;  %v8971_v41 = vld [vmem:[%s12655_s1 + $0x288] ss:$16 sps:$4 sm:$0xff]   ;;  %v8994_v42 = vld [vmem:[%s12655_s1 + $0x42c] ss:$16 sps:$4 sm:$0xff]  }
 0x148   :  { %4253 = vmatpush1.bf16.msra.mxu1 %v8960_v36  ;;  %v3831_v61 = vpop.f32.mrf.mxu0  ;;  %4203 = vmatprep.subr.bf16.mxu0 %v8967_v48  ;;  %v8989_v43 = vld [vmem:[%s12655_s1 + $0x228] ss:$16 sps:$4 sm:$0xff]   ;;  %v8997_v48 = vld [vmem:[%s12655_s1 + $0x20c] ss:$16 sps:$4 sm:$0xff]  }
 0x149   :  { %v3882_v62 = vpop.f32.mrf.mxu1  ;;  %4254 = vmatprep.subr.bf16.mxu1 %v8970_v49  ;;  %v10672_v1 = vadd.f32 %v3880_v57, %v3830_v33  ;;  %v3832_v2 = vadd.f32 %v3831_v61, %v10447_v47  ;;  %v8992_v46 = vld [vmem:[%s12655_s1 + $0x428] ss:$16 sps:$4 sm:$0xff]   ;;  %v9000_v49 = vld [vmem:[%s12655_s1 + $0x40c] ss:$16 sps:$4 sm:$0xff]  }
 0x14a   :  { %v3835_v5 = vpop.f32.mrf.mxu0  ;;  %4140 = vmatmul.mubr.bf16.gmra.mxu0 %v10661_v58  ;;  %v8995_v54 = vld [vmem:[%s12655_s1 + $0x208] ss:$16 sps:$4 sm:$0xff]   ;;  %v9006_v56 = vld [vmem:[%s12655_s1 + $0x5ec] ss:$16 sps:$4 sm:$0xff]  }
 0x14b   :  { %v3886_v6 = vpop.f32.mrf.mxu1  ;;  %4191 = vmatmul.mubr.bf16.gmra.mxu1 %v9769_v30  ;;  %v10683_v7 = vadd.f32 %v3882_v62, %v3832_v2  ;;  %v3836_v11 = vadd.f32 %v3835_v5, %v10502_v15  ;;  %4204 = vmatpush1.bf16.msra.mxu0 %v8965_v20  ;;  %v9403_v15 = vld [vmem:[%s12654_s0 + $0xc] ss:$72 sps:$4 sm:$0xff]   ;;  %v8998_v20 = vld [vmem:[%s12655_s1 + $0x408] ss:$16 sps:$4 sm:$0xff]  }
 0x14c   :  { %4255 = vmatpush1.bf16.msra.mxu1 %v8968_v55  ;;  %v3837_v47 = vpop.f32.mrf.mxu0  ;;  %4205 = vmatprep.subr.bf16.mxu0 %v8973_v63  ;;  %v9003_v55 = vld [vmem:[%s12655_s1 + $0x3ec] ss:$16 sps:$4 sm:$0xff]   ;;  %v9001_v57 = vld [vmem:[%s12655_s1 + $0x3e8] ss:$16 sps:$4 sm:$0xff]  }
 0x14d   :  { %v3888_v12 = vpop.f32.mrf.mxu1  ;;  %4256 = vmatprep.subr.bf16.mxu1 %v8976_v28  ;;  %v3838_v30 = vadd.f32 %v3837_v47, %v10504_v18  ;;  %v10693_v14 = vadd.f32 %v3886_v6, %v3836_v11  ;;  %4231 = vmatprep.mubr.bf16.mxu0 %v9403_v15  ;;  %v8977_v18 = vld [vmem:[%s12655_s1 + $0x268] ss:$16 sps:$4 sm:$0xff]   ;;  %v9009_v61 = vld [vmem:[%s12655_s1 + $0x3cc] ss:$16 sps:$4 sm:$0xff]  }
 0x14e   :  { %4282 = vmatprep.mubr.bf16.mxu1 %v9404_v16  ;;  %v3839_v17 = vpop.f32.mrf.mxu0  ;;  %v9004_v33 = vld [vmem:[%s12655_s1 + $0x5e8] ss:$16 sps:$4 sm:$0xff]   ;;  %v9012_v62 = vld [vmem:[%s12655_s1 + $0x5cc] ss:$16 sps:$4 sm:$0xff]  }
 0x14f   :  { %v3890_v19 = vpop.f32.mrf.mxu1  ;;  %v10701_v21 = vadd.f32 %v3888_v12, %v3838_v30  ;;  %4206 = vmatpush1.bf16.msra.mxu0 %v8971_v41  ;;  %v9007_v63 = vld [vmem:[%s12655_s1 + $0x3c8] ss:$16 sps:$4 sm:$0xff]   ;;  %v9015_v2 = vld [vmem:[%s12655_s1 + $0x3ac] ss:$16 sps:$4 sm:$0xff]  }
 0x150   :  { %4257 = vmatpush1.bf16.msra.mxu1 %v8974_v4  ;;  %4207 = vmatprep.subr.bf16.mxu0 %v8979_v13  ;;  %v3840_v34 = vpop.f32.mrf.mxu0  ;;  %v9010_v28 = vld [vmem:[%s12655_s1 + $0x5c8] ss:$16 sps:$4 sm:$0xff]   ;;  %v9018_v41 = vld [vmem:[%s12655_s1 + $0x5ac] ss:$16 sps:$4 sm:$0xff]  }
 0x151   :  { %4258 = vmatprep.subr.bf16.mxu1 %v8982_v3  ;;  %v3891_v36 = vpop.f32.mrf.mxu1  ;;  %v9013_v4 = vld [vmem:[%s12655_s1 + $0x3a8] ss:$16 sps:$4 sm:$0xff]   ;;  %v9021_v6 = vld [vmem:[%s12655_s1 + $0x38c] ss:$16 sps:$4 sm:$0xff]  }
 0x152   :  { %v9016_v5 = vld [vmem:[%s12655_s1 + $0x5a8] ss:$16 sps:$4 sm:$0xff]   ;;  %v9024_v11 = vld [vmem:[%s12655_s1 + $0x58c] ss:$16 sps:$4 sm:$0xff]  }
 0x153   :  { %4208 = vmatpush1.bf16.msra.mxu0 %v8977_v18  ;;  %v9019_v47 = vld [vmem:[%s12655_s1 + $0x388] ss:$16 sps:$4 sm:$0xff]   ;;  %v9027_v13 = vld [vmem:[%s12655_s1 + $0x36c] ss:$16 sps:$4 sm:$0xff]  }
 0x154   :  { %4259 = vmatpush1.bf16.msra.mxu1 %v8980_v24  ;;  %4209 = vmatprep.subr.bf16.mxu0 %v8985_v25  ;;  %v9022_v12 = vld [vmem:[%s12655_s1 + $0x588] ss:$16 sps:$4 sm:$0xff]   ;;  %v9030_v3 = vld [vmem:[%s12655_s1 + $0x56c] ss:$16 sps:$4 sm:$0xff]  }
 0x155   :  { %4260 = vmatprep.subr.bf16.mxu1 %v8988_v8  ;;  %v9025_v30 = vld [vmem:[%s12655_s1 + $0x368] ss:$16 sps:$4 sm:$0xff]   ;;  %v9033_v16 = vld [vmem:[%s12655_s1 + $0x34c] ss:$16 sps:$4 sm:$0xff]  }
 0x156   :  { %v9028_v15 = vld [vmem:[%s12655_s1 + $0x568] ss:$16 sps:$4 sm:$0xff]   ;;  %v9036_v17 = vld [vmem:[%s12655_s1 + $0x54c] ss:$16 sps:$4 sm:$0xff]  }
 0x157   :  { %4210 = vmatpush1.bf16.msra.mxu0 %v8983_v38  ;;  %v9031_v19 = vld [vmem:[%s12655_s1 + $0x348] ss:$16 sps:$4 sm:$0xff]   ;;  %v9039_v24 = vld [vmem:[%s12655_s1 + $0x32c] ss:$16 sps:$4 sm:$0xff]  }
 0x158   :  { %4261 = vmatpush1.bf16.msra.mxu1 %v8986_v39  ;;  %4211 = vmatprep.subr.bf16.mxu0 %v8991_v40  ;;  %v9034_v18 = vld [vmem:[%s12655_s1 + $0x548] ss:$16 sps:$4 sm:$0xff]   ;;  %v9042_v25 = vld [vmem:[%s12655_s1 + $0x52c] ss:$16 sps:$4 sm:$0xff]  }
 0x159   :  { %4262 = vmatprep.subr.bf16.mxu1 %v8994_v42  ;;  %v9037_v8 = vld [vmem:[%s12655_s1 + $0x328] ss:$16 sps:$4 sm:$0xff]   ;;  %v9045_v36 = vld [vmem:[%s12655_s1 + $0x30c] ss:$16 sps:$4 sm:$0xff]  }
 0x15a   :  { %v9040_v34 = vld [vmem:[%s12655_s1 + $0x528] ss:$16 sps:$4 sm:$0xff]   ;;  %v9048_v38 = vld [vmem:[%s12655_s1 + $0x50c] ss:$16 sps:$4 sm:$0xff]  }
 0x15b   :  { %4212 = vmatpush1.bf16.msra.mxu0 %v8989_v43  ;;  %v9043_v39 = vld [vmem:[%s12655_s1 + $0x308] ss:$16 sps:$4 sm:$0xff]   ;;  %v9051_v42 = vld [vmem:[%s12655_s1 + $0x6ec] ss:$16 sps:$4 sm:$0xff]  }
 0x15c   :  { %4263 = vmatpush1.bf16.msra.mxu1 %v8992_v46  ;;  %4213 = vmatprep.subr.bf16.mxu0 %v8997_v48  ;;  %v9046_v40 = vld [vmem:[%s12655_s1 + $0x508] ss:$16 sps:$4 sm:$0xff]   ;;  %v9054_v43 = vld [vmem:[%s12655_s1 + $0x8ec] ss:$16 sps:$4 sm:$0xff]  }
 0x15d   :  { %4264 = vmatprep.subr.bf16.mxu1 %v9000_v49  ;;  %v9049_v46 = vld [vmem:[%s12655_s1 + $0x6e8] ss:$16 sps:$4 sm:$0xff]   ;;  %v9057_v49 = vld [vmem:[%s12655_s1 + $0x6cc] ss:$16 sps:$4 sm:$0xff]  }
 0x15e   :  { %v9052_v48 = vld [vmem:[%s12655_s1 + $0x8e8] ss:$16 sps:$4 sm:$0xff]  }
 0x15f   :  { %4214 = vmatpush1.bf16.msra.mxu0 %v8995_v54  ;;  %v9060_v54 = vld [vmem:[%s12655_s1 + $0x8cc] ss:$16 sps:$4 sm:$0xff]  }
 0x160   :  { %4265 = vmatpush1.bf16.msra.mxu1 %v8998_v20  ;;  %4215 = vmatprep.subr.bf16.mxu0 %v9003_v55  ;;  %v9055_v20 = vld [vmem:[%s12655_s1 + $0x6c8] ss:$16 sps:$4 sm:$0xff]  }
 0x161   :  { %4266 = vmatprep.subr.bf16.mxu1 %v9006_v56 }
 0x163   :  { %4216 = vmatpush2.bf16.msra.mxu0 %v9001_v57  ;;  %v9405_v57 = vld [vmem:[%s12654_s0 + $0x8] ss:$72 sps:$4 sm:$0xff]  }
 0x164   :  { %4267 = vmatpush2.bf16.msra.mxu1 %v9004_v33  ;;  %4217 = vmatprep.subr.bf16.mxu0 %v9009_v61  ;;  %v9406_v33 = vld [vmem:[%s12654_s0 + $0x10] ss:$72 sps:$4 sm:$0xff]  }
 0x165   :  { %4268 = vmatprep.subr.bf16.mxu1 %v9012_v62  ;;  %v9058_v61 = vld [vmem:[%s12655_s1 + $0x8c8] ss:$16 sps:$4 sm:$0xff]  }
 0x167   :  { %4218 = vmatpush2.bf16.msra.mxu0 %v9007_v63 }
 0x168   :  { %4269 = vmatpush2.bf16.msra.mxu1 %v9010_v28  ;;  %4219 = vmatprep.subr.bf16.mxu0 %v9015_v2  ;;  %v9063_v2 = vld [vmem:[%s12655_s1 + $0x6ac] ss:$16 sps:$4 sm:$0xff]  }
 0x169   :  { %4270 = vmatprep.subr.bf16.mxu1 %v9018_v41  ;;  %v9066_v41 = vld [vmem:[%s12655_s1 + $0x8ac] ss:$16 sps:$4 sm:$0xff]  }
 0x16b   :  { %4220 = vmatpush2.bf16.msra.mxu0 %v9013_v4 }
 0x16c   :  { %4271 = vmatpush2.bf16.msra.mxu1 %v9016_v5  ;;  %4221 = vmatprep.subr.bf16.mxu0 %v9021_v6  ;;  %v9064_v6 = vld [vmem:[%s12655_s1 + $0x8a8] ss:$16 sps:$4 sm:$0xff]  }
 0x16d   :  { %4272 = vmatprep.subr.bf16.mxu1 %v9024_v11 }
 0x16f   :  { %4222 = vmatpush2.bf16.msra.mxu0 %v9019_v47 }
 0x170   :  { %4273 = vmatpush2.bf16.msra.mxu1 %v9022_v12  ;;  %4223 = vmatprep.subr.bf16.mxu0 %v9027_v13 }
 0x171   :  { %4274 = vmatprep.subr.bf16.mxu1 %v9030_v3  ;;  %v9069_v3 = vld [vmem:[%s12655_s1 + $0x68c] ss:$16 sps:$4 sm:$0xff]  }
 0x173   :  { %4224 = vmatpush2.bf16.msra.mxu0 %v9025_v30 }
 0x174   :  { %4275 = vmatpush2.bf16.msra.mxu1 %v9028_v15  ;;  %4225 = vmatprep.subr.bf16.mxu0 %v9033_v16  ;;  %v9070_v16 = vld [vmem:[%s12655_s1 + $0x888] ss:$16 sps:$4 sm:$0xff]  }
 0x175   :  { %4276 = vmatprep.subr.bf16.mxu1 %v9036_v17 }
 0x177   :  { %4226 = vmatpush2.bf16.msra.mxu0 %v9031_v19 }
 0x178   :  { %4277 = vmatpush2.bf16.msra.mxu1 %v9034_v18  ;;  %4227 = vmatprep.subr.bf16.mxu0 %v9039_v24 }
 0x179   :  { %4278 = vmatprep.subr.bf16.mxu1 %v9042_v25 }
 0x17b   :  { %4228 = vmatpush2.bf16.msra.mxu0 %v9037_v8  ;;  %v9075_v8 = vld [vmem:[%s12655_s1 + $0x66c] ss:$16 sps:$4 sm:$0xff]  }
 0x17c   :  { %4279 = vmatpush2.bf16.msra.mxu1 %v9040_v34  ;;  %4229 = vmatprep.subr.bf16.mxu0 %v9045_v36  ;;  %v9408_v36 = vld [vmem:[%s12654_s0 + $0x24] ss:$72 sps:$4 sm:$0xff]  }
 0x17d   :  { %4280 = vmatprep.subr.bf16.mxu1 %v9048_v38 }
 0x17f   :  { %4230 = vmatpush2.bf16.msra.mxu0 %v9043_v39 }
 0x180   :  { %4281 = vmatpush2.bf16.msra.mxu1 %v9046_v40  ;;  %4301 = vmatprep.subr.bf16.mxu0 %v9051_v42  ;;  %v9076_v42 = vld [vmem:[%s12655_s1 + $0x868] ss:$16 sps:$4 sm:$0xff]  }
 0x181   :  { %4352 = vmatprep.subr.bf16.mxu1 %v9054_v43  ;;  %v9081_v43 = vld [vmem:[%s12655_s1 + $0x64c] ss:$16 sps:$4 sm:$0xff]  }
 0x182   :  { %v3927_v55 = vpop.f32.mrf.mxu0  ;;  %4232 = vmatmul.mubr.bf16.vlgmr.msra.gmra.mxu0 %v9405_v57  ;;  %v9085_v57 = vld [vmem:[%s12655_s1 + $0x628] ss:$16 sps:$4 sm:$0xff]  }
 0x183   :  { %v3978_v56 = vpop.f32.mrf.mxu1  ;;  %4283 = vmatmul.mubr.bf16.vlgmr.msra.gmra.mxu1 %v9406_v33  ;;  %v3928_v62 = vadd.f32 %v3927_v55, %v10650_v51  ;;  %4302 = vmatpush1.bf16.msra.mxu0 %v9049_v46  ;;  %v9061_v51 = vld [vmem:[%s12655_s1 + $0x6a8] ss:$16 sps:$4 sm:$0xff]   ;;  %v9084_v46 = vld [vmem:[%s12655_s1 + $0x84c] ss:$16 sps:$4 sm:$0xff]  }
 0x184   :  { %4353 = vmatpush1.bf16.msra.mxu1 %v9052_v48  ;;  %v3929_v63 = vpop.f32.mrf.mxu0  ;;  %4303 = vmatprep.subr.bf16.mxu0 %v9057_v49  ;;  %v9087_v55 = vld [vmem:[%s12655_s1 + $0x62c] ss:$16 sps:$4 sm:$0xff]   ;;  %v9088_v33 = vld [vmem:[%s12655_s1 + $0x828] ss:$16 sps:$4 sm:$0xff]  }
 0x185   :  { %v3980_v28 = vpop.f32.mrf.mxu1  ;;  %4354 = vmatprep.subr.bf16.mxu1 %v9060_v54  ;;  %v10878_v4 = vadd.f32 %v3978_v56, %v3928_v62  ;;  %v3930_v5 = vadd.f32 %v3929_v63, %v10663_v60  ;;  %4241 = vmatprep.mubr.bf16.mxu0 %v9767_v29  ;;  %v9079_v54 = vld [vmem:[%s12655_s1 + $0x648] ss:$16 sps:$4 sm:$0xff]   ;;  %v9090_v56 = vld [vmem:[%s12655_s1 + $0x82c] ss:$16 sps:$4 sm:$0xff]  }
 0x186   :  { %4292 = vmatprep.mubr.bf16.mxu1 %v9939_v22  ;;  %v3931_v11 = vpop.f32.mrf.mxu0  ;;  %v9072_v22 = vld [vmem:[%s12655_s1 + $0x88c] ss:$16 sps:$4 sm:$0xff]   ;;  %v9091_v63 = vld [vmem:[%s12655_s1 + $0x608] ss:$16 sps:$4 sm:$0xff]  }
 0x187   :  { %v3982_v47 = vpop.f32.mrf.mxu1  ;;  %v10889_v12 = vadd.f32 %v3980_v28, %v3930_v5  ;;  %v3932_v13 = vadd.f32 %v3931_v11, %v10672_v1  ;;  %4304 = vmatpush1.bf16.msra.mxu0 %v9055_v20  ;;  %v9067_v1 = vld [vmem:[%s12655_s1 + $0x688] ss:$16 sps:$4 sm:$0xff]   ;;  %v9096_v62 = vld [vmem:[%s12655_s1 + $0x80c] ss:$16 sps:$4 sm:$0xff]  }
 0x188   :  { %4355 = vmatpush1.bf16.msra.mxu1 %v9058_v61  ;;  %v3933_v60 = vpop.f32.mrf.mxu0  ;;  %4305 = vmatprep.subr.bf16.mxu0 %v9063_v2  ;;  %v9082_v20 = vld [vmem:[%s12655_s1 + $0x848] ss:$16 sps:$4 sm:$0xff]   ;;  %v9093_v61 = vld [vmem:[%s12655_s1 + $0x60c] ss:$16 sps:$4 sm:$0xff]  }
 0x189   :  { %v3984_v29 = vpop.f32.mrf.mxu1  ;;  %4356 = vmatprep.subr.bf16.mxu1 %v9066_v41  ;;  %v10898_v30 = vadd.f32 %v3982_v47, %v3932_v13  ;;  %v3934_v15 = vadd.f32 %v3933_v60, %v10683_v7  ;;  %v9094_v28 = vld [vmem:[%s12655_s1 + $0x808] ss:$16 sps:$4 sm:$0xff]   ;;  %v9099_v2 = vld [vmem:[%s12655_s1 + $0x7ec] ss:$16 sps:$4 sm:$0xff]  }
 0x18a   :  { %v3937_v17 = vpop.f32.mrf.mxu0  ;;  %4242 = vmatmul.mubr.bf16.gmra.mxu0 %v9771_v31  ;;  %v9078_v31 = vld [vmem:[%s12655_s1 + $0x86c] ss:$16 sps:$4 sm:$0xff]   ;;  %v9097_v5 = vld [vmem:[%s12655_s1 + $0x7e8] ss:$16 sps:$4 sm:$0xff]  }
 0x18b   :  { %v3988_v19 = vpop.f32.mrf.mxu1  ;;  %4293 = vmatmul.mubr.bf16.gmra.mxu1 %v9957_v32  ;;  %v10909_v18 = vadd.f32 %v3984_v29, %v3934_v15  ;;  %v3938_v24 = vadd.f32 %v3937_v17, %v10693_v14  ;;  %4306 = vmatpush1.bf16.msra.mxu0 %v9061_v51  ;;  %v9407_v14 = vld [vmem:[%s12654_s0 + $0x1c] ss:$72 sps:$4 sm:$0xff]   ;;  %v9100_v51 = vld [vmem:[%s12655_s1 + $0x9e8] ss:$16 sps:$4 sm:$0xff]  }
 0x18c   :  { %4357 = vmatpush1.bf16.msra.mxu1 %v9064_v6  ;;  %v3939_v7 = vpop.f32.mrf.mxu0  ;;  %4307 = vmatprep.subr.bf16.mxu0 %v9069_v3  ;;  %v9102_v41 = vld [vmem:[%s12655_s1 + $0x9ec] ss:$16 sps:$4 sm:$0xff]   ;;  %v9103_v47 = vld [vmem:[%s12655_s1 + $0x7c8] ss:$16 sps:$4 sm:$0xff]  }
 0x18d   :  { %v3990_v25 = vpop.f32.mrf.mxu1  ;;  %4358 = vmatprep.subr.bf16.mxu1 %v9072_v22  ;;  %v3940_v32 = vadd.f32 %v3939_v7, %v10701_v21  ;;  %v10919_v34 = vadd.f32 %v3988_v19, %v3938_v24  ;;  %4333 = vmatprep.mubr.bf16.mxu0 %v9407_v14  ;;  %v9073_v21 = vld [vmem:[%s12655_s1 + $0x668] ss:$16 sps:$4 sm:$0xff]   ;;  %v9105_v6 = vld [vmem:[%s12655_s1 + $0x7cc] ss:$16 sps:$4 sm:$0xff]  }
 0x18e   :  { %4384 = vmatprep.mubr.bf16.mxu1 %v9408_v36  ;;  %v3941_v38 = vpop.f32.mrf.mxu0  ;;  %v9108_v11 = vld [vmem:[%s12655_s1 + $0x9cc] ss:$16 sps:$4 sm:$0xff]   ;;  %v9106_v13 = vld [vmem:[%s12655_s1 + $0x9c8] ss:$16 sps:$4 sm:$0xff]  }
 0x18f   :  { %v3992_v39 = vpop.f32.mrf.mxu1  ;;  %v10927_v40 = vadd.f32 %v3990_v25, %v3940_v32  ;;  %4308 = vmatpush1.bf16.msra.mxu0 %v9067_v1  ;;  %v9111_v60 = vld [vmem:[%s12655_s1 + $0x7ac] ss:$16 sps:$4 sm:$0xff]   ;;  %v9109_v3 = vld [vmem:[%s12655_s1 + $0x7a8] ss:$16 sps:$4 sm:$0xff]  }
 0x190   :  { %4359 = vmatpush1.bf16.msra.mxu1 %v9070_v16  ;;  %4309 = vmatprep.subr.bf16.mxu0 %v9075_v8  ;;  %v3942_v48 = vpop.f32.mrf.mxu0  ;;  %v9114_v29 = vld [vmem:[%s12655_s1 + $0x9ac] ss:$16 sps:$4 sm:$0xff]   ;;  %v9112_v22 = vld [vmem:[%s12655_s1 + $0x9a8] ss:$16 sps:$4 sm:$0xff]  }
 0x191   :  { %4360 = vmatprep.subr.bf16.mxu1 %v9078_v31  ;;  %v3993_v49 = vpop.f32.mrf.mxu1  ;;  %v9117_v15 = vld [vmem:[%s12655_s1 + $0x78c] ss:$16 sps:$4 sm:$0xff]   ;;  %v9115_v16 = vld [vmem:[%s12655_s1 + $0x788] ss:$16 sps:$4 sm:$0xff]  }
 0x192   :  { %v9120_v1 = vld [vmem:[%s12655_s1 + $0x98c] ss:$16 sps:$4 sm:$0xff]   ;;  %v9118_v17 = vld [vmem:[%s12655_s1 + $0x988] ss:$16 sps:$4 sm:$0xff]  }
 0x193   :  { %4310 = vmatpush1.bf16.msra.mxu0 %v9073_v21  ;;  %v9123_v19 = vld [vmem:[%s12655_s1 + $0x76c] ss:$16 sps:$4 sm:$0xff]   ;;  %v9121_v7 = vld [vmem:[%s12655_s1 + $0x768] ss:$16 sps:$4 sm:$0xff]  }
 0x194   :  { %4361 = vmatpush1.bf16.msra.mxu1 %v9076_v42  ;;  %4311 = vmatprep.subr.bf16.mxu0 %v9081_v43  ;;  %v9126_v24 = vld [vmem:[%s12655_s1 + $0x96c] ss:$16 sps:$4 sm:$0xff]   ;;  %v9124_v25 = vld [vmem:[%s12655_s1 + $0x968] ss:$16 sps:$4 sm:$0xff]  }
 0x195   :  { %4362 = vmatprep.subr.bf16.mxu1 %v9084_v46  ;;  %v9129_v8 = vld [vmem:[%s12655_s1 + $0x74c] ss:$16 sps:$4 sm:$0xff]   ;;  %v9127_v32 = vld [vmem:[%s12655_s1 + $0x748] ss:$16 sps:$4 sm:$0xff]  }
 0x196   :  { %v9132_v31 = vld [vmem:[%s12655_s1 + $0x94c] ss:$16 sps:$4 sm:$0xff]   ;;  %v9130_v14 = vld [vmem:[%s12655_s1 + $0x948] ss:$16 sps:$4 sm:$0xff]  }
 0x197   :  { %4312 = vmatpush1.bf16.msra.mxu0 %v9079_v54  ;;  %v9135_v36 = vld [vmem:[%s12655_s1 + $0x72c] ss:$16 sps:$4 sm:$0xff]  }
 0x198   :  { %4363 = vmatpush1.bf16.msra.mxu1 %v9082_v20  ;;  %4313 = vmatprep.subr.bf16.mxu0 %v9087_v55  ;;  %v9138_v38 = vld [vmem:[%s12655_s1 + $0x92c] ss:$16 sps:$4 sm:$0xff]  }
 0x199   :  { %4364 = vmatprep.subr.bf16.mxu1 %v9090_v56 }
 0x19b   :  { %4314 = vmatpush1.bf16.msra.mxu0 %v9085_v57 }
 0x19c   :  { %4365 = vmatpush1.bf16.msra.mxu1 %v9088_v33  ;;  %4315 = vmatprep.subr.bf16.mxu0 %v9093_v61 }
 0x19d   :  { %4366 = vmatprep.subr.bf16.mxu1 %v9096_v62 }
 0x19f   :  { %4316 = vmatpush1.bf16.msra.mxu0 %v9091_v63 }
 0x1a0   :  { %4367 = vmatpush1.bf16.msra.mxu1 %v9094_v28  ;;  %4317 = vmatprep.subr.bf16.mxu0 %v9099_v2 }
 0x1a1   :  { %4368 = vmatprep.subr.bf16.mxu1 %v9102_v41 }
 0x1a3   :  { %4318 = vmatpush2.bf16.msra.mxu0 %v9097_v5 }
 0x1a4   :  { %4369 = vmatpush2.bf16.msra.mxu1 %v9100_v51  ;;  %4319 = vmatprep.subr.bf16.mxu0 %v9105_v6 }
 0x1a5   :  { %4370 = vmatprep.subr.bf16.mxu1 %v9108_v11 }
 0x1a7   :  { %4320 = vmatpush2.bf16.msra.mxu0 %v9103_v47 }
 0x1a8   :  { %4371 = vmatpush2.bf16.msra.mxu1 %v9106_v13  ;;  %4321 = vmatprep.subr.bf16.mxu0 %v9111_v60 }
 0x1a9   :  { %4372 = vmatprep.subr.bf16.mxu1 %v9114_v29 }
 0x1ab   :  { %4322 = vmatpush2.bf16.msra.mxu0 %v9109_v3 }
 0x1ac   :  { %4373 = vmatpush2.bf16.msra.mxu1 %v9112_v22  ;;  %4323 = vmatprep.subr.bf16.mxu0 %v9117_v15 }
 0x1ad   :  { %4374 = vmatprep.subr.bf16.mxu1 %v9120_v1 }
 0x1af   :  { %4324 = vmatpush2.bf16.msra.mxu0 %v9115_v16 }
 0x1b0   :  { %4375 = vmatpush2.bf16.msra.mxu1 %v9118_v17  ;;  %4325 = vmatprep.subr.bf16.mxu0 %v9123_v19 }
 0x1b1   :  { %4376 = vmatprep.subr.bf16.mxu1 %v9126_v24 }
 0x1b3   :  { %4326 = vmatpush2.bf16.msra.mxu0 %v9121_v7 }
 0x1b4   :  { %4377 = vmatpush2.bf16.msra.mxu1 %v9124_v25  ;;  %4327 = vmatprep.subr.bf16.mxu0 %v9129_v8 }
 0x1b5   :  { %4378 = vmatprep.subr.bf16.mxu1 %v9132_v31 }
 0x1b6   :  { %13 = vsyncpa [#allocation3], 0  ;;  %v9133_v39 = vld [vmem:[%s12655_s1 + $0x728] ss:$16 sps:$4 sm:$0xff]   ;;  %v9141_v42 = vld [vmem:[%s12655_s1 + $0x70c] ss:$16 sps:$4 sm:$0xff]  }
 0x1b7   :  { %4328 = vmatpush2.bf16.msra.mxu0 %v9127_v32  ;;  %v9136_v21 = vld [vmem:[%s12655_s1 + $0x928] ss:$16 sps:$4 sm:$0xff]   ;;  %v9144_v43 = vld [vmem:[%s12655_s1 + $0x90c] ss:$16 sps:$4 sm:$0xff]   ;;  %vm4624_vm0 = vcmask 1043456   ;;  %vm4620_vm1 = vcmask 162816  }
 0x1b8   :  { %4379 = vmatpush2.bf16.msra.mxu1 %v9130_v14  ;;  %4329 = vmatprep.subr.bf16.mxu0 %v9135_v36  ;;  %v9139_v46 = vld [vmem:[%s12655_s1 + $0x708] ss:$16 sps:$4 sm:$0xff]   ;;  %v9147_v49 = vld [vmem:[%s12655_s1 + $0xaec] ss:$16 sps:$4 sm:$0xff]  }
 0x1b9   :  { %4380 = vmatprep.subr.bf16.mxu1 %v9138_v38  ;;  %v9142_v48 = vld [vmem:[%s12655_s1 + $0x908] ss:$16 sps:$4 sm:$0xff]   ;;  %v9150_v54 = vld [vmem:[%s12655_s1 + $0xcec] ss:$16 sps:$4 sm:$0xff]  }
 0x1ba   :  { %v9145_v20 = vld [vmem:[%s12655_s1 + $0xae8] ss:$16 sps:$4 sm:$0xff]   ;;  %v9153_v56 = vld [vmem:[%s12655_s1 + $0xacc] ss:$16 sps:$4 sm:$0xff]  }
 0x1bb   :  { %4330 = vmatpush2.bf16.msra.mxu0 %v9133_v39  ;;  %v9148_v55 = vld [vmem:[%s12655_s1 + $0xce8] ss:$16 sps:$4 sm:$0xff]   ;;  %v9156_v57 = vld [vmem:[%s12655_s1 + $0xccc] ss:$16 sps:$4 sm:$0xff]  }
 0x1bc   :  { %4381 = vmatpush2.bf16.msra.mxu1 %v9136_v21  ;;  %4331 = vmatprep.subr.bf16.mxu0 %v9141_v42  ;;  %v9409_v62 = vld [vmem:[%s12654_s0 + $0x18] ss:$72 sps:$4 sm:$0xff]   ;;  %v9159_v6 = vld [vmem:[%s12655_s1 + $0xaac] ss:$16 sps:$4 sm:$0xff]  }
 0x1bd   :  { %4382 = vmatprep.subr.bf16.mxu1 %v9144_v43  ;;  %v9410_v63 = vld [vmem:[%s12654_s0 + $0x20] ss:$72 sps:$4 sm:$0xff]   ;;  %v9411_v14 = vld [vmem:[%s12654_s0 + $0x2c] ss:$72 sps:$4 sm:$0xff]  }
 0x1be   :  { %v9151_v2 = vld [vmem:[%s12655_s1 + $0xac8] ss:$16 sps:$4 sm:$0xff]   ;;  %v9412_v36 = vld [vmem:[%s12654_s0 + $0x34] ss:$72 sps:$4 sm:$0xff]  }
 0x1bf   :  { %4332 = vmatpush2.bf16.msra.mxu0 %v9139_v46  ;;  %v9154_v41 = vld [vmem:[%s12655_s1 + $0xcc8] ss:$16 sps:$4 sm:$0xff]   ;;  %v9177_v43 = vld [vmem:[%s12655_s1 + $0xa4c] ss:$16 sps:$4 sm:$0xff]  }
 0x1c0   :  { %4383 = vmatpush2.bf16.msra.mxu1 %v9142_v48  ;;  %4403 = vmatprep.subr.bf16.mxu0 %v9147_v49  ;;  %v9157_v22 = vld [vmem:[%s12655_s1 + $0xaa8] ss:$16 sps:$4 sm:$0xff]   ;;  %v9180_v46 = vld [vmem:[%s12655_s1 + $0xc4c] ss:$16 sps:$4 sm:$0xff]  }
 0x1c1   :  { %4454 = vmatprep.subr.bf16.mxu1 %v9150_v54  ;;  %v9163_v25 = vld [vmem:[%s12655_s1 + $0xa88] ss:$16 sps:$4 sm:$0xff]  }
 0x1c2   :  { %v4029_v33 = vpop.f32.mrf.mxu0  ;;  %4334 = vmatmul.mubr.bf16.vlgmr.msra.gmra.mxu0 %v9409_v62  ;;  %v9172_v42 = vld [vmem:[%s12655_s1 + $0xc68] ss:$16 sps:$4 sm:$0xff]   ;;  %v9192_v62 = vld [vmem:[%s12655_s1 + $0xc0c] ss:$16 sps:$4 sm:$0xff]  }
 0x1c3   :  { %v4080_v61 = vpop.f32.mrf.mxu1  ;;  %4385 = vmatmul.mubr.bf16.vlgmr.msra.gmra.mxu1 %v9410_v63  ;;  %v4030_v28 = vadd.f32 %v4029_v33, %v10878_v4  ;;  %4404 = vmatpush1.bf16.msra.mxu0 %v9145_v20  ;;  %v9162_v4 = vld [vmem:[%s12655_s1 + $0xcac] ss:$16 sps:$4 sm:$0xff]   ;;  %v9175_v54 = vld [vmem:[%s12655_s1 + $0xa48] ss:$16 sps:$4 sm:$0xff]  }
 0x1c4   :  { %4455 = vmatpush1.bf16.msra.mxu1 %v9148_v55  ;;  %v4031_v5 = vpop.f32.mrf.mxu0  ;;  %4405 = vmatprep.subr.bf16.mxu0 %v9153_v56  ;;  %v9178_v20 = vld [vmem:[%s12655_s1 + $0xc48] ss:$16 sps:$4 sm:$0xff]   ;;  %v9183_v55 = vld [vmem:[%s12655_s1 + $0xa2c] ss:$16 sps:$4 sm:$0xff]  }
 0x1c5   :  { %v4082_v51 = vpop.f32.mrf.mxu1  ;;  %4456 = vmatprep.subr.bf16.mxu1 %v9156_v57  ;;  %v11104_v11 = vadd.f32 %v4080_v61, %v4030_v28  ;;  %v4032_v47 = vadd.f32 %v4031_v5, %v10889_v12  ;;  %4343 = vmatprep.mubr.bf16.mxu0 %v9941_v23  ;;  %v9160_v12 = vld [vmem:[%s12655_s1 + $0xca8] ss:$16 sps:$4 sm:$0xff]   ;;  %v9186_v56 = vld [vmem:[%s12655_s1 + $0xc2c] ss:$16 sps:$4 sm:$0xff]  }
 0x1c6   :  { %4394 = vmatprep.mubr.bf16.mxu1 %v10161_v44  ;;  %v4033_v13 = vpop.f32.mrf.mxu0  ;;  %v9165_v44 = vld [vmem:[%s12655_s1 + $0xa8c] ss:$16 sps:$4 sm:$0xff]   ;;  %v9181_v57 = vld [vmem:[%s12655_s1 + $0xa28] ss:$16 sps:$4 sm:$0xff]  }
 0x1c7   :  { %v4084_v60 = vpop.f32.mrf.mxu1  ;;  %v11109_v29 = vadd.f32 %v4082_v51, %v4032_v47  ;;  %v4034_v3 = vadd.f32 %v4033_v13, %v10898_v30  ;;  %4406 = vmatpush1.bf16.msra.mxu0 %v9151_v2  ;;  %v9168_v30 = vld [vmem:[%s12655_s1 + $0xc8c] ss:$16 sps:$4 sm:$0xff]   ;;  %v9184_v33 = vld [vmem:[%s12655_s1 + $0xc28] ss:$16 sps:$4 sm:$0xff]  }
 0x1c8   :  { %4457 = vmatpush1.bf16.msra.mxu1 %v9154_v41  ;;  %v4035_v15 = vpop.f32.mrf.mxu0  ;;  %4407 = vmatprep.subr.bf16.mxu0 %v9159_v6  ;;  %v9189_v61 = vld [vmem:[%s12655_s1 + $0xa0c] ss:$16 sps:$4 sm:$0xff]   ;;  %v9187_v63 = vld [vmem:[%s12655_s1 + $0xa08] ss:$16 sps:$4 sm:$0xff]  }
 0x1c9   :  { %v4086_v23 = vpop.f32.mrf.mxu1  ;;  %4458 = vmatprep.subr.bf16.mxu1 %v9162_v4  ;;  %v11124_v1 = vadd.f32 %v4084_v60, %v4034_v3  ;;  %v4036_v16 = vadd.f32 %v4035_v15, %v10909_v18  ;;  %v9166_v18 = vld [vmem:[%s12655_s1 + $0xc88] ss:$16 sps:$4 sm:$0xff]   ;;  %v9195_v2 = vld [vmem:[%s12655_s1 + $0xbec] ss:$16 sps:$4 sm:$0xff]  }
 0x1ca   :  { %v4039_v17 = vpop.f32.mrf.mxu0  ;;  %4344 = vmatmul.mubr.bf16.gmra.mxu0 %v9965_v35  ;;  %v9171_v35 = vld [vmem:[%s12655_s1 + $0xa6c] ss:$16 sps:$4 sm:$0xff]   ;;  %v9190_v28 = vld [vmem:[%s12655_s1 + $0xc08] ss:$16 sps:$4 sm:$0xff]  }
 0x1cb   :  { %v4090_v19 = vpop.f32.mrf.mxu1  ;;  %4395 = vmatmul.mubr.bf16.gmra.mxu1 %v10179_v50  ;;  %v11129_v24 = vadd.f32 %v4086_v23, %v4036_v16  ;;  %v4040_v7 = vadd.f32 %v4039_v17, %v10919_v34  ;;  %4408 = vmatpush1.bf16.msra.mxu0 %v9157_v22  ;;  %v9174_v50 = vld [vmem:[%s12655_s1 + $0xc6c] ss:$16 sps:$4 sm:$0xff]   ;;  %v9193_v5 = vld [vmem:[%s12655_s1 + $0xbe8] ss:$16 sps:$4 sm:$0xff]  }
 0x1cc   :  { %4459 = vmatpush1.bf16.msra.mxu1 %v9160_v12  ;;  %v4041_v8 = vpop.f32.mrf.mxu0  ;;  %4409 = vmatprep.subr.bf16.mxu0 %v9165_v44  ;;  %v9198_v41 = vld [vmem:[%s12655_s1 + $0xdec] ss:$16 sps:$4 sm:$0xff]   ;;  %v9196_v51 = vld [vmem:[%s12655_s1 + $0xde8] ss:$16 sps:$4 sm:$0xff]  }
 0x1cd   :  { %v4092_v31 = vpop.f32.mrf.mxu1  ;;  %4460 = vmatprep.subr.bf16.mxu1 %v9168_v30  ;;  %v4042_v34 = vadd.f32 %v4041_v8, %v10927_v40  ;;  %v11145_v32 = vadd.f32 %v4090_v19, %v4040_v7  ;;  %4435 = vmatprep.mubr.bf16.mxu0 %v9411_v14  ;;  %v9169_v40 = vld [vmem:[%s12655_s1 + $0xa68] ss:$16 sps:$4 sm:$0xff]   ;;  %v9201_v6 = vld [vmem:[%s12655_s1 + $0xbcc] ss:$16 sps:$4 sm:$0xff]  }
 0x1ce   :  { %4486 = vmatprep.mubr.bf16.mxu1 %v9412_v36  ;;  %v4043_v38 = vpop.f32.mrf.mxu0  ;;  %v9204_v4 = vld [vmem:[%s12655_s1 + $0xdcc] ss:$16 sps:$4 sm:$0xff]   ;;  %v9199_v47 = vld [vmem:[%s12655_s1 + $0xbc8] ss:$16 sps:$4 sm:$0xff]  }
 0x1cf   :  { %v4094_v39 = vpop.f32.mrf.mxu1  ;;  %v11153_v21 = vadd.f32 %v4092_v31, %v4042_v34  ;;  %4410 = vmatpush1.bf16.msra.mxu0 %v9163_v25  ;;  %v9202_v13 = vld [vmem:[%s12655_s1 + $0xdc8] ss:$16 sps:$4 sm:$0xff]   ;;  %v9207_v60 = vld [vmem:[%s12655_s1 + $0xbac] ss:$16 sps:$4 sm:$0xff]  }
 0x1d0   :  { %4461 = vmatpush1.bf16.msra.mxu1 %v9166_v18  ;;  %4411 = vmatprep.subr.bf16.mxu0 %v9171_v35  ;;  %v4044_v48 = vpop.f32.mrf.mxu0  ;;  %v9210_v3 = vld [vmem:[%s12655_s1 + $0xdac] ss:$16 sps:$4 sm:$0xff]   ;;  %v9205_v22 = vld [vmem:[%s12655_s1 + $0xba8] ss:$16 sps:$4 sm:$0xff]  }
 0x1d1   :  { %4462 = vmatprep.subr.bf16.mxu1 %v9174_v50  ;;  %v4095_v49 = vpop.f32.mrf.mxu1  ;;  %v9208_v12 = vld [vmem:[%s12655_s1 + $0xda8] ss:$16 sps:$4 sm:$0xff]   ;;  %v9213_v15 = vld [vmem:[%s12655_s1 + $0xb8c] ss:$16 sps:$4 sm:$0xff]  }
 0x1d2   :  { %v9216_v23 = vld [vmem:[%s12655_s1 + $0xd8c] ss:$16 sps:$4 sm:$0xff]   ;;  %v9211_v44 = vld [vmem:[%s12655_s1 + $0xb88] ss:$16 sps:$4 sm:$0xff]  }
 0x1d3   :  { %4412 = vmatpush1.bf16.msra.mxu0 %v9169_v40  ;;  %v9214_v30 = vld [vmem:[%s12655_s1 + $0xd88] ss:$16 sps:$4 sm:$0xff]   ;;  %v9219_v16 = vld [vmem:[%s12655_s1 + $0xb6c] ss:$16 sps:$4 sm:$0xff]  }
 0x1d4   :  { %4463 = vmatpush1.bf16.msra.mxu1 %v9172_v42  ;;  %4413 = vmatprep.subr.bf16.mxu0 %v9177_v43  ;;  %v9222_v17 = vld [vmem:[%s12655_s1 + $0xd6c] ss:$16 sps:$4 sm:$0xff]   ;;  %v9217_v19 = vld [vmem:[%s12655_s1 + $0xb68] ss:$16 sps:$4 sm:$0xff]  }
 0x1d5   :  { %4464 = vmatprep.subr.bf16.mxu1 %v9180_v46  ;;  %v9220_v7 = vld [vmem:[%s12655_s1 + $0xd68] ss:$16 sps:$4 sm:$0xff]   ;;  %v9225_v25 = vld [vmem:[%s12655_s1 + $0xb4c] ss:$16 sps:$4 sm:$0xff]  }
 0x1d6   :  { %v9228_v18 = vld [vmem:[%s12655_s1 + $0xd4c] ss:$16 sps:$4 sm:$0xff]   ;;  %v9223_v8 = vld [vmem:[%s12655_s1 + $0xb48] ss:$16 sps:$4 sm:$0xff]  }
 0x1d7   :  { %4414 = vmatpush1.bf16.msra.mxu0 %v9175_v54  ;;  %v9226_v31 = vld [vmem:[%s12655_s1 + $0xd48] ss:$16 sps:$4 sm:$0xff]   ;;  %v9231_v35 = vld [vmem:[%s12655_s1 + $0xb2c] ss:$16 sps:$4 sm:$0xff]  }
 0x1d8   :  { %4465 = vmatpush1.bf16.msra.mxu1 %v9178_v20  ;;  %4415 = vmatprep.subr.bf16.mxu0 %v9183_v55  ;;  %v9234_v50 = vld [vmem:[%s12655_s1 + $0xd2c] ss:$16 sps:$4 sm:$0xff]   ;;  %v9229_v34 = vld [vmem:[%s12655_s1 + $0xb28] ss:$16 sps:$4 sm:$0xff]  }
 0x1d9   :  { %4466 = vmatprep.subr.bf16.mxu1 %v9186_v56  ;;  %v9232_v14 = vld [vmem:[%s12655_s1 + $0xd28] ss:$16 sps:$4 sm:$0xff]   ;;  %v9237_v36 = vld [vmem:[%s12655_s1 + $0xb0c] ss:$16 sps:$4 sm:$0xff]  }
 0x1da   :  { %v9240_v38 = vld [vmem:[%s12655_s1 + $0xd0c] ss:$16 sps:$4 sm:$0xff]   ;;  %v9235_v39 = vld [vmem:[%s12655_s1 + $0xb08] ss:$16 sps:$4 sm:$0xff]  }
 0x1db   :  { %4416 = vmatpush1.bf16.msra.mxu0 %v9181_v57  ;;  %v9238_v40 = vld [vmem:[%s12655_s1 + $0xd08] ss:$16 sps:$4 sm:$0xff]   ;;  %v9243_v42 = vld [vmem:[%s12655_s1 + $0xeec] ss:$16 sps:$4 sm:$0xff]  }
 0x1dc   :  { %4467 = vmatpush1.bf16.msra.mxu1 %v9184_v33  ;;  %4417 = vmatprep.subr.bf16.mxu0 %v9189_v61  ;;  %v9246_v43 = vld [vmem:[%s12655_s1 + $0x10ec] ss:$16 sps:$4 sm:$0xff]   ;;  %v9241_v46 = vld [vmem:[%s12655_s1 + $0xee8] ss:$16 sps:$4 sm:$0xff]  }
 0x1dd   :  { %4468 = vmatprep.subr.bf16.mxu1 %v9192_v62  ;;  %v9244_v48 = vld [vmem:[%s12655_s1 + $0x10e8] ss:$16 sps:$4 sm:$0xff]   ;;  %v9249_v49 = vld [vmem:[%s12655_s1 + $0xecc] ss:$16 sps:$4 sm:$0xff]  }
 0x1de   :  { %v9252_v54 = vld [vmem:[%s12655_s1 + $0x10cc] ss:$16 sps:$4 sm:$0xff]   ;;  %v9413_v56 = vld [vmem:[%s12654_s0 + $0x28] ss:$72 sps:$4 sm:$0xff]  }
 0x1df   :  { %4418 = vmatpush1.bf16.msra.mxu0 %v9187_v63  ;;  %v9414_v57 = vld [vmem:[%s12654_s0 + $0x30] ss:$72 sps:$4 sm:$0xff]  }
 0x1e0   :  { %4469 = vmatpush1.bf16.msra.mxu1 %v9190_v28  ;;  %4419 = vmatprep.subr.bf16.mxu0 %v9195_v2  ;;  %v9247_v61 = vld [vmem:[%s12655_s1 + $0xec8] ss:$16 sps:$4 sm:$0xff]   ;;  %v9258_v2 = vld [vmem:[%s12655_s1 + $0x10ac] ss:$16 sps:$4 sm:$0xff]  }
 0x1e1   :  { %4470 = vmatprep.subr.bf16.mxu1 %v9198_v41  ;;  %v9250_v62 = vld [vmem:[%s12655_s1 + $0x10c8] ss:$16 sps:$4 sm:$0xff]  }
 0x1e3   :  { %4420 = vmatpush2.bf16.msra.mxu0 %v9193_v5 }
 0x1e4   :  { %4471 = vmatpush2.bf16.msra.mxu1 %v9196_v51  ;;  %4421 = vmatprep.subr.bf16.mxu0 %v9201_v6  ;;  %v9253_v51 = vld [vmem:[%s12655_s1 + $0xea8] ss:$16 sps:$4 sm:$0xff]  }
 0x1e5   :  { %4472 = vmatprep.subr.bf16.mxu1 %v9204_v4  ;;  %v9256_v6 = vld [vmem:[%s12655_s1 + $0x10a8] ss:$16 sps:$4 sm:$0xff]  }
 0x1e7   :  { %4422 = vmatpush2.bf16.msra.mxu0 %v9199_v47 }
 0x1e8   :  { %4473 = vmatpush2.bf16.msra.mxu1 %v9202_v13  ;;  %4423 = vmatprep.subr.bf16.mxu0 %v9207_v60 }
 0x1e9   :  { %4474 = vmatprep.subr.bf16.mxu1 %v9210_v3  ;;  %v9259_v3 = vld [vmem:[%s12655_s1 + $0xe88] ss:$16 sps:$4 sm:$0xff]  }
 0x1eb   :  { %4424 = vmatpush2.bf16.msra.mxu0 %v9205_v22  ;;  %v9262_v22 = vld [vmem:[%s12655_s1 + $0x1088] ss:$16 sps:$4 sm:$0xff]  }
 0x1ec   :  { %4475 = vmatpush2.bf16.msra.mxu1 %v9208_v12  ;;  %4425 = vmatprep.subr.bf16.mxu0 %v9213_v15 }
 0x1ed   :  { %4476 = vmatprep.subr.bf16.mxu1 %v9216_v23  ;;  %v9415_v23 = vld [vmem:[%s12654_s0 + $0x3c] ss:$72 sps:$4 sm:$0xff]  }
 0x1ef   :  { %4426 = vmatpush2.bf16.msra.mxu0 %v9211_v44  ;;  %v9416_v44 = vld [vmem:[%s12654_s0 + $0x44] ss:$72 sps:$4 sm:$0xff]  }
 0x1f0   :  { %4477 = vmatpush2.bf16.msra.mxu1 %v9214_v30  ;;  %4427 = vmatprep.subr.bf16.mxu0 %v9219_v16 }
 0x1f1   :  { %4478 = vmatprep.subr.bf16.mxu1 %v9222_v17  ;;  %v9265_v17 = vld [vmem:[%s12655_s1 + $0xe68] ss:$16 sps:$4 sm:$0xff]  }
 0x1f3   :  { %4428 = vmatpush2.bf16.msra.mxu0 %v9217_v19  ;;  %v9268_v19 = vld [vmem:[%s12655_s1 + $0x1068] ss:$16 sps:$4 sm:$0xff]  }
 0x1f4   :  { %4479 = vmatpush2.bf16.msra.mxu1 %v9220_v7  ;;  %4429 = vmatprep.subr.bf16.mxu0 %v9225_v25  ;;  %v9273_v7 = vld [vmem:[%s12655_s1 + $0xe4c] ss:$16 sps:$4 sm:$0xff]  }
 0x1f5   :  { %4480 = vmatprep.subr.bf16.mxu1 %v9228_v18  ;;  %v9276_v25 = vld [vmem:[%s12655_s1 + $0x104c] ss:$16 sps:$4 sm:$0xff]  }
 0x1f7   :  { %4430 = vmatpush2.bf16.msra.mxu0 %v9223_v8 }
 0x1f8   :  { %4481 = vmatpush2.bf16.msra.mxu1 %v9226_v31  ;;  %4431 = vmatprep.subr.bf16.mxu0 %v9231_v35  ;;  %v9271_v31 = vld [vmem:[%s12655_s1 + $0xe48] ss:$16 sps:$4 sm:$0xff]  }
 0x1f9   :  { %4482 = vmatprep.subr.bf16.mxu1 %v9234_v50  ;;  %v9274_v35 = vld [vmem:[%s12655_s1 + $0x1048] ss:$16 sps:$4 sm:$0xff]   ;;  %v9279_v50 = vld [vmem:[%s12655_s1 + $0xe2c] ss:$16 sps:$4 sm:$0xff]  }
 0x1fb   :  { %4432 = vmatpush2.bf16.msra.mxu0 %v9229_v34  ;;  %v9282_v34 = vld [vmem:[%s12655_s1 + $0x102c] ss:$16 sps:$4 sm:$0xff]  }
 0x1fc   :  { %4483 = vmatpush2.bf16.msra.mxu1 %v9232_v14  ;;  %4433 = vmatprep.subr.bf16.mxu0 %v9237_v36  ;;  %v9277_v14 = vld [vmem:[%s12655_s1 + $0xe28] ss:$16 sps:$4 sm:$0xff]  }
 0x1fd   :  { %4484 = vmatprep.subr.bf16.mxu1 %v9240_v38  ;;  %v9280_v36 = vld [vmem:[%s12655_s1 + $0x1028] ss:$16 sps:$4 sm:$0xff]   ;;  %v9285_v38 = vld [vmem:[%s12655_s1 + $0xe0c] ss:$16 sps:$4 sm:$0xff]  }
 0x1ff   :  { %4434 = vmatpush2.bf16.msra.mxu0 %v9235_v39  ;;  %v9288_v39 = vld [vmem:[%s12655_s1 + $0x100c] ss:$16 sps:$4 sm:$0xff]  }
 0x200   :  { %4485 = vmatpush2.bf16.msra.mxu1 %v9238_v40  ;;  %4505 = vmatprep.subr.bf16.mxu0 %v9243_v42  ;;  %v9283_v40 = vld [vmem:[%s12655_s1 + $0xe08] ss:$16 sps:$4 sm:$0xff]  }
 0x201   :  { %4556 = vmatprep.subr.bf16.mxu1 %v9246_v43  ;;  %v9286_v42 = vld [vmem:[%s12655_s1 + $0x1008] ss:$16 sps:$4 sm:$0xff]   ;;  %v9291_v43 = vld [vmem:[%s12655_s1 + $0xfec] ss:$16 sps:$4 sm:$0xff]  }
 0x202   :  { %v4131_v20 = vpop.f32.mrf.mxu0  ;;  %4436 = vmatmul.mubr.bf16.vlgmr.msra.gmra.mxu0 %v9413_v56  ;;  %v9295_v56 = vld [vmem:[%s12655_s1 + $0xfc8] ss:$16 sps:$4 sm:$0xff]  }
 0x203   :  { %v11311_v55 = vpop.f32.mrf.mxu1  ;;  %4487 = vmatmul.mubr.bf16.vlgmr.msra.gmra.mxu1 %v9414_v57  ;;  %v11320_v33 = vadd.f32 %v4131_v20, %v11104_v11  ;;  %4506 = vmatpush1.bf16.msra.mxu0 %v9241_v46  ;;  %v9255_v11 = vld [vmem:[%s12655_s1 + $0xeac] ss:$16 sps:$4 sm:$0xff]   ;;  %v9298_v57 = vld [vmem:[%s12655_s1 + $0x11c8] ss:$16 sps:$4 sm:$0xff]  }
 0x204   :  { %4557 = vmatpush1.bf16.msra.mxu1 %v9244_v48  ;;  %v11328_v63 = vpop.f32.mrf.mxu0  ;;  %4507 = vmatprep.subr.bf16.mxu0 %v9249_v49  ;;  %v9294_v46 = vld [vmem:[%s12655_s1 + $0x11ec] ss:$16 sps:$4 sm:$0xff]   ;;  %v9289_v48 = vld [vmem:[%s12655_s1 + $0xfe8] ss:$16 sps:$4 sm:$0xff]  }
 0x205   :  { %v11330_v28 = vpop.f32.mrf.mxu1  ;;  %4558 = vmatprep.subr.bf16.mxu1 %v9252_v54  ;;  %4445 = vmatprep.mubr.bf16.mxu0 %v10163_v45  ;;  %v9261_v45 = vld [vmem:[%s12655_s1 + $0xe8c] ss:$16 sps:$4 sm:$0xff]   ;;  %v9292_v49 = vld [vmem:[%s12655_s1 + $0x11e8] ss:$16 sps:$4 sm:$0xff]  }
 0x206   :  { %4496 = vmatprep.mubr.bf16.mxu1 %v10398_v9  ;;  %v11340_v41 = vpop.f32.mrf.mxu0  ;;  %v9264_v9 = vld [vmem:[%s12655_s1 + $0x108c] ss:$16 sps:$4 sm:$0xff]  }
 0x207   :  { %v11342_v5 = vpop.f32.mrf.mxu1  ;;  %4508 = vmatpush1.bf16.msra.mxu0 %v9247_v61  ;;  %v9297_v54 = vld [vmem:[%s12655_s1 + $0xfcc] ss:$16 sps:$4 sm:$0xff]  }
 0x208   :  { %4559 = vmatpush1.bf16.msra.mxu1 %v9250_v62  ;;  %v11350_v4 = vpop.f32.mrf.mxu0  ;;  %4509 = vmatprep.subr.bf16.mxu0 %v9255_v11  ;;  %v9300_v20 = vld [vmem:[%s12655_s1 + $0x11cc] ss:$16 sps:$4 sm:$0xff]   ;;  %v9301_v11 = vld [vmem:[%s12655_s1 + $0xfa8] ss:$16 sps:$4 sm:$0xff]  }
 0x209   :  { %v11352_v47 = vpop.f32.mrf.mxu1  ;;  %4560 = vmatprep.subr.bf16.mxu1 %v9258_v2  ;;  %v9303_v61 = vld [vmem:[%s12655_s1 + $0xfac] ss:$16 sps:$4 sm:$0xff]   ;;  %v9304_v2 = vld [vmem:[%s12655_s1 + $0x11a8] ss:$16 sps:$4 sm:$0xff]  }
 0x20a   :  { %v11360_v13 = vpop.f32.mrf.mxu0  ;;  %4446 = vmatmul.mubr.bf16.gmra.mxu0 %v10184_v52  ;;  %v9267_v52 = vld [vmem:[%s12655_s1 + $0xe6c] ss:$16 sps:$4 sm:$0xff]  }
 0x20b   :  { %4497 = vmatmul.mubr.bf16.gmra.mxu1 %v10420_v26  ;;  %v11364_v60 = vpop.f32.mrf.mxu1  ;;  %4510 = vmatpush1.bf16.msra.mxu0 %v9253_v51  ;;  %v9270_v26 = vld [vmem:[%s12655_s1 + $0x106c] ss:$16 sps:$4 sm:$0xff]  }
 0x20c   :  { %4561 = vmatpush1.bf16.msra.mxu1 %v9256_v6  ;;  %v11372_v12 = vpop.f32.mrf.mxu0  ;;  %4511 = vmatprep.subr.bf16.mxu0 %v9261_v45  ;;  %v9306_v62 = vld [vmem:[%s12655_s1 + $0x11ac] ss:$16 sps:$4 sm:$0xff]   ;;  %v9307_v45 = vld [vmem:[%s12655_s1 + $0xf88] ss:$16 sps:$4 sm:$0xff]  }
 0x20d   :  { %4562 = vmatprep.subr.bf16.mxu1 %v9264_v9  ;;  %v11380_v15 = vpop.f32.mrf.mxu1  ;;  %4537 = vmatprep.mubr.bf16.mxu0 %v9415_v23  ;;  %v9309_v51 = vld [vmem:[%s12655_s1 + $0xf8c] ss:$16 sps:$4 sm:$0xff]   ;;  %v9310_v9 = vld [vmem:[%s12655_s1 + $0x1188] ss:$16 sps:$4 sm:$0xff]  }
 0x20e   :  { %4588 = vmatprep.mubr.bf16.mxu1 %v9416_v44  ;;  %v4145_v30 = vpop.f32.mrf.mxu0  ;;  %v9312_v6 = vld [vmem:[%s12655_s1 + $0x118c] ss:$16 sps:$4 sm:$0xff]  }
 0x20f   :  { %v4196_v16 = vpop.f32.mrf.mxu1  ;;  %4512 = vmatpush1.bf16.msra.mxu0 %v9259_v3  ;;  %v9315_v3 = vld [vmem:[%s12655_s1 + $0xf6c] ss:$16 sps:$4 sm:$0xff]   ;;  %v9319_v30 = vld [vmem:[%s12655_s1 + $0xf48] ss:$16 sps:$4 sm:$0xff]  }
 0x210   :  { %4563 = vmatpush1.bf16.msra.mxu1 %v9262_v22  ;;  %4513 = vmatprep.subr.bf16.mxu0 %v9267_v52  ;;  %v4146_v18 = vpop.f32.mrf.mxu0  ;;  %v9318_v22 = vld [vmem:[%s12655_s1 + $0x116c] ss:$16 sps:$4 sm:$0xff]   ;;  %v9313_v52 = vld [vmem:[%s12655_s1 + $0xf68] ss:$16 sps:$4 sm:$0xff]  }
 0x211   :  { %4564 = vmatprep.subr.bf16.mxu1 %v9270_v26  ;;  %v4197_v8 = vpop.f32.mrf.mxu1  ;;  %v9316_v26 = vld [vmem:[%s12655_s1 + $0x1168] ss:$16 sps:$4 sm:$0xff]   ;;  %v9321_v23 = vld [vmem:[%s12655_s1 + $0xf4c] ss:$16 sps:$4 sm:$0xff]  }
 0x212   :  { %v9324_v44 = vld [vmem:[%s12655_s1 + $0x114c] ss:$16 sps:$4 sm:$0xff]   ;;  %v9322_v16 = vld [vmem:[%s12655_s1 + $0x1148] ss:$16 sps:$4 sm:$0xff]  }
 0x213   :  { %4514 = vmatpush1.bf16.msra.mxu0 %v9265_v17  ;;  %v9327_v17 = vld [vmem:[%s12655_s1 + $0xf2c] ss:$16 sps:$4 sm:$0xff]  }
 0x214   :  { %4565 = vmatpush1.bf16.msra.mxu1 %v9268_v19  ;;  %4515 = vmatprep.subr.bf16.mxu0 %v9273_v7  ;;  %v9330_v19 = vld [vmem:[%s12655_s1 + $0x112c] ss:$16 sps:$4 sm:$0xff]   ;;  %v9325_v7 = vld [vmem:[%s12655_s1 + $0xf28] ss:$16 sps:$4 sm:$0xff]  }
 0x215   :  { %4566 = vmatprep.subr.bf16.mxu1 %v9276_v25  ;;  %v9328_v25 = vld [vmem:[%s12655_s1 + $0x1128] ss:$16 sps:$4 sm:$0xff]   ;;  %v9333_v18 = vld [vmem:[%s12655_s1 + $0xf0c] ss:$16 sps:$4 sm:$0xff]  }
 0x216   :  { %v9336_v8 = vld [vmem:[%s12655_s1 + $0x110c] ss:$16 sps:$4 sm:$0xff]  }
 0x217   :  { %4516 = vmatpush1.bf16.msra.mxu0 %v9271_v31  ;;  %v646_v31 = vsub.s32 2, %v10341_v53 }
 0x218   :  { %4567 = vmatpush1.bf16.msra.mxu1 %v9274_v35  ;;  %4517 = vmatprep.subr.bf16.mxu0 %v9279_v50  ;;  %v4144_v35 = vadd.f32 %v11372_v12, %v11153_v21  ;;  %v650_v50 = vsub.s32 3, %v10341_v53  ;;  %v4142_v12 = vadd.f32 %v11360_v13, %v11145_v32 }
 0x219   :  { %4568 = vmatprep.subr.bf16.mxu1 %v9282_v34  ;;  %v9331_v34 = vld [vmem:[%s12655_s1 + $0xf08] ss:$16 sps:$4 sm:$0xff]  }
 0x21a   :  { %v4615_v13 = vmax.f32 %v4142_v12, 0.0 }
 0x21b   :  { %4518 = vmatpush1.bf16.msra.mxu0 %v9277_v14  ;;  %v9334_v14 = vld [vmem:[%s12655_s1 + $0x1108] ss:$16 sps:$4 sm:$0xff]  }
 0x21c   :  { %4569 = vmatpush1.bf16.msra.mxu1 %v9280_v36  ;;  %4519 = vmatprep.subr.bf16.mxu0 %v9285_v38  ;;  %v9417_v36 = vld [vmem:[%s12656_s2] sm:$0xf]  ;;  %v4138_v38 = vadd.f32 %v11350_v4, %v11129_v24 }
 0x21d   :  { %4570 = vmatprep.subr.bf16.mxu1 %v9288_v39  ;;  %v647_v21 = vrot.slane %v9417_v36, %v646_v31  ;;  %v4616_v39 = vmax.f32 %v4144_v35, 0.0  ;;  %v9418_v4 = vld [vmem:[%s12654_s0 + $0x38] ss:$72 sps:$4 sm:$0xff]  }
 0x21e   :  { %v4835_v35 = vld [vmem:[%s12658_s4 + $0x1a0] sm:$0xff] }
 0x21f   :  { %4520 = vmatpush1.bf16.msra.mxu0 %v9283_v40  ;;  %v651_v40 = vrot.slane %v9417_v36, %v650_v50  ;;  %v4183_v32 = vadd.f32 %v11311_v55, %v647_v21  ;;  %v4827_v36 = vld [vmem:[%s12658_s4 + $0x160] sm:$0xff] }
 0x220   :  { %4571 = vmatpush1.bf16.msra.mxu1 %v9286_v42  ;;  %4521 = vmatprep.subr.bf16.mxu0 %v9291_v43  ;;  %v4136_v42 = vadd.f32 %v11340_v41, %v11124_v1  ;;  %v4134_v43 = vadd.f32 %v11328_v63, %v11109_v29  ;;  %v9419_v1 = vld [vmem:[%s12654_s0 + $0x40] ss:$72 sps:$4 sm:$0xff]  }
 0x221   :  { %4572 = vmatprep.subr.bf16.mxu1 %v9294_v46  ;;  %v4612_v46 = vmax.f32 %v4138_v38, 0.0  ;;  %v4185_v29 = vadd.f32 %v11330_v28, %v651_v40  ;;  %v4815_v38 = vld [vmem:[%s12658_s4 + $0x100] sm:$0xff] }
 0x222   :  { %v4611_v63 = vmax.f32 %v4136_v42, 0.0  ;;  %v4608_v55 = vmax.f32 %v4134_v43, 0.0  ;;  %v4807_v43 = vld [vmem:[%s12658_s4 + $0xc0] sm:$0xff] }
 0x223   :  { %4522 = vmatpush2.bf16.msra.mxu0 %v9289_v48 }
 0x224   :  { %4573 = vmatpush2.bf16.msra.mxu1 %v9292_v49  ;;  %4523 = vmatprep.subr.bf16.mxu0 %v9297_v54 }
 0x225   :  { %4574 = vmatprep.subr.bf16.mxu1 %v9300_v20  ;;  %v4607_v20 = vmax.f32 %v11320_v33, 0.0 }
 0x227   :  { %4524 = vmatpush2.bf16.msra.mxu0 %v9295_v56  ;;  %v4187_v56 = vadd.f32 %v11342_v5, %v647_v21 }
 0x228   :  { %4575 = vmatpush2.bf16.msra.mxu1 %v9298_v57  ;;  %4525 = vmatprep.subr.bf16.mxu0 %v9303_v61 }
 0x229   :  { %4576 = vmatprep.subr.bf16.mxu1 %v9306_v62 }
 0x22b   :  { %4526 = vmatpush2.bf16.msra.mxu0 %v9301_v11  ;;  %v4189_v11 = vadd.f32 %v11352_v47, %v651_v40 }
 0x22c   :  { %4577 = vmatpush2.bf16.msra.mxu1 %v9304_v2  ;;  %4527 = vmatprep.subr.bf16.mxu0 %v9309_v51 }
 0x22d   :  { %4578 = vmatprep.subr.bf16.mxu1 %v9312_v6 }
 0x22f   :  { %4528 = vmatpush2.bf16.msra.mxu0 %v9307_v45 }
 0x230   :  { %4579 = vmatpush2.bf16.msra.mxu1 %v9310_v9  ;;  %4529 = vmatprep.subr.bf16.mxu0 %v9315_v3  ;;  %v4195_v3 = vadd.f32 %v11380_v15, %v651_v40  ;;  %v4839_v15 = vld [vmem:[%s12658_s4 + $0x1c0] sm:$0xff] }
 0x231   :  { %4580 = vmatprep.subr.bf16.mxu1 %v9318_v22 }
 0x233   :  { %4530 = vmatpush2.bf16.msra.mxu0 %v9313_v52  ;;  %v9442_v52 = vmov 0.0  }
 0x234   :  { %4581 = vmatpush2.bf16.msra.mxu1 %v9316_v26  ;;  %4531 = vmatprep.subr.bf16.mxu0 %v9321_v23 }
 0x235   :  { %4582 = vmatprep.subr.bf16.mxu1 %v9324_v44 }
 0x237   :  { %4532 = vmatpush2.bf16.msra.mxu0 %v9319_v30 }
 0x238   :  { %4583 = vmatpush2.bf16.msra.mxu1 %v9322_v16  ;;  %4533 = vmatprep.subr.bf16.mxu0 %v9327_v17  ;;  %v4843_v17 = vld [vmem:[%s12658_s4 + $0x1e0] sm:$0xff] }
 0x239   :  { %4584 = vmatprep.subr.bf16.mxu1 %v9330_v19  ;;  %v4831_v19 = vld [vmem:[%s12658_s4 + $0x180] sm:$0xff] }
 0x23b   :  { %4534 = vmatpush2.bf16.msra.mxu0 %v9325_v7 }
 0x23c   :  { %4585 = vmatpush2.bf16.msra.mxu1 %v9328_v25  ;;  %4535 = vmatprep.subr.bf16.mxu0 %v9333_v18  ;;  %v8073_v18 = vcombine.low %v4839_v15, %v4843_v17 }
 0x23d   :  { %4586 = vmatprep.subr.bf16.mxu1 %v9336_v8  ;;  %v8074_v8 = vcombine.high %v4839_v15, %v4843_v17 }
 0x23f   :  { %4536 = vmatpush2.bf16.msra.mxu0 %v9331_v34  ;;  %v8066_v34 = vcombine.high %v4831_v19, %v4835_v35 }
 0x240   :  { %4587 = vmatpush2.bf16.msra.mxu1 %v9334_v14  ;;  %8011 = vmatprep.subr.msk.mxu0 %vm4624_vm0, %v4616_v39  ;;  %v4823_v14 = vld [vmem:[%s12658_s4 + $0x140] sm:$0xff] }
 0x241   :  { %v8058_v12 = vcombine.high %v4823_v14, %v4827_v36  ;;  %v4819_v39 = vld [vmem:[%s12658_s4 + $0x120] sm:$0xff]  ;;  %v8057_v40 = vcombine.low %v4823_v14, %v4827_v36 }
 0x242   :  { %v4233_v48 = vpop.f32.mrf.mxu0  ;;  %4538 = vmatmul.mubr.bf16.vlgmr.msra.gmra.mxu0 %v9418_v4  ;;  %v8050_v42 = vcombine.high %v4815_v38, %v4819_v39 }
 0x243   :  { %v4284_v24 = vpop.f32.mrf.mxu1  ;;  %4589 = vmatmul.mubr.bf16.vlgmr.msra.gmra.mxu1 %v9419_v1  ;;  %v4234_v41 = vadd.f32 %v4233_v48, %v4183_v32  ;;  %8012 = vmatpush1.msk.msra.mxu0 %vm4624_vm0, %v4615_v13  ;;  %v4811_v32 = vld [vmem:[%s12658_s4 + $0xe0] sm:$0xff]  ;;  %v8049_v13 = vcombine.low %v4815_v38, %v4819_v39 }
 0x244   :  { %4547 = vmatprep.mubr.bf16.mxu0 %v10400_v10  ;;  %v4235_v49 = vpop.f32.mrf.mxu0  ;;  %4665 = vmatprep.subr.mxu0 %v4612_v46  ;;  %v8042_v46 = vcombine.high %v4807_v43, %v4811_v32  ;;  %v4799_v48 = vld [vmem:[%s12658_s4 + $0x80] sm:$0xff]  ;;  %v8041_v4 = vcombine.low %v4807_v43, %v4811_v32 }
 0x245   :  { %v4286_v54 = vpop.f32.mrf.mxu1  ;;  %4598 = vmatprep.mubr.bf16.mxu1 %v10638_v37  ;;  %v11559_v57 = vadd.f32 %v4284_v24, %v4234_v41  ;;  %v4236_v61 = vadd.f32 %v4235_v49, %v4185_v29  ;;  %4666 = vmatpush1.msra.mxu0 %v4611_v63  ;;  %v4193_v37 = vadd.f32 %v11364_v60, %v647_v21  ;;  %v4803_v24 = vld [vmem:[%s12658_s4 + $0xa0] sm:$0xff] }
 0x246   :  { %v4237_v28 = vpop.f32.mrf.mxu0  ;;  %4667 = vmatprep.subr.mxu0 %v4608_v55  ;;  %v8065_v21 = vcombine.low %v4831_v19, %v4835_v35  ;;  %v8034_v1 = vcombine.high %v4799_v48, %v4803_v24  ;;  %v4791_v29 = vld [vmem:[%s12658_s4 + $0x40] sm:$0xff]  ;;  %v8033_v41 = vcombine.low %v4799_v48, %v4803_v24 }
 0x247   :  { %v4288_v62 = vpop.f32.mrf.mxu1  ;;  %v11562_v10 = vadd.f32 %v4286_v54, %v4236_v61  ;;  %v4238_v2 = vadd.f32 %v4237_v28, %v4187_v56  ;;  %4668 = vmatpush1.msra.mxu0 %v4607_v20  ;;  %v4795_v63 = vld [vmem:[%s12658_s4 + $0x60] sm:$0xff] }
 0x248   :  { %v4239_v51 = vpop.f32.mrf.mxu0  ;;  %6361 = vmatprep.subr.bf16.mxu0 %v8074_v8  ;;  %v8026_v55 = vcombine.high %v4791_v29, %v4795_v63  ;;  %v4783_v49 = vld [vmem:[%s12658_s4] sm:$0xff]  ;;  %v8025_v20 = vcombine.low %v4791_v29, %v4795_v63 }
 0x249   :  { %v4290_v6 = vpop.f32.mrf.mxu1  ;;  %v11565_v33 = vadd.f32 %v4288_v62, %v4238_v2  ;;  %v4240_v5 = vadd.f32 %v4239_v51, %v4189_v11  ;;  %v4787_v54 = vld [vmem:[%s12658_s4 + $0x20] sm:$0xff] }
 0x24a   :  { %v4243_v45 = vpop.f32.mrf.mxu0  ;;  %4548 = vmatmul.mubr.bf16.gmra.mxu0 %v10422_v27  ;;  %v11577_v27 = vld [vmem:[%s12657_s3] sm:$0x3]  ;;  %v8018_v56 = vcombine.high %v4783_v49, %v4787_v54  ;;  %v8017_v62 = vcombine.low %v4783_v49, %v4787_v54  ;;  %s9443_s3 = smov [#allocation2]  }
 0x24b   :  { %4599 = vmatmul.mubr.bf16.gmra.mxu1 %v10661_v58  ;;  %v4294_v9 = vpop.f32.mrf.mxu1  ;;  %v11570_v47 = vadd.f32 %v4290_v6, %v4240_v5  ;;  %v4244_v22 = vadd.f32 %v4243_v45, %v4193_v37  ;;  %4701 = vmatprep.mubr.f32.mxu0 %v9442_v52  ;;  %v4903_v61 = vld [vmem:[%s12658_s4 + $0x3c0] sm:$0xff]  ;;  %s7391_s24 = sshll.u32 %s9443_s3, 4  ;;  %s7392_s24 = int_to_ptr.vmem [resolvable:$true] %s7391_s24 }
 0x24c   :  { %4772 = vmatprep.mubr.f32.mxu1 %v9442_v52  ;;  %v4245_v26 = vpop.f32.mrf.mxu0  ;;  %v4907_v28 = vld [vmem:[%s12658_s4 + $0x3e0] sm:$0xff]  ;;  %p9425_p1 = scmp.lt.s32.totalorder %s7392_s24, %s7392_s24 }
 0x24d   :  { %v4296_v23 = vpop.f32.mrf.mxu1  ;;  %v4246_v60 = vadd.f32 %v4245_v26, %v4195_v3  ;;  %v11572_v44 = vadd.f32 %v4294_v9, %v4244_v22  ;;  %v8138_v11 = vcombine.high %v4903_v61, %v4907_v28  ;;  %v8137_v2 = vcombine.low %v4903_v61, %v4907_v28  ;;  %v4895_v51 = vld [vmem:[%s12658_s4 + $0x380] sm:$0xff] }
 0x24e   :  { %v4247_v58 = vpop.f32.mrf.mxu0  ;;  %v4899_v6 = vld [vmem:[%s12658_s4 + $0x3a0] sm:$0xff] }
 0x24f   :  { %v4298_v30 = vpop.f32.mrf.mxu1  ;;  %v11579_v16 = vadd.f32 %v4296_v23, %v4246_v60  ;;  %v8130_v37 = vcombine.high %v4895_v51, %v4899_v6  ;;  %v8129_v5 = vcombine.low %v4895_v51, %v4899_v6  ;;  %v4887_v45 = vld [vmem:[%s12658_s4 + $0x340] sm:$0xff] }
 0x250   :  { %v4248_v7 = vpop.f32.mrf.mxu0  ;;  %v4891_v9 = vld [vmem:[%s12658_s4 + $0x360] sm:$0xff] }
 0x251   :  { %v4299_v25 = vpop.f32.mrf.mxu1  ;;  %v8122_v3 = vcombine.high %v4887_v45, %v4891_v9  ;;  %v8121_v22 = vcombine.low %v4887_v45, %v4891_v9  ;;  %v4879_v52 = vld [vmem:[%s12658_s4 + $0x300] sm:$0xff] }
 0x252   :  { %8013 = vmatmul.mubr.msk.f32.vlgmr.msra.gmra.mxu0 %vm4620_vm1, %v11577_v27  ;;  %v4883_v26 = vld [vmem:[%s12658_s4 + $0x320] sm:$0xff] }
 0x253   :  { %6362 = vmatpush1.bf16.msra.mxu0 %v8073_v18  ;;  %v8114_v23 = vcombine.high %v4879_v52, %v4883_v26  ;;  %v8113_v30 = vcombine.low %v4879_v52, %v4883_v26  ;;  %v4871_v7 = vld [vmem:[%s12658_s4 + $0x2c0] sm:$0xff] }
 0x254   :  { %6363 = vmatprep.subr.bf16.mxu0 %v8066_v34  ;;  %v4875_v25 = vld [vmem:[%s12658_s4 + $0x2e0] sm:$0xff] }
 0x255   :  { %v8106_v35 = vcombine.high %v4871_v7, %v4875_v25  ;;  %v8105_v36 = vcombine.low %v4871_v7, %v4875_v25  ;;  %v4863_v39 = vld [vmem:[%s12658_s4 + $0x280] sm:$0xff] }
 0x256   :  { %v4859_v29 = vld [vmem:[%s12658_s4 + $0x260] sm:$0xff] }
 0x257   :  { %6364 = vmatpush1.bf16.msra.mxu0 %v8065_v21  ;;  %v4847_v61 = vld [vmem:[%s12658_s4 + $0x200] sm:$0xff] }
 0x258   :  { %6365 = vmatprep.subr.bf16.mxu0 %v8058_v12  ;;  %v4851_v28 = vld [vmem:[%s12658_s4 + $0x220] sm:$0xff] }
 0x25b   :  { %6366 = vmatpush1.bf16.msra.mxu0 %v8057_v40  ;;  %v4867_v40 = vld [vmem:[%s12658_s4 + $0x2a0] sm:$0xff] }
 0x25c   :  { %6367 = vmatprep.subr.bf16.mxu0 %v8050_v42  ;;  %v8098_v43 = vcombine.high %v4863_v39, %v4867_v40 }
 0x25f   :  { %6368 = vmatpush1.bf16.msra.mxu0 %v8049_v13 }
 0x260   :  { %6369 = vmatprep.subr.bf16.mxu0 %v8042_v46  ;;  %v8097_v46 = vcombine.low %v4863_v39, %v4867_v40 }
 0x263   :  { %6370 = vmatpush1.bf16.msra.mxu0 %v8041_v4 }
 0x264   :  { %6371 = vmatprep.subr.bf16.mxu0 %v8034_v1  ;;  %v4855_v1 = vld [vmem:[%s12658_s4 + $0x240] sm:$0xff] }
 0x265   :  { %v8089_v54 = vcombine.low %v4855_v1, %v4859_v29 }
 0x267   :  { %6372 = vmatpush1.bf16.msra.mxu0 %v8033_v41  ;;  %v8090_v41 = vcombine.high %v4855_v1, %v4859_v29 }
 0x268   :  { %6373 = vmatprep.subr.bf16.mxu0 %v8026_v55 }
 0x26b   :  { %6374 = vmatpush1.bf16.msra.mxu0 %v8025_v20 }
 0x26c   :  { %6375 = vmatprep.subr.bf16.mxu0 %v8018_v56 }
 0x26f   :  { %6376 = vmatpush1.bf16.msra.mxu0 %v8017_v62  ;;  %v8082_v62 = vcombine.high %v4847_v61, %v4851_v28 }
 0x270   :  { %6377 = vmatprep.subr.bf16.mxu0 %v8138_v11  ;;  %v11688_v11 = vld [vmem:[%s12658_s4 + $0x1c8] sm:$0xff] }
 0x273   :  { %6378 = vmatpush2.bf16.msra.mxu0 %v8137_v2  ;;  %v11693_v2 = vld [vmem:[%s12658_s4 + $0x1e8] sm:$0xff] }
 0x274   :  { %6379 = vmatprep.subr.bf16.mxu0 %v8130_v37  ;;  %v8076_v51 = vcombine.high %v11688_v11, %v11693_v2  ;;  %v8075_v6 = vcombine.low %v11688_v11, %v11693_v2  ;;  %v4820_v11 = vld [vmem:[%s12658_s4 + $0x128] sm:$0xff] }
 0x277   :  { %6380 = vmatpush2.bf16.msra.mxu0 %v8129_v5 }
 0x278   :  { %6381 = vmatprep.subr.bf16.mxu0 %v8122_v3 }
 0x27b   :  { %6382 = vmatpush2.bf16.msra.mxu0 %v8121_v22 }
 0x27c   :  { %6383 = vmatprep.subr.bf16.mxu0 %v8114_v23 }
 0x27f   :  { %6384 = vmatpush2.bf16.msra.mxu0 %v8113_v30 }
 0x280   :  { %6385 = vmatprep.subr.bf16.mxu0 %v8106_v35 }
 0x282   :  { %v4335_v60 = vpop.f32.mrf.mxu0 }
 0x283   :  { %v4386_v58 = vpop.f32.mrf.mxu1  ;;  %v4336_v15 = vadd.f32 %v4335_v60, %v11559_v57  ;;  %6386 = vmatpush2.bf16.msra.mxu0 %v8105_v36 }
 0x284   :  { %v4337_v17 = vpop.f32.mrf.mxu0  ;;  %6387 = vmatprep.subr.bf16.mxu0 %v8098_v43 }
 0x285   :  { %v4388_v19 = vpop.f32.mrf.mxu1  ;;  %v4387_v18 = vadd.f32 %v4386_v58, %v4336_v15  ;;  %v4338_v8 = vadd.f32 %v4337_v17, %v11562_v10 }
 0x286   :  { %v4339_v34 = vpop.f32.mrf.mxu0 }
 0x287   :  { %v4390_v14 = vpop.f32.mrf.mxu1  ;;  %v4389_v57 = vadd.f32 %v4388_v19, %v4338_v8  ;;  %v4340_v21 = vadd.f32 %v4339_v34, %v11565_v33  ;;  %6388 = vmatpush2.bf16.msra.mxu0 %v8097_v46 }
 0x288   :  { %v4341_v12 = vpop.f32.mrf.mxu0  ;;  %6389 = vmatprep.subr.bf16.mxu0 %v8090_v41 }
 0x289   :  { %v4392_v38 = vpop.f32.mrf.mxu1  ;;  %v4391_v10 = vadd.f32 %v4390_v14, %v4340_v21  ;;  %v4342_v42 = vadd.f32 %v4341_v12, %v11570_v47 }
 0x28a   :  { %v4345_v32 = vpop.f32.mrf.mxu0 }
 0x28b   :  { %v4396_v13 = vpop.f32.mrf.mxu1  ;;  %v4393_v33 = vadd.f32 %v4392_v38, %v4342_v42  ;;  %v4346_v48 = vadd.f32 %v4345_v32, %v11572_v44  ;;  %6390 = vmatpush2.bf16.msra.mxu0 %v8089_v54 }
 0x28c   :  { %v4347_v24 = vpop.f32.mrf.mxu0  ;;  %6391 = vmatprep.subr.bf16.mxu0 %v8082_v62 }
 0x28d   :  { %v4398_v4 = vpop.f32.mrf.mxu1  ;;  %v4348_v47 = vadd.f32 %v4347_v24, %v11579_v16  ;;  %v4397_v63 = vadd.f32 %v4396_v13, %v4346_v48  ;;  %v8081_v16 = vcombine.low %v4847_v61, %v4851_v28 }
 0x28e   :  { %v4349_v55 = vpop.f32.mrf.mxu0 }
 0x28f   :  { %v4400_v49 = vpop.f32.mrf.mxu1  ;;  %v4399_v44 = vadd.f32 %v4398_v4, %v4348_v47  ;;  %6392 = vmatpush2.bf16.msra.mxu0 %v8081_v16 }
 0x290   :  { %v4350_v20 = vpop.f32.mrf.mxu0  ;;  %6443 = vmatprep.subr.bf16.mxu0 %v8076_v51 }
 0x291   :  { %v4401_v56 = vpop.f32.mrf.mxu1 }
 0x2c2   :  { %v4437_v37 = vpop.f32.mrf.mxu0 }
 0x2c3   :  { %v4488_v5 = vpop.f32.mrf.mxu1  ;;  %v4438_v45 = vadd.f32 %v4437_v37, %v4387_v18 }
 0x2c4   :  { %v4439_v9 = vpop.f32.mrf.mxu0 }
 0x2c5   :  { %v4490_v3 = vpop.f32.mrf.mxu1  ;;  %v4489_v22 = vadd.f32 %v4488_v5, %v4438_v45  ;;  %v4440_v52 = vadd.f32 %v4439_v9, %v4389_v57 }
 0x2c6   :  { %v4441_v26 = vpop.f32.mrf.mxu0 }
 0x2c7   :  { %v4492_v23 = vpop.f32.mrf.mxu1  ;;  %v4491_v60 = vadd.f32 %v4490_v3, %v4440_v52  ;;  %v4442_v58 = vadd.f32 %v4441_v26, %v4391_v10  ;;  %v4836_v52 = vld [vmem:[%s12658_s4 + $0x1a8] sm:$0xff] }
 0x2c8   :  { %v4443_v30 = vpop.f32.mrf.mxu0 }
 0x2c9   :  { %v4494_v15 = vpop.f32.mrf.mxu1  ;;  %v4493_v17 = vadd.f32 %v4492_v23, %v4442_v58  ;;  %v4444_v19 = vadd.f32 %v4443_v30, %v4393_v33 }
 0x2ca   :  { %v4447_v7 = vpop.f32.mrf.mxu0 }
 0x2cb   :  { %v4498_v25 = vpop.f32.mrf.mxu1  ;;  %v4495_v8 = vadd.f32 %v4494_v15, %v4444_v19  ;;  %v4448_v35 = vadd.f32 %v4447_v7, %v4397_v63  ;;  %v4967_v15 = vld [vmem:[%s12658_s4 + $0x5c0] sm:$0xff] }
 0x2cc   :  { %v4449_v34 = vpop.f32.mrf.mxu0 }
 0x2cd   :  { %v4500_v14 = vpop.f32.mrf.mxu1  ;;  %v4499_v36 = vadd.f32 %v4498_v25, %v4448_v35  ;;  %v4450_v32 = vadd.f32 %v4449_v34, %v4399_v44  ;;  %v4824_v25 = vld [vmem:[%s12658_s4 + $0x148] sm:$0xff] }
 0x2ce   :  { %v4451_v18 = vpop.f32.mrf.mxu0 }
 0x2cf   :  { %v4502_v21 = vpop.f32.mrf.mxu1  ;;  %v4501_v24 = vadd.f32 %v4500_v14, %v4450_v32  ;;  %v4963_v18 = vld [vmem:[%s12658_s4 + $0x5a0] sm:$0xff] }
 0x2d0   :  { %v4452_v12 = vpop.f32.mrf.mxu0 }
 0x2d1   :  { %v4503_v38 = vpop.f32.mrf.mxu1 }
 0x2d2   :  { %v4951_v38 = vld [vmem:[%s12658_s4 + $0x540] sm:$0xff] }
 0x302   :  { %v4539_v57 = vpop.f32.mrf.mxu0 }
 0x303   :  { %v4590_v39 = vpop.f32.mrf.mxu1  ;;  %v4540_v49 = vadd.f32 %v4539_v57, %v4489_v22  ;;  %v4832_v22 = vld [vmem:[%s12658_s4 + $0x188] sm:$0xff]  ;;  %v4955_v57 = vld [vmem:[%s12658_s4 + $0x560] sm:$0xff] }
 0x304   :  { %v4541_v40 = vpop.f32.mrf.mxu0  ;;  %v8068_v7 = vcombine.high %v4832_v22, %v4836_v52  ;;  %v8067_v14 = vcombine.low %v4832_v22, %v4836_v52  ;;  %v4904_v52 = vld [vmem:[%s12658_s4 + $0x3c8] sm:$0xff] }
 0x305   :  { %v4592_v42 = vpop.f32.mrf.mxu1  ;;  %v4542_v41 = vadd.f32 %v4541_v40, %v4491_v60  ;;  %v4591_v5 = vadd.f32 %v4590_v39, %v4540_v49  ;;  %v8186_v40 = vcombine.high %v4951_v38, %v4955_v57  ;;  %v4792_v49 = vld [vmem:[%s12658_s4 + $0x48] sm:$0xff] }
 0x306   :  { %v4543_v10 = vpop.f32.mrf.mxu0 }
 0x307   :  { %v4594_v43 = vpop.f32.mrf.mxu1  ;;  %v4544_v29 = vadd.f32 %v4543_v10, %v4493_v17  ;;  %v4593_v51 = vadd.f32 %v4592_v42, %v4542_v41  ;;  %v4971_v17 = vld [vmem:[%s12658_s4 + $0x5e0] sm:$0xff]  ;;  %v4609_v19 = vmax.f32 %v4591_v5, 0.0  ;;  %v4808_v42 = vld [vmem:[%s12658_s4 + $0xc8] sm:$0xff] }
 0x308   :  { %v4545_v13 = vpop.f32.mrf.mxu0  ;;  %v8202_v35 = vcombine.high %v4967_v15, %v4971_v17  ;;  %v8201_v34 = vcombine.low %v4967_v15, %v4971_v17  ;;  %v4812_v10 = vld [vmem:[%s12658_s4 + $0xe8] sm:$0xff]  ;;  %v4911_v15 = vld [vmem:[%s12658_s4 + $0x400] sm:$0xff] }
 0x309   :  { %v4596_v46 = vpop.f32.mrf.mxu1  ;;  %v4546_v4 = vadd.f32 %v4545_v13, %v4495_v8  ;;  %v4595_v62 = vadd.f32 %v4594_v43, %v4544_v29  ;;  %v4610_v58 = vmax.f32 %v4593_v51, 0.0  ;;  %v4828_v8 = vld [vmem:[%s12658_s4 + $0x168] sm:$0xff]  ;;  %v8185_v43 = vcombine.low %v4951_v38, %v4955_v57  ;;  %v4943_v13 = vld [vmem:[%s12658_s4 + $0x500] sm:$0xff] }
 0x30a   :  { %v4549_v33 = vpop.f32.mrf.mxu0  ;;  %v8060_v21 = vcombine.high %v4824_v25, %v4828_v8  ;;  %v8043_v29 = vcombine.low %v4808_v42, %v4812_v10  ;;  %v4788_v51 = vld [vmem:[%s12658_s4 + $0x28] sm:$0xff]  ;;  %v4915_v17 = vld [vmem:[%s12658_s4 + $0x420] sm:$0xff] }
 0x30b   :  { %v4600_v48 = vpop.f32.mrf.mxu1  ;;  %v4550_v1 = vadd.f32 %v4549_v33, %v4499_v36  ;;  %v4597_v61 = vadd.f32 %v4596_v46, %v4546_v4  ;;  %v4613_v26 = vmax.f32 %v4595_v62, 0.0  ;;  %v4959_v36 = vld [vmem:[%s12658_s4 + $0x580] sm:$0xff]  ;;  %v8044_v33 = vcombine.high %v4808_v42, %v4812_v10  ;;  %v4804_v4 = vld [vmem:[%s12658_s4 + $0xa8] sm:$0xff] }
 0x30c   :  { %v4551_v47 = vpop.f32.mrf.mxu0  ;;  %v8194_v12 = vcombine.high %v4959_v36, %v4963_v18  ;;  %v8193_v2 = vcombine.low %v4959_v36, %v4963_v18  ;;  %v4947_v46 = vld [vmem:[%s12658_s4 + $0x520] sm:$0xff]  ;;  %v4884_v42 = vld [vmem:[%s12658_s4 + $0x328] sm:$0xff] }
 0x30d   :  { %v4602_v63 = vpop.f32.mrf.mxu1  ;;  %v4552_v55 = vadd.f32 %v4551_v47, %v4501_v24  ;;  %v4601_v54 = vadd.f32 %v4600_v48, %v4550_v1  ;;  %v4614_v3 = vmax.f32 %v4597_v61, 0.0  ;;  %v8178_v48 = vcombine.high %v4943_v13, %v4947_v46  ;;  %v4800_v24 = vld [vmem:[%s12658_s4 + $0x88] sm:$0xff]  ;;  %v4935_v47 = vld [vmem:[%s12658_s4 + $0x4c0] sm:$0xff] }
 0x30e   :  { %v4553_v20 = vpop.f32.mrf.mxu0  ;;  %v8177_v1 = vcombine.low %v4943_v13, %v4947_v46  ;;  %v8036_v41 = vcombine.high %v4800_v24, %v4804_v4  ;;  %v4927_v61 = vld [vmem:[%s12658_s4 + $0x480] sm:$0xff] }
 0x30f   :  { %v4604_v56 = vpop.f32.mrf.mxu1  ;;  %v4603_v28 = vadd.f32 %v4602_v63, %v4552_v55  ;;  %v4617_v45 = vmax.f32 %v4601_v54, 0.0  ;;  %v4939_v63 = vld [vmem:[%s12658_s4 + $0x4e0] sm:$0xff]  ;;  %v4796_v54 = vld [vmem:[%s12658_s4 + $0x68] sm:$0xff] }
 0x310   :  { %v4554_v44 = vpop.f32.mrf.mxu0  ;;  %v8170_v55 = vcombine.high %v4935_v47, %v4939_v63  ;;  %v8169_v20 = vcombine.low %v4935_v47, %v4939_v63  ;;  %v8035_v56 = vcombine.low %v4800_v24, %v4804_v4  ;;  %v8028_v62 = vcombine.high %v4792_v49, %v4796_v54  ;;  %v5035_v36 = vld [vmem:[%s12658_s4 + $0x7e0] sm:$0xff]  ;;  %v4876_v24 = vld [vmem:[%s12658_s4 + $0x2e8] sm:$0xff] }
 0x311   :  { %v4605_v16 = vpop.f32.mrf.mxu1  ;;  %v4618_v37 = vmax.f32 %v4603_v28, 0.0  ;;  %v4931_v28 = vld [vmem:[%s12658_s4 + $0x4a0] sm:$0xff]  ;;  %v8027_v5 = vcombine.low %v4792_v49, %v4796_v54  ;;  %v4868_v49 = vld [vmem:[%s12658_s4 + $0x2a8] sm:$0xff] }
 0x312   :  { %v4703_v9 = vpop.f32.mrf.mxu0  ;;  %v8162_v44 = vcombine.high %v4927_v61, %v4931_v28  ;;  %v4784_v16 = vld [vmem:[%s12658_s4 + $0x8] sm:$0xff]  ;;  %v5027_v38 = vld [vmem:[%s12658_s4 + $0x7a0] sm:$0xff] }
 0x313   :  { %8014 = vmatprep.subr.msk.mxu1 %vm4624_vm0, %v4618_v37  ;;  %v11707_v23 = vpack.c.bf16 %v4703_v9, %v4703_v9  ;;  %v8161_v37 = vcombine.low %v4927_v61, %v4931_v28  ;;  %v4923_v9 = vld [vmem:[%s12658_s4 + $0x460] sm:$0xff] }
 0x314   :  { %8015 = vmatpush1.msk.msra.mxu1 %vm4624_vm0, %v4617_v45  ;;  %v4705_v60 = vpop.f32.mrf.mxu0  ;;  %v4919_v45 = vld [vmem:[%s12658_s4 + $0x440] sm:$0xff] }
 0x315   :  { %4736 = vmatprep.subr.mxu1 %v4614_v3  ;;  %v11709_v30 = vpack.c.bf16 %v4705_v60, %v4705_v60  ;;  %v8020_v3 = vcombine.high %v4784_v16, %v4788_v51  ;;  %v8154_v22 = vcombine.high %v4919_v45, %v4923_v9  ;;  %v8153_v60 = vcombine.low %v4919_v45, %v4923_v9  ;;  %v5019_v13 = vld [vmem:[%s12658_s4 + $0x760] sm:$0xff] }
 0x316   :  { %4737 = vmatpush1.msra.mxu1 %v4613_v26  ;;  %v4908_v26 = vld [vmem:[%s12658_s4 + $0x3e8] sm:$0xff]  ;;  %v5011_v47 = vld [vmem:[%s12658_s4 + $0x720] sm:$0xff] }
 0x317   :  { %4738 = vmatprep.subr.mxu1 %v4610_v58  ;;  %6393 = vmatprep.mubr.bf16.mxu0 %v11709_v30  ;;  %v8019_v58 = vcombine.low %v4784_v16, %v4788_v51  ;;  %v5003_v61 = vld [vmem:[%s12658_s4 + $0x6e0] sm:$0xff]  ;;  %v4860_v16 = vld [vmem:[%s12658_s4 + $0x268] sm:$0xff] }
 0x318   :  { %4739 = vmatpush1.msra.mxu1 %v4609_v19  ;;  %6394 = vmatmul.mubr.bf16.vlgmr.msra.gmra.mxu0 %v11707_v23  ;;  %v8140_v19 = vcombine.high %v4904_v52, %v4908_v26  ;;  %v4995_v45 = vld [vmem:[%s12658_s4 + $0x6a0] sm:$0xff] }
 0x319   :  { %8016 = vmatmul.mubr.msk.f32.vlgmr.msra.gmra.mxu1 %vm4620_vm1, %v11577_v27  ;;  %6444 = vmatpush1.bf16.msra.mxu0 %v8075_v6  ;;  %v4816_v27 = vld [vmem:[%s12658_s4 + $0x108] sm:$0xff]  ;;  %v8059_v6 = vcombine.low %v4824_v25, %v4828_v8 }
 0x31a   :  { %6445 = vmatprep.subr.bf16.mxu0 %v8068_v7  ;;  %6475 = vmatprep.mubr.bf16.mxu0 %v11709_v30  ;;  %v8052_v39 = vcombine.high %v4816_v27, %v4820_v11  ;;  %v8051_v32 = vcombine.low %v4816_v27, %v4820_v11  ;;  %v8146_v7 = vcombine.high %v4911_v15, %v4915_v17  ;;  %v4896_v25 = vld [vmem:[%s12658_s4 + $0x388] sm:$0xff] }
 0x31b   :  { %6402 = vmatprep.subr.bf16.mxu1 %v8202_v35  ;;  %v4900_v8 = vld [vmem:[%s12658_s4 + $0x3a8] sm:$0xff]  ;;  %v8145_v35 = vcombine.low %v4911_v15, %v4915_v17  ;;  %v4987_v15 = vld [vmem:[%s12658_s4 + $0x660] sm:$0xff] }
 0x31c   :  { %6403 = vmatpush1.bf16.msra.mxu1 %v8201_v34  ;;  %v8139_v34 = vcombine.low %v4904_v52, %v4908_v26  ;;  %v8132_v18 = vcombine.high %v4896_v25, %v4900_v8  ;;  %v4892_v27 = vld [vmem:[%s12658_s4 + $0x368] sm:$0xff] }
 0x31d   :  { %6446 = vmatpush1.bf16.msra.mxu0 %v8067_v14  ;;  %6404 = vmatprep.subr.bf16.mxu1 %v8194_v12  ;;  %v5031_v14 = vld [vmem:[%s12658_s4 + $0x7c0] sm:$0xff]  ;;  %v4888_v12 = vld [vmem:[%s12658_s4 + $0x348] sm:$0xff] }
 0x31e   :  { %6447 = vmatprep.subr.bf16.mxu0 %v8060_v21  ;;  %v8266_v21 = vcombine.high %v5031_v14, %v5035_v36  ;;  %v8265_v11 = vcombine.low %v5031_v14, %v5035_v36  ;;  %v8124_v57 = vcombine.high %v4888_v12, %v4892_v27  ;;  %v4852_v52 = vld [vmem:[%s12658_s4 + $0x228] sm:$0xff]  ;;  %v4833_v14 = vld [vmem:[%s12658_s4 + $0x190] sm:$0xff] }
 0x31f   :  { %v4837_v36 = vld [vmem:[%s12658_s4 + $0x1b0] sm:$0xff] }
 0x320   :  { %6405 = vmatpush1.bf16.msra.mxu1 %v8193_v2  ;;  %v8131_v2 = vcombine.low %v4896_v25, %v4900_v8  ;;  %v4845_v25 = vld [vmem:[%s12658_s4 + $0x1f0] sm:$0xff] }
 0x321   :  { %6448 = vmatpush1.bf16.msra.mxu0 %v8059_v6  ;;  %6406 = vmatprep.subr.bf16.mxu1 %v8186_v40  ;;  %v5023_v6 = vld [vmem:[%s12658_s4 + $0x780] sm:$0xff]  ;;  %v4880_v40 = vld [vmem:[%s12658_s4 + $0x308] sm:$0xff] }
 0x322   :  { %6449 = vmatprep.subr.bf16.mxu0 %v8052_v39  ;;  %v8258_v39 = vcombine.high %v5023_v6, %v5027_v38  ;;  %v8257_v10 = vcombine.low %v5023_v6, %v5027_v38  ;;  %v8116_v46 = vcombine.high %v4880_v40, %v4884_v42  ;;  %v8069_v6 = vcombine.low %v4833_v14, %v4837_v36 }
 0x324   :  { %6407 = vmatpush1.bf16.msra.mxu1 %v8185_v43  ;;  %v8123_v43 = vcombine.low %v4888_v12, %v4892_v27  ;;  %v4825_v12 = vld [vmem:[%s12658_s4 + $0x150] sm:$0xff] }
 0x325   :  { %6450 = vmatpush1.bf16.msra.mxu0 %v8051_v32  ;;  %6408 = vmatprep.subr.bf16.mxu1 %v8178_v48  ;;  %v5015_v32 = vld [vmem:[%s12658_s4 + $0x740] sm:$0xff]  ;;  %v4872_v48 = vld [vmem:[%s12658_s4 + $0x2c8] sm:$0xff]  ;;  %v4829_v27 = vld [vmem:[%s12658_s4 + $0x170] sm:$0xff] }
 0x326   :  { %6451 = vmatprep.subr.bf16.mxu0 %v8044_v33  ;;  %v8250_v33 = vcombine.high %v5015_v32, %v5019_v13  ;;  %v8249_v4 = vcombine.low %v5015_v32, %v5019_v13  ;;  %v8108_v63 = vcombine.high %v4872_v48, %v4876_v24  ;;  %v8061_v32 = vcombine.low %v4825_v12, %v4829_v27 }
 0x328   :  { %6409 = vmatpush1.bf16.msra.mxu1 %v8177_v1  ;;  %v8115_v1 = vcombine.low %v4880_v40, %v4884_v42  ;;  %v4817_v40 = vld [vmem:[%s12658_s4 + $0x110] sm:$0xff] }
 0x329   :  { %6452 = vmatpush1.bf16.msra.mxu0 %v8043_v29  ;;  %6410 = vmatprep.subr.bf16.mxu1 %v8170_v55  ;;  %v5007_v29 = vld [vmem:[%s12658_s4 + $0x700] sm:$0xff]  ;;  %v4864_v55 = vld [vmem:[%s12658_s4 + $0x288] sm:$0xff]  ;;  %v4821_v42 = vld [vmem:[%s12658_s4 + $0x130] sm:$0xff] }
 0x32a   :  { %6453 = vmatprep.subr.bf16.mxu0 %v8036_v41  ;;  %v8242_v41 = vcombine.high %v5007_v29, %v5011_v47  ;;  %v8241_v54 = vcombine.low %v5007_v29, %v5011_v47  ;;  %v8100_v28 = vcombine.high %v4864_v55, %v4868_v49  ;;  %v4801_v29 = vld [vmem:[%s12658_s4 + $0x90] sm:$0xff] }
 0x32b   :  { %v4805_v47 = vld [vmem:[%s12658_s4 + $0xb0] sm:$0xff] }
 0x32c   :  { %6411 = vmatpush1.bf16.msra.mxu1 %v8169_v20  ;;  %v8107_v20 = vcombine.low %v4872_v48, %v4876_v24  ;;  %v4809_v48 = vld [vmem:[%s12658_s4 + $0xd0] sm:$0xff] }
 0x32d   :  { %6454 = vmatpush1.bf16.msra.mxu0 %v8035_v56  ;;  %6412 = vmatprep.subr.bf16.mxu1 %v8162_v44  ;;  %v4999_v56 = vld [vmem:[%s12658_s4 + $0x6c0] sm:$0xff]  ;;  %v4856_v44 = vld [vmem:[%s12658_s4 + $0x248] sm:$0xff]  ;;  %v4813_v24 = vld [vmem:[%s12658_s4 + $0xf0] sm:$0xff] }
 0x32e   :  { %6455 = vmatprep.subr.bf16.mxu0 %v8028_v62  ;;  %v8234_v62 = vcombine.high %v4999_v56, %v5003_v61  ;;  %v8233_v51 = vcombine.low %v4999_v56, %v5003_v61  ;;  %v8092_v9 = vcombine.high %v4856_v44, %v4860_v16  ;;  %v4785_v56 = vld [vmem:[%s12658_s4 + $0x10] sm:$0xff] }
 0x32f   :  { %v4789_v61 = vld [vmem:[%s12658_s4 + $0x30] sm:$0xff] }
 0x330   :  { %6413 = vmatpush1.bf16.msra.mxu1 %v8161_v37  ;;  %v8099_v37 = vcombine.low %v4864_v55, %v4868_v49  ;;  %v4793_v55 = vld [vmem:[%s12658_s4 + $0x50] sm:$0xff] }
 0x331   :  { %6456 = vmatpush1.bf16.msra.mxu0 %v8027_v5  ;;  %6414 = vmatprep.subr.bf16.mxu1 %v8154_v22  ;;  %v4991_v5 = vld [vmem:[%s12658_s4 + $0x680] sm:$0xff]  ;;  %v4848_v22 = vld [vmem:[%s12658_s4 + $0x208] sm:$0xff]  ;;  %v4797_v49 = vld [vmem:[%s12658_s4 + $0x70] sm:$0xff] }
 0x332   :  { %6457 = vmatprep.subr.bf16.mxu0 %v8020_v3  ;;  %v8226_v3 = vcombine.high %v4991_v5, %v4995_v45  ;;  %v8225_v26 = vcombine.low %v4991_v5, %v4995_v45  ;;  %v8084_v17 = vcombine.high %v4848_v22, %v4852_v52  ;;  %v4897_v5 = vld [vmem:[%s12658_s4 + $0x390] sm:$0xff] }
 0x333   :  { %v4901_v45 = vld [vmem:[%s12658_s4 + $0x3b0] sm:$0xff] }
 0x334   :  { %6415 = vmatpush1.bf16.msra.mxu1 %v8153_v60  ;;  %v8091_v60 = vcombine.low %v4856_v44, %v4860_v16  ;;  %v4905_v44 = vld [vmem:[%s12658_s4 + $0x3d0] sm:$0xff] }
 0x335   :  { %6458 = vmatpush1.bf16.msra.mxu0 %v8019_v58  ;;  %6416 = vmatprep.subr.bf16.mxu1 %v8146_v7  ;;  %v4983_v58 = vld [vmem:[%s12658_s4 + $0x640] sm:$0xff]  ;;  %v4841_v7 = vld [vmem:[%s12658_s4 + $0x1d0] sm:$0xff] }
 0x336   :  { %6459 = vmatprep.subr.bf16.mxu0 %v8140_v19  ;;  %v8218_v19 = vcombine.high %v4983_v58, %v4987_v15  ;;  %v8217_v8 = vcombine.low %v4983_v58, %v4987_v15  ;;  %v4909_v16 = vld [vmem:[%s12658_s4 + $0x3f0] sm:$0xff] }
 0x337   :  { %v4881_v58 = vld [vmem:[%s12658_s4 + $0x310] sm:$0xff] }
 0x338   :  { %6417 = vmatpush1.bf16.msra.mxu1 %v8145_v35  ;;  %v8083_v35 = vcombine.low %v4848_v22, %v4852_v52  ;;  %v4889_v22 = vld [vmem:[%s12658_s4 + $0x350] sm:$0xff] }
 0x339   :  { %6460 = vmatpush2.bf16.msra.mxu0 %v8139_v34  ;;  %6418 = vmatprep.subr.bf16.mxu1 %v8266_v21  ;;  %v8078_v34 = vcombine.high %v4841_v7, %v4845_v25  ;;  %v8070_v21 = vcombine.high %v4833_v14, %v4837_v36  ;;  %v4893_v52 = vld [vmem:[%s12658_s4 + $0x370] sm:$0xff] }
 0x33a   :  { %6461 = vmatprep.subr.bf16.mxu0 %v8132_v18  ;;  %v8077_v18 = vcombine.low %v4841_v7, %v4845_v25  ;;  %v4885_v15 = vld [vmem:[%s12658_s4 + $0x330] sm:$0xff] }
 0x33b   :  { %v4873_v7 = vld [vmem:[%s12658_s4 + $0x2d0] sm:$0xff] }
 0x33c   :  { %6419 = vmatpush2.bf16.msra.mxu1 %v8265_v11  ;;  %v4975_v11 = vld [vmem:[%s12658_s4 + $0x600] sm:$0xff]  ;;  %v4877_v25 = vld [vmem:[%s12658_s4 + $0x2f0] sm:$0xff] }
 0x33d   :  { %6462 = vmatpush2.bf16.msra.mxu0 %v8131_v2  ;;  %6420 = vmatprep.subr.bf16.mxu1 %v8258_v39  ;;  %v4979_v2 = vld [vmem:[%s12658_s4 + $0x620] sm:$0xff]  ;;  %v4869_v14 = vld [vmem:[%s12658_s4 + $0x2b0] sm:$0xff]  ;;  %v8109_v36 = vcombine.low %v4873_v7, %v4877_v25 }
 0x33e   :  { %6463 = vmatprep.subr.bf16.mxu0 %v8124_v57  ;;  %v8210_v38 = vcombine.high %v4975_v11, %v4979_v2  ;;  %v8062_v57 = vcombine.high %v4825_v12, %v4829_v27  ;;  %v8209_v39 = vcombine.low %v4975_v11, %v4979_v2  ;;  %v4861_v12 = vld [vmem:[%s12658_s4 + $0x270] sm:$0xff] }
 0x33f   :  { %v4849_v2 = vld [vmem:[%s12658_s4 + $0x210] sm:$0xff] }
 0x340   :  { %6421 = vmatpush2.bf16.msra.mxu1 %v8257_v10  ;;  %v11928_v10 = vld [vmem:[%s12658_s4 + $0x5c8] sm:$0xff] }
 0x341   :  { %6464 = vmatpush2.bf16.msra.mxu0 %v8123_v43  ;;  %6422 = vmatprep.subr.bf16.mxu1 %v8250_v33  ;;  %v11933_v43 = vld [vmem:[%s12658_s4 + $0x5e8] sm:$0xff] }
 0x342   :  { %6465 = vmatprep.subr.bf16.mxu0 %v8116_v46  ;;  %v8204_v13 = vcombine.high %v11928_v10, %v11933_v43  ;;  %v8054_v46 = vcombine.high %v4817_v40, %v4821_v42  ;;  %v8203_v33 = vcombine.low %v11928_v10, %v11933_v43  ;;  %v4936_v10 = vld [vmem:[%s12658_s4 + $0x4c8] sm:$0xff] }
 0x343   :  { %v4940_v43 = vld [vmem:[%s12658_s4 + $0x4e8] sm:$0xff] }
 0x344   :  { %6423 = vmatpush2.bf16.msra.mxu1 %v8249_v4  ;;  %v8053_v4 = vcombine.low %v4817_v40, %v4821_v42  ;;  %v4846_v40 = vld [vmem:[%s12658_s4 + $0x1f8] sm:$0xff] }
 0x345   :  { %6466 = vmatpush2.bf16.msra.mxu0 %v8115_v1  ;;  %6424 = vmatprep.subr.bf16.mxu1 %v8242_v41  ;;  %v8046_v1 = vcombine.high %v4809_v48, %v4813_v24  ;;  %v8038_v41 = vcombine.high %v4801_v29, %v4805_v47 }
 0x346   :  { %6467 = vmatprep.subr.bf16.mxu0 %v8108_v63  ;;  %v8045_v63 = vcombine.low %v4809_v48, %v4813_v24 }
 0x348   :  { %6425 = vmatpush2.bf16.msra.mxu1 %v8241_v54  ;;  %v8037_v54 = vcombine.low %v4801_v29, %v4805_v47 }
 0x349   :  { %6468 = vmatpush2.bf16.msra.mxu0 %v8107_v20  ;;  %6426 = vmatprep.subr.bf16.mxu1 %v8234_v62  ;;  %v8030_v20 = vcombine.high %v4793_v55, %v4797_v49  ;;  %v8022_v62 = vcombine.high %v4785_v56, %v4789_v61 }
 0x34a   :  { %6469 = vmatprep.subr.bf16.mxu0 %v8100_v28  ;;  %v8029_v28 = vcombine.low %v4793_v55, %v4797_v49 }
 0x34c   :  { %6427 = vmatpush2.bf16.msra.mxu1 %v8233_v51  ;;  %v8021_v51 = vcombine.low %v4785_v56, %v4789_v61  ;;  %v4802_v61 = vld [vmem:[%s12658_s4 + $0x98] sm:$0xff] }
 0x34d   :  { %6470 = vmatpush2.bf16.msra.mxu0 %v8099_v37  ;;  %6428 = vmatprep.subr.bf16.mxu1 %v8226_v3  ;;  %v8142_v37 = vcombine.high %v4905_v44, %v4909_v16  ;;  %v8134_v3 = vcombine.high %v4897_v5, %v4901_v45 }
 0x34e   :  { %6471 = vmatprep.subr.bf16.mxu0 %v8092_v9  ;;  %v8141_v9 = vcombine.low %v4905_v44, %v4909_v16  ;;  %v4794_v16 = vld [vmem:[%s12658_s4 + $0x58] sm:$0xff] }
 0x350   :  { %6429 = vmatpush2.bf16.msra.mxu1 %v8225_v26  ;;  %v8133_v26 = vcombine.low %v4897_v5, %v4901_v45  ;;  %v4786_v45 = vld [vmem:[%s12658_s4 + $0x18] sm:$0xff] }
 0x351   :  { %6472 = vmatpush2.bf16.msra.mxu0 %v8091_v60  ;;  %6430 = vmatprep.subr.bf16.mxu1 %v8218_v19  ;;  %v8126_v60 = vcombine.high %v4889_v22, %v4893_v52  ;;  %v8118_v19 = vcombine.high %v4881_v58, %v4885_v15 }
 0x352   :  { %6473 = vmatprep.subr.bf16.mxu0 %v8084_v17  ;;  %v8125_v17 = vcombine.low %v4889_v22, %v4893_v52  ;;  %v4906_v52 = vld [vmem:[%s12658_s4 + $0x3d8] sm:$0xff] }
 0x354   :  { %6431 = vmatpush2.bf16.msra.mxu1 %v8217_v8  ;;  %v8117_v8 = vcombine.low %v4881_v58, %v4885_v15  ;;  %v4898_v15 = vld [vmem:[%s12658_s4 + $0x398] sm:$0xff] }
 0x355   :  { %6474 = vmatpush2.bf16.msra.mxu0 %v8083_v35  ;;  %6432 = vmatprep.subr.bf16.mxu1 %v8210_v38  ;;  %v8110_v35 = vcombine.high %v4873_v7, %v4877_v25  ;;  %v4890_v25 = vld [vmem:[%s12658_s4 + $0x358] sm:$0xff] }
 0x356   :  { %6525 = vmatprep.subr.bf16.mxu0 %v8078_v34  ;;  %v4865_v34 = vld [vmem:[%s12658_s4 + $0x290] sm:$0xff] }
 0x357   :  { %v8101_v27 = vcombine.low %v4865_v34, %v4869_v14 }
 0x358   :  { %6476 = vmatmul.mubr.bf16.vlgmr.msra.gmra.mxu0 %v11707_v23  ;;  %6433 = vmatpush2.bf16.msra.mxu1 %v8209_v39  ;;  %v4842_v39 = vld [vmem:[%s12658_s4 + $0x1d8] sm:$0xff] }
 0x359   :  { %6526 = vmatpush1.bf16.msra.mxu0 %v8077_v18  ;;  %6557 = vmatprep.mubr.bf16.mxu0 %v11709_v30  ;;  %v8102_v18 = vcombine.high %v4865_v34, %v4869_v14  ;;  %v8079_v48 = vcombine.low %v4842_v39, %v4846_v40  ;;  %v4882_v14 = vld [vmem:[%s12658_s4 + $0x318] sm:$0xff] }
 0x35a   :  { %6527 = vmatprep.subr.bf16.mxu0 %v8070_v21  ;;  %6484 = vmatprep.subr.bf16.mxu1 %v8204_v13  ;;  %v4857_v21 = vld [vmem:[%s12658_s4 + $0x250] sm:$0xff]  ;;  %v4834_v13 = vld [vmem:[%s12658_s4 + $0x198] sm:$0xff] }
 0x35b   :  { %v8094_v11 = vcombine.high %v4857_v21, %v4861_v12  ;;  %v8093_v38 = vcombine.low %v4857_v21, %v4861_v12  ;;  %v4874_v12 = vld [vmem:[%s12658_s4 + $0x2d8] sm:$0xff] }
 0x35d   :  { %6528 = vmatpush1.bf16.msra.mxu0 %v8069_v6  ;;  %v4853_v6 = vld [vmem:[%s12658_s4 + $0x230] sm:$0xff] }
 0x35e   :  { %6529 = vmatprep.subr.bf16.mxu0 %v8062_v57  ;;  %v8086_v57 = vcombine.high %v4849_v2, %v4853_v6  ;;  %v8085_v42 = vcombine.low %v4849_v2, %v4853_v6  ;;  %v4866_v6 = vld [vmem:[%s12658_s4 + $0x298] sm:$0xff] }
 0x361   :  { %6530 = vmatpush1.bf16.msra.mxu0 %v8061_v32  ;;  %v8080_v32 = vcombine.high %v4842_v39, %v4846_v40  ;;  %v4858_v40 = vld [vmem:[%s12658_s4 + $0x258] sm:$0xff] }
 0x362   :  { %6531 = vmatprep.subr.bf16.mxu0 %v8054_v46  ;;  %v4838_v46 = vld [vmem:[%s12658_s4 + $0x1b8] sm:$0xff] }
 0x363   :  { %v8072_v24 = vcombine.high %v4834_v13, %v4838_v46  ;;  %v8071_v29 = vcombine.low %v4834_v13, %v4838_v46  ;;  %v4850_v46 = vld [vmem:[%s12658_s4 + $0x218] sm:$0xff] }
 0x365   :  { %6532 = vmatpush1.bf16.msra.mxu0 %v8053_v4  ;;  %v4826_v4 = vld [vmem:[%s12658_s4 + $0x158] sm:$0xff] }
 0x366   :  { %6533 = vmatprep.subr.bf16.mxu0 %v8046_v1  ;;  %v4830_v1 = vld [vmem:[%s12658_s4 + $0x178] sm:$0xff] }
 0x367   :  { %v8064_v47 = vcombine.high %v4826_v4, %v4830_v1  ;;  %v8063_v55 = vcombine.low %v4826_v4, %v4830_v1 }
 0x369   :  { %6534 = vmatpush1.bf16.msra.mxu0 %v8045_v63  ;;  %v4818_v63 = vld [vmem:[%s12658_s4 + $0x118] sm:$0xff] }
 0x36a   :  { %6535 = vmatprep.subr.bf16.mxu0 %v8038_v41  ;;  %v4822_v41 = vld [vmem:[%s12658_s4 + $0x138] sm:$0xff] }
 0x36b   :  { %v8056_v49 = vcombine.high %v4818_v63, %v4822_v41 }
 0x36d   :  { %6536 = vmatpush1.bf16.msra.mxu0 %v8037_v54  ;;  %v4810_v54 = vld [vmem:[%s12658_s4 + $0xd8] sm:$0xff] }
 0x36e   :  { %6537 = vmatprep.subr.bf16.mxu0 %v8030_v20  ;;  %v8055_v20 = vcombine.low %v4818_v63, %v4822_v41  ;;  %v4964_v63 = vld [vmem:[%s12658_s4 + $0x5a8] sm:$0xff] }
 0x371   :  { %6538 = vmatpush1.bf16.msra.mxu0 %v8029_v28  ;;  %v4806_v28 = vld [vmem:[%s12658_s4 + $0xb8] sm:$0xff] }
 0x372   :  { %6539 = vmatprep.subr.bf16.mxu0 %v8022_v62  ;;  %v8040_v44 = vcombine.high %v4802_v61, %v4806_v28 }
 0x375   :  { %6540 = vmatpush1.bf16.msra.mxu0 %v8021_v51  ;;  %v4798_v51 = vld [vmem:[%s12658_s4 + $0x78] sm:$0xff] }
 0x376   :  { %6541 = vmatprep.subr.bf16.mxu0 %v8142_v37  ;;  %v8039_v37 = vcombine.low %v4802_v61, %v4806_v28  ;;  %v8032_v5 = vcombine.high %v4794_v16, %v4798_v51  ;;  %v4944_v61 = vld [vmem:[%s12658_s4 + $0x508] sm:$0xff] }
 0x377   :  { %v4948_v28 = vld [vmem:[%s12658_s4 + $0x528] sm:$0xff] }
 0x379   :  { %6542 = vmatpush2.bf16.msra.mxu0 %v8141_v9  ;;  %v4790_v9 = vld [vmem:[%s12658_s4 + $0x38] sm:$0xff] }
 0x37a   :  { %6543 = vmatprep.subr.bf16.mxu0 %v8134_v3  ;;  %v8031_v3 = vcombine.low %v4794_v16, %v4798_v51  ;;  %v8024_v22 = vcombine.high %v4786_v45, %v4790_v9  ;;  %v8172_v16 = vcombine.high %v4936_v10, %v4940_v43  ;;  %v4928_v51 = vld [vmem:[%s12658_s4 + $0x488] sm:$0xff] }
 0x37d   :  { %6544 = vmatpush2.bf16.msra.mxu0 %v8133_v26  ;;  %v4910_v26 = vld [vmem:[%s12658_s4 + $0x3f8] sm:$0xff] }
 0x37e   :  { %6545 = vmatprep.subr.bf16.mxu0 %v8126_v60  ;;  %v8023_v60 = vcombine.low %v4786_v45, %v4790_v9  ;;  %v8144_v58 = vcombine.high %v4906_v52, %v4910_v26  ;;  %v4920_v9 = vld [vmem:[%s12658_s4 + $0x448] sm:$0xff] }
 0x381   :  { %6546 = vmatpush2.bf16.msra.mxu0 %v8125_v17  ;;  %v4902_v17 = vld [vmem:[%s12658_s4 + $0x3b8] sm:$0xff] }
 0x382   :  { %6547 = vmatprep.subr.bf16.mxu0 %v8118_v19  ;;  %v8143_v19 = vcombine.low %v4906_v52, %v4910_v26  ;;  %v8136_v7 = vcombine.high %v4898_v15, %v4902_v17  ;;  %v4912_v26 = vld [vmem:[%s12658_s4 + $0x408] sm:$0xff] }
 0x385   :  { %6548 = vmatpush2.bf16.msra.mxu0 %v8117_v8  ;;  %v4894_v8 = vld [vmem:[%s12658_s4 + $0x378] sm:$0xff] }
 0x386   :  { %6549 = vmatprep.subr.bf16.mxu0 %v8110_v35  ;;  %v8135_v35 = vcombine.low %v4898_v15, %v4902_v17  ;;  %v8128_v34 = vcombine.high %v4890_v25, %v4894_v8  ;;  %v5032_v17 = vld [vmem:[%s12658_s4 + $0x7c8] sm:$0xff] }
 0x389   :  { %6550 = vmatpush2.bf16.msra.mxu0 %v8109_v36  ;;  %v4886_v36 = vld [vmem:[%s12658_s4 + $0x338] sm:$0xff] }
 0x38a   :  { %6551 = vmatprep.subr.bf16.mxu0 %v8102_v18  ;;  %v8127_v18 = vcombine.low %v4890_v25, %v4894_v8  ;;  %v8120_v21 = vcombine.high %v4882_v14, %v4886_v36  ;;  %v5024_v8 = vld [vmem:[%s12658_s4 + $0x788] sm:$0xff] }
 0x38d   :  { %6552 = vmatpush2.bf16.msra.mxu0 %v8101_v27  ;;  %v4878_v27 = vld [vmem:[%s12658_s4 + $0x2f8] sm:$0xff] }
 0x38e   :  { %6553 = vmatprep.subr.bf16.mxu0 %v8094_v11  ;;  %v8119_v11 = vcombine.low %v4882_v14, %v4886_v36  ;;  %v8112_v2 = vcombine.high %v4874_v12, %v4878_v27  ;;  %v5016_v36 = vld [vmem:[%s12658_s4 + $0x748] sm:$0xff] }
 0x391   :  { %6554 = vmatpush2.bf16.msra.mxu0 %v8093_v38  ;;  %v4870_v38 = vld [vmem:[%s12658_s4 + $0x2b8] sm:$0xff] }
 0x392   :  { %6555 = vmatprep.subr.bf16.mxu0 %v8086_v57  ;;  %v8111_v57 = vcombine.low %v4874_v12, %v4878_v27  ;;  %v8104_v39 = vcombine.high %v4866_v6, %v4870_v38 }
 0x395   :  { %6556 = vmatpush2.bf16.msra.mxu0 %v8085_v42  ;;  %v4862_v42 = vld [vmem:[%s12658_s4 + $0x278] sm:$0xff] }
 0x396   :  { %6607 = vmatprep.subr.bf16.mxu0 %v8080_v32  ;;  %v8103_v32 = vcombine.low %v4866_v6, %v4870_v38  ;;  %v8096_v13 = vcombine.high %v4858_v40, %v4862_v42 }
 0x398   :  { %6558 = vmatmul.mubr.bf16.vlgmr.msra.gmra.mxu0 %v11707_v23 }
 0x399   :  { %6608 = vmatpush1.bf16.msra.mxu0 %v8079_v48  ;;  %6639 = vmatprep.mubr.bf16.mxu0 %v11709_v30  ;;  %v4814_v30 = vld [vmem:[%s12658_s4 + $0xf8] sm:$0xff] }
 0x39a   :  { %6609 = vmatprep.subr.bf16.mxu0 %v8072_v24  ;;  %v8048_v56 = vcombine.high %v4810_v54, %v4814_v30  ;;  %v8047_v62 = vcombine.low %v4810_v54, %v4814_v30  ;;  %v4854_v48 = vld [vmem:[%s12658_s4 + $0x238] sm:$0xff]  ;;  %v8095_v24 = vcombine.low %v4858_v40, %v4862_v42  ;;  %v4956_v30 = vld [vmem:[%s12658_s4 + $0x568] sm:$0xff] }
 0x39b   :  { %v8088_v4 = vcombine.high %v4850_v46, %v4854_v48  ;;  %v8087_v1 = vcombine.low %v4850_v46, %v4854_v48  ;;  %v5000_v40 = vld [vmem:[%s12658_s4 + $0x6c8] sm:$0xff]  ;;  %v9337_v46 = vld [vmem:[%s12660_s6 + $0x78] sm:$0xff]  }
 0x39c   :  { %v5004_v42 = vld [vmem:[%s12658_s4 + $0x6e8] sm:$0xff] }
 0x39d   :  { %6610 = vmatpush1.bf16.msra.mxu0 %v8071_v29  ;;  %v8236_v48 = vcombine.high %v5000_v40, %v5004_v42 }
 0x39e   :  { %6611 = vmatprep.subr.bf16.mxu0 %v8064_v47  ;;  %v4960_v47 = vld [vmem:[%s12658_s4 + $0x588] sm:$0xff] }
 0x39f   :  { %v8196_v54 = vcombine.high %v4960_v47, %v4964_v63 }
 0x3a1   :  { %6612 = vmatpush1.bf16.msra.mxu0 %v8063_v55 }
 0x3a2   :  { %6613 = vmatprep.subr.bf16.mxu0 %v8056_v49 }
 0x3a5   :  { %6614 = vmatpush1.bf16.msra.mxu0 %v8055_v20  ;;  %v8195_v20 = vcombine.low %v4960_v47, %v4964_v63  ;;  %v9339_v47 = vld [vmem:[%s12660_s6 + $0x70] sm:$0xff]  }
 0x3a6   :  { %6615 = vmatprep.subr.bf16.mxu0 %v8048_v56 }
 0x3a9   :  { %6616 = vmatpush1.bf16.msra.mxu0 %v8047_v62 }
 0x3aa   :  { %6617 = vmatprep.subr.bf16.mxu0 %v8040_v44  ;;  %v8180_v44 = vcombine.high %v4944_v61, %v4948_v28 }
 0x3ad   :  { %6618 = vmatpush1.bf16.msra.mxu0 %v8039_v37  ;;  %v4932_v37 = vld [vmem:[%s12658_s4 + $0x4a8] sm:$0xff] }
 0x3ae   :  { %6619 = vmatprep.subr.bf16.mxu0 %v8032_v5  ;;  %v8171_v5 = vcombine.low %v4936_v10, %v4940_v43  ;;  %v8164_v45 = vcombine.high %v4928_v51, %v4932_v37  ;;  %v9343_v43 = vld [vmem:[%s12660_s6 + $0x60] sm:$0xff]  }
 0x3b1   :  { %6620 = vmatpush1.bf16.msra.mxu0 %v8031_v3  ;;  %v4924_v3 = vld [vmem:[%s12658_s4 + $0x468] sm:$0xff] }
 0x3b2   :  { %6621 = vmatprep.subr.bf16.mxu0 %v8024_v22  ;;  %v8163_v22 = vcombine.low %v4928_v51, %v4932_v37  ;;  %v8156_v52 = vcombine.high %v4920_v9, %v4924_v3  ;;  %v9344_v51 = vld [vmem:[%s12660_s6 + $0x20] sm:$0xff]   ;;  %v4969_v37 = vld [vmem:[%s12658_s4 + $0x5d0] sm:$0xff] }
 0x3b5   :  { %6622 = vmatpush1.bf16.msra.mxu0 %v8023_v60  ;;  %v4916_v60 = vld [vmem:[%s12658_s4 + $0x428] sm:$0xff] }
 0x3b6   :  { %6623 = vmatprep.subr.bf16.mxu0 %v8144_v58  ;;  %v8155_v58 = vcombine.low %v4920_v9, %v4924_v3  ;;  %v8148_v15 = vcombine.high %v4912_v26, %v4916_v60  ;;  %v9345_v3 = vld [vmem:[%s12660_s6 + $0x58] sm:$0xff]  }
 0x3b9   :  { %6624 = vmatpush2.bf16.msra.mxu0 %v8143_v19  ;;  %v5036_v19 = vld [vmem:[%s12658_s4 + $0x7e8] sm:$0xff] }
 0x3ba   :  { %6625 = vmatprep.subr.bf16.mxu0 %v8136_v7  ;;  %v8147_v7 = vcombine.low %v4912_v26, %v4916_v60  ;;  %v8268_v25 = vcombine.high %v5032_v17, %v5036_v19  ;;  %v9346_v26 = vld [vmem:[%s12660_s6 + $0x18] sm:$0xff]   ;;  %v4965_v60 = vld [vmem:[%s12658_s4 + $0x5b0] sm:$0xff] }
 0x3bd   :  { %6626 = vmatpush2.bf16.msra.mxu0 %v8135_v35  ;;  %v5028_v35 = vld [vmem:[%s12658_s4 + $0x7a8] sm:$0xff] }
 0x3be   :  { %6627 = vmatprep.subr.bf16.mxu0 %v8128_v34  ;;  %v8267_v34 = vcombine.low %v5032_v17, %v5036_v19  ;;  %v8260_v14 = vcombine.high %v5024_v8, %v5028_v35 }
 0x3c1   :  { %6628 = vmatpush2.bf16.msra.mxu0 %v8127_v18  ;;  %v5020_v18 = vld [vmem:[%s12658_s4 + $0x768] sm:$0xff] }
 0x3c2   :  { %6629 = vmatprep.subr.bf16.mxu0 %v8120_v21  ;;  %v8259_v21 = vcombine.low %v5024_v8, %v5028_v35  ;;  %v8252_v27 = vcombine.high %v5016_v36, %v5020_v18  ;;  %v8251_v38 = vcombine.low %v5016_v36, %v5020_v18  ;;  %v9348_v8 = vld [vmem:[%s12660_s6 + $0x10] sm:$0xff]   ;;  %v9349_v18 = vld [vmem:[%s12660_s6 + $0x48] sm:$0xff]  }
 0x3c3   :  { %v4953_v35 = vld [vmem:[%s12658_s4 + $0x550] sm:$0xff] }
 0x3c5   :  { %6630 = vmatpush2.bf16.msra.mxu0 %v8119_v11  ;;  %v5008_v11 = vld [vmem:[%s12658_s4 + $0x708] sm:$0xff] }
 0x3c6   :  { %6631 = vmatprep.subr.bf16.mxu0 %v8112_v2  ;;  %v5012_v2 = vld [vmem:[%s12658_s4 + $0x728] sm:$0xff] }
 0x3c9   :  { %6632 = vmatpush2.bf16.msra.mxu0 %v8111_v57 }
 0x3ca   :  { %6633 = vmatprep.subr.bf16.mxu0 %v8104_v39  ;;  %v8244_v39 = vcombine.high %v5008_v11, %v5012_v2 }
 0x3cd   :  { %6634 = vmatpush2.bf16.msra.mxu0 %v8103_v32 }
 0x3ce   :  { %6635 = vmatprep.subr.bf16.mxu0 %v8096_v13  ;;  %v8243_v13 = vcombine.low %v5008_v11, %v5012_v2  ;;  %v4945_v11 = vld [vmem:[%s12658_s4 + $0x510] sm:$0xff] }
 0x3cf   :  { %v4949_v2 = vld [vmem:[%s12658_s4 + $0x530] sm:$0xff] }
 0x3d1   :  { %6636 = vmatpush2.bf16.msra.mxu0 %v8095_v24  ;;  %v9338_v24 = vld [vmem:[%s12660_s6 + $0x38] sm:$0xff]  }
 0x3d2   :  { %6637 = vmatprep.subr.bf16.mxu0 %v8088_v4  ;;  %v4992_v4 = vld [vmem:[%s12658_s4 + $0x688] sm:$0xff] }
 0x3d5   :  { %6638 = vmatpush2.bf16.msra.mxu0 %v8087_v1  ;;  %v4996_v1 = vld [vmem:[%s12658_s4 + $0x6a8] sm:$0xff] }
 0x3d6   :  { %8338 = vmatprep.subr.bf16.mxu0 %v9337_v46  ;;  %v8228_v63 = vcombine.high %v4992_v4, %v4996_v1 }
 0x3d8   :  { %6640 = vmatmul.mubr.bf16.vlgmr.msra.gmra.mxu0 %v11707_v23  ;;  %v4952_v23 = vld [vmem:[%s12658_s4 + $0x548] sm:$0xff]  ;;  %v12180_v12 = vpop.f32.mrf.mxu0 }
 0x3d9   :  { %v4774_v29 = vpop.f32.mrf.mxu1  ;;  %v8188_v56 = vcombine.high %v4952_v23, %v4956_v30  ;;  %v8187_v62 = vcombine.low %v4952_v23, %v4956_v30  ;;  %8339 = vmatpush3.bf16.msra.mxu0 %v9338_v24  ;;  %v4988_v23 = vld [vmem:[%s12658_s4 + $0x668] sm:$0xff]  ;;  %v8227_v30 = vcombine.low %v4992_v4, %v4996_v1  ;;  %v4933_v24 = vld [vmem:[%s12658_s4 + $0x4b0] sm:$0xff] }
 0x3da   :  { %v12118_v49 = vpack.c.bf16 %v4774_v29, %v4774_v29  ;;  %v12188_v6 = vpop.f32.mrf.mxu0  ;;  %v8235_v29 = vcombine.low %v5000_v40, %v5004_v42  ;;  %8340 = vmatprep.subr.bf16.mxu0 %v9339_v47  ;;  %v9352_v40 = vld [vmem:[%s12660_s6] sm:$0xff]   ;;  %v4937_v42 = vld [vmem:[%s12658_s4 + $0x4d0] sm:$0xff] }
 0x3db   :  { %v4776_v41 = vpop.f32.mrf.mxu1  ;;  %v4925_v47 = vld [vmem:[%s12658_s4 + $0x470] sm:$0xff] }
 0x3dc   :  { %v12116_v55 = vpack.c.bf16 %v4776_v41, %v4776_v41  ;;  %v6399_v57 = vpop.f32.mrf.mxu0  ;;  %v9340_v41 = vld [vmem:[%s12660_s6 + $0x30] sm:$0xff]  }
 0x3dd   :  { %8341 = vmatpush3.bf16.msra.mxu0 %v9340_v41  ;;  %v9351_v57 = vld [vmem:[%s12660_s6 + $0x40] sm:$0xff]  }
 0x3de   :  { %6434 = vmatprep.mubr.bf16.mxu1 %v12116_v55  ;;  %v6400_v32 = vpop.f32.mrf.mxu0 }
 0x3df   :  { %6435 = vmatmul.mubr.bf16.vlgmr.msra.gmra.mxu1 %v12118_v49  ;;  %v4941_v32 = vld [vmem:[%s12658_s4 + $0x4f0] sm:$0xff] }
 0x3e0   :  { %6485 = vmatpush1.bf16.msra.mxu1 %v8203_v33  ;;  %6516 = vmatprep.mubr.bf16.mxu1 %v12116_v55  ;;  %v8179_v33 = vcombine.low %v4944_v61, %v4948_v28  ;;  %v9342_v61 = vld [vmem:[%s12660_s6 + $0x28] sm:$0xff]   ;;  %v8174_v46 = vcombine.high %v4937_v42, %v4941_v32  ;;  %v8173_v4 = vcombine.low %v4937_v42, %v4941_v32 }
 0x3e1   :  { %6486 = vmatprep.subr.bf16.mxu1 %v8196_v54  ;;  %v4984_v54 = vld [vmem:[%s12658_s4 + $0x648] sm:$0xff] }
 0x3e2   :  { %v4976_v28 = vld [vmem:[%s12658_s4 + $0x608] sm:$0xff]  ;;  %v8219_v10 = vcombine.low %v4984_v54, %v4988_v23 }
 0x3e4   :  { %6487 = vmatpush1.bf16.msra.mxu1 %v8195_v20  ;;  %v9341_v20 = vld [vmem:[%s12660_s6 + $0x68] sm:$0xff]  }
 0x3e5   :  { %6488 = vmatprep.subr.bf16.mxu1 %v8188_v56  ;;  %v8220_v56 = vcombine.high %v4984_v54, %v4988_v23  ;;  %8342 = vmatprep.subr.bf16.mxu0 %v9341_v20  ;;  %v4913_v54 = vld [vmem:[%s12658_s4 + $0x410] sm:$0xff] }
 0x3e6   :  { %8343 = vmatpush3.bf16.msra.mxu0 %v9342_v61  ;;  %v4917_v23 = vld [vmem:[%s12658_s4 + $0x430] sm:$0xff] }
 0x3e7   :  { %8344 = vmatprep.subr.bf16.mxu0 %v9343_v43  ;;  %v8150_v20 = vcombine.high %v4913_v54, %v4917_v23  ;;  %v5037_v61 = vld [vmem:[%s12658_s4 + $0x7f0] sm:$0xff] }
 0x3e8   :  { %6489 = vmatpush1.bf16.msra.mxu1 %v8187_v62  ;;  %v4980_v62 = vld [vmem:[%s12658_s4 + $0x628] sm:$0xff]  ;;  %v5029_v43 = vld [vmem:[%s12658_s4 + $0x7b0] sm:$0xff] }
 0x3e9   :  { %6490 = vmatprep.subr.bf16.mxu1 %v8180_v44  ;;  %v12235_v44 = vld [vmem:[%s12659_s5] sm:$0xff] }
 0x3ea   :  { %8345 = vmatpush3.bf16.msra.mxu0 %v9344_v51  ;;  %v5017_v51 = vld [vmem:[%s12658_s4 + $0x750] sm:$0xff] }
 0x3eb   :  { %8346 = vmatprep.subr.bf16.mxu0 %v9345_v3 }
 0x3ec   :  { %6491 = vmatpush1.bf16.msra.mxu1 %v8179_v33  ;;  %v8212_v33 = vcombine.high %v4976_v28, %v4980_v62 }
 0x3ed   :  { %6492 = vmatprep.subr.bf16.mxu1 %v8172_v16  ;;  %v5052_v16 = vrot.slane %v12235_v44, %v646_v31  ;;  %v8211_v31 = vcombine.low %v4976_v28, %v4980_v62  ;;  %v8149_v28 = vcombine.low %v4913_v54, %v4917_v23  ;;  %v4958_v54 = vld [vmem:[%s12658_s4 + $0x578] sm:$0xff] }
 0x3ee   :  { %8347 = vmatpush3.bf16.msra.mxu0 %v9346_v26  ;;  %v5001_v26 = vld [vmem:[%s12658_s4 + $0x6d0] sm:$0xff] }
 0x3f0   :  { %6493 = vmatpush1.bf16.msra.mxu1 %v8171_v5  ;;  %v4973_v5 = vld [vmem:[%s12658_s4 + $0x5f0] sm:$0xff] }
 0x3f1   :  { %6494 = vmatprep.subr.bf16.mxu1 %v8164_v45  ;;  %v5056_v45 = vrot.slane %v12235_v44, %v650_v50  ;;  %v4961_v50 = vld [vmem:[%s12658_s4 + $0x590] sm:$0xff]  ;;  %v8205_v17 = vcombine.low %v4969_v37, %v4973_v5 }
 0x3f2   :  { %v8197_v36 = vcombine.low %v4961_v50, %v4965_v60 }
 0x3f4   :  { %6495 = vmatpush1.bf16.msra.mxu1 %v8163_v22  ;;  %v8206_v22 = vcombine.high %v4969_v37, %v4973_v5  ;;  %v5021_v37 = vld [vmem:[%s12658_s4 + $0x770] sm:$0xff] }
 0x3f5   :  { %6496 = vmatprep.subr.bf16.mxu1 %v8156_v52  ;;  %v8253_v3 = vcombine.low %v5017_v51, %v5021_v37 }
 0x3f8   :  { %6497 = vmatpush1.bf16.msra.mxu1 %v8155_v58 }
 0x3f9   :  { %6498 = vmatprep.subr.bf16.mxu1 %v8148_v15 }
 0x3fc   :  { %6499 = vmatpush1.bf16.msra.mxu1 %v8147_v7  ;;  %v9347_v7 = vld [vmem:[%s12660_s6 + $0x50] sm:$0xff]  }
 0x3fd   :  { %6500 = vmatprep.subr.bf16.mxu1 %v8268_v25  ;;  %v8198_v25 = vcombine.high %v4961_v50, %v4965_v60  ;;  %8348 = vmatprep.subr.bf16.mxu0 %v9347_v7  ;;  %v5005_v50 = vld [vmem:[%s12658_s4 + $0x6f0] sm:$0xff] }
 0x3fe   :  { %8349 = vmatpush3.bf16.msra.mxu0 %v9348_v8  ;;  %v8237_v7 = vcombine.low %v5001_v26, %v5005_v50  ;;  %v4985_v8 = vld [vmem:[%s12658_s4 + $0x650] sm:$0xff] }
 0x3ff   :  { %8350 = vmatprep.subr.bf16.mxu0 %v9349_v18  ;;  %v4977_v18 = vld [vmem:[%s12658_s4 + $0x610] sm:$0xff] }
 0x400   :  { %6501 = vmatpush2.bf16.msra.mxu1 %v8267_v34  ;;  %v4957_v34 = vld [vmem:[%s12658_s4 + $0x570] sm:$0xff] }
 0x401   :  { %6502 = vmatprep.subr.bf16.mxu1 %v8260_v14 }
 0x404   :  { %6503 = vmatpush2.bf16.msra.mxu1 %v8259_v21  ;;  %v8190_v21 = vcombine.high %v4953_v35, %v4957_v34 }
 0x405   :  { %6504 = vmatprep.subr.bf16.mxu1 %v8252_v27  ;;  %v9350_v27 = vld [vmem:[%s12660_s6 + $0x8] sm:$0xff]  }
 0x406   :  { %8351 = vmatpush3.bf16.msra.mxu0 %v9350_v27  ;;  %v5063_v27 = vsub.s32 5, %v10341_v53 }
 0x407   :  { %8352 = vmatprep.subr.bf16.mxu0 %v9351_v57  ;;  %v4970_v57 = vld [vmem:[%s12658_s4 + $0x5d8] sm:$0xff] }
 0x408   :  { %6505 = vmatpush2.bf16.msra.mxu1 %v8251_v38  ;;  %v8189_v38 = vcombine.low %v4953_v35, %v4957_v34  ;;  %v4989_v35 = vld [vmem:[%s12658_s4 + $0x670] sm:$0xff] }
 0x409   :  { %6506 = vmatprep.subr.bf16.mxu1 %v8244_v39  ;;  %v8182_v39 = vcombine.high %v4945_v11, %v4949_v2 }
 0x40a   :  { %8353 = vmatpush3.bf16.msra.mxu0 %v9352_v40  ;;  %v5064_v40 = vrot.slane %v12235_v44, %v5063_v27 }
 0x40c   :  { %6507 = vmatpush2.bf16.msra.mxu1 %v8243_v13  ;;  %v8181_v13 = vcombine.low %v4945_v11, %v4949_v2  ;;  %v8221_v11 = vcombine.low %v4985_v8, %v4989_v35 }
 0x40d   :  { %6508 = vmatprep.subr.bf16.mxu1 %v8236_v48  ;;  %v4929_v48 = vld [vmem:[%s12658_s4 + $0x490] sm:$0xff] }
 0x40e   :  { %v8166_v1 = vcombine.high %v4929_v48, %v4933_v24 }
 0x410   :  { %6509 = vmatpush2.bf16.msra.mxu1 %v8235_v29  ;;  %v4921_v29 = vld [vmem:[%s12658_s4 + $0x450] sm:$0xff] }
 0x411   :  { %6510 = vmatprep.subr.bf16.mxu1 %v8228_v63  ;;  %v8165_v63 = vcombine.low %v4929_v48, %v4933_v24  ;;  %v8158_v41 = vcombine.high %v4921_v29, %v4925_v47  ;;  %v4962_v48 = vld [vmem:[%s12658_s4 + $0x598] sm:$0xff] }
 0x412   :  { %v4966_v24 = vld [vmem:[%s12658_s4 + $0x5b8] sm:$0xff] }
 0x414   :  { %6511 = vmatpush2.bf16.msra.mxu1 %v8227_v30  ;;  %v8157_v30 = vcombine.low %v4921_v29, %v4925_v47 }
 0x415   :  { %6512 = vmatprep.subr.bf16.mxu1 %v8220_v56  ;;  %v5033_v56 = vld [vmem:[%s12658_s4 + $0x7d0] sm:$0xff] }
 0x416   :  { %v8270_v62 = vcombine.high %v5033_v56, %v5037_v61 }
 0x418   :  { %6513 = vmatpush2.bf16.msra.mxu1 %v8219_v10  ;;  %v6477_v9 = vpop.f32.mrf.mxu0  ;;  %v5025_v10 = vld [vmem:[%s12658_s4 + $0x790] sm:$0xff] }
 0x419   :  { %6514 = vmatprep.subr.bf16.mxu1 %v8212_v33  ;;  %v12258_v52 = vadd.f32 %v6477_v9, %v5052_v16  ;;  %v8269_v33 = vcombine.low %v5033_v56, %v5037_v61  ;;  %v8262_v16 = vcombine.high %v5025_v10, %v5029_v43  ;;  %v8261_v5 = vcombine.low %v5025_v10, %v5029_v43  ;;  %v5013_v9 = vld [vmem:[%s12658_s4 + $0x730] sm:$0xff]  ;;  %v4946_v56 = vld [vmem:[%s12658_s4 + $0x518] sm:$0xff] }
 0x41a   :  { %v6479_v58 = vpop.f32.mrf.mxu0  ;;  %v4950_v61 = vld [vmem:[%s12658_s4 + $0x538] sm:$0xff] }
 0x41b   :  { %v12269_v15 = vadd.f32 %v6479_v58, %v5056_v45  ;;  %v8254_v45 = vcombine.high %v5017_v51, %v5021_v37  ;;  %v8238_v58 = vcombine.high %v5001_v26, %v5005_v50  ;;  %v4938_v10 = vld [vmem:[%s12658_s4 + $0x4d8] sm:$0xff]  ;;  %v8183_v43 = vcombine.low %v4946_v56, %v4950_v61 }
 0x41c   :  { %6515 = vmatpush2.bf16.msra.mxu1 %v8211_v31  ;;  %v6481_v19 = vpop.f32.mrf.mxu0  ;;  %v5009_v31 = vld [vmem:[%s12658_s4 + $0x710] sm:$0xff]  ;;  %v4930_v51 = vld [vmem:[%s12658_s4 + $0x498] sm:$0xff] }
 0x41d   :  { %6566 = vmatprep.subr.bf16.mxu1 %v8206_v22  ;;  %v8246_v22 = vcombine.high %v5009_v31, %v5013_v9  ;;  %v8245_v60 = vcombine.low %v5009_v31, %v5013_v9  ;;  %v4997_v19 = vld [vmem:[%s12658_s4 + $0x6b0] sm:$0xff]  ;;  %v4934_v37 = vld [vmem:[%s12658_s4 + $0x4b8] sm:$0xff] }
 0x41e   :  { %v6482_v14 = vpop.f32.mrf.mxu0  ;;  %v4922_v31 = vld [vmem:[%s12658_s4 + $0x458] sm:$0xff] }
 0x41f   :  { %6517 = vmatmul.mubr.bf16.vlgmr.msra.gmra.mxu1 %v12118_v49  ;;  %v8222_v14 = vcombine.high %v4985_v8, %v4989_v35  ;;  %v4926_v9 = vld [vmem:[%s12658_s4 + $0x478] sm:$0xff] }
 0x420   :  { %6567 = vmatpush1.bf16.msra.mxu1 %v8205_v17  ;;  %6598 = vmatprep.mubr.bf16.mxu1 %v12116_v55  ;;  %v4993_v17 = vld [vmem:[%s12658_s4 + $0x690] sm:$0xff]  ;;  %v4914_v26 = vld [vmem:[%s12658_s4 + $0x418] sm:$0xff] }
 0x421   :  { %6568 = vmatprep.subr.bf16.mxu1 %v8198_v25  ;;  %v8230_v25 = vcombine.high %v4993_v17, %v4997_v19  ;;  %v8229_v34 = vcombine.low %v4993_v17, %v4997_v19  ;;  %v4918_v50 = vld [vmem:[%s12658_s4 + $0x438] sm:$0xff] }
 0x422   :  { %v5034_v17 = vld [vmem:[%s12658_s4 + $0x7d8] sm:$0xff] }
 0x423   :  { %v5038_v19 = vld [vmem:[%s12658_s4 + $0x7f8] sm:$0xff] }
 0x424   :  { %6569 = vmatpush1.bf16.msra.mxu1 %v8197_v36  ;;  %v5059_v36 = vsub.s32 4, %v10341_v53  ;;  %v5026_v8 = vld [vmem:[%s12658_s4 + $0x798] sm:$0xff] }
 0x425   :  { %6570 = vmatprep.subr.bf16.mxu1 %v8190_v21  ;;  %v4981_v21 = vld [vmem:[%s12658_s4 + $0x630] sm:$0xff]  ;;  %v5030_v35 = vld [vmem:[%s12658_s4 + $0x7b8] sm:$0xff] }
 0x426   :  { %v8214_v2 = vcombine.high %v4977_v18, %v4981_v21  ;;  %v8213_v42 = vcombine.low %v4977_v18, %v4981_v21  ;;  %v5022_v18 = vld [vmem:[%s12658_s4 + $0x778] sm:$0xff]  ;;  %v8263_v21 = vcombine.low %v5026_v8, %v5030_v35 }
 0x428   :  { %6571 = vmatpush1.bf16.msra.mxu1 %v8189_v38  ;;  %v5060_v38 = vrot.slane %v12235_v44, %v5059_v36  ;;  %v5018_v36 = vld [vmem:[%s12658_s4 + $0x758] sm:$0xff] }
 0x429   :  { %6572 = vmatprep.subr.bf16.mxu1 %v8182_v39  ;;  %v4974_v39 = vld [vmem:[%s12658_s4 + $0x5f8] sm:$0xff]  ;;  %v8256_v27 = vcombine.high %v5018_v36, %v5022_v18 }
 0x42a   :  { %v8207_v29 = vcombine.low %v4970_v57, %v4974_v39 }
 0x42c   :  { %6573 = vmatpush1.bf16.msra.mxu1 %v8181_v13  ;;  %v8208_v13 = vcombine.high %v4970_v57, %v4974_v39  ;;  %v5002_v39 = vld [vmem:[%s12658_s4 + $0x6d8] sm:$0xff] }
 0x42d   :  { %6574 = vmatprep.subr.bf16.mxu1 %v8174_v46 }
 0x430   :  { %6575 = vmatpush1.bf16.msra.mxu1 %v8173_v4 }
 0x431   :  { %6576 = vmatprep.subr.bf16.mxu1 %v8166_v1 }
 0x434   :  { %6577 = vmatpush1.bf16.msra.mxu1 %v8165_v63  ;;  %v8200_v63 = vcombine.high %v4962_v48, %v4966_v24 }
 0x435   :  { %6578 = vmatprep.subr.bf16.mxu1 %v8158_v41  ;;  %v4954_v41 = vld [vmem:[%s12658_s4 + $0x558] sm:$0xff] }
 0x438   :  { %6579 = vmatpush1.bf16.msra.mxu1 %v8157_v30  ;;  %v8199_v30 = vcombine.low %v4962_v48, %v4966_v24  ;;  %v4998_v48 = vld [vmem:[%s12658_s4 + $0x6b8] sm:$0xff] }
 0x439   :  { %6580 = vmatprep.subr.bf16.mxu1 %v8150_v20  ;;  %v8192_v20 = vcombine.high %v4954_v41, %v4958_v54 }
 0x43c   :  { %6581 = vmatpush1.bf16.msra.mxu1 %v8149_v28  ;;  %v8191_v28 = vcombine.low %v4954_v41, %v4958_v54  ;;  %v5067_v54 = vsub.s32 6, %v10341_v53 }
 0x43d   :  { %6582 = vmatprep.subr.bf16.mxu1 %v8270_v62  ;;  %v8184_v62 = vcombine.high %v4946_v56, %v4950_v61 }
 0x440   :  { %6583 = vmatpush2.bf16.msra.mxu1 %v8269_v33 }
 0x441   :  { %6584 = vmatprep.subr.bf16.mxu1 %v8262_v16  ;;  %v9369_v16 = vld [vmem:[%s12660_s6 + $0x178] sm:$0xff]  }
 0x442   :  { %8382 = vmatprep.subr.bf16.mxu0 %v9369_v16  ;;  %v5044_v16 = vrot.slane %v12235_v44, %v638_v59 }
 0x444   :  { %6585 = vmatpush2.bf16.msra.mxu1 %v8261_v5  ;;  %v6396_v59 = vadd.f32 %v12180_v12, %v5044_v16 }
 0x445   :  { %6586 = vmatprep.subr.bf16.mxu1 %v8254_v45  ;;  %v8168_v45 = vcombine.high %v4930_v51, %v4934_v37 }
 0x448   :  { %6587 = vmatpush2.bf16.msra.mxu1 %v8253_v3  ;;  %v8167_v3 = vcombine.low %v4930_v51, %v4934_v37 }
 0x449   :  { %6588 = vmatprep.subr.bf16.mxu1 %v8246_v22  ;;  %v8160_v22 = vcombine.high %v4922_v31, %v4926_v9 }
 0x44c   :  { %6589 = vmatpush2.bf16.msra.mxu1 %v8245_v60  ;;  %v8159_v60 = vcombine.low %v4922_v31, %v4926_v9  ;;  %v9354_v31 = vld [vmem:[%s12660_s6 + $0xb8] sm:$0xff]   ;;  %v9355_v9 = vld [vmem:[%s12660_s6 + $0xf0] sm:$0xff]  }
 0x44d   :  { %6590 = vmatprep.subr.bf16.mxu1 %v8238_v58  ;;  %v8152_v58 = vcombine.high %v4914_v26, %v4918_v50 }
 0x450   :  { %6591 = vmatpush2.bf16.msra.mxu1 %v8237_v7  ;;  %v8151_v7 = vcombine.low %v4914_v26, %v4918_v50  ;;  %v9357_v50 = vld [vmem:[%s12660_s6 + $0xe8] sm:$0xff]  }
 0x451   :  { %6592 = vmatprep.subr.bf16.mxu1 %v8230_v25  ;;  %v8272_v25 = vcombine.high %v5034_v17, %v5038_v19 }
 0x454   :  { %6593 = vmatpush2.bf16.msra.mxu1 %v8229_v34  ;;  %v8271_v34 = vcombine.low %v5034_v17, %v5038_v19  ;;  %v9359_v19 = vld [vmem:[%s12660_s6 + $0xe0] sm:$0xff]  }
 0x455   :  { %6594 = vmatprep.subr.bf16.mxu1 %v8222_v14  ;;  %v8264_v14 = vcombine.high %v5026_v8, %v5030_v35  ;;  %v9371_v35 = vld [vmem:[%s12660_s6 + $0x170] sm:$0xff]  }
 0x458   :  { %6595 = vmatpush2.bf16.msra.mxu1 %v8221_v11  ;;  %v6559_v32 = vpop.f32.mrf.mxu0  ;;  %v5010_v11 = vld [vmem:[%s12658_s4 + $0x718] sm:$0xff] }
 0x459   :  { %6596 = vmatprep.subr.bf16.mxu1 %v8214_v2  ;;  %v12385_v46 = vadd.f32 %v6559_v32, %v5060_v38  ;;  %v5014_v2 = vld [vmem:[%s12658_s4 + $0x738] sm:$0xff]  ;;  %v8255_v38 = vcombine.low %v5018_v36, %v5022_v18  ;;  %v9372_v36 = vld [vmem:[%s12660_s6 + $0x130] sm:$0xff]   ;;  %v9373_v18 = vld [vmem:[%s12660_s6 + $0x168] sm:$0xff]  }
 0x45a   :  { %v6561_v4 = vpop.f32.mrf.mxu0  ;;  %v8248_v57 = vcombine.high %v5010_v11, %v5014_v2 }
 0x45b   :  { %v12393_v1 = vadd.f32 %v6561_v4, %v5064_v40  ;;  %v5006_v40 = vld [vmem:[%s12658_s4 + $0x6f8] sm:$0xff] }
 0x45c   :  { %6597 = vmatpush2.bf16.msra.mxu1 %v8213_v42  ;;  %v6563_v47 = vpop.f32.mrf.mxu0  ;;  %v8247_v42 = vcombine.low %v5010_v11, %v5014_v2  ;;  %v8240_v32 = vcombine.high %v5002_v39, %v5006_v40  ;;  %v8239_v24 = vcombine.low %v5002_v39, %v5006_v40  ;;  %v9374_v11 = vld [vmem:[%s12660_s6 + $0x128] sm:$0xff]   ;;  %v9375_v2 = vld [vmem:[%s12660_s6 + $0x160] sm:$0xff]   ;;  %v9377_v40 = vld [vmem:[%s12660_s6 + $0x158] sm:$0xff]  }
 0x45d   :  { %6648 = vmatprep.subr.bf16.mxu1 %v8208_v13  ;;  %v4994_v13 = vld [vmem:[%s12658_s4 + $0x698] sm:$0xff]  ;;  %v9376_v39 = vld [vmem:[%s12660_s6 + $0x120] sm:$0xff]  }
 0x45e   :  { %v6564_v23 = vpop.f32.mrf.mxu0  ;;  %v8232_v4 = vcombine.high %v4994_v13, %v4998_v48  ;;  %v4990_v47 = vld [vmem:[%s12658_s4 + $0x678] sm:$0xff] }
 0x45f   :  { %6599 = vmatmul.mubr.bf16.vlgmr.msra.gmra.mxu1 %v12118_v49  ;;  %v4978_v23 = vld [vmem:[%s12658_s4 + $0x618] sm:$0xff] }
 0x460   :  { %6649 = vmatpush1.bf16.msra.mxu1 %v8207_v29  ;;  %6680 = vmatprep.mubr.bf16.mxu1 %v12116_v55  ;;  %v4942_v55 = vld [vmem:[%s12658_s4 + $0x4f8] sm:$0xff] }
 0x461   :  { %6650 = vmatprep.subr.bf16.mxu1 %v8200_v63  ;;  %v8176_v33 = vcombine.high %v4938_v10, %v4942_v55  ;;  %v8175_v5 = vcombine.low %v4938_v10, %v4942_v55  ;;  %v4986_v29 = vld [vmem:[%s12658_s4 + $0x658] sm:$0xff]  ;;  %v8231_v63 = vcombine.low %v4994_v13, %v4998_v48  ;;  %v9379_v48 = vld [vmem:[%s12660_s6 + $0x150] sm:$0xff]  }
 0x462   :  { %v8224_v41 = vcombine.high %v4986_v29, %v4990_v47  ;;  %v8223_v56 = vcombine.low %v4986_v29, %v4990_v47  ;;  %v9378_v13 = vld [vmem:[%s12660_s6 + $0x118] sm:$0xff]   ;;  %v9380_v29 = vld [vmem:[%s12660_s6 + $0x110] sm:$0xff]   ;;  %v9381_v47 = vld [vmem:[%s12660_s6 + $0x148] sm:$0xff]  }
 0x464   :  { %6651 = vmatpush1.bf16.msra.mxu1 %v8199_v30  ;;  %v4982_v30 = vld [vmem:[%s12658_s4 + $0x638] sm:$0xff] }
 0x465   :  { %6652 = vmatprep.subr.bf16.mxu1 %v8192_v20  ;;  %v5071_v20 = vsub.s32 7, %v10341_v53  ;;  %v8216_v61 = vcombine.high %v4978_v23, %v4982_v30  ;;  %v8215_v10 = vcombine.low %v4978_v23, %v4982_v30 }
 0x468   :  { %6653 = vmatpush1.bf16.msra.mxu1 %v8191_v28  ;;  %v5068_v28 = vrot.slane %v12235_v44, %v5067_v54  ;;  %v9384_v54 = vld [vmem:[%s12660_s6 + $0x100] sm:$0xff]  }
 0x469   :  { %6654 = vmatprep.subr.bf16.mxu1 %v8184_v62  ;;  %v5072_v62 = vrot.slane %v12235_v44, %v5071_v20 }
 0x46c   :  { %6655 = vmatpush1.bf16.msra.mxu1 %v8183_v43 }
 0x46d   :  { %6656 = vmatprep.subr.bf16.mxu1 %v8176_v33  ;;  %v9353_v33 = vld [vmem:[%s12660_s6 + $0xf8] sm:$0xff]  }
 0x470   :  { %6657 = vmatpush1.bf16.msra.mxu1 %v8175_v5  ;;  %v5048_v5 = vrot.slane %v12235_v44, %v642_v0  ;;  %v9356_v44 = vld [vmem:[%s12660_s6 + $0xb0] sm:$0xff]  }
 0x471   :  { %6658 = vmatprep.subr.bf16.mxu1 %v8168_v45 }
 0x472   :  { %v6398_v53 = vadd.f32 %v12188_v6, %v5048_v5  ;;  %v9390_v5 = vld [vmem:[%s12660_s6 + $0x1a8] sm:$0xff]  }
 0x474   :  { %6659 = vmatpush1.bf16.msra.mxu1 %v8167_v3 }
 0x475   :  { %6660 = vmatprep.subr.bf16.mxu1 %v8160_v22 }
 0x478   :  { %6661 = vmatpush1.bf16.msra.mxu1 %v8159_v60 }
 0x479   :  { %6662 = vmatprep.subr.bf16.mxu1 %v8152_v58 }
 0x47c   :  { %6663 = vmatpush1.bf16.msra.mxu1 %v8151_v7 }
 0x47d   :  { %6664 = vmatprep.subr.bf16.mxu1 %v8272_v25  ;;  %v9370_v25 = vld [vmem:[%s12660_s6 + $0x138] sm:$0xff]  }
 0x480   :  { %6665 = vmatpush2.bf16.msra.mxu1 %v8271_v34  ;;  %v9360_v34 = vld [vmem:[%s12660_s6 + $0xa0] sm:$0xff]  }
 0x481   :  { %6666 = vmatprep.subr.bf16.mxu1 %v8264_v14  ;;  %v9361_v14 = vld [vmem:[%s12660_s6 + $0xd8] sm:$0xff]  }
 0x484   :  { %6667 = vmatpush2.bf16.msra.mxu1 %v8263_v21  ;;  %v9362_v21 = vld [vmem:[%s12660_s6 + $0x98] sm:$0xff]  }
 0x485   :  { %6668 = vmatprep.subr.bf16.mxu1 %v8256_v27  ;;  %v9363_v27 = vld [vmem:[%s12660_s6 + $0xd0] sm:$0xff]  }
 0x488   :  { %6669 = vmatpush2.bf16.msra.mxu1 %v8255_v38  ;;  %v9364_v38 = vld [vmem:[%s12660_s6 + $0x90] sm:$0xff]  }
 0x489   :  { %6670 = vmatprep.subr.bf16.mxu1 %v8248_v57  ;;  %v9365_v57 = vld [vmem:[%s12660_s6 + $0xc8] sm:$0xff]  }
 0x48c   :  { %6671 = vmatpush2.bf16.msra.mxu1 %v8247_v42  ;;  %v9366_v42 = vld [vmem:[%s12660_s6 + $0x88] sm:$0xff]  }
 0x48d   :  { %6672 = vmatprep.subr.bf16.mxu1 %v8240_v32  ;;  %v9367_v32 = vld [vmem:[%s12660_s6 + $0xc0] sm:$0xff]  }
 0x490   :  { %6673 = vmatpush2.bf16.msra.mxu1 %v8239_v24  ;;  %v9368_v24 = vld [vmem:[%s12660_s6 + $0x80] sm:$0xff]  }
 0x491   :  { %6674 = vmatprep.subr.bf16.mxu1 %v8232_v4  ;;  %v9385_v4 = vld [vmem:[%s12660_s6 + $0x1f8] sm:$0xff]  }
 0x494   :  { %6675 = vmatpush2.bf16.msra.mxu1 %v8231_v63  ;;  %v9382_v63 = vld [vmem:[%s12660_s6 + $0x108] sm:$0xff]  }
 0x495   :  { %6676 = vmatprep.subr.bf16.mxu1 %v8224_v41  ;;  %v9383_v41 = vld [vmem:[%s12660_s6 + $0x140] sm:$0xff]  }
 0x498   :  { %6677 = vmatpush2.bf16.msra.mxu1 %v8223_v56  ;;  %v6641_v55 = vpop.f32.mrf.mxu0 }
 0x499   :  { %6678 = vmatprep.subr.bf16.mxu1 %v8216_v61  ;;  %v12488_v43 = vadd.f32 %v6641_v55, %v5068_v28 }
 0x49a   :  { %v6643_v51 = vpop.f32.mrf.mxu0 }
 0x49b   :  { %v12496_v37 = vadd.f32 %v6643_v51, %v5072_v62  ;;  %v9387_v51 = vld [vmem:[%s12660_s6 + $0x1f0] sm:$0xff]  }
 0x49c   :  { %6679 = vmatpush2.bf16.msra.mxu1 %v8215_v10  ;;  %v6645_v45 = vpop.f32.mrf.mxu0 }
 0x49d   :  { %8360 = vmatprep.subr.bf16.mxu1 %v9353_v33  ;;  %v9386_v33 = vld [vmem:[%s12660_s6 + $0x1b8] sm:$0xff]   ;;  %v9391_v45 = vld [vmem:[%s12660_s6 + $0x1e0] sm:$0xff]  }
 0x49e   :  { %v6646_v3 = vpop.f32.mrf.mxu0 }
 0x49f   :  { %6681 = vmatmul.mubr.bf16.vlgmr.msra.gmra.mxu1 %v12118_v49  ;;  %v6436_v22 = vpop.f32.mrf.mxu1  ;;  %v9358_v49 = vld [vmem:[%s12660_s6 + $0xa8] sm:$0xff]   ;;  %v9395_v3 = vld [vmem:[%s12660_s6 + $0x1d0] sm:$0xff]  }
 0x4a0   :  { %v6437_v0 = vadd.f32 %v6436_v22, %v6396_v59  ;;  %8361 = vmatpush3.bf16.msra.mxu1 %v9354_v31  ;;  %v9392_v31 = vld [vmem:[%s12660_s6 + $0x1a0] sm:$0xff]   ;;  %v9394_v59 = vld [vmem:[%s12660_s6 + $0x198] sm:$0xff]   ;;  %v9396_v22 = vld [vmem:[%s12660_s6 + $0x190] sm:$0xff]  }
 0x4a1   :  { %v6438_v26 = vpop.f32.mrf.mxu1  ;;  %8362 = vmatprep.subr.bf16.mxu1 %v9355_v9  ;;  %v9393_v9 = vld [vmem:[%s12660_s6 + $0x1d8] sm:$0xff]  }
 0x4a2   :  { %v6439_v60 = vadd.f32 %v6438_v26, %v6398_v53  ;;  %v6689_v12 = vmax.f32 %v6437_v0, 0.0  ;;  %v9397_v53 = vld [vmem:[%s12660_s6 + $0x1c8] sm:$0xff]   ;;  %v9400_v26 = vld [vmem:[%s12660_s6 + $0x180] sm:$0xff]  }
 0x4a3   :  { %v6440_v58 = vpop.f32.mrf.mxu1  ;;  %v9398_v0 = vld [vmem:[%s12660_s6 + $0x188] sm:$0xff]  }
 0x4a4   :  { %v6690_v17 = vmax.f32 %v6439_v60, 0.0  ;;  %8363 = vmatpush3.bf16.msra.mxu1 %v9356_v44  ;;  %v6697_v8 = vpack.c.bf16 %v6689_v12, %v6689_v12  ;;  %v9399_v44 = vld [vmem:[%s12660_s6 + $0x1c0] sm:$0xff]  }
 0x4a5   :  { %v6441_v6 = vpop.f32.mrf.mxu1  ;;  %8364 = vmatprep.subr.bf16.mxu1 %v9357_v50 }
 0x4a6   :  { %v6698_v7 = vpack.c.bf16 %v6690_v17, %v6690_v17 }
 0x4a8   :  { %7256 = vmatprep.mubr.bf16.mxu0 %v6698_v7  ;;  %8365 = vmatpush3.bf16.msra.mxu1 %v9358_v49 }
 0x4a9   :  { %7257 = vmatmul.mubr.bf16.vlgmr.msra.gmra.mxu0 %v6697_v8  ;;  %8366 = vmatprep.subr.bf16.mxu1 %v9359_v19 }
 0x4aa   :  { %8383 = vmatpush3.bf16.msra.mxu0 %v9370_v25 }
 0x4ab   :  { %8384 = vmatprep.subr.bf16.mxu0 %v9371_v35 }
 0x4ac   :  { %8367 = vmatpush3.bf16.msra.mxu1 %v9360_v34 }
 0x4ad   :  { %8368 = vmatprep.subr.bf16.mxu1 %v9361_v14 }
 0x4ae   :  { %8385 = vmatpush3.bf16.msra.mxu0 %v9372_v36 }
 0x4af   :  { %8386 = vmatprep.subr.bf16.mxu0 %v9373_v18 }
 0x4b0   :  { %8369 = vmatpush3.bf16.msra.mxu1 %v9362_v21 }
 0x4b1   :  { %8370 = vmatprep.subr.bf16.mxu1 %v9363_v27 }
 0x4b2   :  { %8387 = vmatpush3.bf16.msra.mxu0 %v9374_v11 }
 0x4b3   :  { %8388 = vmatprep.subr.bf16.mxu0 %v9375_v2 }
 0x4b4   :  { %8371 = vmatpush3.bf16.msra.mxu1 %v9364_v38 }
 0x4b5   :  { %8372 = vmatprep.subr.bf16.mxu1 %v9365_v57 }
 0x4b6   :  { %8389 = vmatpush3.bf16.msra.mxu0 %v9376_v39 }
 0x4b7   :  { %8390 = vmatprep.subr.bf16.mxu0 %v9377_v40 }
 0x4b8   :  { %8373 = vmatpush3.bf16.msra.mxu1 %v9366_v42 }
 0x4b9   :  { %8374 = vmatprep.subr.bf16.mxu1 %v9367_v32 }
 0x4ba   :  { %8391 = vmatpush3.bf16.msra.mxu0 %v9378_v13 }
 0x4bb   :  { %8392 = vmatprep.subr.bf16.mxu0 %v9379_v48 }
 0x4bc   :  { %8375 = vmatpush3.bf16.msra.mxu1 %v9368_v24 }
 0x4bd   :  { %8404 = vmatprep.subr.bf16.mxu1 %v9385_v4 }
 0x4be   :  { %8393 = vmatpush3.bf16.msra.mxu0 %v9380_v29 }
 0x4bf   :  { %8394 = vmatprep.subr.bf16.mxu0 %v9381_v47 }
 0x4c2   :  { %8395 = vmatpush3.bf16.msra.mxu0 %v9382_v63 }
 0x4c3   :  { %8396 = vmatprep.subr.bf16.mxu0 %v9383_v41 }
 0x4c6   :  { %8397 = vmatpush3.bf16.msra.mxu0 %v9384_v54 }
 0x4df   :  { %v6518_v23 = vpop.f32.mrf.mxu1 }
 0x4e0   :  { %v6519_v30 = vadd.f32 %v6518_v23, %v12258_v52  ;;  %v9388_v52 = vld [vmem:[%s12660_s6 + $0x1b0] sm:$0xff]  }
 0x4e1   :  { %v6520_v20 = vpop.f32.mrf.mxu1 }
 0x4e2   :  { %v6521_v56 = vadd.f32 %v6520_v20, %v12269_v15  ;;  %v6691_v61 = vmax.f32 %v6519_v30, 0.0  ;;  %v9389_v15 = vld [vmem:[%s12660_s6 + $0x1e8] sm:$0xff]  }
 0x4e3   :  { %v6522_v28 = vpop.f32.mrf.mxu1 }
 0x4e4   :  { %v6692_v62 = vmax.f32 %v6521_v56, 0.0  ;;  %v6699_v16 = vpack.c.bf16 %v6691_v61, %v6691_v61 }
 0x4e5   :  { %v6523_v10 = vpop.f32.mrf.mxu1 }
 0x4e6   :  { %v6700_v55 = vpack.c.bf16 %v6692_v62, %v6692_v62 }
 0x4e8   :  { %7296 = vmatprep.mubr.bf16.mxu1 %v6700_v55 }
 0x4e9   :  { %7297 = vmatmul.mubr.bf16.vlgmr.msra.gmra.mxu1 %v6699_v16 }
 0x4ea   :  { %8405 = vmatpush3.bf16.msra.mxu1 %v9386_v33 }
 0x4eb   :  { %8406 = vmatprep.subr.bf16.mxu1 %v9387_v51 }
 0x4ee   :  { %8407 = vmatpush3.bf16.msra.mxu1 %v9388_v52 }
 0x4ef   :  { %8408 = vmatprep.subr.bf16.mxu1 %v9389_v15 }
 0x4f2   :  { %8409 = vmatpush3.bf16.msra.mxu1 %v9390_v5 }
 0x4f3   :  { %8410 = vmatprep.subr.bf16.mxu1 %v9391_v45 }
 0x4f6   :  { %8411 = vmatpush3.bf16.msra.mxu1 %v9392_v31 }
 0x4f7   :  { %8412 = vmatprep.subr.bf16.mxu1 %v9393_v9 }
 0x4fa   :  { %8413 = vmatpush3.bf16.msra.mxu1 %v9394_v59 }
 0x4fb   :  { %8414 = vmatprep.subr.bf16.mxu1 %v9395_v3 }
 0x4fe   :  { %8415 = vmatpush3.bf16.msra.mxu1 %v9396_v22 }
 0x4ff   :  { %8416 = vmatprep.subr.bf16.mxu1 %v9397_v53 }
 0x502   :  { %8417 = vmatpush3.bf16.msra.mxu1 %v9398_v0 }
 0x503   :  { %8418 = vmatprep.subr.bf16.mxu1 %v9399_v44 }
 0x506   :  { %8419 = vmatpush3.bf16.msra.mxu1 %v9400_v26 }
 0x51f   :  { %v6600_v50 = vpop.f32.mrf.mxu1 }
 0x520   :  { %v6601_v60 = vadd.f32 %v6600_v50, %v12385_v46 }
 0x521   :  { %v6602_v12 = vpop.f32.mrf.mxu1 }
 0x522   :  { %v6603_v58 = vadd.f32 %v6602_v12, %v12393_v1  ;;  %v6693_v17 = vmax.f32 %v6601_v60, 0.0 }
 0x523   :  { %v6604_v49 = vpop.f32.mrf.mxu1 }
 0x524   :  { %v6694_v6 = vmax.f32 %v6603_v58, 0.0  ;;  %v6701_v25 = vpack.c.bf16 %v6693_v17, %v6693_v17 }
 0x525   :  { %v6605_v19 = vpop.f32.mrf.mxu1 }
 0x526   :  { %v6702_v7 = vpack.c.bf16 %v6694_v6, %v6694_v6 }
 0x528   :  { %7336 = vmatprep.mubr.bf16.mxu0 %v6702_v7 }
 0x529   :  { %7337 = vmatmul.mubr.bf16.vlgmr.msra.gmra.mxu0 %v6701_v25 }
 0x55f   :  { %v6682_v8 = vpop.f32.mrf.mxu1 }
 0x560   :  { %v6683_v35 = vadd.f32 %v6682_v8, %v12488_v43  ;;  %v8273_v43 = vld [vmem:[%s12661_s7] ss:$0 sm:$0xff]  ;;  %s9420_s7 = scalar_lea.vmem %s7392_s24, 32 }
 0x561   :  { %v6684_v34 = vpop.f32.mrf.mxu1  ;;  %p9421_p0 = scmp.ne.s32.totalorder %s7392_s24, %s9420_s7  ;;  %p9426_p2 = scmp.lt.s32.totalorder %s9420_s7, %s9420_s7 }
 0x562   :  { %v6685_v14 = vadd.f32 %v6684_v34, %v12496_v37  ;;  %v6695_v36 = vmax.f32 %v6683_v35, 0.0 }
 0x563   :  { %v6686_v18 = vpop.f32.mrf.mxu1  ;;  %p9427_p3 = por %p9426_p2, %p9425_p1 }
 0x564   :  { %v6696_v46 = vmax.f32 %v6685_v14, 0.0  ;;  %v6703_v1 = vpack.c.bf16 %v6695_v36, %v6695_v36 }
 0x565   :  { %v6687_v21 = vpop.f32.mrf.mxu1  ;;  %p9428_p4 = pnand %p9427_p3, %p9421_p0 }
 0x566   :  { %v6704_v27 = vpack.c.bf16 %v6696_v46, %v6696_v46 }
 0x568   :  { %7376 = vmatprep.mubr.bf16.mxu1 %v6704_v27 }
 0x569   :  { %7377 = vmatmul.mubr.bf16.vlgmr.msra.gmra.mxu1 %v6703_v1  ;;  %v8354_v11 = vpop.f32.mrf.mxu0 }
 0x56b   :  { %v8355_v2 = vpop.f32.mrf.mxu0 }
 0x56c   :  { %v8356_v38 = vadd.f32 %v8355_v2, %v8354_v11 }
 0x56d   :  { %v8357_v57 = vpop.f32.mrf.mxu0 }
 0x56e   :  { %v7259_v37 = vadd.f32 %v8356_v38, %v8273_v43 }
 0x56f   :  { %v8358_v39 = vpop.f32.mrf.mxu0 }
 0x5a9   :  { %v8376_v40 = vpop.f32.mrf.mxu1 }
 0x5ab   :  { %v8377_v42 = vpop.f32.mrf.mxu1 }
 0x5ac   :  { %v8378_v32 = vadd.f32 %v8377_v42, %v8376_v40 }
 0x5ad   :  { %v8379_v13 = vpop.f32.mrf.mxu1 }
 0x5ae   :  { %v7299_v48 = vadd.f32 %v8378_v32, %v7259_v37 }
 0x5af   :  { %v8380_v24 = vpop.f32.mrf.mxu1 }
 0x5e9   :  { %v8398_v4 = vpop.f32.mrf.mxu0 }
 0x5eb   :  { %v8399_v29 = vpop.f32.mrf.mxu0 }
 0x5ec   :  { %v8400_v47 = vadd.f32 %v8399_v29, %v8398_v4 }
 0x5ed   :  { %v8401_v63 = vpop.f32.mrf.mxu0 }
 0x5ee   :  { %v7339_v41 = vadd.f32 %v8400_v47, %v7299_v48 }
 0x5ef   :  { %v8402_v54 = vpop.f32.mrf.mxu0 }
 0x629   :  { %v8420_v23 = vpop.f32.mrf.mxu1 }
 0x62b   :  { %v8421_v30 = vpop.f32.mrf.mxu1 }
 0x62c   :  { %v8422_v20 = vadd.f32 %v8421_v30, %v8420_v23 }
 0x62d   :  { %v8423_v56 = vpop.f32.mrf.mxu1 }
 0x62e   :  { %v7379_v61 = vadd.f32 %v8422_v20, %v7339_v41 }
 0x62f   :  { %v8424_v28 = vpop.f32.mrf.mxu1 }
 0x630   :  { %7384 = vst [vmem:[#allocation2] sm:$0x3] %v7379_v61 }
 0x631   :  { %9431 = shalt.err (!%p9428_p4)
}
 0x632   :  { %7394 = dma.vmem_to_hbm [thread:$0]  %s7392_s24, 32, %s12662_s8, [#allocation3]  }
 0x633   :  { %9440 = dma.done.wait [#allocation3], 32  }
 0x634   :  { %9441 = vsyncadd [#allocation3], 4294967264 }
 0x635   :  { %7398 = vsyncpa [#allocation3], 1 }

</bundles_post_ra>
